<compile_context>
chip_gen: v7x
topology: tpu7x:2x2x1
jax: 0.10.0
libtpu: 0.0.40
codegen_flags: <defaults>
</compile_context>

<pallas_src>
import functools

import jax
import jax.numpy as jnp
from jax.experimental import pallas as pl
from jax.experimental.pallas import tpu as pltpu


# ---------------------------------------------------------------------------
# Pallas kernel 1: fused  conv-matmul + bias + BatchNorm + activation
# ---------------------------------------------------------------------------
def _fused_conv_kernel(w_ref, p_ref, b_ref, g_ref, beta_ref, o_ref, *, act, use_bn):
    """out[p] = act(bn(W[p] @ patches[p] + bias)) for each sub-pixel phase p.

    w_ref:    (P, Cout, K)   weight matrices (one per phase; P=1 for Conv2d)
    p_ref:    (P, K, M)      channel-major im2col patches, M on lanes
    b_ref:    (Cout, 1)      conv bias
    g_ref:    (Cout, 1)      BN gamma   (ignored when use_bn=False)
    beta_ref: (Cout, 1)      BN beta
    o_ref:    (P, Cout, M)
    """
    P = w_ref.shape[0]
    M = p_ref.shape[-1]
    bias = b_ref[...]

    ys = []
    for ph in range(P):
        y = jnp.dot(w_ref[ph], p_ref[ph], preferred_element_type=jnp.float32)
        ys.append(y + bias)

    if use_bn:
        # Training-mode BatchNorm2d: biased batch stats over (N, H, W) == over
        # all phases and lanes here.  eps matches PyTorch default (1e-5).
        total = float(P * M)
        mean = sum(jnp.sum(y, axis=1, keepdims=True) for y in ys) / total
        var = sum(jnp.sum(jnp.square(y - mean), axis=1, keepdims=True)
                  for y in ys) / total
        scale = g_ref[...] * jax.lax.rsqrt(var + 1e-5)
        shift = beta_ref[...] - mean * scale

    for ph in range(P):
        y = ys[ph]
        if use_bn:
            y = y * scale + shift
        if act == "leaky_relu":
            y = jnp.where(y >= 0, y, 0.1 * y)       # module uses LeakyReLU(0.1)
        elif act == "relu":
            y = jnp.maximum(y, 0.0)
        elif act == "tanh":
            y = jnp.tanh(y)
        o_ref[ph] = y


def fused_conv(w_mats, patches, bias, gamma, beta, *, act, use_bn):
    """w_mats: (P, Cout, K), patches: (P, K, M) -> (P, Cout, M) float32."""
    P, Cout, K = w_mats.shape
    M = patches.shape[-1]

    # M tiling: only for layers without BatchNorm (BN needs global statistics,
    # computed in-kernel over a single block).  Expose >=2 lane-dense blocks
    # so the grid axis can be megacore-sharded on v7x.
    tm = M
    if not use_bn:
        for cand in (1024, 512, 256, 128):
            if M % cand == 0 and M // cand >= 2:
                tm = cand
                break

    kernel = functools.partial(_fused_conv_kernel, act=act, use_bn=use_bn)
    return pl.pallas_call(
        kernel,
        out_shape=jax.ShapeDtypeStruct((P, Cout, M), jnp.float32),
        grid_spec=pltpu.PrefetchScalarGridSpec(
            num_scalar_prefetch=0,
            grid=(M // tm,),
            in_specs=[
                pl.BlockSpec((P, Cout, K), lambda i: (0, 0, 0)),
                pl.BlockSpec((P, K, tm), lambda i: (0, 0, i)),
                pl.BlockSpec((Cout, 1), lambda i: (0, 0)),
                pl.BlockSpec((Cout, 1), lambda i: (0, 0)),
                pl.BlockSpec((Cout, 1), lambda i: (0, 0)),
            ],
            out_specs=pl.BlockSpec((P, Cout, tm), lambda i: (0, 0, i)),
        ),
        compiler_params=pltpu.CompilerParams(
            dimension_semantics=("parallel",)),
    )(w_mats.astype(jnp.float32), patches.astype(jnp.float32),
      bias.reshape(Cout, 1).astype(jnp.float32),
      gamma.reshape(Cout, 1).astype(jnp.float32),
      beta.reshape(Cout, 1).astype(jnp.float32))


# ---------------------------------------------------------------------------
# Pallas kernel 2: merged block5 (conv -> 1x1 latent) + block6 (tconv -> 4x4)
# ---------------------------------------------------------------------------
def _latent_kernel(p5_ref, w5_ref, b5_ref, w6_ref, b6_ref, y_ref, h6_ref):
    # block5: y(latent, N)      = W5(latent, K5) @ patches5(K5, N) + b5
    # block6: h6(Cout*k*k, N)   = W6m(Cout*k*k, latent) @ y + b6(repeated)
    y = jnp.dot(w5_ref[...], p5_ref[...],
                preferred_element_type=jnp.float32) + b5_ref[...]
    y_ref[...] = y
    h6_ref[...] = jnp.dot(w6_ref[...], y,
                          preferred_element_type=jnp.float32) + b6_ref[...]


def latent_block(h, w5, b5, w6, b6):
    """h: (C4, N, 4, 4) channel-major.  Returns (y(latent,N), h6(C6,N,4,4))."""
    C4, N, _, _ = h.shape
    latent, _, k, _ = w5.shape              # Conv2d weight (Cout, Cin, k, k)
    C6 = w6.shape[1]                        # ConvTranspose2d weight (Cin, Cout, k, k)
    K5, C6K = C4 * k * k, C6 * k * k

    patches5, _, _ = _im2col_cm(h, k, stride=1, padding=0)          # (K5, N)
    w5m = w5.reshape(latent, K5)
    w6m = jnp.transpose(w6, (1, 2, 3, 0)).reshape(C6K, latent)      # [(co,kh,kw), ci]
    b6r = jnp.repeat(b6, k * k)                                     # bias per (co,kh,kw)

    y, h6 = pl.pallas_call(
        _latent_kernel,
        out_shape=(jax.ShapeDtypeStruct((latent, N), jnp.float32),
                   jax.ShapeDtypeStruct((C6K, N), jnp.float32)),
        grid_spec=pltpu.PrefetchScalarGridSpec(
            num_scalar_prefetch=0,
            grid=(1,),
            in_specs=[
                pl.BlockSpec((K5, N), lambda i: (0, 0)),
                pl.BlockSpec((latent, K5), lambda i: (0, 0)),
                pl.BlockSpec((latent, 1), lambda i: (0, 0)),
                pl.BlockSpec((C6K, latent), lambda i: (0, 0)),
                pl.BlockSpec((C6K, 1), lambda i: (0, 0)),
            ],
            out_specs=(pl.BlockSpec((latent, N), lambda i: (0, 0)),
                       pl.BlockSpec((C6K, N), lambda i: (0, 0))),
        ),
    )(patches5.astype(jnp.float32), w5m.astype(jnp.float32),
      b5.reshape(latent, 1).astype(jnp.float32),
      w6m.astype(jnp.float32), b6r.reshape(C6K, 1).astype(jnp.float32))

    h6 = h6.reshape(C6, k, k, N).transpose(0, 3, 1, 2)              # (C6, N, k, k)
    return y, h6


# ---------------------------------------------------------------------------
# XLA glue: channel-major im2col and layer wrappers
# ---------------------------------------------------------------------------
def _im2col_cm(x, k, stride, padding):
    """x: (Cin, N, H, W) channel-major -> patches (Cin*k*k, N*Ho*Wo)."""
    Cin, N, H, W = x.shape
    xp = jnp.pad(x, ((0, 0), (0, 0), (padding, padding), (padding, padding)))
    Ho = (H + 2 * padding - k) // stride + 1
    Wo = (W + 2 * padding - k) // stride + 1
    taps = []
    for kh in range(k):
        for kw in range(k):
            taps.append(xp[:, :, kh:kh + stride * Ho:stride,
                           kw:kw + stride * Wo:stride])             # (Cin,N,Ho,Wo)
    p = jnp.stack(taps, axis=1)                                     # (Cin,k*k,N,Ho,Wo)
    return p.reshape(Cin * k * k, N * Ho * Wo), Ho, Wo


def conv2d_block(h, w, b, gamma, beta, stride, padding, act, use_bn):
    """Conv2d + (BN) + act on channel-major activations.  w: (Cout,Cin,k,k)."""
    Cin, N, _, _ = h.shape
    Cout, _, k, _ = w.shape
    patches, Ho, Wo = _im2col_cm(h, k, stride, padding)
    wm = w.reshape(Cout, Cin * k * k)[None]                         # (1, Cout, K)
    if gamma is None:
        gamma = jnp.ones((Cout,), jnp.float32)
        beta = jnp.zeros((Cout,), jnp.float32)
    out = fused_conv(wm, patches[None], b, gamma, beta, act=act, use_bn=use_bn)
    return out.reshape(Cout, N, Ho, Wo)


def conv_transpose2d_block(h, w, b, gamma, beta, act, use_bn):
    """ConvTranspose2d(k=4, stride=2, pad=1) + (BN) + act via the 4-phase
    (sub-pixel) decomposition: 4 stride-1 2x2 convs, no inserted zeros.
    h: (Cin, N, Hi, Wi);  w: (Cin, Cout, k, k) (PyTorch layout)."""
    Cin, N, Hi, Wi = h.shape
    _, Cout, k, _ = w.shape
    assert k == 4
    hp = jnp.pad(h, ((0, 0), (0, 0), (1, 1), (1, 1)))

    w_mats, patch_mats = [], []
    for rh in range(2):
        for rw in range(2):
            taps_w, taps_p = [], []
            for dh in range(2):
                for dw in range(2):
                    kh = (k - 1) - 2 * dh - rh
                    kw = (k - 1) - 2 * dw - rw
                    taps_w.append(w[:, :, kh, kw])                  # (Cin, Cout)
                    taps_p.append(hp[:, :, rh + dh:rh + dh + Hi,
                                     rw + dw:rw + dw + Wi])         # (Cin,N,Hi,Wi)
            w_mats.append(jnp.stack(taps_w, axis=1)
                          .transpose(2, 0, 1).reshape(Cout, Cin * 4))
            patch_mats.append(jnp.stack(taps_p, axis=1)
                              .reshape(Cin * 4, N * Hi * Wi))
    w_mats = jnp.stack(w_mats)                                      # (4, Cout, Cin*4)
    patch_mats = jnp.stack(patch_mats)                              # (4, Cin*4, M)

    if gamma is None:
        gamma = jnp.ones((Cout,), jnp.float32)
        beta = jnp.zeros((Cout,), jnp.float32)
    out = fused_conv(w_mats, patch_mats, b, gamma, beta, act=act, use_bn=use_bn)

    # interleave phases: final[co, n, 2a+rh, 2b+rw] = out[rh*2+rw][co, n, a, b]
    out = out.reshape(2, 2, Cout, N, Hi, Wi)
    out = out.transpose(2, 3, 4, 0, 5, 1).reshape(Cout, N, 2 * Hi, 2 * Wi)
    return out


# ---------------------------------------------------------------------------
# Parameters (deterministic synthetic init, PyTorch weight layouts)
# ---------------------------------------------------------------------------
def init_params(key, latent_dim=16, dim_color=3, dim_f=8, k=4):
    keys = iter(jax.random.split(key, 64))

    def conv(cout, cin):
        return (0.05 * jax.random.normal(next(keys), (cout, cin, k, k), jnp.float32),
                0.05 * jax.random.normal(next(keys), (cout,), jnp.float32))

    def tconv(cin, cout):
        return (0.05 * jax.random.normal(next(keys), (cin, cout, k, k), jnp.float32),
                0.05 * jax.random.normal(next(keys), (cout,), jnp.float32))

    def bn(c):
        return (1.0 + 0.05 * jax.random.normal(next(keys), (c,), jnp.float32),
                0.05 * jax.random.normal(next(keys), (c,), jnp.float32))

    p = {}
    p["c1_w"], p["c1_b"] = conv(dim_f, dim_color)
    p["c2_w"], p["c2_b"] = conv(dim_f * 2, dim_f)
    p["bn2_g"], p["bn2_b"] = bn(dim_f * 2)
    p["c3_w"], p["c3_b"] = conv(dim_f * 4, dim_f * 2)
    p["bn3_g"], p["bn3_b"] = bn(dim_f * 4)
    p["c4_w"], p["c4_b"] = conv(dim_f * 8, dim_f * 4)
    p["bn4_g"], p["bn4_b"] = bn(dim_f * 8)
    p["c5_w"], p["c5_b"] = conv(latent_dim, dim_f * 8)

    p["t6_w"], p["t6_b"] = tconv(latent_dim, dim_f * 8)
    p["t7_w"], p["t7_b"] = tconv(dim_f * 8, dim_f * 4)
    p["bn7_g"], p["bn7_b"] = bn(dim_f * 4)
    p["t8_w"], p["t8_b"] = tconv(dim_f * 4, dim_f * 2)
    p["bn8_g"], p["bn8_b"] = bn(dim_f * 2)
    p["t9_w"], p["t9_b"] = tconv(dim_f * 2, dim_f)
    p["bn9_g"], p["bn9_b"] = bn(dim_f)
    p["t10_w"], p["t10_b"] = tconv(dim_f, dim_color)
    return p


# ---------------------------------------------------------------------------
# Forward pass:  returns (z, y) like the PyTorch module (both NCHW)
# ---------------------------------------------------------------------------
def cnn_autoencoder_forward(params, x_nchw):
    N = x_nchw.shape[0]
    h = jnp.transpose(x_nchw, (1, 0, 2, 3)).astype(jnp.float32)     # (C, N, H, W)

    # ---- encoder: block1, mid_block[2,3,4] ----
    h = conv2d_block(h, params["c1_w"], params["c1_b"], None, None,
                     2, 1, "leaky_relu", False)
    h = conv2d_block(h, params["c2_w"], params["c2_b"], params["bn2_g"],
                     params["bn2_b"], 2, 1, "leaky_relu", True)
    h = conv2d_block(h, params["c3_w"], params["c3_b"], params["bn3_g"],
                     params["bn3_b"], 2, 1, "leaky_relu", True)
    h = conv2d_block(h, params["c4_w"], params["c4_b"], params["bn4_g"],
                     params["bn4_b"], 2, 1, "leaky_relu", True)

    # ---- block5 (latent) + block6 (first decoder layer), one pallas_call ----
    y2d, h = latent_block(h, params["c5_w"], params["c5_b"],
                          params["t6_w"], params["t6_b"])

    # ---- decoder: reverse_mid_block[7,8,9], block10 ----
    h = conv_transpose2d_block(h, params["t7_w"], params["t7_b"],
                               params["bn7_g"], params["bn7_b"], "relu", True)
    h = conv_transpose2d_block(h, params["t8_w"], params["t8_b"],
                               params["bn8_g"], params["bn8_b"], "relu", True)
    h = conv_transpose2d_block(h, params["t9_w"], params["t9_b"],
                               params["bn9_g"], params["bn9_b"], "relu", True)
    h = conv_transpose2d_block(h, params["t10_w"], params["t10_b"],
                               None, None, "tanh", False)

    z = jnp.transpose(h, (1, 0, 2, 3))                              # NCHW
    y = jnp.transpose(y2d, (1, 0)).reshape(N, -1, 1, 1)             # (N, latent, 1, 1)
    return z, y


if __name__ == "__main__":
    key = jax.random.PRNGKey(0)
    k_param, k_x = jax.random.split(key)

    LATENT, DIM_COLOR, DIM_F, IMG = 16, 3, 8, 64
    params = init_params(k_param, latent_dim=LATENT, dim_color=DIM_COLOR, dim_f=DIM_F)
    x = jax.random.normal(k_x, (2, DIM_COLOR, IMG, IMG), jnp.float32)

    fwd = jax.jit(cnn_autoencoder_forward)
    z, y = fwd(params, x)
    jax.block_until_ready((z, y))

    assert z.shape == (2, DIM_COLOR, IMG, IMG), z.shape
    assert y.shape == (2, LATENT, 1, 1), y.shape
    assert bool(jnp.all(jnp.isfinite(z))) and bool(jnp.all(jnp.isfinite(y)))
    print("KERNEL_OK")
</pallas_src>

<mosaic_0001>
module attributes {stable_mosaic.version = 11 : i64} {
  func.func @_fused_conv_kernel(%arg0: i32, %arg1: memref<1x8x48xf32, #tpu.memory_space<vmem>>, %arg2: memref<1x48x1024xf32, #tpu.memory_space<vmem>>, %arg3: memref<8x1xf32, #tpu.memory_space<vmem>>, %arg4: memref<8x1xf32, #tpu.memory_space<vmem>>, %arg5: memref<8x1xf32, #tpu.memory_space<vmem>>, %arg6: memref<1x8x1024xf32, #tpu.memory_space<vmem>>) attributes {dimension_semantics = [#tpu.dimension_semantics<parallel>], iteration_bounds = array<i64: 2>, scalar_prefetch = 0 : i64, scratch_operands = 0 : i64, tpu.core_type = #tpu.core_type<tc>, window_params = [{pipeline_mode = #tpu.pipeline_mode<synchronous>, transform_indices = @transform_0, window_bounds = array<i64: 1, 8, 48>}, {transform_indices = @transform_1, window_bounds = array<i64: 1, 48, 1024>}, {pipeline_mode = #tpu.pipeline_mode<synchronous>, transform_indices = @transform_2, window_bounds = array<i64: 8, 1>}, {pipeline_mode = #tpu.pipeline_mode<synchronous>, transform_indices = @transform_3, window_bounds = array<i64: 8, 1>}, {pipeline_mode = #tpu.pipeline_mode<synchronous>, transform_indices = @transform_4, window_bounds = array<i64: 8, 1>}, {transform_indices = @transform_5, window_bounds = array<i64: 1, 8, 1024>}]} {
    %c0 = arith.constant 0 : index
    %c0_0 = arith.constant 0 : index
    %0 = vector.load %arg3[%c0, %c0_0] : memref<8x1xf32, #tpu.memory_space<vmem>>, vector<8x1xf32>
    %c0_1 = arith.constant 0 : index
    %c0_2 = arith.constant 0 : index
    %c0_3 = arith.constant 0 : index
    %1 = vector.load %arg1[%c0_1, %c0_2, %c0_3] : memref<1x8x48xf32, #tpu.memory_space<vmem>>, vector<1x8x48xf32>
    %2 = vector.shape_cast %1 : vector<1x8x48xf32> to vector<8x48xf32>
    %c0_4 = arith.constant 0 : index
    %c0_5 = arith.constant 0 : index
    %c0_6 = arith.constant 0 : index
    %3 = vector.load %arg2[%c0_4, %c0_5, %c0_6] : memref<1x48x1024xf32, #tpu.memory_space<vmem>>, vector<1x48x1024xf32>
    %4 = vector.shape_cast %3 : vector<1x48x1024xf32> to vector<48x1024xf32>
    %cst = arith.constant dense<0.000000e+00> : vector<8x1024xf32>
    %5 = tpu.matmul %2, %4, %cst {dimension_numbers = #tpu.dot_dimension_numbers<[1], [0], [0], [1], [0, 0, 1, 1], [], []>} : vector<8x48xf32>, vector<48x1024xf32>, vector<8x1024xf32> -> vector<8x1024xf32>
    %6 = vector.broadcast %0 : vector<8x1xf32> to vector<8x1024xf32>
    %7 = arith.addf %5, %6 : vector<8x1024xf32>
    %cst_7 = arith.constant 0.000000e+00 : f32
    %8 = vector.broadcast %cst_7 : f32 to vector<8x1024xf32>
    %9 = arith.cmpf oge, %7, %8 : vector<8x1024xf32>
    %cst_8 = arith.constant 1.000000e-01 : f32
    %10 = vector.broadcast %cst_8 : f32 to vector<8x1024xf32>
    %11 = arith.mulf %10, %7 : vector<8x1024xf32>
    %12 = arith.select %9, %7, %11 : vector<8x1024xi1>, vector<8x1024xf32>
    %c0_9 = arith.constant 0 : index
    %c0_10 = arith.constant 0 : index
    %c0_11 = arith.constant 0 : index
    %13 = vector.load %arg6[%c0_9, %c0_10, %c0_11] : memref<1x8x1024xf32, #tpu.memory_space<vmem>>, vector<1x8x1024xf32>
    %14 = vector.shape_cast %13 : vector<1x8x1024xf32> to vector<8x1024xf32>
    %15 = vector.shape_cast %12 : vector<8x1024xf32> to vector<1x8x1024xf32>
    tpu.vector_store %arg6[%c0_9, %c0_10, %c0_11], %15 {strides = array<i32>} : memref<1x8x1024xf32, #tpu.memory_space<vmem>>, vector<1x8x1024xf32>,
    return
  }
  func.func @transform_0(%arg0: i32) -> (i32, i32, i32) {
    %c0_i32 = arith.constant 0 : i32
    %c0_i32_0 = arith.constant 0 : i32
    %c0_i32_1 = arith.constant 0 : i32
    %c0_i32_2 = arith.constant 0 : i32
    return %c0_i32, %c0_i32_0, %c0_i32_1 : i32, i32, i32
  }
  func.func @transform_1(%arg0: i32) -> (i32, i32, i32) {
    %c0_i32 = arith.constant 0 : i32
    %c0_i32_0 = arith.constant 0 : i32
    %c0_i32_1 = arith.constant 0 : i32
    return %c0_i32, %c0_i32_0, %arg0 : i32, i32, i32
  }
  func.func @transform_2(%arg0: i32) -> (i32, i32) {
    %c0_i32 = arith.constant 0 : i32
    %c0_i32_0 = arith.constant 0 : i32
    %c0_i32_1 = arith.constant 0 : i32
    return %c0_i32, %c0_i32_0 : i32, i32
  }
  func.func @transform_3(%arg0: i32) -> (i32, i32) {
    %c0_i32 = arith.constant 0 : i32
    %c0_i32_0 = arith.constant 0 : i32
    %c0_i32_1 = arith.constant 0 : i32
    return %c0_i32, %c0_i32_0 : i32, i32
  }
  func.func @transform_4(%arg0: i32) -> (i32, i32) {
    %c0_i32 = arith.constant 0 : i32
    %c0_i32_0 = arith.constant 0 : i32
    %c0_i32_1 = arith.constant 0 : i32
    return %c0_i32, %c0_i32_0 : i32, i32
  }
  func.func @transform_5(%arg0: i32) -> (i32, i32, i32) {
    %c0_i32 = arith.constant 0 : i32
    %c0_i32_0 = arith.constant 0 : i32
    %c0_i32_1 = arith.constant 0 : i32
    return %c0_i32, %c0_i32_0, %arg0 : i32, i32, i32
  }
}

module attributes {stable_mosaic.version = 11 : i64} {
  func.func @_fused_conv_kernel(%arg0: i32, %arg1: memref<1x16x128xf32, #tpu.memory_space<vmem>>, %arg2: memref<1x128x512xf32, #tpu.memory_space<vmem>>, %arg3: memref<16x1xf32, #tpu.memory_space<vmem>>, %arg4: memref<16x1xf32, #tpu.memory_space<vmem>>, %arg5: memref<16x1xf32, #tpu.memory_space<vmem>>, %arg6: memref<1x16x512xf32, #tpu.memory_space<vmem>>) attributes {dimension_semantics = [#tpu.dimension_semantics<parallel>], iteration_bounds = array<i64: 1>, scalar_prefetch = 0 : i64, scratch_operands = 0 : i64, tpu.core_type = #tpu.core_type<tc>, window_params = [{pipeline_mode = #tpu.pipeline_mode<synchronous>, transform_indices = @transform_0, window_bounds = array<i64: 1, 16, 128>}, {transform_indices = @transform_1, window_bounds = array<i64: 1, 128, 512>}, {pipeline_mode = #tpu.pipeline_mode<synchronous>, transform_indices = @transform_2, window_bounds = array<i64: 16, 1>}, {pipeline_mode = #tpu.pipeline_mode<synchronous>, transform_indices = @transform_3, window_bounds = array<i64: 16, 1>}, {pipeline_mode = #tpu.pipeline_mode<synchronous>, transform_indices = @transform_4, window_bounds = array<i64: 16, 1>}, {transform_indices = @transform_5, window_bounds = array<i64: 1, 16, 512>}]} {
    %c0 = arith.constant 0 : index
    %c0_0 = arith.constant 0 : index
    %0 = vector.load %arg3[%c0, %c0_0] : memref<16x1xf32, #tpu.memory_space<vmem>>, vector<16x1xf32>
    %c0_1 = arith.constant 0 : index
    %c0_2 = arith.constant 0 : index
    %c0_3 = arith.constant 0 : index
    %1 = vector.load %arg1[%c0_1, %c0_2, %c0_3] : memref<1x16x128xf32, #tpu.memory_space<vmem>>, vector<1x16x128xf32>
    %2 = vector.shape_cast %1 : vector<1x16x128xf32> to vector<16x128xf32>
    %c0_4 = arith.constant 0 : index
    %c0_5 = arith.constant 0 : index
    %c0_6 = arith.constant 0 : index
    %3 = vector.load %arg2[%c0_4, %c0_5, %c0_6] : memref<1x128x512xf32, #tpu.memory_space<vmem>>, vector<1x128x512xf32>
    %4 = vector.shape_cast %3 : vector<1x128x512xf32> to vector<128x512xf32>
    %cst = arith.constant dense<0.000000e+00> : vector<16x512xf32>
    %5 = tpu.matmul %2, %4, %cst {dimension_numbers = #tpu.dot_dimension_numbers<[1], [0], [0], [1], [0, 0, 1, 1], [], []>} : vector<16x128xf32>, vector<128x512xf32>, vector<16x512xf32> -> vector<16x512xf32>
    %6 = vector.broadcast %0 : vector<16x1xf32> to vector<16x512xf32>
    %7 = arith.addf %5, %6 : vector<16x512xf32>
    %cst_7 = arith.constant dense<0.000000e+00> : vector<16xf32>
    %8 = vector.multi_reduction <add>, %7, %cst_7 [1] : vector<16x512xf32> to vector<16xf32>
    %9 = vector.shape_cast %8 : vector<16xf32> to vector<16x1xf32>
    %cst_8 = arith.constant 0.000000e+00 : f32
    %10 = vector.broadcast %cst_8 : f32 to vector<16x1xf32>
    %11 = arith.addf %10, %9 : vector<16x1xf32>
    %cst_9 = arith.constant 5.120000e+02 : f32
    %12 = vector.broadcast %cst_9 : f32 to vector<16x1xf32>
    %13 = arith.divf %11, %12 : vector<16x1xf32>
    %14 = vector.broadcast %13 : vector<16x1xf32> to vector<16x512xf32>
    %15 = arith.subf %7, %14 : vector<16x512xf32>
    %16 = arith.mulf %15, %15 : vector<16x512xf32>
    %cst_10 = arith.constant dense<0.000000e+00> : vector<16xf32>
    %17 = vector.multi_reduction <add>, %16, %cst_10 [1] : vector<16x512xf32> to vector<16xf32>
    %18 = vector.shape_cast %17 : vector<16xf32> to vector<16x1xf32>
    %cst_11 = arith.constant 0.000000e+00 : f32
    %19 = vector.broadcast %cst_11 : f32 to vector<16x1xf32>
    %20 = arith.addf %19, %18 : vector<16x1xf32>
    %cst_12 = arith.constant 5.120000e+02 : f32
    %21 = vector.broadcast %cst_12 : f32 to vector<16x1xf32>
    %22 = arith.divf %20, %21 : vector<16x1xf32>
    %c0_13 = arith.constant 0 : index
    %c0_14 = arith.constant 0 : index
    %23 = vector.load %arg4[%c0_13, %c0_14] : memref<16x1xf32, #tpu.memory_space<vmem>>, vector<16x1xf32>
    %cst_15 = arith.constant 9.99999974E-6 : f32
    %24 = vector.broadcast %cst_15 : f32 to vector<16x1xf32>
    %25 = arith.addf %22, %24 : vector<16x1xf32>
    %26 = math.rsqrt %25 : vector<16x1xf32>
    %27 = arith.mulf %23, %26 : vector<16x1xf32>
    %c0_16 = arith.constant 0 : index
    %c0_17 = arith.constant 0 : index
    %28 = vector.load %arg5[%c0_16, %c0_17] : memref<16x1xf32, #tpu.memory_space<vmem>>, vector<16x1xf32>
    %29 = arith.mulf %13, %27 : vector<16x1xf32>
    %30 = arith.subf %28, %29 : vector<16x1xf32>
    %31 = vector.broadcast %27 : vector<16x1xf32> to vector<16x512xf32>
    %32 = arith.mulf %7, %31 : vector<16x512xf32>
    %33 = vector.broadcast %30 : vector<16x1xf32> to vector<16x512xf32>
    %34 = arith.addf %32, %33 : vector<16x512xf32>
    %cst_18 = arith.constant 0.000000e+00 : f32
    %35 = vector.broadcast %cst_18 : f32 to vector<16x512xf32>
    %36 = arith.cmpf oge, %34, %35 : vector<16x512xf32>
    %cst_19 = arith.constant 1.000000e-01 : f32
    %37 = vector.broadcast %cst_19 : f32 to vector<16x512xf32>
    %38 = arith.mulf %37, %34 : vector<16x512xf32>
    %39 = arith.select %36, %34, %38 : vector<16x512xi1>, vector<16x512xf32>
    %c0_20 = arith.constant 0 : index
    %c0_21 = arith.constant 0 : index
    %c0_22 = arith.constant 0 : index
    %40 = vector.load %arg6[%c0_20, %c0_21, %c0_22] : memref<1x16x512xf32, #tpu.memory_space<vmem>>, vector<1x16x512xf32>
    %41 = vector.shape_cast %40 : vector<1x16x512xf32> to vector<16x512xf32>
    %42 = vector.shape_cast %39 : vector<16x512xf32> to vector<1x16x512xf32>
    tpu.vector_store %arg6[%c0_20, %c0_21, %c0_22], %42 {strides = array<i32>} : memref<1x16x512xf32, #tpu.memory_space<vmem>>, vector<1x16x512xf32>,
    return
  }
  func.func @transform_0(%arg0: i32) -> (i32, i32, i32) {
    %c0_i32 = arith.constant 0 : i32
    %c0_i32_0 = arith.constant 0 : i32
    %c0_i32_1 = arith.constant 0 : i32
    %c0_i32_2 = arith.constant 0 : i32
    return %c0_i32, %c0_i32_0, %c0_i32_1 : i32, i32, i32
  }
  func.func @transform_1(%arg0: i32) -> (i32, i32, i32) {
    %c0_i32 = arith.constant 0 : i32
    %c0_i32_0 = arith.constant 0 : i32
    %c0_i32_1 = arith.constant 0 : i32
    return %c0_i32, %c0_i32_0, %arg0 : i32, i32, i32
  }
  func.func @transform_2(%arg0: i32) -> (i32, i32) {
    %c0_i32 = arith.constant 0 : i32
    %c0_i32_0 = arith.constant 0 : i32
    %c0_i32_1 = arith.constant 0 : i32
    return %c0_i32, %c0_i32_0 : i32, i32
  }
  func.func @transform_3(%arg0: i32) -> (i32, i32) {
    %c0_i32 = arith.constant 0 : i32
    %c0_i32_0 = arith.constant 0 : i32
    %c0_i32_1 = arith.constant 0 : i32
    return %c0_i32, %c0_i32_0 : i32, i32
  }
  func.func @transform_4(%arg0: i32) -> (i32, i32) {
    %c0_i32 = arith.constant 0 : i32
    %c0_i32_0 = arith.constant 0 : i32
    %c0_i32_1 = arith.constant 0 : i32
    return %c0_i32, %c0_i32_0 : i32, i32
  }
  func.func @transform_5(%arg0: i32) -> (i32, i32, i32) {
    %c0_i32 = arith.constant 0 : i32
    %c0_i32_0 = arith.constant 0 : i32
    %c0_i32_1 = arith.constant 0 : i32
    return %c0_i32, %c0_i32_0, %arg0 : i32, i32, i32
  }
}

module attributes {stable_mosaic.version = 11 : i64} {
  func.func @_fused_conv_kernel(%arg0: i32, %arg1: memref<1x32x256xf32, #tpu.memory_space<vmem>>, %arg2: memref<1x256x128xf32, #tpu.memory_space<vmem>>, %arg3: memref<32x1xf32, #tpu.memory_space<vmem>>, %arg4: memref<32x1xf32, #tpu.memory_space<vmem>>, %arg5: memref<32x1xf32, #tpu.memory_space<vmem>>, %arg6: memref<1x32x128xf32, #tpu.memory_space<vmem>>) attributes {dimension_semantics = [#tpu.dimension_semantics<parallel>], iteration_bounds = array<i64: 1>, scalar_prefetch = 0 : i64, scratch_operands = 0 : i64, tpu.core_type = #tpu.core_type<tc>, window_params = [{pipeline_mode = #tpu.pipeline_mode<synchronous>, transform_indices = @transform_0, window_bounds = array<i64: 1, 32, 256>}, {transform_indices = @transform_1, window_bounds = array<i64: 1, 256, 128>}, {pipeline_mode = #tpu.pipeline_mode<synchronous>, transform_indices = @transform_2, window_bounds = array<i64: 32, 1>}, {pipeline_mode = #tpu.pipeline_mode<synchronous>, transform_indices = @transform_3, window_bounds = array<i64: 32, 1>}, {pipeline_mode = #tpu.pipeline_mode<synchronous>, transform_indices = @transform_4, window_bounds = array<i64: 32, 1>}, {transform_indices = @transform_5, window_bounds = array<i64: 1, 32, 128>}]} {
    %c0 = arith.constant 0 : index
    %c0_0 = arith.constant 0 : index
    %0 = vector.load %arg3[%c0, %c0_0] : memref<32x1xf32, #tpu.memory_space<vmem>>, vector<32x1xf32>
    %c0_1 = arith.constant 0 : index
    %c0_2 = arith.constant 0 : index
    %c0_3 = arith.constant 0 : index
    %1 = vector.load %arg1[%c0_1, %c0_2, %c0_3] : memref<1x32x256xf32, #tpu.memory_space<vmem>>, vector<1x32x256xf32>
    %2 = vector.shape_cast %1 : vector<1x32x256xf32> to vector<32x256xf32>
    %c0_4 = arith.constant 0 : index
    %c0_5 = arith.constant 0 : index
    %c0_6 = arith.constant 0 : index
    %3 = vector.load %arg2[%c0_4, %c0_5, %c0_6] : memref<1x256x128xf32, #tpu.memory_space<vmem>>, vector<1x256x128xf32>
    %4 = vector.shape_cast %3 : vector<1x256x128xf32> to vector<256x128xf32>
    %cst = arith.constant dense<0.000000e+00> : vector<32x128xf32>
    %5 = tpu.matmul %2, %4, %cst {dimension_numbers = #tpu.dot_dimension_numbers<[1], [0], [0], [1], [0, 0, 1, 1], [], []>} : vector<32x256xf32>, vector<256x128xf32>, vector<32x128xf32> -> vector<32x128xf32>
    %6 = vector.broadcast %0 : vector<32x1xf32> to vector<32x128xf32>
    %7 = arith.addf %5, %6 : vector<32x128xf32>
    %cst_7 = arith.constant dense<0.000000e+00> : vector<32xf32>
    %8 = vector.multi_reduction <add>, %7, %cst_7 [1] : vector<32x128xf32> to vector<32xf32>
    %9 = vector.shape_cast %8 : vector<32xf32> to vector<32x1xf32>
    %cst_8 = arith.constant 0.000000e+00 : f32
    %10 = vector.broadcast %cst_8 : f32 to vector<32x1xf32>
    %11 = arith.addf %10, %9 : vector<32x1xf32>
    %cst_9 = arith.constant 1.280000e+02 : f32
    %12 = vector.broadcast %cst_9 : f32 to vector<32x1xf32>
    %13 = arith.divf %11, %12 : vector<32x1xf32>
    %14 = vector.broadcast %13 : vector<32x1xf32> to vector<32x128xf32>
    %15 = arith.subf %7, %14 : vector<32x128xf32>
    %16 = arith.mulf %15, %15 : vector<32x128xf32>
    %cst_10 = arith.constant dense<0.000000e+00> : vector<32xf32>
    %17 = vector.multi_reduction <add>, %16, %cst_10 [1] : vector<32x128xf32> to vector<32xf32>
    %18 = vector.shape_cast %17 : vector<32xf32> to vector<32x1xf32>
    %cst_11 = arith.constant 0.000000e+00 : f32
    %19 = vector.broadcast %cst_11 : f32 to vector<32x1xf32>
    %20 = arith.addf %19, %18 : vector<32x1xf32>
    %cst_12 = arith.constant 1.280000e+02 : f32
    %21 = vector.broadcast %cst_12 : f32 to vector<32x1xf32>
    %22 = arith.divf %20, %21 : vector<32x1xf32>
    %c0_13 = arith.constant 0 : index
    %c0_14 = arith.constant 0 : index
    %23 = vector.load %arg4[%c0_13, %c0_14] : memref<32x1xf32, #tpu.memory_space<vmem>>, vector<32x1xf32>
    %cst_15 = arith.constant 9.99999974E-6 : f32
    %24 = vector.broadcast %cst_15 : f32 to vector<32x1xf32>
    %25 = arith.addf %22, %24 : vector<32x1xf32>
    %26 = math.rsqrt %25 : vector<32x1xf32>
    %27 = arith.mulf %23, %26 : vector<32x1xf32>
    %c0_16 = arith.constant 0 : index
    %c0_17 = arith.constant 0 : index
    %28 = vector.load %arg5[%c0_16, %c0_17] : memref<32x1xf32, #tpu.memory_space<vmem>>, vector<32x1xf32>
    %29 = arith.mulf %13, %27 : vector<32x1xf32>
    %30 = arith.subf %28, %29 : vector<32x1xf32>
    %31 = vector.broadcast %27 : vector<32x1xf32> to vector<32x128xf32>
    %32 = arith.mulf %7, %31 : vector<32x128xf32>
    %33 = vector.broadcast %30 : vector<32x1xf32> to vector<32x128xf32>
    %34 = arith.addf %32, %33 : vector<32x128xf32>
    %cst_18 = arith.constant 0.000000e+00 : f32
    %35 = vector.broadcast %cst_18 : f32 to vector<32x128xf32>
    %36 = arith.cmpf oge, %34, %35 : vector<32x128xf32>
    %cst_19 = arith.constant 1.000000e-01 : f32
    %37 = vector.broadcast %cst_19 : f32 to vector<32x128xf32>
    %38 = arith.mulf %37, %34 : vector<32x128xf32>
    %39 = arith.select %36, %34, %38 : vector<32x128xi1>, vector<32x128xf32>
    %c0_20 = arith.constant 0 : index
    %c0_21 = arith.constant 0 : index
    %c0_22 = arith.constant 0 : index
    %40 = vector.load %arg6[%c0_20, %c0_21, %c0_22] : memref<1x32x128xf32, #tpu.memory_space<vmem>>, vector<1x32x128xf32>
    %41 = vector.shape_cast %40 : vector<1x32x128xf32> to vector<32x128xf32>
    %42 = vector.shape_cast %39 : vector<32x128xf32> to vector<1x32x128xf32>
    tpu.vector_store %arg6[%c0_20, %c0_21, %c0_22], %42 {strides = array<i32>} : memref<1x32x128xf32, #tpu.memory_space<vmem>>, vector<1x32x128xf32>,
    return
  }
  func.func @transform_0(%arg0: i32) -> (i32, i32, i32) {
    %c0_i32 = arith.constant 0 : i32
    %c0_i32_0 = arith.constant 0 : i32
    %c0_i32_1 = arith.constant 0 : i32
    %c0_i32_2 = arith.constant 0 : i32
    return %c0_i32, %c0_i32_0, %c0_i32_1 : i32, i32, i32
  }
  func.func @transform_1(%arg0: i32) -> (i32, i32, i32) {
    %c0_i32 = arith.constant 0 : i32
    %c0_i32_0 = arith.constant 0 : i32
    %c0_i32_1 = arith.constant 0 : i32
    return %c0_i32, %c0_i32_0, %arg0 : i32, i32, i32
  }
  func.func @transform_2(%arg0: i32) -> (i32, i32) {
    %c0_i32 = arith.constant 0 : i32
    %c0_i32_0 = arith.constant 0 : i32
    %c0_i32_1 = arith.constant 0 : i32
    return %c0_i32, %c0_i32_0 : i32, i32
  }
  func.func @transform_3(%arg0: i32) -> (i32, i32) {
    %c0_i32 = arith.constant 0 : i32
    %c0_i32_0 = arith.constant 0 : i32
    %c0_i32_1 = arith.constant 0 : i32
    return %c0_i32, %c0_i32_0 : i32, i32
  }
  func.func @transform_4(%arg0: i32) -> (i32, i32) {
    %c0_i32 = arith.constant 0 : i32
    %c0_i32_0 = arith.constant 0 : i32
    %c0_i32_1 = arith.constant 0 : i32
    return %c0_i32, %c0_i32_0 : i32, i32
  }
  func.func @transform_5(%arg0: i32) -> (i32, i32, i32) {
    %c0_i32 = arith.constant 0 : i32
    %c0_i32_0 = arith.constant 0 : i32
    %c0_i32_1 = arith.constant 0 : i32
    return %c0_i32, %c0_i32_0, %arg0 : i32, i32, i32
  }
}

module attributes {stable_mosaic.version = 11 : i64} {
  func.func @_fused_conv_kernel(%arg0: i32, %arg1: memref<1x64x512xf32, #tpu.memory_space<vmem>>, %arg2: memref<1x512x32xf32, #tpu.memory_space<vmem>>, %arg3: memref<64x1xf32, #tpu.memory_space<vmem>>, %arg4: memref<64x1xf32, #tpu.memory_space<vmem>>, %arg5: memref<64x1xf32, #tpu.memory_space<vmem>>, %arg6: memref<1x64x32xf32, #tpu.memory_space<vmem>>) attributes {dimension_semantics = [#tpu.dimension_semantics<parallel>], iteration_bounds = array<i64: 1>, scalar_prefetch = 0 : i64, scratch_operands = 0 : i64, tpu.core_type = #tpu.core_type<tc>, window_params = [{pipeline_mode = #tpu.pipeline_mode<synchronous>, transform_indices = @transform_0, window_bounds = array<i64: 1, 64, 512>}, {transform_indices = @transform_1, window_bounds = array<i64: 1, 512, 32>}, {pipeline_mode = #tpu.pipeline_mode<synchronous>, transform_indices = @transform_2, window_bounds = array<i64: 64, 1>}, {pipeline_mode = #tpu.pipeline_mode<synchronous>, transform_indices = @transform_3, window_bounds = array<i64: 64, 1>}, {pipeline_mode = #tpu.pipeline_mode<synchronous>, transform_indices = @transform_4, window_bounds = array<i64: 64, 1>}, {transform_indices = @transform_5, window_bounds = array<i64: 1, 64, 32>}]} {
    %c0 = arith.constant 0 : index
    %c0_0 = arith.constant 0 : index
    %0 = vector.load %arg3[%c0, %c0_0] : memref<64x1xf32, #tpu.memory_space<vmem>>, vector<64x1xf32>
    %c0_1 = arith.constant 0 : index
    %c0_2 = arith.constant 0 : index
    %c0_3 = arith.constant 0 : index
    %1 = vector.load %arg1[%c0_1, %c0_2, %c0_3] : memref<1x64x512xf32, #tpu.memory_space<vmem>>, vector<1x64x512xf32>
    %2 = vector.shape_cast %1 : vector<1x64x512xf32> to vector<64x512xf32>
    %c0_4 = arith.constant 0 : index
    %c0_5 = arith.constant 0 : index
    %c0_6 = arith.constant 0 : index
    %3 = vector.load %arg2[%c0_4, %c0_5, %c0_6] : memref<1x512x32xf32, #tpu.memory_space<vmem>>, vector<1x512x32xf32>
    %4 = vector.shape_cast %3 : vector<1x512x32xf32> to vector<512x32xf32>
    %cst = arith.constant dense<0.000000e+00> : vector<64x32xf32>
    %5 = tpu.matmul %2, %4, %cst {dimension_numbers = #tpu.dot_dimension_numbers<[1], [0], [0], [1], [0, 0, 1, 1], [], []>} : vector<64x512xf32>, vector<512x32xf32>, vector<64x32xf32> -> vector<64x32xf32>
    %6 = vector.broadcast %0 : vector<64x1xf32> to vector<64x32xf32>
    %7 = arith.addf %5, %6 : vector<64x32xf32>
    %cst_7 = arith.constant dense<0.000000e+00> : vector<64xf32>
    %8 = vector.multi_reduction <add>, %7, %cst_7 [1] : vector<64x32xf32> to vector<64xf32>
    %9 = vector.shape_cast %8 : vector<64xf32> to vector<64x1xf32>
    %cst_8 = arith.constant 0.000000e+00 : f32
    %10 = vector.broadcast %cst_8 : f32 to vector<64x1xf32>
    %11 = arith.addf %10, %9 : vector<64x1xf32>
    %cst_9 = arith.constant 3.200000e+01 : f32
    %12 = vector.broadcast %cst_9 : f32 to vector<64x1xf32>
    %13 = arith.divf %11, %12 : vector<64x1xf32>
    %14 = vector.broadcast %13 : vector<64x1xf32> to vector<64x32xf32>
    %15 = arith.subf %7, %14 : vector<64x32xf32>
    %16 = arith.mulf %15, %15 : vector<64x32xf32>
    %cst_10 = arith.constant dense<0.000000e+00> : vector<64xf32>
    %17 = vector.multi_reduction <add>, %16, %cst_10 [1] : vector<64x32xf32> to vector<64xf32>
    %18 = vector.shape_cast %17 : vector<64xf32> to vector<64x1xf32>
    %cst_11 = arith.constant 0.000000e+00 : f32
    %19 = vector.broadcast %cst_11 : f32 to vector<64x1xf32>
    %20 = arith.addf %19, %18 : vector<64x1xf32>
    %cst_12 = arith.constant 3.200000e+01 : f32
    %21 = vector.broadcast %cst_12 : f32 to vector<64x1xf32>
    %22 = arith.divf %20, %21 : vector<64x1xf32>
    %c0_13 = arith.constant 0 : index
    %c0_14 = arith.constant 0 : index
    %23 = vector.load %arg4[%c0_13, %c0_14] : memref<64x1xf32, #tpu.memory_space<vmem>>, vector<64x1xf32>
    %cst_15 = arith.constant 9.99999974E-6 : f32
    %24 = vector.broadcast %cst_15 : f32 to vector<64x1xf32>
    %25 = arith.addf %22, %24 : vector<64x1xf32>
    %26 = math.rsqrt %25 : vector<64x1xf32>
    %27 = arith.mulf %23, %26 : vector<64x1xf32>
    %c0_16 = arith.constant 0 : index
    %c0_17 = arith.constant 0 : index
    %28 = vector.load %arg5[%c0_16, %c0_17] : memref<64x1xf32, #tpu.memory_space<vmem>>, vector<64x1xf32>
    %29 = arith.mulf %13, %27 : vector<64x1xf32>
    %30 = arith.subf %28, %29 : vector<64x1xf32>
    %31 = vector.broadcast %27 : vector<64x1xf32> to vector<64x32xf32>
    %32 = arith.mulf %7, %31 : vector<64x32xf32>
    %33 = vector.broadcast %30 : vector<64x1xf32> to vector<64x32xf32>
    %34 = arith.addf %32, %33 : vector<64x32xf32>
    %cst_18 = arith.constant 0.000000e+00 : f32
    %35 = vector.broadcast %cst_18 : f32 to vector<64x32xf32>
    %36 = arith.cmpf oge, %34, %35 : vector<64x32xf32>
    %cst_19 = arith.constant 1.000000e-01 : f32
    %37 = vector.broadcast %cst_19 : f32 to vector<64x32xf32>
    %38 = arith.mulf %37, %34 : vector<64x32xf32>
    %39 = arith.select %36, %34, %38 : vector<64x32xi1>, vector<64x32xf32>
    %c0_20 = arith.constant 0 : index
    %c0_21 = arith.constant 0 : index
    %c0_22 = arith.constant 0 : index
    %40 = vector.load %arg6[%c0_20, %c0_21, %c0_22] : memref<1x64x32xf32, #tpu.memory_space<vmem>>, vector<1x64x32xf32>
    %41 = vector.shape_cast %40 : vector<1x64x32xf32> to vector<64x32xf32>
    %42 = vector.shape_cast %39 : vector<64x32xf32> to vector<1x64x32xf32>
    tpu.vector_store %arg6[%c0_20, %c0_21, %c0_22], %42 {strides = array<i32>} : memref<1x64x32xf32, #tpu.memory_space<vmem>>, vector<1x64x32xf32>,
    return
  }
  func.func @transform_0(%arg0: i32) -> (i32, i32, i32) {
    %c0_i32 = arith.constant 0 : i32
    %c0_i32_0 = arith.constant 0 : i32
    %c0_i32_1 = arith.constant 0 : i32
    %c0_i32_2 = arith.constant 0 : i32
    return %c0_i32, %c0_i32_0, %c0_i32_1 : i32, i32, i32
  }
  func.func @transform_1(%arg0: i32) -> (i32, i32, i32) {
    %c0_i32 = arith.constant 0 : i32
    %c0_i32_0 = arith.constant 0 : i32
    %c0_i32_1 = arith.constant 0 : i32
    return %c0_i32, %c0_i32_0, %arg0 : i32, i32, i32
  }
  func.func @transform_2(%arg0: i32) -> (i32, i32) {
    %c0_i32 = arith.constant 0 : i32
    %c0_i32_0 = arith.constant 0 : i32
    %c0_i32_1 = arith.constant 0 : i32
    return %c0_i32, %c0_i32_0 : i32, i32
  }
  func.func @transform_3(%arg0: i32) -> (i32, i32) {
    %c0_i32 = arith.constant 0 : i32
    %c0_i32_0 = arith.constant 0 : i32
    %c0_i32_1 = arith.constant 0 : i32
    return %c0_i32, %c0_i32_0 : i32, i32
  }
  func.func @transform_4(%arg0: i32) -> (i32, i32) {
    %c0_i32 = arith.constant 0 : i32
    %c0_i32_0 = arith.constant 0 : i32
    %c0_i32_1 = arith.constant 0 : i32
    return %c0_i32, %c0_i32_0 : i32, i32
  }
  func.func @transform_5(%arg0: i32) -> (i32, i32, i32) {
    %c0_i32 = arith.constant 0 : i32
    %c0_i32_0 = arith.constant 0 : i32
    %c0_i32_1 = arith.constant 0 : i32
    return %c0_i32, %c0_i32_0, %arg0 : i32, i32, i32
  }
}

module attributes {stable_mosaic.version = 11 : i64} {
  func.func @_latent_kernel(%arg0: i32, %arg1: memref<1024x2xf32, #tpu.memory_space<vmem>>, %arg2: memref<16x1024xf32, #tpu.memory_space<vmem>>, %arg3: memref<16x1xf32, #tpu.memory_space<vmem>>, %arg4: memref<1024x16xf32, #tpu.memory_space<vmem>>, %arg5: memref<1024x1xf32, #tpu.memory_space<vmem>>, %arg6: memref<16x2xf32, #tpu.memory_space<vmem>>, %arg7: memref<1024x2xf32, #tpu.memory_space<vmem>>) attributes {dimension_semantics = [#tpu.dimension_semantics<arbitrary>], iteration_bounds = array<i64: 1>, scalar_prefetch = 0 : i64, scratch_operands = 0 : i64, tpu.core_type = #tpu.core_type<tc>, window_params = [{pipeline_mode = #tpu.pipeline_mode<synchronous>, transform_indices = @transform_0, window_bounds = array<i64: 1024, 2>}, {pipeline_mode = #tpu.pipeline_mode<synchronous>, transform_indices = @transform_1, window_bounds = array<i64: 16, 1024>}, {pipeline_mode = #tpu.pipeline_mode<synchronous>, transform_indices = @transform_2, window_bounds = array<i64: 16, 1>}, {pipeline_mode = #tpu.pipeline_mode<synchronous>, transform_indices = @transform_3, window_bounds = array<i64: 1024, 16>}, {pipeline_mode = #tpu.pipeline_mode<synchronous>, transform_indices = @transform_4, window_bounds = array<i64: 1024, 1>}, {pipeline_mode = #tpu.pipeline_mode<synchronous>, transform_indices = @transform_5, window_bounds = array<i64: 16, 2>}, {pipeline_mode = #tpu.pipeline_mode<synchronous>, transform_indices = @transform_6, window_bounds = array<i64: 1024, 2>}]} {
    %c0 = arith.constant 0 : index
    %c0_0 = arith.constant 0 : index
    %0 = vector.load %arg2[%c0, %c0_0] : memref<16x1024xf32, #tpu.memory_space<vmem>>, vector<16x1024xf32>
    %c0_1 = arith.constant 0 : index
    %c0_2 = arith.constant 0 : index
    %1 = vector.load %arg1[%c0_1, %c0_2] : memref<1024x2xf32, #tpu.memory_space<vmem>>, vector<1024x2xf32>
    %cst = arith.constant dense<0.000000e+00> : vector<16x2xf32>
    %2 = tpu.matmul %0, %1, %cst {dimension_numbers = #tpu.dot_dimension_numbers<[1], [0], [0], [1], [0, 0, 1, 1], [], []>} : vector<16x1024xf32>, vector<1024x2xf32>, vector<16x2xf32> -> vector<16x2xf32>
    %c0_3 = arith.constant 0 : index
    %c0_4 = arith.constant 0 : index
    %3 = vector.load %arg3[%c0_3, %c0_4] : memref<16x1xf32, #tpu.memory_space<vmem>>, vector<16x1xf32>
    %4 = vector.broadcast %3 : vector<16x1xf32> to vector<16x2xf32>
    %5 = arith.addf %2, %4 : vector<16x2xf32>
    %c0_5 = arith.constant 0 : index
    %c0_6 = arith.constant 0 : index
    %6 = vector.load %arg6[%c0_5, %c0_6] : memref<16x2xf32, #tpu.memory_space<vmem>>, vector<16x2xf32>
    tpu.vector_store %arg6[%c0_5, %c0_6], %5 {strides = array<i32>} : memref<16x2xf32, #tpu.memory_space<vmem>>, vector<16x2xf32>,
    %c0_7 = arith.constant 0 : index
    %c0_8 = arith.constant 0 : index
    %7 = vector.load %arg4[%c0_7, %c0_8] : memref<1024x16xf32, #tpu.memory_space<vmem>>, vector<1024x16xf32>
    %cst_9 = arith.constant dense<0.000000e+00> : vector<1024x2xf32>
    %8 = tpu.matmul %7, %5, %cst_9 {dimension_numbers = #tpu.dot_dimension_numbers<[1], [0], [0], [1], [0, 0, 1, 1], [], []>} : vector<1024x16xf32>, vector<16x2xf32>, vector<1024x2xf32> -> vector<1024x2xf32>
    %c0_10 = arith.constant 0 : index
    %c0_11 = arith.constant 0 : index
    %9 = vector.load %arg5[%c0_10, %c0_11] : memref<1024x1xf32, #tpu.memory_space<vmem>>, vector<1024x1xf32>
    %10 = vector.broadcast %9 : vector<1024x1xf32> to vector<1024x2xf32>
    %11 = arith.addf %8, %10 : vector<1024x2xf32>
    %c0_12 = arith.constant 0 : index
    %c0_13 = arith.constant 0 : index
    %12 = vector.load %arg7[%c0_12, %c0_13] : memref<1024x2xf32, #tpu.memory_space<vmem>>, vector<1024x2xf32>
    tpu.vector_store %arg7[%c0_12, %c0_13], %11 {strides = array<i32>} : memref<1024x2xf32, #tpu.memory_space<vmem>>, vector<1024x2xf32>,
    return
  }
  func.func @transform_0(%arg0: i32) -> (i32, i32) {
    %c0_i32 = arith.constant 0 : i32
    %c0_i32_0 = arith.constant 0 : i32
    %c0_i32_1 = arith.constant 0 : i32
    return %c0_i32, %c0_i32_0 : i32, i32
  }
  func.func @transform_1(%arg0: i32) -> (i32, i32) {
    %c0_i32 = arith.constant 0 : i32
    %c0_i32_0 = arith.constant 0 : i32
    %c0_i32_1 = arith.constant 0 : i32
    return %c0_i32, %c0_i32_0 : i32, i32
  }
  func.func @transform_2(%arg0: i32) -> (i32, i32) {
    %c0_i32 = arith.constant 0 : i32
    %c0_i32_0 = arith.constant 0 : i32
    %c0_i32_1 = arith.constant 0 : i32
    return %c0_i32, %c0_i32_0 : i32, i32
  }
  func.func @transform_3(%arg0: i32) -> (i32, i32) {
    %c0_i32 = arith.constant 0 : i32
    %c0_i32_0 = arith.constant 0 : i32
    %c0_i32_1 = arith.constant 0 : i32
    return %c0_i32, %c0_i32_0 : i32, i32
  }
  func.func @transform_4(%arg0: i32) -> (i32, i32) {
    %c0_i32 = arith.constant 0 : i32
    %c0_i32_0 = arith.constant 0 : i32
    %c0_i32_1 = arith.constant 0 : i32
    return %c0_i32, %c0_i32_0 : i32, i32
  }
  func.func @transform_5(%arg0: i32) -> (i32, i32) {
    %c0_i32 = arith.constant 0 : i32
    %c0_i32_0 = arith.constant 0 : i32
    %c0_i32_1 = arith.constant 0 : i32
    return %c0_i32, %c0_i32_0 : i32, i32
  }
  func.func @transform_6(%arg0: i32) -> (i32, i32) {
    %c0_i32 = arith.constant 0 : i32
    %c0_i32_0 = arith.constant 0 : i32
    %c0_i32_1 = arith.constant 0 : i32
    return %c0_i32, %c0_i32_0 : i32, i32
  }
}

module attributes {stable_mosaic.version = 11 : i64} {
  func.func @_fused_conv_kernel(%arg0: i32, %arg1: memref<4x32x256xf32, #tpu.memory_space<vmem>>, %arg2: memref<4x256x32xf32, #tpu.memory_space<vmem>>, %arg3: memref<32x1xf32, #tpu.memory_space<vmem>>, %arg4: memref<32x1xf32, #tpu.memory_space<vmem>>, %arg5: memref<32x1xf32, #tpu.memory_space<vmem>>, %arg6: memref<4x32x32xf32, #tpu.memory_space<vmem>>) attributes {dimension_semantics = [#tpu.dimension_semantics<parallel>], iteration_bounds = array<i64: 1>, scalar_prefetch = 0 : i64, scratch_operands = 0 : i64, tpu.core_type = #tpu.core_type<tc>, window_params = [{pipeline_mode = #tpu.pipeline_mode<synchronous>, transform_indices = @transform_0, window_bounds = array<i64: 4, 32, 256>}, {transform_indices = @transform_1, window_bounds = array<i64: 4, 256, 32>}, {pipeline_mode = #tpu.pipeline_mode<synchronous>, transform_indices = @transform_2, window_bounds = array<i64: 32, 1>}, {pipeline_mode = #tpu.pipeline_mode<synchronous>, transform_indices = @transform_3, window_bounds = array<i64: 32, 1>}, {pipeline_mode = #tpu.pipeline_mode<synchronous>, transform_indices = @transform_4, window_bounds = array<i64: 32, 1>}, {transform_indices = @transform_5, window_bounds = array<i64: 4, 32, 32>}]} {
    %c0 = arith.constant 0 : index
    %c0_0 = arith.constant 0 : index
    %0 = vector.load %arg3[%c0, %c0_0] : memref<32x1xf32, #tpu.memory_space<vmem>>, vector<32x1xf32>
    %c0_1 = arith.constant 0 : index
    %c0_2 = arith.constant 0 : index
    %c0_3 = arith.constant 0 : index
    %1 = vector.load %arg1[%c0_1, %c0_2, %c0_3] : memref<4x32x256xf32, #tpu.memory_space<vmem>>, vector<1x32x256xf32>
    %2 = vector.shape_cast %1 : vector<1x32x256xf32> to vector<32x256xf32>
    %c0_4 = arith.constant 0 : index
    %c0_5 = arith.constant 0 : index
    %c0_6 = arith.constant 0 : index
    %3 = vector.load %arg2[%c0_4, %c0_5, %c0_6] : memref<4x256x32xf32, #tpu.memory_space<vmem>>, vector<1x256x32xf32>
    %4 = vector.shape_cast %3 : vector<1x256x32xf32> to vector<256x32xf32>
    %cst = arith.constant dense<0.000000e+00> : vector<32x32xf32>
    %5 = tpu.matmul %2, %4, %cst {dimension_numbers = #tpu.dot_dimension_numbers<[1], [0], [0], [1], [0, 0, 1, 1], [], []>} : vector<32x256xf32>, vector<256x32xf32>, vector<32x32xf32> -> vector<32x32xf32>
    %6 = vector.broadcast %0 : vector<32x1xf32> to vector<32x32xf32>
    %7 = arith.addf %5, %6 : vector<32x32xf32>
    %c1 = arith.constant 1 : index
    %c0_7 = arith.constant 0 : index
    %c0_8 = arith.constant 0 : index
    %8 = vector.load %arg1[%c1, %c0_7, %c0_8] : memref<4x32x256xf32, #tpu.memory_space<vmem>>, vector<1x32x256xf32>
    %9 = vector.shape_cast %8 : vector<1x32x256xf32> to vector<32x256xf32>
    %c1_9 = arith.constant 1 : index
    %c0_10 = arith.constant 0 : index
    %c0_11 = arith.constant 0 : index
    %10 = vector.load %arg2[%c1_9, %c0_10, %c0_11] : memref<4x256x32xf32, #tpu.memory_space<vmem>>, vector<1x256x32xf32>
    %11 = vector.shape_cast %10 : vector<1x256x32xf32> to vector<256x32xf32>
    %cst_12 = arith.constant dense<0.000000e+00> : vector<32x32xf32>
    %12 = tpu.matmul %9, %11, %cst_12 {dimension_numbers = #tpu.dot_dimension_numbers<[1], [0], [0], [1], [0, 0, 1, 1], [], []>} : vector<32x256xf32>, vector<256x32xf32>, vector<32x32xf32> -> vector<32x32xf32>
    %13 = vector.broadcast %0 : vector<32x1xf32> to vector<32x32xf32>
    %14 = arith.addf %12, %13 : vector<32x32xf32>
    %c2 = arith.constant 2 : index
    %c0_13 = arith.constant 0 : index
    %c0_14 = arith.constant 0 : index
    %15 = vector.load %arg1[%c2, %c0_13, %c0_14] : memref<4x32x256xf32, #tpu.memory_space<vmem>>, vector<1x32x256xf32>
    %16 = vector.shape_cast %15 : vector<1x32x256xf32> to vector<32x256xf32>
    %c2_15 = arith.constant 2 : index
    %c0_16 = arith.constant 0 : index
    %c0_17 = arith.constant 0 : index
    %17 = vector.load %arg2[%c2_15, %c0_16, %c0_17] : memref<4x256x32xf32, #tpu.memory_space<vmem>>, vector<1x256x32xf32>
    %18 = vector.shape_cast %17 : vector<1x256x32xf32> to vector<256x32xf32>
    %cst_18 = arith.constant dense<0.000000e+00> : vector<32x32xf32>
    %19 = tpu.matmul %16, %18, %cst_18 {dimension_numbers = #tpu.dot_dimension_numbers<[1], [0], [0], [1], [0, 0, 1, 1], [], []>} : vector<32x256xf32>, vector<256x32xf32>, vector<32x32xf32> -> vector<32x32xf32>
    %20 = vector.broadcast %0 : vector<32x1xf32> to vector<32x32xf32>
    %21 = arith.addf %19, %20 : vector<32x32xf32>
    %c3 = arith.constant 3 : index
    %c0_19 = arith.constant 0 : index
    %c0_20 = arith.constant 0 : index
    %22 = vector.load %arg1[%c3, %c0_19, %c0_20] : memref<4x32x256xf32, #tpu.memory_space<vmem>>, vector<1x32x256xf32>
    %23 = vector.shape_cast %22 : vector<1x32x256xf32> to vector<32x256xf32>
    %c3_21 = arith.constant 3 : index
    %c0_22 = arith.constant 0 : index
    %c0_23 = arith.constant 0 : index
    %24 = vector.load %arg2[%c3_21, %c0_22, %c0_23] : memref<4x256x32xf32, #tpu.memory_space<vmem>>, vector<1x256x32xf32>
    %25 = vector.shape_cast %24 : vector<1x256x32xf32> to vector<256x32xf32>
    %cst_24 = arith.constant dense<0.000000e+00> : vector<32x32xf32>
    %26 = tpu.matmul %23, %25, %cst_24 {dimension_numbers = #tpu.dot_dimension_numbers<[1], [0], [0], [1], [0, 0, 1, 1], [], []>} : vector<32x256xf32>, vector<256x32xf32>, vector<32x32xf32> -> vector<32x32xf32>
    %27 = vector.broadcast %0 : vector<32x1xf32> to vector<32x32xf32>
    %28 = arith.addf %26, %27 : vector<32x32xf32>
    %cst_25 = arith.constant dense<0.000000e+00> : vector<32xf32>
    %29 = vector.multi_reduction <add>, %7, %cst_25 [1] : vector<32x32xf32> to vector<32xf32>
    %30 = vector.shape_cast %29 : vector<32xf32> to vector<32x1xf32>
    %cst_26 = arith.constant 0.000000e+00 : f32
    %31 = vector.broadcast %cst_26 : f32 to vector<32x1xf32>
    %32 = arith.addf %31, %30 : vector<32x1xf32>
    %cst_27 = arith.constant dense<0.000000e+00> : vector<32xf32>
    %33 = vector.multi_reduction <add>, %14, %cst_27 [1] : vector<32x32xf32> to vector<32xf32>
    %34 = vector.shape_cast %33 : vector<32xf32> to vector<32x1xf32>
    %35 = arith.addf %32, %34 : vector<32x1xf32>
    %cst_28 = arith.constant dense<0.000000e+00> : vector<32xf32>
    %36 = vector.multi_reduction <add>, %21, %cst_28 [1] : vector<32x32xf32> to vector<32xf32>
    %37 = vector.shape_cast %36 : vector<32xf32> to vector<32x1xf32>
    %38 = arith.addf %35, %37 : vector<32x1xf32>
    %cst_29 = arith.constant dense<0.000000e+00> : vector<32xf32>
    %39 = vector.multi_reduction <add>, %28, %cst_29 [1] : vector<32x32xf32> to vector<32xf32>
    %40 = vector.shape_cast %39 : vector<32xf32> to vector<32x1xf32>
    %41 = arith.addf %38, %40 : vector<32x1xf32>
    %cst_30 = arith.constant 1.280000e+02 : f32
    %42 = vector.broadcast %cst_30 : f32 to vector<32x1xf32>
    %43 = arith.divf %41, %42 : vector<32x1xf32>
    %44 = vector.broadcast %43 : vector<32x1xf32> to vector<32x32xf32>
    %45 = arith.subf %7, %44 : vector<32x32xf32>
    %46 = arith.mulf %45, %45 : vector<32x32xf32>
    %cst_31 = arith.constant dense<0.000000e+00> : vector<32xf32>
    %47 = vector.multi_reduction <add>, %46, %cst_31 [1] : vector<32x32xf32> to vector<32xf32>
    %48 = vector.shape_cast %47 : vector<32xf32> to vector<32x1xf32>
    %cst_32 = arith.constant 0.000000e+00 : f32
    %49 = vector.broadcast %cst_32 : f32 to vector<32x1xf32>
    %50 = arith.addf %49, %48 : vector<32x1xf32>
    %51 = vector.broadcast %43 : vector<32x1xf32> to vector<32x32xf32>
    %52 = arith.subf %14, %51 : vector<32x32xf32>
    %53 = arith.mulf %52, %52 : vector<32x32xf32>
    %cst_33 = arith.constant dense<0.000000e+00> : vector<32xf32>
    %54 = vector.multi_reduction <add>, %53, %cst_33 [1] : vector<32x32xf32> to vector<32xf32>
    %55 = vector.shape_cast %54 : vector<32xf32> to vector<32x1xf32>
    %56 = arith.addf %50, %55 : vector<32x1xf32>
    %57 = vector.broadcast %43 : vector<32x1xf32> to vector<32x32xf32>
    %58 = arith.subf %21, %57 : vector<32x32xf32>
    %59 = arith.mulf %58, %58 : vector<32x32xf32>
    %cst_34 = arith.constant dense<0.000000e+00> : vector<32xf32>
    %60 = vector.multi_reduction <add>, %59, %cst_34 [1] : vector<32x32xf32> to vector<32xf32>
    %61 = vector.shape_cast %60 : vector<32xf32> to vector<32x1xf32>
    %62 = arith.addf %56, %61 : vector<32x1xf32>
    %63 = vector.broadcast %43 : vector<32x1xf32> to vector<32x32xf32>
    %64 = arith.subf %28, %63 : vector<32x32xf32>
    %65 = arith.mulf %64, %64 : vector<32x32xf32>
    %cst_35 = arith.constant dense<0.000000e+00> : vector<32xf32>
    %66 = vector.multi_reduction <add>, %65, %cst_35 [1] : vector<32x32xf32> to vector<32xf32>
    %67 = vector.shape_cast %66 : vector<32xf32> to vector<32x1xf32>
    %68 = arith.addf %62, %67 : vector<32x1xf32>
    %cst_36 = arith.constant 1.280000e+02 : f32
    %69 = vector.broadcast %cst_36 : f32 to vector<32x1xf32>
    %70 = arith.divf %68, %69 : vector<32x1xf32>
    %c0_37 = arith.constant 0 : index
    %c0_38 = arith.constant 0 : index
    %71 = vector.load %arg4[%c0_37, %c0_38] : memref<32x1xf32, #tpu.memory_space<vmem>>, vector<32x1xf32>
    %cst_39 = arith.constant 9.99999974E-6 : f32
    %72 = vector.broadcast %cst_39 : f32 to vector<32x1xf32>
    %73 = arith.addf %70, %72 : vector<32x1xf32>
    %74 = math.rsqrt %73 : vector<32x1xf32>
    %75 = arith.mulf %71, %74 : vector<32x1xf32>
    %c0_40 = arith.constant 0 : index
    %c0_41 = arith.constant 0 : index
    %76 = vector.load %arg5[%c0_40, %c0_41] : memref<32x1xf32, #tpu.memory_space<vmem>>, vector<32x1xf32>
    %77 = arith.mulf %43, %75 : vector<32x1xf32>
    %78 = arith.subf %76, %77 : vector<32x1xf32>
    %79 = vector.broadcast %75 : vector<32x1xf32> to vector<32x32xf32>
    %80 = arith.mulf %7, %79 : vector<32x32xf32>
    %81 = vector.broadcast %78 : vector<32x1xf32> to vector<32x32xf32>
    %82 = arith.addf %80, %81 : vector<32x32xf32>
    %cst_42 = arith.constant 0.000000e+00 : f32
    %83 = vector.broadcast %cst_42 : f32 to vector<32x32xf32>
    %84 = arith.maximumf %82, %83 : vector<32x32xf32>
    %c0_43 = arith.constant 0 : index
    %c0_44 = arith.constant 0 : index
    %c0_45 = arith.constant 0 : index
    %85 = vector.load %arg6[%c0_43, %c0_44, %c0_45] : memref<4x32x32xf32, #tpu.memory_space<vmem>>, vector<1x32x32xf32>
    %86 = vector.shape_cast %85 : vector<1x32x32xf32> to vector<32x32xf32>
    %87 = vector.shape_cast %84 : vector<32x32xf32> to vector<1x32x32xf32>
    tpu.vector_store %arg6[%c0_43, %c0_44, %c0_45], %87 {strides = array<i32>} : memref<4x32x32xf32, #tpu.memory_space<vmem>>, vector<1x32x32xf32>,
    %88 = vector.broadcast %75 : vector<32x1xf32> to vector<32x32xf32>
    %89 = arith.mulf %14, %88 : vector<32x32xf32>
    %90 = vector.broadcast %78 : vector<32x1xf32> to vector<32x32xf32>
    %91 = arith.addf %89, %90 : vector<32x32xf32>
    %cst_46 = arith.constant 0.000000e+00 : f32
    %92 = vector.broadcast %cst_46 : f32 to vector<32x32xf32>
    %93 = arith.maximumf %91, %92 : vector<32x32xf32>
    %c1_47 = arith.constant 1 : index
    %c0_48 = arith.constant 0 : index
    %c0_49 = arith.constant 0 : index
    %94 = vector.load %arg6[%c1_47, %c0_48, %c0_49] : memref<4x32x32xf32, #tpu.memory_space<vmem>>, vector<1x32x32xf32>
    %95 = vector.shape_cast %94 : vector<1x32x32xf32> to vector<32x32xf32>
    %96 = vector.shape_cast %93 : vector<32x32xf32> to vector<1x32x32xf32>
    tpu.vector_store %arg6[%c1_47, %c0_48, %c0_49], %96 {strides = array<i32>} : memref<4x32x32xf32, #tpu.memory_space<vmem>>, vector<1x32x32xf32>,
    %97 = vector.broadcast %75 : vector<32x1xf32> to vector<32x32xf32>
    %98 = arith.mulf %21, %97 : vector<32x32xf32>
    %99 = vector.broadcast %78 : vector<32x1xf32> to vector<32x32xf32>
    %100 = arith.addf %98, %99 : vector<32x32xf32>
    %cst_50 = arith.constant 0.000000e+00 : f32
    %101 = vector.broadcast %cst_50 : f32 to vector<32x32xf32>
    %102 = arith.maximumf %100, %101 : vector<32x32xf32>
    %c2_51 = arith.constant 2 : index
    %c0_52 = arith.constant 0 : index
    %c0_53 = arith.constant 0 : index
    %103 = vector.load %arg6[%c2_51, %c0_52, %c0_53] : memref<4x32x32xf32, #tpu.memory_space<vmem>>, vector<1x32x32xf32>
    %104 = vector.shape_cast %103 : vector<1x32x32xf32> to vector<32x32xf32>
    %105 = vector.shape_cast %102 : vector<32x32xf32> to vector<1x32x32xf32>
    tpu.vector_store %arg6[%c2_51, %c0_52, %c0_53], %105 {strides = array<i32>} : memref<4x32x32xf32, #tpu.memory_space<vmem>>, vector<1x32x32xf32>,
    %106 = vector.broadcast %75 : vector<32x1xf32> to vector<32x32xf32>
    %107 = arith.mulf %28, %106 : vector<32x32xf32>
    %108 = vector.broadcast %78 : vector<32x1xf32> to vector<32x32xf32>
    %109 = arith.addf %107, %108 : vector<32x32xf32>
    %cst_54 = arith.constant 0.000000e+00 : f32
    %110 = vector.broadcast %cst_54 : f32 to vector<32x32xf32>
    %111 = arith.maximumf %109, %110 : vector<32x32xf32>
    %c3_55 = arith.constant 3 : index
    %c0_56 = arith.constant 0 : index
    %c0_57 = arith.constant 0 : index
    %112 = vector.load %arg6[%c3_55, %c0_56, %c0_57] : memref<4x32x32xf32, #tpu.memory_space<vmem>>, vector<1x32x32xf32>
    %113 = vector.shape_cast %112 : vector<1x32x32xf32> to vector<32x32xf32>
    %114 = vector.shape_cast %111 : vector<32x32xf32> to vector<1x32x32xf32>
    tpu.vector_store %arg6[%c3_55, %c0_56, %c0_57], %114 {strides = array<i32>} : memref<4x32x32xf32, #tpu.memory_space<vmem>>, vector<1x32x32xf32>,
    return
  }
  func.func @transform_0(%arg0: i32) -> (i32, i32, i32) {
    %c0_i32 = arith.constant 0 : i32
    %c0_i32_0 = arith.constant 0 : i32
    %c0_i32_1 = arith.constant 0 : i32
    %c0_i32_2 = arith.constant 0 : i32
    return %c0_i32, %c0_i32_0, %c0_i32_1 : i32, i32, i32
  }
  func.func @transform_1(%arg0: i32) -> (i32, i32, i32) {
    %c0_i32 = arith.constant 0 : i32
    %c0_i32_0 = arith.constant 0 : i32
    %c0_i32_1 = arith.constant 0 : i32
    return %c0_i32, %c0_i32_0, %arg0 : i32, i32, i32
  }
  func.func @transform_2(%arg0: i32) -> (i32, i32) {
    %c0_i32 = arith.constant 0 : i32
    %c0_i32_0 = arith.constant 0 : i32
    %c0_i32_1 = arith.constant 0 : i32
    return %c0_i32, %c0_i32_0 : i32, i32
  }
  func.func @transform_3(%arg0: i32) -> (i32, i32) {
    %c0_i32 = arith.constant 0 : i32
    %c0_i32_0 = arith.constant 0 : i32
    %c0_i32_1 = arith.constant 0 : i32
    return %c0_i32, %c0_i32_0 : i32, i32
  }
  func.func @transform_4(%arg0: i32) -> (i32, i32) {
    %c0_i32 = arith.constant 0 : i32
    %c0_i32_0 = arith.constant 0 : i32
    %c0_i32_1 = arith.constant 0 : i32
    return %c0_i32, %c0_i32_0 : i32, i32
  }
  func.func @transform_5(%arg0: i32) -> (i32, i32, i32) {
    %c0_i32 = arith.constant 0 : i32
    %c0_i32_0 = arith.constant 0 : i32
    %c0_i32_1 = arith.constant 0 : i32
    return %c0_i32, %c0_i32_0, %arg0 : i32, i32, i32
  }
}

module attributes {stable_mosaic.version = 11 : i64} {
  func.func @_fused_conv_kernel(%arg0: i32, %arg1: memref<4x16x128xf32, #tpu.memory_space<vmem>>, %arg2: memref<4x128x128xf32, #tpu.memory_space<vmem>>, %arg3: memref<16x1xf32, #tpu.memory_space<vmem>>, %arg4: memref<16x1xf32, #tpu.memory_space<vmem>>, %arg5: memref<16x1xf32, #tpu.memory_space<vmem>>, %arg6: memref<4x16x128xf32, #tpu.memory_space<vmem>>) attributes {dimension_semantics = [#tpu.dimension_semantics<parallel>], iteration_bounds = array<i64: 1>, scalar_prefetch = 0 : i64, scratch_operands = 0 : i64, tpu.core_type = #tpu.core_type<tc>, window_params = [{pipeline_mode = #tpu.pipeline_mode<synchronous>, transform_indices = @transform_0, window_bounds = array<i64: 4, 16, 128>}, {transform_indices = @transform_1, window_bounds = array<i64: 4, 128, 128>}, {pipeline_mode = #tpu.pipeline_mode<synchronous>, transform_indices = @transform_2, window_bounds = array<i64: 16, 1>}, {pipeline_mode = #tpu.pipeline_mode<synchronous>, transform_indices = @transform_3, window_bounds = array<i64: 16, 1>}, {pipeline_mode = #tpu.pipeline_mode<synchronous>, transform_indices = @transform_4, window_bounds = array<i64: 16, 1>}, {transform_indices = @transform_5, window_bounds = array<i64: 4, 16, 128>}]} {
    %c0 = arith.constant 0 : index
    %c0_0 = arith.constant 0 : index
    %0 = vector.load %arg3[%c0, %c0_0] : memref<16x1xf32, #tpu.memory_space<vmem>>, vector<16x1xf32>
    %c0_1 = arith.constant 0 : index
    %c0_2 = arith.constant 0 : index
    %c0_3 = arith.constant 0 : index
    %1 = vector.load %arg1[%c0_1, %c0_2, %c0_3] : memref<4x16x128xf32, #tpu.memory_space<vmem>>, vector<1x16x128xf32>
    %2 = vector.shape_cast %1 : vector<1x16x128xf32> to vector<16x128xf32>
    %c0_4 = arith.constant 0 : index
    %c0_5 = arith.constant 0 : index
    %c0_6 = arith.constant 0 : index
    %3 = vector.load %arg2[%c0_4, %c0_5, %c0_6] : memref<4x128x128xf32, #tpu.memory_space<vmem>>, vector<1x128x128xf32>
    %4 = vector.shape_cast %3 : vector<1x128x128xf32> to vector<128x128xf32>
    %cst = arith.constant dense<0.000000e+00> : vector<16x128xf32>
    %5 = tpu.matmul %2, %4, %cst {dimension_numbers = #tpu.dot_dimension_numbers<[1], [0], [0], [1], [0, 0, 1, 1], [], []>} : vector<16x128xf32>, vector<128x128xf32>, vector<16x128xf32> -> vector<16x128xf32>
    %6 = vector.broadcast %0 : vector<16x1xf32> to vector<16x128xf32>
    %7 = arith.addf %5, %6 : vector<16x128xf32>
    %c1 = arith.constant 1 : index
    %c0_7 = arith.constant 0 : index
    %c0_8 = arith.constant 0 : index
    %8 = vector.load %arg1[%c1, %c0_7, %c0_8] : memref<4x16x128xf32, #tpu.memory_space<vmem>>, vector<1x16x128xf32>
    %9 = vector.shape_cast %8 : vector<1x16x128xf32> to vector<16x128xf32>
    %c1_9 = arith.constant 1 : index
    %c0_10 = arith.constant 0 : index
    %c0_11 = arith.constant 0 : index
    %10 = vector.load %arg2[%c1_9, %c0_10, %c0_11] : memref<4x128x128xf32, #tpu.memory_space<vmem>>, vector<1x128x128xf32>
    %11 = vector.shape_cast %10 : vector<1x128x128xf32> to vector<128x128xf32>
    %cst_12 = arith.constant dense<0.000000e+00> : vector<16x128xf32>
    %12 = tpu.matmul %9, %11, %cst_12 {dimension_numbers = #tpu.dot_dimension_numbers<[1], [0], [0], [1], [0, 0, 1, 1], [], []>} : vector<16x128xf32>, vector<128x128xf32>, vector<16x128xf32> -> vector<16x128xf32>
    %13 = vector.broadcast %0 : vector<16x1xf32> to vector<16x128xf32>
    %14 = arith.addf %12, %13 : vector<16x128xf32>
    %c2 = arith.constant 2 : index
    %c0_13 = arith.constant 0 : index
    %c0_14 = arith.constant 0 : index
    %15 = vector.load %arg1[%c2, %c0_13, %c0_14] : memref<4x16x128xf32, #tpu.memory_space<vmem>>, vector<1x16x128xf32>
    %16 = vector.shape_cast %15 : vector<1x16x128xf32> to vector<16x128xf32>
    %c2_15 = arith.constant 2 : index
    %c0_16 = arith.constant 0 : index
    %c0_17 = arith.constant 0 : index
    %17 = vector.load %arg2[%c2_15, %c0_16, %c0_17] : memref<4x128x128xf32, #tpu.memory_space<vmem>>, vector<1x128x128xf32>
    %18 = vector.shape_cast %17 : vector<1x128x128xf32> to vector<128x128xf32>
    %cst_18 = arith.constant dense<0.000000e+00> : vector<16x128xf32>
    %19 = tpu.matmul %16, %18, %cst_18 {dimension_numbers = #tpu.dot_dimension_numbers<[1], [0], [0], [1], [0, 0, 1, 1], [], []>} : vector<16x128xf32>, vector<128x128xf32>, vector<16x128xf32> -> vector<16x128xf32>
    %20 = vector.broadcast %0 : vector<16x1xf32> to vector<16x128xf32>
    %21 = arith.addf %19, %20 : vector<16x128xf32>
    %c3 = arith.constant 3 : index
    %c0_19 = arith.constant 0 : index
    %c0_20 = arith.constant 0 : index
    %22 = vector.load %arg1[%c3, %c0_19, %c0_20] : memref<4x16x128xf32, #tpu.memory_space<vmem>>, vector<1x16x128xf32>
    %23 = vector.shape_cast %22 : vector<1x16x128xf32> to vector<16x128xf32>
    %c3_21 = arith.constant 3 : index
    %c0_22 = arith.constant 0 : index
    %c0_23 = arith.constant 0 : index
    %24 = vector.load %arg2[%c3_21, %c0_22, %c0_23] : memref<4x128x128xf32, #tpu.memory_space<vmem>>, vector<1x128x128xf32>
    %25 = vector.shape_cast %24 : vector<1x128x128xf32> to vector<128x128xf32>
    %cst_24 = arith.constant dense<0.000000e+00> : vector<16x128xf32>
    %26 = tpu.matmul %23, %25, %cst_24 {dimension_numbers = #tpu.dot_dimension_numbers<[1], [0], [0], [1], [0, 0, 1, 1], [], []>} : vector<16x128xf32>, vector<128x128xf32>, vector<16x128xf32> -> vector<16x128xf32>
    %27 = vector.broadcast %0 : vector<16x1xf32> to vector<16x128xf32>
    %28 = arith.addf %26, %27 : vector<16x128xf32>
    %cst_25 = arith.constant dense<0.000000e+00> : vector<16xf32>
    %29 = vector.multi_reduction <add>, %7, %cst_25 [1] : vector<16x128xf32> to vector<16xf32>
    %30 = vector.shape_cast %29 : vector<16xf32> to vector<16x1xf32>
    %cst_26 = arith.constant 0.000000e+00 : f32
    %31 = vector.broadcast %cst_26 : f32 to vector<16x1xf32>
    %32 = arith.addf %31, %30 : vector<16x1xf32>
    %cst_27 = arith.constant dense<0.000000e+00> : vector<16xf32>
    %33 = vector.multi_reduction <add>, %14, %cst_27 [1] : vector<16x128xf32> to vector<16xf32>
    %34 = vector.shape_cast %33 : vector<16xf32> to vector<16x1xf32>
    %35 = arith.addf %32, %34 : vector<16x1xf32>
    %cst_28 = arith.constant dense<0.000000e+00> : vector<16xf32>
    %36 = vector.multi_reduction <add>, %21, %cst_28 [1] : vector<16x128xf32> to vector<16xf32>
    %37 = vector.shape_cast %36 : vector<16xf32> to vector<16x1xf32>
    %38 = arith.addf %35, %37 : vector<16x1xf32>
    %cst_29 = arith.constant dense<0.000000e+00> : vector<16xf32>
    %39 = vector.multi_reduction <add>, %28, %cst_29 [1] : vector<16x128xf32> to vector<16xf32>
    %40 = vector.shape_cast %39 : vector<16xf32> to vector<16x1xf32>
    %41 = arith.addf %38, %40 : vector<16x1xf32>
    %cst_30 = arith.constant 5.120000e+02 : f32
    %42 = vector.broadcast %cst_30 : f32 to vector<16x1xf32>
    %43 = arith.divf %41, %42 : vector<16x1xf32>
    %44 = vector.broadcast %43 : vector<16x1xf32> to vector<16x128xf32>
    %45 = arith.subf %7, %44 : vector<16x128xf32>
    %46 = arith.mulf %45, %45 : vector<16x128xf32>
    %cst_31 = arith.constant dense<0.000000e+00> : vector<16xf32>
    %47 = vector.multi_reduction <add>, %46, %cst_31 [1] : vector<16x128xf32> to vector<16xf32>
    %48 = vector.shape_cast %47 : vector<16xf32> to vector<16x1xf32>
    %cst_32 = arith.constant 0.000000e+00 : f32
    %49 = vector.broadcast %cst_32 : f32 to vector<16x1xf32>
    %50 = arith.addf %49, %48 : vector<16x1xf32>
    %51 = vector.broadcast %43 : vector<16x1xf32> to vector<16x128xf32>
    %52 = arith.subf %14, %51 : vector<16x128xf32>
    %53 = arith.mulf %52, %52 : vector<16x128xf32>
    %cst_33 = arith.constant dense<0.000000e+00> : vector<16xf32>
    %54 = vector.multi_reduction <add>, %53, %cst_33 [1] : vector<16x128xf32> to vector<16xf32>
    %55 = vector.shape_cast %54 : vector<16xf32> to vector<16x1xf32>
    %56 = arith.addf %50, %55 : vector<16x1xf32>
    %57 = vector.broadcast %43 : vector<16x1xf32> to vector<16x128xf32>
    %58 = arith.subf %21, %57 : vector<16x128xf32>
    %59 = arith.mulf %58, %58 : vector<16x128xf32>
    %cst_34 = arith.constant dense<0.000000e+00> : vector<16xf32>
    %60 = vector.multi_reduction <add>, %59, %cst_34 [1] : vector<16x128xf32> to vector<16xf32>
    %61 = vector.shape_cast %60 : vector<16xf32> to vector<16x1xf32>
    %62 = arith.addf %56, %61 : vector<16x1xf32>
    %63 = vector.broadcast %43 : vector<16x1xf32> to vector<16x128xf32>
    %64 = arith.subf %28, %63 : vector<16x128xf32>
    %65 = arith.mulf %64, %64 : vector<16x128xf32>
    %cst_35 = arith.constant dense<0.000000e+00> : vector<16xf32>
    %66 = vector.multi_reduction <add>, %65, %cst_35 [1] : vector<16x128xf32> to vector<16xf32>
    %67 = vector.shape_cast %66 : vector<16xf32> to vector<16x1xf32>
    %68 = arith.addf %62, %67 : vector<16x1xf32>
    %cst_36 = arith.constant 5.120000e+02 : f32
    %69 = vector.broadcast %cst_36 : f32 to vector<16x1xf32>
    %70 = arith.divf %68, %69 : vector<16x1xf32>
    %c0_37 = arith.constant 0 : index
    %c0_38 = arith.constant 0 : index
    %71 = vector.load %arg4[%c0_37, %c0_38] : memref<16x1xf32, #tpu.memory_space<vmem>>, vector<16x1xf32>
    %cst_39 = arith.constant 9.99999974E-6 : f32
    %72 = vector.broadcast %cst_39 : f32 to vector<16x1xf32>
    %73 = arith.addf %70, %72 : vector<16x1xf32>
    %74 = math.rsqrt %73 : vector<16x1xf32>
    %75 = arith.mulf %71, %74 : vector<16x1xf32>
    %c0_40 = arith.constant 0 : index
    %c0_41 = arith.constant 0 : index
    %76 = vector.load %arg5[%c0_40, %c0_41] : memref<16x1xf32, #tpu.memory_space<vmem>>, vector<16x1xf32>
    %77 = arith.mulf %43, %75 : vector<16x1xf32>
    %78 = arith.subf %76, %77 : vector<16x1xf32>
    %79 = vector.broadcast %75 : vector<16x1xf32> to vector<16x128xf32>
    %80 = arith.mulf %7, %79 : vector<16x128xf32>
    %81 = vector.broadcast %78 : vector<16x1xf32> to vector<16x128xf32>
    %82 = arith.addf %80, %81 : vector<16x128xf32>
    %cst_42 = arith.constant 0.000000e+00 : f32
    %83 = vector.broadcast %cst_42 : f32 to vector<16x128xf32>
    %84 = arith.maximumf %82, %83 : vector<16x128xf32>
    %c0_43 = arith.constant 0 : index
    %c0_44 = arith.constant 0 : index
    %c0_45 = arith.constant 0 : index
    %85 = vector.load %arg6[%c0_43, %c0_44, %c0_45] : memref<4x16x128xf32, #tpu.memory_space<vmem>>, vector<1x16x128xf32>
    %86 = vector.shape_cast %85 : vector<1x16x128xf32> to vector<16x128xf32>
    %87 = vector.shape_cast %84 : vector<16x128xf32> to vector<1x16x128xf32>
    tpu.vector_store %arg6[%c0_43, %c0_44, %c0_45], %87 {strides = array<i32>} : memref<4x16x128xf32, #tpu.memory_space<vmem>>, vector<1x16x128xf32>,
    %88 = vector.broadcast %75 : vector<16x1xf32> to vector<16x128xf32>
    %89 = arith.mulf %14, %88 : vector<16x128xf32>
    %90 = vector.broadcast %78 : vector<16x1xf32> to vector<16x128xf32>
    %91 = arith.addf %89, %90 : vector<16x128xf32>
    %cst_46 = arith.constant 0.000000e+00 : f32
    %92 = vector.broadcast %cst_46 : f32 to vector<16x128xf32>
    %93 = arith.maximumf %91, %92 : vector<16x128xf32>
    %c1_47 = arith.constant 1 : index
    %c0_48 = arith.constant 0 : index
    %c0_49 = arith.constant 0 : index
    %94 = vector.load %arg6[%c1_47, %c0_48, %c0_49] : memref<4x16x128xf32, #tpu.memory_space<vmem>>, vector<1x16x128xf32>
    %95 = vector.shape_cast %94 : vector<1x16x128xf32> to vector<16x128xf32>
    %96 = vector.shape_cast %93 : vector<16x128xf32> to vector<1x16x128xf32>
    tpu.vector_store %arg6[%c1_47, %c0_48, %c0_49], %96 {strides = array<i32>} : memref<4x16x128xf32, #tpu.memory_space<vmem>>, vector<1x16x128xf32>,
    %97 = vector.broadcast %75 : vector<16x1xf32> to vector<16x128xf32>
    %98 = arith.mulf %21, %97 : vector<16x128xf32>
    %99 = vector.broadcast %78 : vector<16x1xf32> to vector<16x128xf32>
    %100 = arith.addf %98, %99 : vector<16x128xf32>
    %cst_50 = arith.constant 0.000000e+00 : f32
    %101 = vector.broadcast %cst_50 : f32 to vector<16x128xf32>
    %102 = arith.maximumf %100, %101 : vector<16x128xf32>
    %c2_51 = arith.constant 2 : index
    %c0_52 = arith.constant 0 : index
    %c0_53 = arith.constant 0 : index
    %103 = vector.load %arg6[%c2_51, %c0_52, %c0_53] : memref<4x16x128xf32, #tpu.memory_space<vmem>>, vector<1x16x128xf32>
    %104 = vector.shape_cast %103 : vector<1x16x128xf32> to vector<16x128xf32>
    %105 = vector.shape_cast %102 : vector<16x128xf32> to vector<1x16x128xf32>
    tpu.vector_store %arg6[%c2_51, %c0_52, %c0_53], %105 {strides = array<i32>} : memref<4x16x128xf32, #tpu.memory_space<vmem>>, vector<1x16x128xf32>,
    %106 = vector.broadcast %75 : vector<16x1xf32> to vector<16x128xf32>
    %107 = arith.mulf %28, %106 : vector<16x128xf32>
    %108 = vector.broadcast %78 : vector<16x1xf32> to vector<16x128xf32>
    %109 = arith.addf %107, %108 : vector<16x128xf32>
    %cst_54 = arith.constant 0.000000e+00 : f32
    %110 = vector.broadcast %cst_54 : f32 to vector<16x128xf32>
    %111 = arith.maximumf %109, %110 : vector<16x128xf32>
    %c3_55 = arith.constant 3 : index
    %c0_56 = arith.constant 0 : index
    %c0_57 = arith.constant 0 : index
    %112 = vector.load %arg6[%c3_55, %c0_56, %c0_57] : memref<4x16x128xf32, #tpu.memory_space<vmem>>, vector<1x16x128xf32>
    %113 = vector.shape_cast %112 : vector<1x16x128xf32> to vector<16x128xf32>
    %114 = vector.shape_cast %111 : vector<16x128xf32> to vector<1x16x128xf32>
    tpu.vector_store %arg6[%c3_55, %c0_56, %c0_57], %114 {strides = array<i32>} : memref<4x16x128xf32, #tpu.memory_space<vmem>>, vector<1x16x128xf32>,
    return
  }
  func.func @transform_0(%arg0: i32) -> (i32, i32, i32) {
    %c0_i32 = arith.constant 0 : i32
    %c0_i32_0 = arith.constant 0 : i32
    %c0_i32_1 = arith.constant 0 : i32
    %c0_i32_2 = arith.constant 0 : i32
    return %c0_i32, %c0_i32_0, %c0_i32_1 : i32, i32, i32
  }
  func.func @transform_1(%arg0: i32) -> (i32, i32, i32) {
    %c0_i32 = arith.constant 0 : i32
    %c0_i32_0 = arith.constant 0 : i32
    %c0_i32_1 = arith.constant 0 : i32
    return %c0_i32, %c0_i32_0, %arg0 : i32, i32, i32
  }
  func.func @transform_2(%arg0: i32) -> (i32, i32) {
    %c0_i32 = arith.constant 0 : i32
    %c0_i32_0 = arith.constant 0 : i32
    %c0_i32_1 = arith.constant 0 : i32
    return %c0_i32, %c0_i32_0 : i32, i32
  }
  func.func @transform_3(%arg0: i32) -> (i32, i32) {
    %c0_i32 = arith.constant 0 : i32
    %c0_i32_0 = arith.constant 0 : i32
    %c0_i32_1 = arith.constant 0 : i32
    return %c0_i32, %c0_i32_0 : i32, i32
  }
  func.func @transform_4(%arg0: i32) -> (i32, i32) {
    %c0_i32 = arith.constant 0 : i32
    %c0_i32_0 = arith.constant 0 : i32
    %c0_i32_1 = arith.constant 0 : i32
    return %c0_i32, %c0_i32_0 : i32, i32
  }
  func.func @transform_5(%arg0: i32) -> (i32, i32, i32) {
    %c0_i32 = arith.constant 0 : i32
    %c0_i32_0 = arith.constant 0 : i32
    %c0_i32_1 = arith.constant 0 : i32
    return %c0_i32, %c0_i32_0, %arg0 : i32, i32, i32
  }
}

module attributes {stable_mosaic.version = 11 : i64} {
  func.func @_fused_conv_kernel(%arg0: i32, %arg1: memref<4x8x64xf32, #tpu.memory_space<vmem>>, %arg2: memref<4x64x512xf32, #tpu.memory_space<vmem>>, %arg3: memref<8x1xf32, #tpu.memory_space<vmem>>, %arg4: memref<8x1xf32, #tpu.memory_space<vmem>>, %arg5: memref<8x1xf32, #tpu.memory_space<vmem>>, %arg6: memref<4x8x512xf32, #tpu.memory_space<vmem>>) attributes {dimension_semantics = [#tpu.dimension_semantics<parallel>], iteration_bounds = array<i64: 1>, scalar_prefetch = 0 : i64, scratch_operands = 0 : i64, tpu.core_type = #tpu.core_type<tc>, window_params = [{pipeline_mode = #tpu.pipeline_mode<synchronous>, transform_indices = @transform_0, window_bounds = array<i64: 4, 8, 64>}, {transform_indices = @transform_1, window_bounds = array<i64: 4, 64, 512>}, {pipeline_mode = #tpu.pipeline_mode<synchronous>, transform_indices = @transform_2, window_bounds = array<i64: 8, 1>}, {pipeline_mode = #tpu.pipeline_mode<synchronous>, transform_indices = @transform_3, window_bounds = array<i64: 8, 1>}, {pipeline_mode = #tpu.pipeline_mode<synchronous>, transform_indices = @transform_4, window_bounds = array<i64: 8, 1>}, {transform_indices = @transform_5, window_bounds = array<i64: 4, 8, 512>}]} {
    %c0 = arith.constant 0 : index
    %c0_0 = arith.constant 0 : index
    %0 = vector.load %arg3[%c0, %c0_0] : memref<8x1xf32, #tpu.memory_space<vmem>>, vector<8x1xf32>
    %c0_1 = arith.constant 0 : index
    %c0_2 = arith.constant 0 : index
    %c0_3 = arith.constant 0 : index
    %1 = vector.load %arg1[%c0_1, %c0_2, %c0_3] : memref<4x8x64xf32, #tpu.memory_space<vmem>>, vector<1x8x64xf32>
    %2 = vector.shape_cast %1 : vector<1x8x64xf32> to vector<8x64xf32>
    %c0_4 = arith.constant 0 : index
    %c0_5 = arith.constant 0 : index
    %c0_6 = arith.constant 0 : index
    %3 = vector.load %arg2[%c0_4, %c0_5, %c0_6] : memref<4x64x512xf32, #tpu.memory_space<vmem>>, vector<1x64x512xf32>
    %4 = vector.shape_cast %3 : vector<1x64x512xf32> to vector<64x512xf32>
    %cst = arith.constant dense<0.000000e+00> : vector<8x512xf32>
    %5 = tpu.matmul %2, %4, %cst {dimension_numbers = #tpu.dot_dimension_numbers<[1], [0], [0], [1], [0, 0, 1, 1], [], []>} : vector<8x64xf32>, vector<64x512xf32>, vector<8x512xf32> -> vector<8x512xf32>
    %6 = vector.broadcast %0 : vector<8x1xf32> to vector<8x512xf32>
    %7 = arith.addf %5, %6 : vector<8x512xf32>
    %c1 = arith.constant 1 : index
    %c0_7 = arith.constant 0 : index
    %c0_8 = arith.constant 0 : index
    %8 = vector.load %arg1[%c1, %c0_7, %c0_8] : memref<4x8x64xf32, #tpu.memory_space<vmem>>, vector<1x8x64xf32>
    %9 = vector.shape_cast %8 : vector<1x8x64xf32> to vector<8x64xf32>
    %c1_9 = arith.constant 1 : index
    %c0_10 = arith.constant 0 : index
    %c0_11 = arith.constant 0 : index
    %10 = vector.load %arg2[%c1_9, %c0_10, %c0_11] : memref<4x64x512xf32, #tpu.memory_space<vmem>>, vector<1x64x512xf32>
    %11 = vector.shape_cast %10 : vector<1x64x512xf32> to vector<64x512xf32>
    %cst_12 = arith.constant dense<0.000000e+00> : vector<8x512xf32>
    %12 = tpu.matmul %9, %11, %cst_12 {dimension_numbers = #tpu.dot_dimension_numbers<[1], [0], [0], [1], [0, 0, 1, 1], [], []>} : vector<8x64xf32>, vector<64x512xf32>, vector<8x512xf32> -> vector<8x512xf32>
    %13 = vector.broadcast %0 : vector<8x1xf32> to vector<8x512xf32>
    %14 = arith.addf %12, %13 : vector<8x512xf32>
    %c2 = arith.constant 2 : index
    %c0_13 = arith.constant 0 : index
    %c0_14 = arith.constant 0 : index
    %15 = vector.load %arg1[%c2, %c0_13, %c0_14] : memref<4x8x64xf32, #tpu.memory_space<vmem>>, vector<1x8x64xf32>
    %16 = vector.shape_cast %15 : vector<1x8x64xf32> to vector<8x64xf32>
    %c2_15 = arith.constant 2 : index
    %c0_16 = arith.constant 0 : index
    %c0_17 = arith.constant 0 : index
    %17 = vector.load %arg2[%c2_15, %c0_16, %c0_17] : memref<4x64x512xf32, #tpu.memory_space<vmem>>, vector<1x64x512xf32>
    %18 = vector.shape_cast %17 : vector<1x64x512xf32> to vector<64x512xf32>
    %cst_18 = arith.constant dense<0.000000e+00> : vector<8x512xf32>
    %19 = tpu.matmul %16, %18, %cst_18 {dimension_numbers = #tpu.dot_dimension_numbers<[1], [0], [0], [1], [0, 0, 1, 1], [], []>} : vector<8x64xf32>, vector<64x512xf32>, vector<8x512xf32> -> vector<8x512xf32>
    %20 = vector.broadcast %0 : vector<8x1xf32> to vector<8x512xf32>
    %21 = arith.addf %19, %20 : vector<8x512xf32>
    %c3 = arith.constant 3 : index
    %c0_19 = arith.constant 0 : index
    %c0_20 = arith.constant 0 : index
    %22 = vector.load %arg1[%c3, %c0_19, %c0_20] : memref<4x8x64xf32, #tpu.memory_space<vmem>>, vector<1x8x64xf32>
    %23 = vector.shape_cast %22 : vector<1x8x64xf32> to vector<8x64xf32>
    %c3_21 = arith.constant 3 : index
    %c0_22 = arith.constant 0 : index
    %c0_23 = arith.constant 0 : index
    %24 = vector.load %arg2[%c3_21, %c0_22, %c0_23] : memref<4x64x512xf32, #tpu.memory_space<vmem>>, vector<1x64x512xf32>
    %25 = vector.shape_cast %24 : vector<1x64x512xf32> to vector<64x512xf32>
    %cst_24 = arith.constant dense<0.000000e+00> : vector<8x512xf32>
    %26 = tpu.matmul %23, %25, %cst_24 {dimension_numbers = #tpu.dot_dimension_numbers<[1], [0], [0], [1], [0, 0, 1, 1], [], []>} : vector<8x64xf32>, vector<64x512xf32>, vector<8x512xf32> -> vector<8x512xf32>
    %27 = vector.broadcast %0 : vector<8x1xf32> to vector<8x512xf32>
    %28 = arith.addf %26, %27 : vector<8x512xf32>
    %cst_25 = arith.constant dense<0.000000e+00> : vector<8xf32>
    %29 = vector.multi_reduction <add>, %7, %cst_25 [1] : vector<8x512xf32> to vector<8xf32>
    %30 = vector.shape_cast %29 : vector<8xf32> to vector<8x1xf32>
    %cst_26 = arith.constant 0.000000e+00 : f32
    %31 = vector.broadcast %cst_26 : f32 to vector<8x1xf32>
    %32 = arith.addf %31, %30 : vector<8x1xf32>
    %cst_27 = arith.constant dense<0.000000e+00> : vector<8xf32>
    %33 = vector.multi_reduction <add>, %14, %cst_27 [1] : vector<8x512xf32> to vector<8xf32>
    %34 = vector.shape_cast %33 : vector<8xf32> to vector<8x1xf32>
    %35 = arith.addf %32, %34 : vector<8x1xf32>
    %cst_28 = arith.constant dense<0.000000e+00> : vector<8xf32>
    %36 = vector.multi_reduction <add>, %21, %cst_28 [1] : vector<8x512xf32> to vector<8xf32>
    %37 = vector.shape_cast %36 : vector<8xf32> to vector<8x1xf32>
    %38 = arith.addf %35, %37 : vector<8x1xf32>
    %cst_29 = arith.constant dense<0.000000e+00> : vector<8xf32>
    %39 = vector.multi_reduction <add>, %28, %cst_29 [1] : vector<8x512xf32> to vector<8xf32>
    %40 = vector.shape_cast %39 : vector<8xf32> to vector<8x1xf32>
    %41 = arith.addf %38, %40 : vector<8x1xf32>
    %cst_30 = arith.constant 2.048000e+03 : f32
    %42 = vector.broadcast %cst_30 : f32 to vector<8x1xf32>
    %43 = arith.divf %41, %42 : vector<8x1xf32>
    %44 = vector.broadcast %43 : vector<8x1xf32> to vector<8x512xf32>
    %45 = arith.subf %7, %44 : vector<8x512xf32>
    %46 = arith.mulf %45, %45 : vector<8x512xf32>
    %cst_31 = arith.constant dense<0.000000e+00> : vector<8xf32>
    %47 = vector.multi_reduction <add>, %46, %cst_31 [1] : vector<8x512xf32> to vector<8xf32>
    %48 = vector.shape_cast %47 : vector<8xf32> to vector<8x1xf32>
    %cst_32 = arith.constant 0.000000e+00 : f32
    %49 = vector.broadcast %cst_32 : f32 to vector<8x1xf32>
    %50 = arith.addf %49, %48 : vector<8x1xf32>
    %51 = vector.broadcast %43 : vector<8x1xf32> to vector<8x512xf32>
    %52 = arith.subf %14, %51 : vector<8x512xf32>
    %53 = arith.mulf %52, %52 : vector<8x512xf32>
    %cst_33 = arith.constant dense<0.000000e+00> : vector<8xf32>
    %54 = vector.multi_reduction <add>, %53, %cst_33 [1] : vector<8x512xf32> to vector<8xf32>
    %55 = vector.shape_cast %54 : vector<8xf32> to vector<8x1xf32>
    %56 = arith.addf %50, %55 : vector<8x1xf32>
    %57 = vector.broadcast %43 : vector<8x1xf32> to vector<8x512xf32>
    %58 = arith.subf %21, %57 : vector<8x512xf32>
    %59 = arith.mulf %58, %58 : vector<8x512xf32>
    %cst_34 = arith.constant dense<0.000000e+00> : vector<8xf32>
    %60 = vector.multi_reduction <add>, %59, %cst_34 [1] : vector<8x512xf32> to vector<8xf32>
    %61 = vector.shape_cast %60 : vector<8xf32> to vector<8x1xf32>
    %62 = arith.addf %56, %61 : vector<8x1xf32>
    %63 = vector.broadcast %43 : vector<8x1xf32> to vector<8x512xf32>
    %64 = arith.subf %28, %63 : vector<8x512xf32>
    %65 = arith.mulf %64, %64 : vector<8x512xf32>
    %cst_35 = arith.constant dense<0.000000e+00> : vector<8xf32>
    %66 = vector.multi_reduction <add>, %65, %cst_35 [1] : vector<8x512xf32> to vector<8xf32>
    %67 = vector.shape_cast %66 : vector<8xf32> to vector<8x1xf32>
    %68 = arith.addf %62, %67 : vector<8x1xf32>
    %cst_36 = arith.constant 2.048000e+03 : f32
    %69 = vector.broadcast %cst_36 : f32 to vector<8x1xf32>
    %70 = arith.divf %68, %69 : vector<8x1xf32>
    %c0_37 = arith.constant 0 : index
    %c0_38 = arith.constant 0 : index
    %71 = vector.load %arg4[%c0_37, %c0_38] : memref<8x1xf32, #tpu.memory_space<vmem>>, vector<8x1xf32>
    %cst_39 = arith.constant 9.99999974E-6 : f32
    %72 = vector.broadcast %cst_39 : f32 to vector<8x1xf32>
    %73 = arith.addf %70, %72 : vector<8x1xf32>
    %74 = math.rsqrt %73 : vector<8x1xf32>
    %75 = arith.mulf %71, %74 : vector<8x1xf32>
    %c0_40 = arith.constant 0 : index
    %c0_41 = arith.constant 0 : index
    %76 = vector.load %arg5[%c0_40, %c0_41] : memref<8x1xf32, #tpu.memory_space<vmem>>, vector<8x1xf32>
    %77 = arith.mulf %43, %75 : vector<8x1xf32>
    %78 = arith.subf %76, %77 : vector<8x1xf32>
    %79 = vector.broadcast %75 : vector<8x1xf32> to vector<8x512xf32>
    %80 = arith.mulf %7, %79 : vector<8x512xf32>
    %81 = vector.broadcast %78 : vector<8x1xf32> to vector<8x512xf32>
    %82 = arith.addf %80, %81 : vector<8x512xf32>
    %cst_42 = arith.constant 0.000000e+00 : f32
    %83 = vector.broadcast %cst_42 : f32 to vector<8x512xf32>
    %84 = arith.maximumf %82, %83 : vector<8x512xf32>
    %c0_43 = arith.constant 0 : index
    %c0_44 = arith.constant 0 : index
    %c0_45 = arith.constant 0 : index
    %85 = vector.load %arg6[%c0_43, %c0_44, %c0_45] : memref<4x8x512xf32, #tpu.memory_space<vmem>>, vector<1x8x512xf32>
    %86 = vector.shape_cast %85 : vector<1x8x512xf32> to vector<8x512xf32>
    %87 = vector.shape_cast %84 : vector<8x512xf32> to vector<1x8x512xf32>
    tpu.vector_store %arg6[%c0_43, %c0_44, %c0_45], %87 {strides = array<i32>} : memref<4x8x512xf32, #tpu.memory_space<vmem>>, vector<1x8x512xf32>,
    %88 = vector.broadcast %75 : vector<8x1xf32> to vector<8x512xf32>
    %89 = arith.mulf %14, %88 : vector<8x512xf32>
    %90 = vector.broadcast %78 : vector<8x1xf32> to vector<8x512xf32>
    %91 = arith.addf %89, %90 : vector<8x512xf32>
    %cst_46 = arith.constant 0.000000e+00 : f32
    %92 = vector.broadcast %cst_46 : f32 to vector<8x512xf32>
    %93 = arith.maximumf %91, %92 : vector<8x512xf32>
    %c1_47 = arith.constant 1 : index
    %c0_48 = arith.constant 0 : index
    %c0_49 = arith.constant 0 : index
    %94 = vector.load %arg6[%c1_47, %c0_48, %c0_49] : memref<4x8x512xf32, #tpu.memory_space<vmem>>, vector<1x8x512xf32>
    %95 = vector.shape_cast %94 : vector<1x8x512xf32> to vector<8x512xf32>
    %96 = vector.shape_cast %93 : vector<8x512xf32> to vector<1x8x512xf32>
    tpu.vector_store %arg6[%c1_47, %c0_48, %c0_49], %96 {strides = array<i32>} : memref<4x8x512xf32, #tpu.memory_space<vmem>>, vector<1x8x512xf32>,
    %97 = vector.broadcast %75 : vector<8x1xf32> to vector<8x512xf32>
    %98 = arith.mulf %21, %97 : vector<8x512xf32>
    %99 = vector.broadcast %78 : vector<8x1xf32> to vector<8x512xf32>
    %100 = arith.addf %98, %99 : vector<8x512xf32>
    %cst_50 = arith.constant 0.000000e+00 : f32
    %101 = vector.broadcast %cst_50 : f32 to vector<8x512xf32>
    %102 = arith.maximumf %100, %101 : vector<8x512xf32>
    %c2_51 = arith.constant 2 : index
    %c0_52 = arith.constant 0 : index
    %c0_53 = arith.constant 0 : index
    %103 = vector.load %arg6[%c2_51, %c0_52, %c0_53] : memref<4x8x512xf32, #tpu.memory_space<vmem>>, vector<1x8x512xf32>
    %104 = vector.shape_cast %103 : vector<1x8x512xf32> to vector<8x512xf32>
    %105 = vector.shape_cast %102 : vector<8x512xf32> to vector<1x8x512xf32>
    tpu.vector_store %arg6[%c2_51, %c0_52, %c0_53], %105 {strides = array<i32>} : memref<4x8x512xf32, #tpu.memory_space<vmem>>, vector<1x8x512xf32>,
    %106 = vector.broadcast %75 : vector<8x1xf32> to vector<8x512xf32>
    %107 = arith.mulf %28, %106 : vector<8x512xf32>
    %108 = vector.broadcast %78 : vector<8x1xf32> to vector<8x512xf32>
    %109 = arith.addf %107, %108 : vector<8x512xf32>
    %cst_54 = arith.constant 0.000000e+00 : f32
    %110 = vector.broadcast %cst_54 : f32 to vector<8x512xf32>
    %111 = arith.maximumf %109, %110 : vector<8x512xf32>
    %c3_55 = arith.constant 3 : index
    %c0_56 = arith.constant 0 : index
    %c0_57 = arith.constant 0 : index
    %112 = vector.load %arg6[%c3_55, %c0_56, %c0_57] : memref<4x8x512xf32, #tpu.memory_space<vmem>>, vector<1x8x512xf32>
    %113 = vector.shape_cast %112 : vector<1x8x512xf32> to vector<8x512xf32>
    %114 = vector.shape_cast %111 : vector<8x512xf32> to vector<1x8x512xf32>
    tpu.vector_store %arg6[%c3_55, %c0_56, %c0_57], %114 {strides = array<i32>} : memref<4x8x512xf32, #tpu.memory_space<vmem>>, vector<1x8x512xf32>,
    return
  }
  func.func @transform_0(%arg0: i32) -> (i32, i32, i32) {
    %c0_i32 = arith.constant 0 : i32
    %c0_i32_0 = arith.constant 0 : i32
    %c0_i32_1 = arith.constant 0 : i32
    %c0_i32_2 = arith.constant 0 : i32
    return %c0_i32, %c0_i32_0, %c0_i32_1 : i32, i32, i32
  }
  func.func @transform_1(%arg0: i32) -> (i32, i32, i32) {
    %c0_i32 = arith.constant 0 : i32
    %c0_i32_0 = arith.constant 0 : i32
    %c0_i32_1 = arith.constant 0 : i32
    return %c0_i32, %c0_i32_0, %arg0 : i32, i32, i32
  }
  func.func @transform_2(%arg0: i32) -> (i32, i32) {
    %c0_i32 = arith.constant 0 : i32
    %c0_i32_0 = arith.constant 0 : i32
    %c0_i32_1 = arith.constant 0 : i32
    return %c0_i32, %c0_i32_0 : i32, i32
  }
  func.func @transform_3(%arg0: i32) -> (i32, i32) {
    %c0_i32 = arith.constant 0 : i32
    %c0_i32_0 = arith.constant 0 : i32
    %c0_i32_1 = arith.constant 0 : i32
    return %c0_i32, %c0_i32_0 : i32, i32
  }
  func.func @transform_4(%arg0: i32) -> (i32, i32) {
    %c0_i32 = arith.constant 0 : i32
    %c0_i32_0 = arith.constant 0 : i32
    %c0_i32_1 = arith.constant 0 : i32
    return %c0_i32, %c0_i32_0 : i32, i32
  }
  func.func @transform_5(%arg0: i32) -> (i32, i32, i32) {
    %c0_i32 = arith.constant 0 : i32
    %c0_i32_0 = arith.constant 0 : i32
    %c0_i32_1 = arith.constant 0 : i32
    return %c0_i32, %c0_i32_0, %arg0 : i32, i32, i32
  }
}

module attributes {stable_mosaic.version = 11 : i64} {
  func.func @_fused_conv_kernel(%arg0: i32, %arg1: memref<4x3x32xf32, #tpu.memory_space<vmem>>, %arg2: memref<4x32x1024xf32, #tpu.memory_space<vmem>>, %arg3: memref<3x1xf32, #tpu.memory_space<vmem>>, %arg4: memref<3x1xf32, #tpu.memory_space<vmem>>, %arg5: memref<3x1xf32, #tpu.memory_space<vmem>>, %arg6: memref<4x3x1024xf32, #tpu.memory_space<vmem>>) attributes {dimension_semantics = [#tpu.dimension_semantics<parallel>], iteration_bounds = array<i64: 2>, scalar_prefetch = 0 : i64, scratch_operands = 0 : i64, tpu.core_type = #tpu.core_type<tc>, window_params = [{pipeline_mode = #tpu.pipeline_mode<synchronous>, transform_indices = @transform_0, window_bounds = array<i64: 4, 3, 32>}, {transform_indices = @transform_1, window_bounds = array<i64: 4, 32, 1024>}, {pipeline_mode = #tpu.pipeline_mode<synchronous>, transform_indices = @transform_2, window_bounds = array<i64: 3, 1>}, {pipeline_mode = #tpu.pipeline_mode<synchronous>, transform_indices = @transform_3, window_bounds = array<i64: 3, 1>}, {pipeline_mode = #tpu.pipeline_mode<synchronous>, transform_indices = @transform_4, window_bounds = array<i64: 3, 1>}, {transform_indices = @transform_5, window_bounds = array<i64: 4, 3, 1024>}]} {
    %c0 = arith.constant 0 : index
    %c0_0 = arith.constant 0 : index
    %0 = vector.load %arg3[%c0, %c0_0] : memref<3x1xf32, #tpu.memory_space<vmem>>, vector<3x1xf32>
    %c0_1 = arith.constant 0 : index
    %c0_2 = arith.constant 0 : index
    %c0_3 = arith.constant 0 : index
    %1 = vector.load %arg1[%c0_1, %c0_2, %c0_3] : memref<4x3x32xf32, #tpu.memory_space<vmem>>, vector<1x3x32xf32>
    %2 = vector.shape_cast %1 : vector<1x3x32xf32> to vector<3x32xf32>
    %c0_4 = arith.constant 0 : index
    %c0_5 = arith.constant 0 : index
    %c0_6 = arith.constant 0 : index
    %3 = vector.load %arg2[%c0_4, %c0_5, %c0_6] : memref<4x32x1024xf32, #tpu.memory_space<vmem>>, vector<1x32x1024xf32>
    %4 = vector.shape_cast %3 : vector<1x32x1024xf32> to vector<32x1024xf32>
    %cst = arith.constant dense<0.000000e+00> : vector<3x1024xf32>
    %5 = tpu.matmul %2, %4, %cst {dimension_numbers = #tpu.dot_dimension_numbers<[1], [0], [0], [1], [0, 0, 1, 1], [], []>} : vector<3x32xf32>, vector<32x1024xf32>, vector<3x1024xf32> -> vector<3x1024xf32>
    %6 = vector.broadcast %0 : vector<3x1xf32> to vector<3x1024xf32>
    %7 = arith.addf %5, %6 : vector<3x1024xf32>
    %c1 = arith.constant 1 : index
    %c0_7 = arith.constant 0 : index
    %c0_8 = arith.constant 0 : index
    %8 = vector.load %arg1[%c1, %c0_7, %c0_8] : memref<4x3x32xf32, #tpu.memory_space<vmem>>, vector<1x3x32xf32>
    %9 = vector.shape_cast %8 : vector<1x3x32xf32> to vector<3x32xf32>
    %c1_9 = arith.constant 1 : index
    %c0_10 = arith.constant 0 : index
    %c0_11 = arith.constant 0 : index
    %10 = vector.load %arg2[%c1_9, %c0_10, %c0_11] : memref<4x32x1024xf32, #tpu.memory_space<vmem>>, vector<1x32x1024xf32>
    %11 = vector.shape_cast %10 : vector<1x32x1024xf32> to vector<32x1024xf32>
    %cst_12 = arith.constant dense<0.000000e+00> : vector<3x1024xf32>
    %12 = tpu.matmul %9, %11, %cst_12 {dimension_numbers = #tpu.dot_dimension_numbers<[1], [0], [0], [1], [0, 0, 1, 1], [], []>} : vector<3x32xf32>, vector<32x1024xf32>, vector<3x1024xf32> -> vector<3x1024xf32>
    %13 = vector.broadcast %0 : vector<3x1xf32> to vector<3x1024xf32>
    %14 = arith.addf %12, %13 : vector<3x1024xf32>
    %c2 = arith.constant 2 : index
    %c0_13 = arith.constant 0 : index
    %c0_14 = arith.constant 0 : index
    %15 = vector.load %arg1[%c2, %c0_13, %c0_14] : memref<4x3x32xf32, #tpu.memory_space<vmem>>, vector<1x3x32xf32>
    %16 = vector.shape_cast %15 : vector<1x3x32xf32> to vector<3x32xf32>
    %c2_15 = arith.constant 2 : index
    %c0_16 = arith.constant 0 : index
    %c0_17 = arith.constant 0 : index
    %17 = vector.load %arg2[%c2_15, %c0_16, %c0_17] : memref<4x32x1024xf32, #tpu.memory_space<vmem>>, vector<1x32x1024xf32>
    %18 = vector.shape_cast %17 : vector<1x32x1024xf32> to vector<32x1024xf32>
    %cst_18 = arith.constant dense<0.000000e+00> : vector<3x1024xf32>
    %19 = tpu.matmul %16, %18, %cst_18 {dimension_numbers = #tpu.dot_dimension_numbers<[1], [0], [0], [1], [0, 0, 1, 1], [], []>} : vector<3x32xf32>, vector<32x1024xf32>, vector<3x1024xf32> -> vector<3x1024xf32>
    %20 = vector.broadcast %0 : vector<3x1xf32> to vector<3x1024xf32>
    %21 = arith.addf %19, %20 : vector<3x1024xf32>
    %c3 = arith.constant 3 : index
    %c0_19 = arith.constant 0 : index
    %c0_20 = arith.constant 0 : index
    %22 = vector.load %arg1[%c3, %c0_19, %c0_20] : memref<4x3x32xf32, #tpu.memory_space<vmem>>, vector<1x3x32xf32>
    %23 = vector.shape_cast %22 : vector<1x3x32xf32> to vector<3x32xf32>
    %c3_21 = arith.constant 3 : index
    %c0_22 = arith.constant 0 : index
    %c0_23 = arith.constant 0 : index
    %24 = vector.load %arg2[%c3_21, %c0_22, %c0_23] : memref<4x32x1024xf32, #tpu.memory_space<vmem>>, vector<1x32x1024xf32>
    %25 = vector.shape_cast %24 : vector<1x32x1024xf32> to vector<32x1024xf32>
    %cst_24 = arith.constant dense<0.000000e+00> : vector<3x1024xf32>
    %26 = tpu.matmul %23, %25, %cst_24 {dimension_numbers = #tpu.dot_dimension_numbers<[1], [0], [0], [1], [0, 0, 1, 1], [], []>} : vector<3x32xf32>, vector<32x1024xf32>, vector<3x1024xf32> -> vector<3x1024xf32>
    %27 = vector.broadcast %0 : vector<3x1xf32> to vector<3x1024xf32>
    %28 = arith.addf %26, %27 : vector<3x1024xf32>
    %29 = math.tanh %7 : vector<3x1024xf32>
    %c0_25 = arith.constant 0 : index
    %c0_26 = arith.constant 0 : index
    %c0_27 = arith.constant 0 : index
    %30 = vector.load %arg6[%c0_25, %c0_26, %c0_27] : memref<4x3x1024xf32, #tpu.memory_space<vmem>>, vector<1x3x1024xf32>
    %31 = vector.shape_cast %30 : vector<1x3x1024xf32> to vector<3x1024xf32>
    %32 = vector.shape_cast %29 : vector<3x1024xf32> to vector<1x3x1024xf32>
    tpu.vector_store %arg6[%c0_25, %c0_26, %c0_27], %32 {strides = array<i32>} : memref<4x3x1024xf32, #tpu.memory_space<vmem>>, vector<1x3x1024xf32>,
    %33 = math.tanh %14 : vector<3x1024xf32>
    %c1_28 = arith.constant 1 : index
    %c0_29 = arith.constant 0 : index
    %c0_30 = arith.constant 0 : index
    %34 = vector.load %arg6[%c1_28, %c0_29, %c0_30] : memref<4x3x1024xf32, #tpu.memory_space<vmem>>, vector<1x3x1024xf32>
    %35 = vector.shape_cast %34 : vector<1x3x1024xf32> to vector<3x1024xf32>
    %36 = vector.shape_cast %33 : vector<3x1024xf32> to vector<1x3x1024xf32>
    tpu.vector_store %arg6[%c1_28, %c0_29, %c0_30], %36 {strides = array<i32>} : memref<4x3x1024xf32, #tpu.memory_space<vmem>>, vector<1x3x1024xf32>,
    %37 = math.tanh %21 : vector<3x1024xf32>
    %c2_31 = arith.constant 2 : index
    %c0_32 = arith.constant 0 : index
    %c0_33 = arith.constant 0 : index
    %38 = vector.load %arg6[%c2_31, %c0_32, %c0_33] : memref<4x3x1024xf32, #tpu.memory_space<vmem>>, vector<1x3x1024xf32>
    %39 = vector.shape_cast %38 : vector<1x3x1024xf32> to vector<3x1024xf32>
    %40 = vector.shape_cast %37 : vector<3x1024xf32> to vector<1x3x1024xf32>
    tpu.vector_store %arg6[%c2_31, %c0_32, %c0_33], %40 {strides = array<i32>} : memref<4x3x1024xf32, #tpu.memory_space<vmem>>, vector<1x3x1024xf32>,
    %41 = math.tanh %28 : vector<3x1024xf32>
    %c3_34 = arith.constant 3 : index
    %c0_35 = arith.constant 0 : index
    %c0_36 = arith.constant 0 : index
    %42 = vector.load %arg6[%c3_34, %c0_35, %c0_36] : memref<4x3x1024xf32, #tpu.memory_space<vmem>>, vector<1x3x1024xf32>
    %43 = vector.shape_cast %42 : vector<1x3x1024xf32> to vector<3x1024xf32>
    %44 = vector.shape_cast %41 : vector<3x1024xf32> to vector<1x3x1024xf32>
    tpu.vector_store %arg6[%c3_34, %c0_35, %c0_36], %44 {strides = array<i32>} : memref<4x3x1024xf32, #tpu.memory_space<vmem>>, vector<1x3x1024xf32>,
    return
  }
  func.func @transform_0(%arg0: i32) -> (i32, i32, i32) {
    %c0_i32 = arith.constant 0 : i32
    %c0_i32_0 = arith.constant 0 : i32
    %c0_i32_1 = arith.constant 0 : i32
    %c0_i32_2 = arith.constant 0 : i32
    return %c0_i32, %c0_i32_0, %c0_i32_1 : i32, i32, i32
  }
  func.func @transform_1(%arg0: i32) -> (i32, i32, i32) {
    %c0_i32 = arith.constant 0 : i32
    %c0_i32_0 = arith.constant 0 : i32
    %c0_i32_1 = arith.constant 0 : i32
    return %c0_i32, %c0_i32_0, %arg0 : i32, i32, i32
  }
  func.func @transform_2(%arg0: i32) -> (i32, i32) {
    %c0_i32 = arith.constant 0 : i32
    %c0_i32_0 = arith.constant 0 : i32
    %c0_i32_1 = arith.constant 0 : i32
    return %c0_i32, %c0_i32_0 : i32, i32
  }
  func.func @transform_3(%arg0: i32) -> (i32, i32) {
    %c0_i32 = arith.constant 0 : i32
    %c0_i32_0 = arith.constant 0 : i32
    %c0_i32_1 = arith.constant 0 : i32
    return %c0_i32, %c0_i32_0 : i32, i32
  }
  func.func @transform_4(%arg0: i32) -> (i32, i32) {
    %c0_i32 = arith.constant 0 : i32
    %c0_i32_0 = arith.constant 0 : i32
    %c0_i32_1 = arith.constant 0 : i32
    return %c0_i32, %c0_i32_0 : i32, i32
  }
  func.func @transform_5(%arg0: i32) -> (i32, i32, i32) {
    %c0_i32 = arith.constant 0 : i32
    %c0_i32_0 = arith.constant 0 : i32
    %c0_i32_1 = arith.constant 0 : i32
    return %c0_i32, %c0_i32_0, %arg0 : i32, i32, i32
  }
}

</mosaic_0001>

<bundles_post_ra>
// kernel: cnn_autoencoder_forward.9
= control target key start
LH: loop header
LB: loop body
LE: loop exit
PB: predicated region body
PF: predicated region fallthrough
CT: control target
= control target key end

     0   :  { %s927_s18 = smov 0   ;;  %s929_s19 = smov 0   ;;  %s1153_s0 = inlined_call_operand.vmem [shape: f32[1,8,48], index: 0, kind: input, shape index: {}]   ;;  %s1154_s1 = inlined_call_operand.vmem [shape: f32[1,48,2048], index: 1, kind: input, shape index: {}]   ;;  %s1155_s2 = inlined_call_operand.vmem [shape: f32[8,1], index: 2, kind: input, shape index: {}]   ;;  %s1156_s3 = inlined_call_operand.vmem [shape: f32[8,1], index: 3, kind: input, shape index: {}]   ;;  %s1157_s4 = inlined_call_operand.vmem [shape: f32[8,1], index: 4, kind: input, shape index: {}]   ;;  %s1158_s5 = inlined_call_operand.vmem [shape: f32[1,8,2048], index: 5, kind: output, shape index: {}]  }
   0x1   :  { %s931_s20 = smov 0  }
   0x2 LB: > { %s778_s3 = sadd.s32 4294967295, %s893_s20   ;;  %s944_s4 = sadd.s32 1, %s893_s20   ;;  %s893_s20 = sphi %s931_s20, %s1161_s20   ;;  %s889_s19 = sphi %s929_s19, %s1160_s19   ;;  %s885_s18 = sphi %s927_s18, %s1159_s18  }
   0x3   : > { %s40_s21 = ssub.s32 %s893_s20, %s944_s4  ;;  %s43_s22 = sadd.s32 1, %s889_s19 }
   0x4   : > { %p41_p0 = scmp.eq.s32.totalorder %s40_s21, 0  ;;  %p50_p1 = scmp.ne.s32.totalorder %s889_s19, %s885_s18 }
   0x5   : > { %p51_p2 = scmp.eq.s32.totalorder %s893_s20, 0  ;;  %p781_p4 = scmp.ge.s32.totalorder %s893_s20, 2 }
   0x6   : > { %s953_s23 = scalar_select %p41_p0, %s889_s19, %s43_s22  }
   0x7   : > { %p52_p3 = por %p51_p2, %p50_p1  ;;  %177 = sbr.rel (%p781_p4) target bundleno = 43 (0x2b), region = 32 }
   0xe   : > { %180 = sbr.rel (!%p52_p3) target bundleno = 43 (0x2b), region = 36  ;;  %s182_s24 = sand.u32 (%p52_p3), 1, %s889_s19  }
   0xf   : > { %s793_s25 = sshll.u32 (%p52_p3), %s893_s20, 6  ;;  %s842_s26 = smul.u32 (%p52_p3), 384, %s182_s24 }
  0x10   : > { %s961_s29 = scalar_lea.vmem (%p52_p3), %s1154_s1, %s793_s25 }
  0x11   : > { %v200_v0 = vld [vmem:[%s961_s29] sm:$0xff] (%p52_p3)  ;;  %v202_v1 = vld [vmem:[%s961_s29 + $0x8] sm:$0xff] (%p52_p3)  ;;  %v204_v2 = vld [vmem:[%s961_s29 + $0x10] sm:$0xff] (%p52_p3)  ;;  %s969_s30 = scalar_lea.vmem (%p52_p3), [#allocation2], %s842_s26 }
  0x12   : > { %v206_v3 = vld [vmem:[%s961_s29 + $0x18] sm:$0xff] (%p52_p3)  ;;  %v208_v4 = vld [vmem:[%s961_s29 + $0x20] sm:$0xff] (%p52_p3)  ;;  %v210_v5 = vld [vmem:[%s961_s29 + $0x28] sm:$0xff] (%p52_p3)  ;;  %201 = vst [vmem:[%s969_s30] sm:$0xff] (%p52_p3), %v200_v0 }
  0x13   : > { %203 = vst [vmem:[%s969_s30 + $0x8] sm:$0xff] (%p52_p3), %v202_v1  ;;  %205 = vst [vmem:[%s969_s30 + $0x10] sm:$0xff] (%p52_p3), %v204_v2  ;;  %v212_v6 = vld [vmem:[%s961_s29 + $0x30] sm:$0xff] (%p52_p3)  ;;  %v214_v7 = vld [vmem:[%s961_s29 + $0x38] sm:$0xff] (%p52_p3) }
  0x14   : > { %207 = vst [vmem:[%s969_s30 + $0x18] sm:$0xff] (%p52_p3), %v206_v3  ;;  %209 = vst [vmem:[%s969_s30 + $0x20] sm:$0xff] (%p52_p3), %v208_v4  ;;  %v216_v8 = vld [vmem:[%s961_s29 + $0x80] sm:$0xff] (%p52_p3)  ;;  %v218_v9 = vld [vmem:[%s961_s29 + $0x88] sm:$0xff] (%p52_p3) }
  0x15   : > { %211 = vst [vmem:[%s969_s30 + $0x28] sm:$0xff] %v210_v5  ;;  %213 = vst [vmem:[%s969_s30 + $0x30] sm:$0xff] %v212_v6  ;;  %v220_v10 = vld [vmem:[%s961_s29 + $0x90] sm:$0xff]  ;;  %v222_v11 = vld [vmem:[%s961_s29 + $0x98] sm:$0xff] }
  0x16   : > { %215 = vst [vmem:[%s969_s30 + $0x38] sm:$0xff] %v214_v7  ;;  %217 = vst [vmem:[%s969_s30 + $0x40] sm:$0xff] %v216_v8  ;;  %v224_v12 = vld [vmem:[%s961_s29 + $0xa0] sm:$0xff]  ;;  %v226_v13 = vld [vmem:[%s961_s29 + $0xa8] sm:$0xff] }
  0x17   : > { %219 = vst [vmem:[%s969_s30 + $0x48] sm:$0xff] %v218_v9  ;;  %221 = vst [vmem:[%s969_s30 + $0x50] sm:$0xff] %v220_v10  ;;  %v228_v14 = vld [vmem:[%s961_s29 + $0xb0] sm:$0xff]  ;;  %v230_v15 = vld [vmem:[%s961_s29 + $0xb8] sm:$0xff] }
  0x18   : > { %223 = vst [vmem:[%s969_s30 + $0x58] sm:$0xff] %v222_v11  ;;  %225 = vst [vmem:[%s969_s30 + $0x60] sm:$0xff] %v224_v12  ;;  %v232_v16 = vld [vmem:[%s961_s29 + $0x100] sm:$0xff]  ;;  %v234_v17 = vld [vmem:[%s961_s29 + $0x108] sm:$0xff] }
  0x19   : > { %227 = vst [vmem:[%s969_s30 + $0x68] sm:$0xff] %v226_v13  ;;  %229 = vst [vmem:[%s969_s30 + $0x70] sm:$0xff] %v228_v14  ;;  %v236_v18 = vld [vmem:[%s961_s29 + $0x110] sm:$0xff]  ;;  %v238_v19 = vld [vmem:[%s961_s29 + $0x118] sm:$0xff] }
  0x1a   : > { %231 = vst [vmem:[%s969_s30 + $0x78] sm:$0xff] %v230_v15  ;;  %233 = vst [vmem:[%s969_s30 + $0x80] sm:$0xff] %v232_v16  ;;  %v240_v20 = vld [vmem:[%s961_s29 + $0x120] sm:$0xff]  ;;  %v242_v21 = vld [vmem:[%s961_s29 + $0x128] sm:$0xff] }
  0x1b   : > { %235 = vst [vmem:[%s969_s30 + $0x88] sm:$0xff] %v234_v17  ;;  %237 = vst [vmem:[%s969_s30 + $0x90] sm:$0xff] %v236_v18  ;;  %v244_v22 = vld [vmem:[%s961_s29 + $0x130] sm:$0xff]  ;;  %v246_v23 = vld [vmem:[%s961_s29 + $0x138] sm:$0xff] }
  0x1c   : > { %239 = vst [vmem:[%s969_s30 + $0x98] sm:$0xff] %v238_v19  ;;  %241 = vst [vmem:[%s969_s30 + $0xa0] sm:$0xff] %v240_v20  ;;  %v248_v24 = vld [vmem:[%s961_s29 + $0x180] sm:$0xff]  ;;  %v250_v25 = vld [vmem:[%s961_s29 + $0x188] sm:$0xff] }
  0x1d   : > { %243 = vst [vmem:[%s969_s30 + $0xa8] sm:$0xff] %v242_v21  ;;  %245 = vst [vmem:[%s969_s30 + $0xb0] sm:$0xff] %v244_v22  ;;  %v252_v26 = vld [vmem:[%s961_s29 + $0x190] sm:$0xff]  ;;  %v254_v27 = vld [vmem:[%s961_s29 + $0x198] sm:$0xff] }
  0x1e   : > { %247 = vst [vmem:[%s969_s30 + $0xb8] sm:$0xff] %v246_v23  ;;  %249 = vst [vmem:[%s969_s30 + $0xc0] sm:$0xff] %v248_v24  ;;  %v256_v28 = vld [vmem:[%s961_s29 + $0x1a0] sm:$0xff]  ;;  %v258_v29 = vld [vmem:[%s961_s29 + $0x1a8] sm:$0xff] }
  0x1f   : > { %251 = vst [vmem:[%s969_s30 + $0xc8] sm:$0xff] %v250_v25  ;;  %253 = vst [vmem:[%s969_s30 + $0xd0] sm:$0xff] %v252_v26  ;;  %v260_v30 = vld [vmem:[%s961_s29 + $0x1b0] sm:$0xff]  ;;  %v262_v31 = vld [vmem:[%s961_s29 + $0x1b8] sm:$0xff] }
  0x20   : > { %255 = vst [vmem:[%s969_s30 + $0xd8] sm:$0xff] %v254_v27  ;;  %257 = vst [vmem:[%s969_s30 + $0xe0] sm:$0xff] %v256_v28  ;;  %v264_v32 = vld [vmem:[%s961_s29 + $0x200] sm:$0xff]  ;;  %v266_v33 = vld [vmem:[%s961_s29 + $0x208] sm:$0xff] }
  0x21   : > { %259 = vst [vmem:[%s969_s30 + $0xe8] sm:$0xff] %v258_v29  ;;  %261 = vst [vmem:[%s969_s30 + $0xf0] sm:$0xff] %v260_v30  ;;  %v268_v34 = vld [vmem:[%s961_s29 + $0x210] sm:$0xff]  ;;  %v270_v35 = vld [vmem:[%s961_s29 + $0x218] sm:$0xff] }
  0x22   : > { %263 = vst [vmem:[%s969_s30 + $0xf8] sm:$0xff] %v262_v31  ;;  %265 = vst [vmem:[%s969_s30 + $0x100] sm:$0xff] %v264_v32  ;;  %v272_v36 = vld [vmem:[%s961_s29 + $0x220] sm:$0xff]  ;;  %v274_v37 = vld [vmem:[%s961_s29 + $0x228] sm:$0xff] }
  0x23   : > { %267 = vst [vmem:[%s969_s30 + $0x108] sm:$0xff] %v266_v33  ;;  %269 = vst [vmem:[%s969_s30 + $0x110] sm:$0xff] %v268_v34  ;;  %v276_v38 = vld [vmem:[%s961_s29 + $0x230] sm:$0xff]  ;;  %v278_v39 = vld [vmem:[%s961_s29 + $0x238] sm:$0xff] }
  0x24   : > { %271 = vst [vmem:[%s969_s30 + $0x118] sm:$0xff] %v270_v35  ;;  %273 = vst [vmem:[%s969_s30 + $0x120] sm:$0xff] %v272_v36  ;;  %v280_v40 = vld [vmem:[%s961_s29 + $0x280] sm:$0xff]  ;;  %v282_v41 = vld [vmem:[%s961_s29 + $0x288] sm:$0xff] }
  0x25   : > { %275 = vst [vmem:[%s969_s30 + $0x128] sm:$0xff] %v274_v37  ;;  %277 = vst [vmem:[%s969_s30 + $0x130] sm:$0xff] %v276_v38  ;;  %v284_v42 = vld [vmem:[%s961_s29 + $0x290] sm:$0xff]  ;;  %v286_v43 = vld [vmem:[%s961_s29 + $0x298] sm:$0xff] }
  0x26   : > { %279 = vst [vmem:[%s969_s30 + $0x138] sm:$0xff] %v278_v39  ;;  %281 = vst [vmem:[%s969_s30 + $0x140] sm:$0xff] %v280_v40  ;;  %v288_v44 = vld [vmem:[%s961_s29 + $0x2a0] sm:$0xff]  ;;  %v290_v45 = vld [vmem:[%s961_s29 + $0x2a8] sm:$0xff] }
  0x27   : > { %283 = vst [vmem:[%s969_s30 + $0x148] sm:$0xff] %v282_v41  ;;  %285 = vst [vmem:[%s969_s30 + $0x150] sm:$0xff] %v284_v42  ;;  %v292_v46 = vld [vmem:[%s961_s29 + $0x2b0] sm:$0xff]  ;;  %v294_v47 = vld [vmem:[%s961_s29 + $0x2b8] sm:$0xff] }
  0x28   : > { %287 = vst [vmem:[%s969_s30 + $0x158] sm:$0xff] %v286_v43  ;;  %289 = vst [vmem:[%s969_s30 + $0x160] sm:$0xff] %v288_v44 }
  0x29   : > { %291 = vst [vmem:[%s969_s30 + $0x168] sm:$0xff] %v290_v45  ;;  %293 = vst [vmem:[%s969_s30 + $0x170] sm:$0xff] %v292_v46 }
  0x2a   : > { %295 = vst [vmem:[%s969_s30 + $0x178] sm:$0xff] %v294_v47 }
  0x2b PF: > { %p784_p5 = scmp.ge.s32.totalorder %s893_s20, 1  ;;  %p300_p6 = scmp.lt.s32.totalorder %s893_s20, 3 }
  0x2d   : > { %p301_p7 = pnand %p784_p5, %p300_p6 }
  0x2e   : > { %s307_s6 = sand.u32 (!%p301_p7), 1, %s885_s18   ;;  %v341_v48 = vld [vmem:[%s1155_s2] sm:$0xff] (!%p301_p7)  ;;  %v895_v49 = vmov (!%p301_p7), 0.0   ;;  %v896_v50 = vmov (!%p301_p7), 0   ;;  %vm396_vm0 = vcmask (!%p301_p7), 392192   ;;  %s785_s13 = sshll.u32 (!%p301_p7), %s778_s3, 3 }
  0x2f   : > { %304 = sbr.rel (%p301_p7) target bundleno = 299 (0x12b), region = 59  ;;  %464 = vmatprep.mubr.f32.mxu0 (!%p301_p7), %v895_v49  ;;  %535 = vmatprep.mubr.f32.mxu1 (!%p301_p7), %v895_v49  ;;  %v342_v37 = vld [vmem:[%s1153_s0] sm:$0xff] (!%p301_p7)  ;;  %p336_p8 = scmp.lt.s32.totalorder (!%p301_p7), %s785_s13, 15 }
  0x30   : > { %s843_s9 = smul.u32 (!%p301_p7), 384, %s307_s6  ;;  %870 = vset.pattern.permute.xlu0 (!%p301_p7), %v896_v50 }
  0x31   : > { %393 = vperm.xlu0 (!%p301_p7), %870, %v341_v48  }
  0x32   : > { %s1069_s10 = scalar_lea.vmem (!%p301_p7), [#allocation2], %s843_s9 }
  0x33   : > { %v344_v51 = vld [vmem:[%s1069_s10 + $0x8] sm:$0xff] (!%p301_p7)  ;;  %v346_v53 = vld [vmem:[%s1069_s10 + $0x18] sm:$0xff] (!%p301_p7)  ;;  %v343_v56 = vld [vmem:[%s1069_s10] sm:$0xff] (!%p301_p7) }
  0x34   : > { %v352_v52 = vld [vmem:[%s1069_s10 + $0x48] sm:$0xff] (!%p301_p7)  ;;  %v354_v55 = vld [vmem:[%s1069_s10 + $0x58] sm:$0xff] (!%p301_p7)  ;;  %v351_v57 = vld [vmem:[%s1069_s10 + $0x40] sm:$0xff] (!%p301_p7) }
  0x35   : > { %v794_v54 = vpack.c.bf16 (!%p301_p7), %v352_v52, %v344_v51  ;;  %v806_v58 = vpack.c.bf16 (!%p301_p7), %v354_v55, %v346_v53  ;;  %v796_v59 = vpack.c.bf16 (!%p301_p7), %v351_v57, %v343_v56  ;;  %v345_v60 = vld [vmem:[%s1069_s10 + $0x10] sm:$0xff] (!%p301_p7)  ;;  %v360_v62 = vld [vmem:[%s1069_s10 + $0x88] sm:$0xff] (!%p301_p7)  ;;  %v362_v1 = vld [vmem:[%s1069_s10 + $0x98] sm:$0xff] (!%p301_p7) }
  0x36   : > { %v353_v61 = vld [vmem:[%s1069_s10 + $0x50] sm:$0xff]  ;;  %v368_v0 = vld [vmem:[%s1069_s10 + $0xc8] sm:$0xff]  ;;  %v370_v2 = vld [vmem:[%s1069_s10 + $0xd8] sm:$0xff]  ;;  %s1163_s13 = smov (!%p336_p8, %s785_s13), 15 }
  0x37   : > { %795 = vmatprep.subr.bf16.mxu0 %v794_v54  ;;  %v808_v63 = vpack.c.bf16 %v353_v61, %v345_v60  ;;  %807 = vmatprep.subr.bf16.mxu1 %v806_v58  ;;  %v798_v3 = vpack.c.bf16 %v368_v0, %v360_v62  ;;  %v810_v4 = vpack.c.bf16 %v370_v2, %v362_v1  ;;  %v359_v5 = vld [vmem:[%s1069_s10 + $0x80] sm:$0xff]  ;;  %v361_v7 = vld [vmem:[%s1069_s10 + $0x90] sm:$0xff]  ;;  %v376_v10 = vld [vmem:[%s1069_s10 + $0x108] sm:$0xff]  ;;  %s786_s14 = sshll.u32 %s1163_s13, 3 }
  0x38   : > { %797 = vmatpush1.bf16.msra.mxu0 %v796_v59  ;;  %v367_v6 = vld [vmem:[%s1069_s10 + $0xc0] sm:$0xff]  ;;  %v369_v9 = vld [vmem:[%s1069_s10 + $0xd0] sm:$0xff]  ;;  %v384_v11 = vld [vmem:[%s1069_s10 + $0x148] sm:$0xff]  ;;  %s1133_s17 = scalar_lea.vmem %s1158_s5, %s786_s14 }
  0x39   : > { %809 = vmatpush1.bf16.msra.mxu1 %v808_v63  ;;  %v800_v8 = vpack.c.bf16 %v367_v6, %v359_v5  ;;  %799 = vmatprep.subr.bf16.mxu0 %v798_v3  ;;  %v812_v12 = vpack.c.bf16 %v369_v9, %v361_v7  ;;  %v802_v13 = vpack.c.bf16 %v384_v11, %v376_v10  ;;  %v378_v14 = vld [vmem:[%s1069_s10 + $0x118] sm:$0xff]  ;;  %v375_v16 = vld [vmem:[%s1069_s10 + $0x100] sm:$0xff]  ;;  %v377_v19 = vld [vmem:[%s1069_s10 + $0x110] sm:$0xff] }
  0x3a   : > { %811 = vmatprep.subr.bf16.mxu1 %v810_v4  ;;  %v386_v15 = vld [vmem:[%s1069_s10 + $0x158] sm:$0xff]  ;;  %v383_v18 = vld [vmem:[%s1069_s10 + $0x140] sm:$0xff]  ;;  %v385_v20 = vld [vmem:[%s1069_s10 + $0x150] sm:$0xff] }
  0x3b   : > { %v814_v17 = vpack.c.bf16 %v386_v15, %v378_v14  ;;  %v804_v21 = vpack.c.bf16 %v383_v18, %v375_v16  ;;  %v348_v22 = vld [vmem:[%s1069_s10 + $0x28] sm:$0xff]  ;;  %v350_v24 = vld [vmem:[%s1069_s10 + $0x38] sm:$0xff]  ;;  %v816_v25 = vpack.c.bf16 %v385_v20, %v377_v19  ;;  %v347_v28 = vld [vmem:[%s1069_s10 + $0x20] sm:$0xff] }
  0x3c   : > { %801 = vmatpush1.bf16.msra.mxu0 %v800_v8  ;;  %v356_v23 = vld [vmem:[%s1069_s10 + $0x68] sm:$0xff]  ;;  %v358_v27 = vld [vmem:[%s1069_s10 + $0x78] sm:$0xff]  ;;  %v355_v29 = vld [vmem:[%s1069_s10 + $0x60] sm:$0xff] }
  0x3d   : > { %813 = vmatpush1.bf16.msra.mxu1 %v812_v12  ;;  %803 = vmatprep.subr.bf16.mxu0 %v802_v13  ;;  %v818_v26 = vpack.c.bf16 %v356_v23, %v348_v22  ;;  %v830_v30 = vpack.c.bf16 %v358_v27, %v350_v24  ;;  %v349_v31 = vld [vmem:[%s1069_s10 + $0x30] sm:$0xff]  ;;  %v364_v33 = vld [vmem:[%s1069_s10 + $0xa8] sm:$0xff]  ;;  %v366_v35 = vld [vmem:[%s1069_s10 + $0xb8] sm:$0xff]  ;;  %v820_v38 = vpack.c.bf16 %v355_v29, %v347_v28 }
  0x3e   : > { %815 = vmatprep.subr.bf16.mxu1 %v814_v17  ;;  %v357_v32 = vld [vmem:[%s1069_s10 + $0x70] sm:$0xff]  ;;  %v372_v34 = vld [vmem:[%s1069_s10 + $0xe8] sm:$0xff]  ;;  %v374_v36 = vld [vmem:[%s1069_s10 + $0xf8] sm:$0xff] }
  0x3f   : > { %v832_v39 = vpack.c.bf16 %v357_v32, %v349_v31  ;;  %v822_v40 = vpack.c.bf16 %v372_v34, %v364_v33  ;;  %v363_v41 = vld [vmem:[%s1069_s10 + $0xa0] sm:$0xff]  ;;  %v365_v43 = vld [vmem:[%s1069_s10 + $0xb0] sm:$0xff]  ;;  %v834_v44 = vpack.c.bf16 %v374_v36, %v366_v35  ;;  %v380_v46 = vld [vmem:[%s1069_s10 + $0x128] sm:$0xff] }
  0x40   : > { %805 = vmatpush1.bf16.msra.mxu0 %v804_v21  ;;  %v371_v42 = vld [vmem:[%s1069_s10 + $0xe0] sm:$0xff]  ;;  %v373_v45 = vld [vmem:[%s1069_s10 + $0xf0] sm:$0xff]  ;;  %v388_v47 = vld [vmem:[%s1069_s10 + $0x168] sm:$0xff] }
  0x41   : > { %817 = vmatpush1.bf16.msra.mxu1 %v816_v25  ;;  %819 = vmatprep.subr.bf16.mxu0 %v818_v26  ;;  %v382_v48 = vld [vmem:[%s1069_s10 + $0x138] sm:$0xff]  ;;  %v824_v51 = vpack.c.bf16 %v371_v42, %v363_v41  ;;  %v836_v52 = vpack.c.bf16 %v373_v45, %v365_v43  ;;  %v826_v53 = vpack.c.bf16 %v388_v47, %v380_v46  ;;  %v379_v54 = vld [vmem:[%s1069_s10 + $0x120] sm:$0xff]  ;;  %v381_v57 = vld [vmem:[%s1069_s10 + $0x130] sm:$0xff] }
  0x42   : > { %831 = vmatprep.subr.bf16.mxu1 %v830_v30  ;;  %v390_v50 = vld [vmem:[%s1069_s10 + $0x178] sm:$0xff]  ;;  %v387_v55 = vld [vmem:[%s1069_s10 + $0x160] sm:$0xff]  ;;  %v389_v58 = vld [vmem:[%s1069_s10 + $0x170] sm:$0xff] }
  0x43   : > { %787 = vmatmul.mubr.msk.f32.vlgmr.msra.gmra.mrb[0].mxu0 %vm396_vm0, %v342_v37  ;;  %v838_v56 = vpack.c.bf16 %v390_v50, %v382_v48  ;;  %v828_v59 = vpack.c.bf16 %v387_v55, %v379_v54  ;;  %v840_v60 = vpack.c.bf16 %v389_v58, %v381_v57 }
  0x44   : > { %788 = vmatmul.mubr.msk.f32.vlgmr.msra.gmra.mrb[0].mxu1 %vm396_vm0, %v342_v37  ;;  %821 = vmatpush1.bf16.msra.mxu0 %v820_v38 }
  0x45   : > { %833 = vmatpush1.bf16.msra.mxu1 %v832_v39  ;;  %823 = vmatprep.subr.bf16.mxu0 %v822_v40 }
  0x46   : > { %835 = vmatprep.subr.bf16.mxu1 %v834_v44  ;;  %606 = vmatprep.mubr.f32.mxu0 %v895_v49 }
  0x47   : > { %677 = vmatprep.mubr.f32.mxu1 %v895_v49 }
  0x48   : > { %825 = vmatpush1.bf16.msra.mxu0 %v824_v51 }
  0x49   : > { %837 = vmatpush1.bf16.msra.mxu1 %v836_v52  ;;  %827 = vmatprep.subr.bf16.mxu0 %v826_v53 }
  0x4a   : > { %839 = vmatprep.subr.bf16.mxu1 %v838_v56 }
  0x4c   : > { %829 = vmatpush1.bf16.msra.mxu0 %v828_v59 }
  0x4d   : > { %841 = vmatpush1.bf16.msra.mxu1 %v840_v60 }
  0x4f   : > { %789 = vmatmul.mubr.msk.f32.vlgmr.msra.gmra.mrb[2].mxu0 %vm396_vm0, %v342_v37 }
  0x50   : > { %790 = vmatmul.mubr.msk.f32.vlgmr.msra.gmra.mrb[2].mxu1 %vm396_vm0, %v342_v37 }
  0xb0   : > { %v394_v61 = vpop.permute.xlu0 %393 }
 0x116   : > { %v466_v62 = vpop.f32.mrb[0].mxu0 }
 0x117   : > { %v467_v49 = vadd.f32 %v466_v62, %v394_v61  ;;  %v537_v63 = vpop.f32.mrb[0].mxu1  ;;  %v468_v0 = vpop.f32.mrb[1].mxu0 }
 0x118   : > { %v538_v1 = vadd.f32 %v537_v63, %v394_v61  ;;  %v469_v2 = vadd.f32 %v468_v0, %v394_v61  ;;  %v539_v3 = vpop.f32.mrb[1].mxu1 }
 0x119   : > { %vm684_vm1 = vcmp.ge.f32.partialorder %v467_v49, 0.0  ;;  %v692_v4 = vmul.f32 0.1, %v467_v49  ;;  %v540_v5 = vadd.f32 %v539_v3, %v394_v61 }
 0x11a   : > { %vm686_vm2 = vcmp.ge.f32.partialorder %v538_v1, 0.0  ;;  %v694_v6 = vmul.f32 0.1, %v538_v1  ;;  %vm685_vm3 = vcmp.ge.f32.partialorder %v469_v2, 0.0  ;;  %v693_v7 = vmul.f32 0.1, %v469_v2 }
 0x11b   : > { %v700_v8 = vsel %vm684_vm1, %v467_v49, %v692_v4  ;;  %vm687_vm4 = vcmp.ge.f32.partialorder %v540_v5, 0.0  ;;  %v695_v9 = vmul.f32 0.1, %v540_v5 }
 0x11c   : > { %708 = vst [vmem:[%s1133_s17] sm:$0xff] %v700_v8  ;;  %v702_v10 = vsel %vm686_vm2, %v538_v1, %v694_v6  ;;  %v701_v11 = vsel %vm685_vm3, %v469_v2, %v693_v7 }
 0x11d   : > { %710 = vst [vmem:[%s1133_s17 + $0x10] sm:$0xff] %v702_v10  ;;  %709 = vst [vmem:[%s1133_s17 + $0x8] sm:$0xff] %v701_v11  ;;  %v703_v12 = vsel %vm687_vm4, %v540_v5, %v695_v9 }
 0x11e   : > { %711 = vst [vmem:[%s1133_s17 + $0x18] sm:$0xff] %v703_v12 }
 0x122   : > { %v608_v13 = vpop.f32.mrb[2].mxu0 }
 0x123   : > { %v609_v14 = vadd.f32 %v608_v13, %v394_v61  ;;  %v679_v15 = vpop.f32.mrb[2].mxu1  ;;  %v610_v16 = vpop.f32.mrb[3].mxu0 }
 0x124   : > { %v680_v17 = vadd.f32 %v679_v15, %v394_v61  ;;  %v611_v18 = vadd.f32 %v610_v16, %v394_v61  ;;  %v681_v19 = vpop.f32.mrb[3].mxu1 }
 0x125   : > { %vm688_vm5 = vcmp.ge.f32.partialorder %v609_v14, 0.0  ;;  %v696_v20 = vmul.f32 0.1, %v609_v14  ;;  %v682_v21 = vadd.f32 %v681_v19, %v394_v61 }
 0x126   : > { %vm690_vm6 = vcmp.ge.f32.partialorder %v680_v17, 0.0  ;;  %v698_v22 = vmul.f32 0.1, %v680_v17  ;;  %vm689_vm7 = vcmp.ge.f32.partialorder %v611_v18, 0.0  ;;  %v697_v23 = vmul.f32 0.1, %v611_v18 }
 0x127   : > { %v704_v24 = vsel %vm688_vm5, %v609_v14, %v696_v20  ;;  %vm691_vm8 = vcmp.ge.f32.partialorder %v682_v21, 0.0  ;;  %v699_v25 = vmul.f32 0.1, %v682_v21 }
 0x128   : > { %712 = vst [vmem:[%s1133_s17 + $0x20] sm:$0xff] %v704_v24  ;;  %v706_v26 = vsel %vm690_vm6, %v680_v17, %v698_v22  ;;  %v705_v27 = vsel %vm689_vm7, %v611_v18, %v697_v23 }
 0x129   : > { %714 = vst [vmem:[%s1133_s17 + $0x30] sm:$0xff] %v706_v26  ;;  %713 = vst [vmem:[%s1133_s17 + $0x28] sm:$0xff] %v705_v27  ;;  %v707_v28 = vsel %vm691_vm8, %v682_v21, %v699_v25 }
 0x12a   : > { %715 = vst [vmem:[%s1133_s17 + $0x38] sm:$0xff] %v707_v28 }
 0x12b PF: > { %p12_p9 = scmp.ge.s32.totalorder %s944_s4, 4   ;;  %s1159_s18 = smov %s889_s19 }
 0x12c   : > { %s1160_s19 = smov %s953_s23  ;;  %s1161_s20 = smov %s944_s4 }
 0x12d   :  { %14 = sbr.rel (!%p12_p9) target bundleno = 2 (0x2), region = 98 }

// kernel: cnn_autoencoder_forward.10
= control target key start
LH: loop header
LB: loop body
LE: loop exit
PB: predicated region body
PF: predicated region fallthrough
CT: control target
= control target key end

     0   :  { %v455_v3 = vmov 0.0   ;;  %v456_v8 = vmov 0   ;;  %s771_s1 = inlined_call_operand.vmem [shape: f32[1,128,512], index: 1, kind: input, shape index: {}]   ;;  %s772_s2 = inlined_call_operand.vmem [shape: f32[16,1], index: 2, kind: input, shape index: {}]   ;;  %s773_s0 = inlined_call_operand.vmem [shape: f32[1,16,128], index: 0, kind: input, shape index: {}]   ;;  %s774_s3 = inlined_call_operand.vmem [shape: f32[16,1], index: 3, kind: input, shape index: {}]   ;;  %s775_s4 = inlined_call_operand.vmem [shape: f32[16,1], index: 4, kind: input, shape index: {}]   ;;  %s776_s5 = inlined_call_operand.vmem [shape: f32[1,16,512], index: 5, kind: output, shape index: {}]  }
   0x1   :  { %v25_v0 = vld [vmem:[%s771_s1 + $0x8] sm:$0xff]  ;;  %v27_v2 = vld [vmem:[%s771_s1 + $0x18] sm:$0xff]  ;;  %162 = vmatprep.mubr.f32.mxu0 %v455_v3  ;;  %239 = vmatprep.mubr.f32.mxu1 %v455_v3  ;;  %v24_v6 = vld [vmem:[%s771_s1] sm:$0xff] }
   0x2   :  { %v29_v1 = vld [vmem:[%s771_s1 + $0x28] sm:$0xff]  ;;  %v31_v5 = vld [vmem:[%s771_s1 + $0x38] sm:$0xff]  ;;  %v28_v7 = vld [vmem:[%s771_s1 + $0x20] sm:$0xff]  ;;  %449 = vset.pattern.permute.xlu0 %v456_v8  ;;  %450 = vset.pattern.permute.xlu1 %v456_v8 }
   0x3   :  { %v383_v4 = vpack.c.bf16 %v29_v1, %v25_v0  ;;  %v415_v9 = vpack.c.bf16 %v31_v5, %v27_v2  ;;  %v385_v10 = vpack.c.bf16 %v28_v7, %v24_v6  ;;  %v26_v11 = vld [vmem:[%s771_s1 + $0x10] sm:$0xff]  ;;  %v33_v13 = vld [vmem:[%s771_s1 + $0x48] sm:$0xff]  ;;  %v35_v16 = vld [vmem:[%s771_s1 + $0x58] sm:$0xff] }
   0x4   :  { %v30_v12 = vld [vmem:[%s771_s1 + $0x30] sm:$0xff]  ;;  %v37_v15 = vld [vmem:[%s771_s1 + $0x68] sm:$0xff]  ;;  %v39_v17 = vld [vmem:[%s771_s1 + $0x78] sm:$0xff] }
   0x5   :  { %384 = vmatprep.subr.bf16.mxu0 %v383_v4  ;;  %v417_v14 = vpack.c.bf16 %v30_v12, %v26_v11  ;;  %416 = vmatprep.subr.bf16.mxu1 %v415_v9  ;;  %v387_v18 = vpack.c.bf16 %v37_v15, %v33_v13  ;;  %v419_v19 = vpack.c.bf16 %v39_v17, %v35_v16  ;;  %v32_v20 = vld [vmem:[%s771_s1 + $0x40] sm:$0xff]  ;;  %v34_v22 = vld [vmem:[%s771_s1 + $0x50] sm:$0xff]  ;;  %v41_v25 = vld [vmem:[%s771_s1 + $0x88] sm:$0xff] }
   0x6   :  { %386 = vmatpush1.bf16.msra.mxu0 %v385_v10  ;;  %v36_v21 = vld [vmem:[%s771_s1 + $0x60] sm:$0xff]  ;;  %v38_v24 = vld [vmem:[%s771_s1 + $0x70] sm:$0xff]  ;;  %v45_v26 = vld [vmem:[%s771_s1 + $0xa8] sm:$0xff] }
   0x7   :  { %418 = vmatpush1.bf16.msra.mxu1 %v417_v14  ;;  %v389_v23 = vpack.c.bf16 %v36_v21, %v32_v20  ;;  %388 = vmatprep.subr.bf16.mxu0 %v387_v18  ;;  %v421_v27 = vpack.c.bf16 %v38_v24, %v34_v22  ;;  %v391_v28 = vpack.c.bf16 %v45_v26, %v41_v25  ;;  %v43_v29 = vld [vmem:[%s771_s1 + $0x98] sm:$0xff]  ;;  %v40_v31 = vld [vmem:[%s771_s1 + $0x80] sm:$0xff]  ;;  %v42_v34 = vld [vmem:[%s771_s1 + $0x90] sm:$0xff] }
   0x8   :  { %420 = vmatprep.subr.bf16.mxu1 %v419_v19  ;;  %v47_v30 = vld [vmem:[%s771_s1 + $0xb8] sm:$0xff]  ;;  %v44_v33 = vld [vmem:[%s771_s1 + $0xa0] sm:$0xff]  ;;  %v46_v35 = vld [vmem:[%s771_s1 + $0xb0] sm:$0xff] }
   0x9   :  { %v423_v32 = vpack.c.bf16 %v47_v30, %v43_v29  ;;  %v393_v36 = vpack.c.bf16 %v44_v33, %v40_v31  ;;  %v49_v37 = vld [vmem:[%s771_s1 + $0xc8] sm:$0xff]  ;;  %v51_v39 = vld [vmem:[%s771_s1 + $0xd8] sm:$0xff]  ;;  %v425_v40 = vpack.c.bf16 %v46_v35, %v42_v34  ;;  %v48_v43 = vld [vmem:[%s771_s1 + $0xc0] sm:$0xff] }
   0xa   :  { %390 = vmatpush1.bf16.msra.mxu0 %v389_v23  ;;  %v53_v38 = vld [vmem:[%s771_s1 + $0xe8] sm:$0xff]  ;;  %v55_v42 = vld [vmem:[%s771_s1 + $0xf8] sm:$0xff]  ;;  %v52_v44 = vld [vmem:[%s771_s1 + $0xe0] sm:$0xff] }
   0xb   :  { %422 = vmatpush1.bf16.msra.mxu1 %v421_v27  ;;  %392 = vmatprep.subr.bf16.mxu0 %v391_v28  ;;  %v395_v41 = vpack.c.bf16 %v53_v38, %v49_v37  ;;  %v427_v45 = vpack.c.bf16 %v55_v42, %v51_v39  ;;  %v50_v46 = vld [vmem:[%s771_s1 + $0xd0] sm:$0xff]  ;;  %v57_v48 = vld [vmem:[%s771_s1 + $0x108] sm:$0xff]  ;;  %v59_v50 = vld [vmem:[%s771_s1 + $0x118] sm:$0xff]  ;;  %v397_v52 = vpack.c.bf16 %v52_v44, %v48_v43 }
   0xc   :  { %424 = vmatprep.subr.bf16.mxu1 %v423_v32  ;;  %v54_v47 = vld [vmem:[%s771_s1 + $0xf0] sm:$0xff]  ;;  %v61_v49 = vld [vmem:[%s771_s1 + $0x128] sm:$0xff]  ;;  %v63_v51 = vld [vmem:[%s771_s1 + $0x138] sm:$0xff] }
   0xd   :  { %v429_v53 = vpack.c.bf16 %v54_v47, %v50_v46  ;;  %v399_v54 = vpack.c.bf16 %v61_v49, %v57_v48  ;;  %v56_v55 = vld [vmem:[%s771_s1 + $0x100] sm:$0xff]  ;;  %v58_v57 = vld [vmem:[%s771_s1 + $0x110] sm:$0xff]  ;;  %v431_v58 = vpack.c.bf16 %v63_v51, %v59_v50  ;;  %v65_v60 = vld [vmem:[%s771_s1 + $0x148] sm:$0xff] }
   0xe   :  { %394 = vmatpush1.bf16.msra.mxu0 %v393_v36  ;;  %v60_v56 = vld [vmem:[%s771_s1 + $0x120] sm:$0xff]  ;;  %v62_v59 = vld [vmem:[%s771_s1 + $0x130] sm:$0xff]  ;;  %v69_v61 = vld [vmem:[%s771_s1 + $0x168] sm:$0xff] }
   0xf   :  { %426 = vmatpush1.bf16.msra.mxu1 %v425_v40  ;;  %396 = vmatprep.subr.bf16.mxu0 %v395_v41  ;;  %v67_v62 = vld [vmem:[%s771_s1 + $0x158] sm:$0xff]  ;;  %v401_v0 = vpack.c.bf16 %v60_v56, %v56_v55  ;;  %v433_v1 = vpack.c.bf16 %v62_v59, %v58_v57  ;;  %v403_v2 = vpack.c.bf16 %v69_v61, %v65_v60  ;;  %v64_v4 = vld [vmem:[%s771_s1 + $0x140] sm:$0xff]  ;;  %v66_v6 = vld [vmem:[%s771_s1 + $0x150] sm:$0xff] }
  0x10   :  { %428 = vmatprep.subr.bf16.mxu1 %v427_v45  ;;  %v71_v63 = vld [vmem:[%s771_s1 + $0x178] sm:$0xff]  ;;  %v68_v5 = vld [vmem:[%s771_s1 + $0x160] sm:$0xff]  ;;  %v70_v8 = vld [vmem:[%s771_s1 + $0x170] sm:$0xff] }
  0x11   :  { %v435_v7 = vpack.c.bf16 %v71_v63, %v67_v62  ;;  %v73_v9 = vld [vmem:[%s771_s1 + $0x188] sm:$0xff]  ;;  %v75_v11 = vld [vmem:[%s771_s1 + $0x198] sm:$0xff]  ;;  %v405_v13 = vpack.c.bf16 %v68_v5, %v64_v4  ;;  %v72_v14 = vld [vmem:[%s771_s1 + $0x180] sm:$0xff]  ;;  %v437_v15 = vpack.c.bf16 %v70_v8, %v66_v6 }
  0x12   :  { %398 = vmatpush1.bf16.msra.mxu0 %v397_v52  ;;  %v77_v10 = vld [vmem:[%s771_s1 + $0x1a8] sm:$0xff]  ;;  %v79_v12 = vld [vmem:[%s771_s1 + $0x1b8] sm:$0xff]  ;;  %v76_v17 = vld [vmem:[%s771_s1 + $0x1a0] sm:$0xff] }
  0x13   :  { %430 = vmatpush1.bf16.msra.mxu1 %v429_v53  ;;  %400 = vmatprep.subr.bf16.mxu0 %v399_v54  ;;  %v407_v16 = vpack.c.bf16 %v77_v10, %v73_v9  ;;  %v74_v18 = vld [vmem:[%s771_s1 + $0x190] sm:$0xff]  ;;  %v439_v20 = vpack.c.bf16 %v79_v12, %v75_v11  ;;  %v81_v21 = vld [vmem:[%s771_s1 + $0x1c8] sm:$0xff]  ;;  %v20_v23 = vld [vmem:[%s772_s2] sm:$0xff]  ;;  %v409_v26 = vpack.c.bf16 %v76_v17, %v72_v14 }
  0x14   :  { %432 = vmatprep.subr.bf16.mxu1 %v431_v58  ;;  %v78_v19 = vld [vmem:[%s771_s1 + $0x1b0] sm:$0xff]  ;;  %v85_v22 = vld [vmem:[%s771_s1 + $0x1e8] sm:$0xff]  ;;  %v83_v24 = vld [vmem:[%s771_s1 + $0x1d8] sm:$0xff]  ;;  %90 = vperm.xlu0 %449, %v20_v23  }
  0x15   :  { %v87_v25 = vld [vmem:[%s771_s1 + $0x1f8] sm:$0xff]  ;;  %v21_v27 = vld [vmem:[%s772_s2 + $0x8] sm:$0xff]  ;;  %v441_v28 = vpack.c.bf16 %v78_v19, %v74_v18  ;;  %v411_v29 = vpack.c.bf16 %v85_v22, %v81_v21  ;;  %v80_v30 = vld [vmem:[%s771_s1 + $0x1c0] sm:$0xff] }
  0x16   :  { %402 = vmatpush1.bf16.msra.mxu0 %v401_v0  ;;  %v84_v31 = vld [vmem:[%s771_s1 + $0x1e0] sm:$0xff]  ;;  %v443_v32 = vpack.c.bf16 %v87_v25, %v83_v24  ;;  %v82_v33 = vld [vmem:[%s771_s1 + $0x1d0] sm:$0xff]  ;;  %v23_v38 = vld [vmem:[%s773_s0 + $0x8] sm:$0xff] }
  0x17   :  { %434 = vmatpush1.bf16.msra.mxu1 %v433_v1  ;;  %404 = vmatprep.subr.bf16.mxu0 %v403_v2  ;;  %v86_v34 = vld [vmem:[%s771_s1 + $0x1f0] sm:$0xff]  ;;  %v413_v35 = vpack.c.bf16 %v84_v31, %v80_v30  ;;  %v22_v37 = vld [vmem:[%s773_s0] sm:$0xff] }
  0x18   :  { %436 = vmatprep.subr.bf16.mxu1 %v435_v7  ;;  %95 = vperm.xlu0 %449, %v21_v27   ;;  %v445_v36 = vpack.c.bf16 %v86_v34, %v82_v33  ;;  %v297_v31 = vld [vmem:[%s774_s3] sm:$0xff]  ;;  %v298_v34 = vld [vmem:[%s774_s3 + $0x8] sm:$0xff] }
  0x1a   :  { %406 = vmatpush1.bf16.msra.mxu0 %v405_v13 }
  0x1b   :  { %438 = vmatpush1.bf16.msra.mxu1 %v437_v15  ;;  %408 = vmatprep.subr.bf16.mxu0 %v407_v16 }
  0x1c   :  { %440 = vmatprep.subr.bf16.mxu1 %v439_v20 }
  0x1e   :  { %410 = vmatpush1.bf16.msra.mxu0 %v409_v26 }
  0x1f   :  { %442 = vmatpush1.bf16.msra.mxu1 %v441_v28  ;;  %412 = vmatprep.subr.bf16.mxu0 %v411_v29 }
  0x20   :  { %444 = vmatprep.subr.bf16.mxu1 %v443_v32 }
  0x22   :  { %414 = vmatpush1.bf16.msra.mxu0 %v413_v35 }
  0x23   :  { %446 = vmatpush1.bf16.msra.mxu1 %v445_v36 }
  0x25   :  { %163 = vmatmul.mubr.f32.vlgmr.msra.gmra.mrb[0].mxu0 %v22_v37 }
  0x26   :  { %240 = vmatmul.mubr.f32.vlgmr.msra.gmra.mrb[0].mxu1 %v22_v37  ;;  %168 = vmatprep.mubr.f32.mxu0 %v455_v3 }
  0x27   :  { %245 = vmatprep.mubr.f32.mxu1 %v455_v3 }
  0x29   :  { %169 = vmatmul.mubr.f32.gmra.mrb[2].mxu0 %v23_v38 }
  0x2a   :  { %246 = vmatmul.mubr.f32.gmra.mrb[2].mxu1 %v23_v38  ;;  %v305_v38 = vld [vmem:[%s775_s4] sm:$0xff] }
  0x93   :  { %v91_v39 = vpop.permute.xlu0 %90 }
  0x97   :  { %v96_v47 = vpop.permute.xlu0 %95 }
  0xf8   :  { %v164_v40 = vpop.f32.mrb[0].mxu0 }
  0xf9   :  { %v695_v41 = vadd.f32 %v164_v40, %v91_v39  ;;  %v241_v42 = vpop.f32.mrb[0].mxu1  ;;  %v166_v43 = vpop.f32.mrb[1].mxu0 }
  0xfa   :  { %v697_v44 = vadd.f32 %v166_v43, %v91_v39  ;;  %v243_v45 = vpop.f32.mrb[1].mxu1  ;;  %v699_v46 = vadd.f32 %v241_v42, %v91_v39  ;;  %v306_v42 = vld [vmem:[%s775_s4 + $0x8] sm:$0xff] }
  0xfb   :  { %v705_v52 = vadd.f32 %v243_v45, %v91_v39 }
  0xfc   :  { %v170_v48 = vpop.f32.mrb[2].mxu0  ;;  %v252_v49 = vadd.f32 %v697_v44, %v695_v41 }
  0xfd   :  { %v703_v50 = vadd.f32 %v170_v48, %v96_v47  ;;  %v247_v3 = vpop.f32.mrb[2].mxu1  ;;  %v172_v51 = vpop.f32.mrb[3].mxu0 }
  0xfe   :  { %v707_v53 = vadd.f32 %v172_v51, %v96_v47  ;;  %v249_v54 = vpop.f32.mrb[3].mxu1  ;;  %v253_v55 = vadd.f32 %v252_v49, %v699_v46  ;;  %v710_v56 = vadd.f32 %v247_v3, %v96_v47 }
  0xff   :  { %v715_v59 = vadd.f32 %v249_v54, %v96_v47 }
 0x100   :  { %v257_v57 = vadd.f32 %v707_v53, %v703_v50  ;;  %v254_v58 = vadd.f32 %v253_v55, %v705_v52 }
 0x102   :  { %255 = vadd.xlane.f32.xlu1 %v254_v58  ;;  %v258_v60 = vadd.f32 %v257_v57, %v710_v56 }
 0x104   :  { %v259_v61 = vadd.f32 %v258_v60, %v715_v59 }
 0x106   :  { %260 = vadd.xlane.f32.xlu1 %v259_v61 }
 0x18f   :  { %v256_v62 = vpop.xlane.xlu1 %255 }
 0x190   :  { %v265_v63 = vmul.f32 0.001953125, %v256_v62 }
 0x192   :  { %v267_v0 = vsub.f32 %v695_v41, %v265_v63  ;;  %v268_v1 = vsub.f32 %v697_v44, %v265_v63  ;;  %v269_v2 = vsub.f32 %v699_v46, %v265_v63  ;;  %v270_v5 = vsub.f32 %v705_v52, %v265_v63 }
 0x193   :  { %v261_v4 = vpop.xlane.xlu1 %260 }
 0x194   :  { %v266_v6 = vmul.f32 0.001953125, %v261_v4  ;;  %v275_v7 = vmul.f32 %v267_v0, %v267_v0  ;;  %v276_v8 = vmul.f32 %v268_v1, %v268_v1  ;;  %v277_v9 = vmul.f32 %v269_v2, %v269_v2 }
 0x195   :  { %v278_v14 = vmul.f32 %v270_v5, %v270_v5 }
 0x196   :  { %v283_v10 = vadd.f32 %v276_v8, %v275_v7  ;;  %v271_v11 = vsub.f32 %v703_v50, %v266_v6  ;;  %v272_v12 = vsub.f32 %v707_v53, %v266_v6  ;;  %v273_v13 = vsub.f32 %v710_v56, %v266_v6 }
 0x197   :  { %v274_v16 = vsub.f32 %v715_v59, %v266_v6 }
 0x198   :  { %v284_v15 = vadd.f32 %v283_v10, %v277_v9  ;;  %v279_v17 = vmul.f32 %v271_v11, %v271_v11  ;;  %v280_v18 = vmul.f32 %v272_v12, %v272_v12  ;;  %v281_v20 = vmul.f32 %v273_v13, %v273_v13 }
 0x199   :  { %v282_v22 = vmul.f32 %v274_v16, %v274_v16 }
 0x19a   :  { %v285_v19 = vadd.f32 %v284_v15, %v278_v14  ;;  %v288_v21 = vadd.f32 %v280_v18, %v279_v17 }
 0x19c   :  { %286 = vadd.xlane.f32.xlu0 %v285_v19  ;;  %v289_v23 = vadd.f32 %v288_v21, %v281_v20 }
 0x19e   :  { %v290_v24 = vadd.f32 %v289_v23, %v282_v22 }
 0x1a0   :  { %291 = vadd.xlane.f32.xlu1 %v290_v24 }
 0x229   :  { %v287_v25 = vpop.xlane.xlu0 %286 }
 0x22a   :  { %v295_v26 = vmul.f32 0.001953125, %v287_v25 }
 0x22c   :  { %v299_v27 = vadd.f32 1e-05, %v295_v26 }
 0x22d   :  { %v292_v28 = vpop.xlane.xlu1 %291 }
 0x22e   :  { %451 = vrsqrt.f32 %v299_v27  ;;  %v296_v29 = vmul.f32 0.001953125, %v292_v28 }
 0x230   :  { %v300_v30 = vadd.f32 1e-05, %v296_v29 }
 0x232   :  { %453 = vrsqrt.f32 %v300_v30 }
 0x238   :  { %v452_v32 = vpop.eup %451 }
 0x239   :  { %v303_v33 = vmul.f32 %v452_v32, %v297_v31 }
 0x23b   :  { %313 = vperm.xlu1 %450, %v303_v33   ;;  %v307_v37 = vmul.f32 %v303_v33, %v265_v63 }
 0x23c   :  { %v454_v35 = vpop.eup %453 }
 0x23d   :  { %v304_v36 = vmul.f32 %v454_v35, %v298_v34  ;;  %v309_v39 = vsub.f32 %v305_v38, %v307_v37 }
 0x23f   :  { %318 = vperm.xlu1 %450, %v304_v36   ;;  %v308_v40 = vmul.f32 %v304_v36, %v266_v6 }
 0x241   :  { %v310_v43 = vsub.f32 %v306_v42, %v308_v40 }
 0x243   :  { %331 = vperm.xlu1 %450, %v309_v39  }
 0x247   :  { %336 = vperm.xlu1 %450, %v310_v43  }
 0x2ba   :  { %v314_v45 = vpop.permute.xlu1 %313 }
 0x2bb   :  { %v321_v48 = vmul.f32 %v314_v45, %v695_v41  ;;  %v322_v49 = vmul.f32 %v314_v45, %v697_v44  ;;  %v323_v3 = vmul.f32 %v314_v45, %v699_v46  ;;  %v324_v51 = vmul.f32 %v314_v45, %v705_v52 }
 0x2be   :  { %v319_v47 = vpop.permute.xlu1 %318 }
 0x2bf   :  { %v325_v61 = vmul.f32 %v319_v47, %v703_v50  ;;  %v326_v62 = vmul.f32 %v319_v47, %v707_v53  ;;  %v327_v63 = vmul.f32 %v319_v47, %v710_v56  ;;  %v328_v52 = vmul.f32 %v319_v47, %v715_v59 }
 0x2c2   :  { %v332_v54 = vpop.permute.xlu1 %331 }
 0x2c3   :  { %v339_v55 = vadd.f32 %v332_v54, %v321_v48  ;;  %v340_v57 = vadd.f32 %v332_v54, %v322_v49  ;;  %v341_v58 = vadd.f32 %v332_v54, %v323_v3  ;;  %v342_v60 = vadd.f32 %v332_v54, %v324_v51 }
 0x2c5   :  { %vm347_vm0 = vcmp.ge.f32.partialorder %v339_v55, 0.0  ;;  %vm348_vm1 = vcmp.ge.f32.partialorder %v340_v57, 0.0  ;;  %vm349_vm2 = vcmp.ge.f32.partialorder %v341_v58, 0.0  ;;  %vm350_vm3 = vcmp.ge.f32.partialorder %v342_v60, 0.0 }
 0x2c6   :  { %v355_v41 = vmul.f32 0.1, %v339_v55  ;;  %v356_v44 = vmul.f32 0.1, %v340_v57  ;;  %v357_v46 = vmul.f32 0.1, %v341_v58  ;;  %v337_v0 = vpop.permute.xlu1 %336 }
 0x2c7   :  { %v358_v1 = vmul.f32 0.1, %v342_v60  ;;  %v343_v2 = vadd.f32 %v337_v0, %v325_v61  ;;  %v344_v4 = vadd.f32 %v337_v0, %v326_v62  ;;  %v345_v5 = vadd.f32 %v337_v0, %v327_v63 }
 0x2c8   :  { %v363_v6 = vsel %vm347_vm0, %v339_v55, %v355_v41  ;;  %v364_v50 = vsel %vm348_vm1, %v340_v57, %v356_v44  ;;  %v365_v7 = vsel %vm349_vm2, %v341_v58, %v357_v46  ;;  %v346_v53 = vadd.f32 %v337_v0, %v328_v52 }
 0x2c9   :  { %v366_v8 = vsel %vm350_vm3, %v342_v60, %v358_v1  ;;  %371 = vst [vmem:[%s776_s5] sm:$0xff] %v363_v6  ;;  %372 = vst [vmem:[%s776_s5 + $0x8] sm:$0xff] %v364_v50  ;;  %vm351_vm4 = vcmp.ge.f32.partialorder %v343_v2, 0.0  ;;  %vm352_vm5 = vcmp.ge.f32.partialorder %v344_v4, 0.0  ;;  %vm353_vm6 = vcmp.ge.f32.partialorder %v345_v5, 0.0 }
 0x2ca   :  { %373 = vst [vmem:[%s776_s5 + $0x10] sm:$0xff] %v365_v7  ;;  %374 = vst [vmem:[%s776_s5 + $0x18] sm:$0xff] %v366_v8  ;;  %vm354_vm7 = vcmp.ge.f32.partialorder %v346_v53, 0.0  ;;  %v359_v56 = vmul.f32 0.1, %v343_v2 }
 0x2cb   :  { %v360_v59 = vmul.f32 0.1, %v344_v4  ;;  %v361_v9 = vmul.f32 0.1, %v345_v5  ;;  %v362_v10 = vmul.f32 0.1, %v346_v53 }
 0x2cc   :  { %v367_v11 = vsel %vm351_vm4, %v343_v2, %v359_v56 }
 0x2cd   :  { %v368_v12 = vsel %vm352_vm5, %v344_v4, %v360_v59  ;;  %v369_v13 = vsel %vm353_vm6, %v345_v5, %v361_v9  ;;  %v370_v14 = vsel %vm354_vm7, %v346_v53, %v362_v10  ;;  %375 = vst [vmem:[%s776_s5 + $0x20] sm:$0xff] %v367_v11 }
 0x2ce   :  { %376 = vst [vmem:[%s776_s5 + $0x28] sm:$0xff] %v368_v12  ;;  %377 = vst [vmem:[%s776_s5 + $0x30] sm:$0xff] %v369_v13 }
 0x2cf   :  { %378 = vst [vmem:[%s776_s5 + $0x38] sm:$0xff] %v370_v14 }

// kernel: cnn_autoencoder_forward.11
= control target key start
LH: loop header
LB: loop body
LE: loop exit
PB: predicated region body
PF: predicated region fallthrough
CT: control target
= control target key end

     0   :  { %v409_v3 = vmov 0   ;;  %s628_s1 = inlined_call_operand.vmem [shape: f32[1,256,128], index: 1, kind: input, shape index: {}]   ;;  %s629_s0 = inlined_call_operand.vmem [shape: f32[1,32,256], index: 0, kind: input, shape index: {}]   ;;  %s630_s2 = inlined_call_operand.vmem [shape: f32[32,1], index: 2, kind: input, shape index: {}]   ;;  %s631_s3 = inlined_call_operand.vmem [shape: f32[32,1], index: 3, kind: input, shape index: {}]   ;;  %s632_s4 = inlined_call_operand.vmem [shape: f32[32,1], index: 4, kind: input, shape index: {}]   ;;  %s633_s5 = inlined_call_operand.vmem [shape: f32[1,32,128], index: 5, kind: output, shape index: {}]  }
   0x1   :  { %v48_v0 = vld [vmem:[%s628_s1 + $0x80] sm:$0xff]  ;;  %v49_v1 = vld [vmem:[%s628_s1 + $0x88] sm:$0xff]  ;;  %399 = vset.pattern.permute.xlu0 %v409_v3  ;;  %400 = vset.pattern.permute.xlu1 %v409_v3  ;;  %v50_v6 = vld [vmem:[%s628_s1 + $0x90] sm:$0xff] }
   0x2   :  { %v32_v2 = vld [vmem:[%s628_s1] sm:$0xff]  ;;  %v350_v4 = vpack.c.bf16 %v49_v1, %v48_v0  ;;  %v33_v5 = vld [vmem:[%s628_s1 + $0x8] sm:$0xff]  ;;  %v51_v7 = vld [vmem:[%s628_s1 + $0x98] sm:$0xff] }
   0x3   :  { %v352_v8 = vpack.c.bf16 %v33_v5, %v32_v2  ;;  %v354_v9 = vpack.c.bf16 %v51_v7, %v50_v6  ;;  %v34_v10 = vld [vmem:[%s628_s1 + $0x10] sm:$0xff]  ;;  %v35_v11 = vld [vmem:[%s628_s1 + $0x18] sm:$0xff]  ;;  %v52_v12 = vld [vmem:[%s628_s1 + $0xa0] sm:$0xff] }
   0x4   :  { %351 = vmatprep.subr.bf16.mxu0 %v350_v4  ;;  %382 = vmatprep.subr.bf16.mxu1 %v350_v4  ;;  %v53_v13 = vld [vmem:[%s628_s1 + $0xa8] sm:$0xff]  ;;  %v356_v14 = vpack.c.bf16 %v35_v11, %v34_v10  ;;  %v36_v16 = vld [vmem:[%s628_s1 + $0x20] sm:$0xff]  ;;  %v54_v18 = vld [vmem:[%s628_s1 + $0xb0] sm:$0xff] }
   0x5   :  { %353 = vmatpush3.bf16.msra.mxu0 %v352_v8  ;;  %390 = vmatpush3.bf16.msra.mxu1 %v352_v8  ;;  %v358_v15 = vpack.c.bf16 %v53_v13, %v52_v12  ;;  %v37_v17 = vld [vmem:[%s628_s1 + $0x28] sm:$0xff]  ;;  %v55_v19 = vld [vmem:[%s628_s1 + $0xb8] sm:$0xff]  ;;  %v38_v22 = vld [vmem:[%s628_s1 + $0x30] sm:$0xff] }
   0x6   :  { %355 = vmatprep.subr.bf16.mxu0 %v354_v9  ;;  %383 = vmatprep.subr.bf16.mxu1 %v354_v9  ;;  %v360_v20 = vpack.c.bf16 %v37_v17, %v36_v16  ;;  %v362_v21 = vpack.c.bf16 %v55_v19, %v54_v18  ;;  %v39_v23 = vld [vmem:[%s628_s1 + $0x38] sm:$0xff]  ;;  %v56_v24 = vld [vmem:[%s628_s1 + $0xc0] sm:$0xff]  ;;  %v57_v25 = vld [vmem:[%s628_s1 + $0xc8] sm:$0xff] }
   0x7   :  { %v25_v26 = vld [vmem:[%s629_s0 + $0x8] sm:$0xff]  ;;  %v364_v28 = vpack.c.bf16 %v39_v23, %v38_v22  ;;  %v40_v29 = vld [vmem:[%s628_s1 + $0x40] sm:$0xff]  ;;  %v366_v30 = vpack.c.bf16 %v57_v25, %v56_v24  ;;  %v22_v33 = vld [vmem:[%s630_s2 + $0x10] sm:$0xff] }
   0x8   :  { %148 = vmatprep.mubr.f32.mxu0 %v25_v26  ;;  %v29_v27 = vld [vmem:[%s629_s0 + $0x28] sm:$0xff]  ;;  %v20_v32 = vld [vmem:[%s630_s2] sm:$0xff]  ;;  %v58_v34 = vld [vmem:[%s628_s1 + $0xd0] sm:$0xff]  ;;  %76 = vperm.xlu1 %400, %v22_v33  }
   0x9   :  { %357 = vmatpush3.bf16.msra.mxu0 %v356_v14  ;;  %391 = vmatpush3.bf16.msra.mxu1 %v356_v14  ;;  %v41_v31 = vld [vmem:[%s628_s1 + $0x48] sm:$0xff]  ;;  %v59_v35 = vld [vmem:[%s628_s1 + $0xd8] sm:$0xff]  ;;  %v42_v40 = vld [vmem:[%s628_s1 + $0x50] sm:$0xff] }
   0xa   :  { %359 = vmatprep.subr.bf16.mxu0 %v358_v15  ;;  %384 = vmatprep.subr.bf16.mxu1 %v358_v15  ;;  %v21_v36 = vld [vmem:[%s630_s2 + $0x8] sm:$0xff]  ;;  %v368_v37 = vpack.c.bf16 %v41_v31, %v40_v29  ;;  %v23_v38 = vld [vmem:[%s630_s2 + $0x18] sm:$0xff]  ;;  %v370_v39 = vpack.c.bf16 %v59_v35, %v58_v34  ;;  %v60_v42 = vld [vmem:[%s628_s1 + $0xe0] sm:$0xff] }
   0xb   :  { %158 = vmatprep.mubr.f32.mxu1 %v29_v27  ;;  %66 = vperm.xlu0 %399, %v20_v32   ;;  %v43_v41 = vld [vmem:[%s628_s1 + $0x58] sm:$0xff]  ;;  %v61_v43 = vld [vmem:[%s628_s1 + $0xe8] sm:$0xff]  ;;  %v44_v46 = vld [vmem:[%s628_s1 + $0x60] sm:$0xff] }
   0xc   :  { %81 = vperm.xlu1 %400, %v23_v38   ;;  %v372_v44 = vpack.c.bf16 %v43_v41, %v42_v40  ;;  %v374_v45 = vpack.c.bf16 %v61_v43, %v60_v42  ;;  %v45_v47 = vld [vmem:[%s628_s1 + $0x68] sm:$0xff]  ;;  %v62_v48 = vld [vmem:[%s628_s1 + $0xf0] sm:$0xff]  ;;  %v63_v49 = vld [vmem:[%s628_s1 + $0xf8] sm:$0xff] }
   0xd   :  { %361 = vmatpush3.bf16.msra.mxu0 %v360_v20  ;;  %392 = vmatpush3.bf16.msra.mxu1 %v360_v20  ;;  %v376_v50 = vpack.c.bf16 %v45_v47, %v44_v46  ;;  %v378_v51 = vpack.c.bf16 %v63_v49, %v62_v48  ;;  %v46_v52 = vld [vmem:[%s628_s1 + $0x70] sm:$0xff]  ;;  %v47_v53 = vld [vmem:[%s628_s1 + $0x78] sm:$0xff]  ;;  %v24_v55 = vld [vmem:[%s629_s0] sm:$0xff] }
   0xe   :  { %363 = vmatprep.subr.bf16.mxu0 %v362_v21  ;;  %385 = vmatprep.subr.bf16.mxu1 %v362_v21  ;;  %v380_v54 = vpack.c.bf16 %v47_v53, %v46_v52  ;;  %v28_v56 = vld [vmem:[%s629_s0 + $0x20] sm:$0xff]  ;;  %v27_v57 = vld [vmem:[%s629_s0 + $0x18] sm:$0xff]  ;;  %v26_v59 = vld [vmem:[%s629_s0 + $0x10] sm:$0xff] }
   0xf   :  { %71 = vperm.xlu0 %399, %v21_v36   ;;  %v31_v58 = vld [vmem:[%s629_s0 + $0x38] sm:$0xff]  ;;  %v30_v60 = vld [vmem:[%s629_s0 + $0x30] sm:$0xff]  ;;  %v211_v49 = vld [vmem:[%s631_s3 + $0x8] sm:$0xff] }
  0x10   :  { %v212_v48 = vld [vmem:[%s631_s3 + $0x10] sm:$0xff] }
  0x11   :  { %365 = vmatpush3.bf16.msra.mxu0 %v364_v28  ;;  %393 = vmatpush3.bf16.msra.mxu1 %v364_v28 }
  0x12   :  { %367 = vmatprep.subr.bf16.mxu0 %v366_v30  ;;  %386 = vmatprep.subr.bf16.mxu1 %v366_v30 }
  0x15   :  { %369 = vmatpush3.bf16.msra.mxu0 %v368_v37  ;;  %394 = vmatpush3.bf16.msra.mxu1 %v368_v37 }
  0x16   :  { %371 = vmatprep.subr.bf16.mxu0 %v370_v39  ;;  %387 = vmatprep.subr.bf16.mxu1 %v370_v39 }
  0x19   :  { %373 = vmatpush3.bf16.msra.mxu0 %v372_v44  ;;  %395 = vmatpush3.bf16.msra.mxu1 %v372_v44 }
  0x1a   :  { %375 = vmatprep.subr.bf16.mxu0 %v374_v45  ;;  %388 = vmatprep.subr.bf16.mxu1 %v374_v45  ;;  %v210_v45 = vld [vmem:[%s631_s3] sm:$0xff] }
  0x1d   :  { %377 = vmatpush3.bf16.msra.mxu0 %v376_v50  ;;  %396 = vmatpush3.bf16.msra.mxu1 %v376_v50 }
  0x1e   :  { %379 = vmatprep.subr.bf16.mxu0 %v378_v51  ;;  %389 = vmatprep.subr.bf16.mxu1 %v378_v51 }
  0x21   :  { %381 = vmatpush3.bf16.msra.mxu0 %v380_v54  ;;  %397 = vmatpush3.bf16.msra.mxu1 %v380_v54 }
  0x24   :  { %149 = vmatmul.mubr.f32.vlgmr.msra.gmra.mrb[0].mxu0 %v24_v55  ;;  %159 = vmatmul.mubr.f32.vlgmr.msra.gmra.mrb[0].mxu1 %v28_v56  ;;  %v213_v55 = vld [vmem:[%s631_s3 + $0x18] sm:$0xff]  ;;  %v226_v56 = vld [vmem:[%s632_s4] sm:$0xff] }
  0x25   :  { %153 = vmatprep.mubr.f32.mxu0 %v27_v57  ;;  %163 = vmatprep.mubr.f32.mxu1 %v31_v58 }
  0x28   :  { %154 = vmatmul.mubr.f32.gmra.mrb[2].mxu0 %v26_v59  ;;  %164 = vmatmul.mubr.f32.gmra.mrb[2].mxu1 %v30_v60 }
  0x87   :  { %v77_v4 = vpop.permute.xlu1 %76 }
  0x8a   :  { %v67_v61 = vpop.permute.xlu0 %66 }
  0x8b   :  { %v82_v15 = vpop.permute.xlu1 %81 }
  0x8e   :  { %v72_v13 = vpop.permute.xlu0 %71 }
  0xf7   :  { %v338_v62 = vpop.f32.mrb[0].mxu0  ;;  %v344_v63 = vpop.f32.mrb[0].mxu1 }
  0xf8   :  { %v339_v0 = vpop.f32.mrb[1].mxu0  ;;  %v345_v1 = vpop.f32.mrb[1].mxu1 }
  0xf9   :  { %v340_v2 = vadd.f32 %v339_v0, %v338_v62  ;;  %v346_v3 = vadd.f32 %v345_v1, %v344_v63  ;;  %v227_v62 = vld [vmem:[%s632_s4 + $0x8] sm:$0xff]  ;;  %v228_v63 = vld [vmem:[%s632_s4 + $0x10] sm:$0xff] }
  0xfb   :  { %v572_v5 = vadd.f32 %v340_v2, %v67_v61  ;;  %v341_v6 = vpop.f32.mrb[2].mxu0  ;;  %v347_v7 = vpop.f32.mrb[2].mxu1  ;;  %v574_v10 = vadd.f32 %v346_v3, %v77_v4  ;;  %v229_v3 = vld [vmem:[%s632_s4 + $0x18] sm:$0xff] }
  0xfc   :  { %v342_v8 = vpop.f32.mrb[3].mxu0  ;;  %v348_v9 = vpop.f32.mrb[3].mxu1 }
  0xfd   :  { %v343_v11 = vadd.f32 %v342_v8, %v341_v6  ;;  %v349_v12 = vadd.f32 %v348_v9, %v347_v7  ;;  %169 = vadd.xlane.f32.xlu0 %v572_v5 }
  0xff   :  { %v577_v14 = vadd.f32 %v343_v11, %v72_v13  ;;  %v581_v16 = vadd.f32 %v349_v12, %v82_v15 }
 0x101   :  { %171 = vadd.xlane.f32.xlu1 %v577_v14  ;;  %173 = vadd.xlane.f32.xlu0 %v574_v10 }
 0x105   :  { %175 = vadd.xlane.f32.xlu0 %v581_v16 }
 0x18a   :  { %v170_v17 = vpop.xlane.xlu0 %169 }
 0x18b   :  { %v182_v18 = vmul.f32 0.0078125, %v170_v17 }
 0x18d   :  { %v186_v19 = vsub.f32 %v572_v5, %v182_v18 }
 0x18e   :  { %v172_v20 = vpop.xlane.xlu1 %171  ;;  %v174_v21 = vpop.xlane.xlu0 %173 }
 0x18f   :  { %v183_v22 = vmul.f32 0.0078125, %v172_v20  ;;  %v184_v23 = vmul.f32 0.0078125, %v174_v21  ;;  %v190_v24 = vmul.f32 %v186_v19, %v186_v19 }
 0x191   :  { %194 = vadd.xlane.f32.xlu1 %v190_v24  ;;  %v187_v25 = vsub.f32 %v577_v14, %v183_v22  ;;  %v188_v26 = vsub.f32 %v574_v10, %v184_v23 }
 0x192   :  { %v176_v27 = vpop.xlane.xlu0 %175 }
 0x193   :  { %v185_v28 = vmul.f32 0.0078125, %v176_v27  ;;  %v191_v29 = vmul.f32 %v187_v25, %v187_v25  ;;  %v192_v30 = vmul.f32 %v188_v26, %v188_v26 }
 0x195   :  { %196 = vadd.xlane.f32.xlu0 %v191_v29  ;;  %198 = vadd.xlane.f32.xlu1 %v192_v30  ;;  %v189_v31 = vsub.f32 %v581_v16, %v185_v28 }
 0x197   :  { %v193_v32 = vmul.f32 %v189_v31, %v189_v31 }
 0x199   :  { %200 = vadd.xlane.f32.xlu0 %v193_v32 }
 0x21e   :  { %v195_v33 = vpop.xlane.xlu1 %194 }
 0x21f   :  { %v206_v34 = vmul.f32 0.0078125, %v195_v33 }
 0x221   :  { %v214_v35 = vadd.f32 1e-05, %v206_v34 }
 0x222   :  { %v199_v36 = vpop.xlane.xlu1 %198  ;;  %v197_v37 = vpop.xlane.xlu0 %196 }
 0x223   :  { %401 = vrsqrt.f32 %v214_v35  ;;  %v208_v38 = vmul.f32 0.0078125, %v199_v36  ;;  %v207_v39 = vmul.f32 0.0078125, %v197_v37 }
 0x225   :  { %v216_v40 = vadd.f32 1e-05, %v208_v38  ;;  %v215_v41 = vadd.f32 1e-05, %v207_v39 }
 0x226   :  { %v201_v42 = vpop.xlane.xlu0 %200 }
 0x227   :  { %403 = vrsqrt.f32 %v216_v40  ;;  %v209_v43 = vmul.f32 0.0078125, %v201_v42 }
 0x228   :  { %405 = vrsqrt.f32 %v215_v41 }
 0x229   :  { %v217_v44 = vadd.f32 1e-05, %v209_v43 }
 0x22b   :  { %407 = vrsqrt.f32 %v217_v44 }
 0x22d   :  { %v402_v46 = vpop.eup %401 }
 0x22e   :  { %v222_v47 = vmul.f32 %v402_v46, %v210_v45 }
 0x230   :  { %240 = vperm.xlu1 %400, %v222_v47   ;;  %v230_v54 = vmul.f32 %v222_v47, %v182_v18 }
 0x231   :  { %v404_v50 = vpop.eup %403 }
 0x232   :  { %v406_v51 = vpop.eup %405  ;;  %v224_v52 = vmul.f32 %v404_v50, %v212_v48  ;;  %v234_v60 = vsub.f32 %v226_v56, %v230_v54 }
 0x233   :  { %v223_v53 = vmul.f32 %v406_v51, %v211_v49 }
 0x234   :  { %250 = vperm.xlu1 %400, %v224_v52   ;;  %v232_v61 = vmul.f32 %v224_v52, %v184_v23 }
 0x235   :  { %v408_v57 = vpop.eup %407  ;;  %245 = vperm.xlu0 %399, %v223_v53   ;;  %v231_v59 = vmul.f32 %v223_v53, %v183_v22 }
 0x236   :  { %v225_v58 = vmul.f32 %v408_v57, %v213_v55  ;;  %v236_v2 = vsub.f32 %v228_v63, %v232_v61 }
 0x237   :  { %v235_v0 = vsub.f32 %v227_v62, %v231_v59 }
 0x238   :  { %255 = vperm.xlu1 %400, %v225_v58   ;;  %v233_v1 = vmul.f32 %v225_v58, %v185_v28 }
 0x239   :  { %264 = vperm.xlu0 %399, %v234_v60  }
 0x23a   :  { %v237_v4 = vsub.f32 %v229_v3, %v233_v1 }
 0x23c   :  { %269 = vperm.xlu1 %400, %v235_v0  }
 0x23d   :  { %274 = vperm.xlu0 %399, %v236_v2  }
 0x240   :  { %279 = vperm.xlu1 %400, %v237_v4  }
 0x2af   :  { %v241_v6 = vpop.permute.xlu1 %240 }
 0x2b0   :  { %v258_v9 = vmul.f32 %v241_v6, %v572_v5 }
 0x2b3   :  { %v251_v7 = vpop.permute.xlu1 %250 }
 0x2b4   :  { %v246_v8 = vpop.permute.xlu0 %245  ;;  %v260_v17 = vmul.f32 %v251_v7, %v574_v10 }
 0x2b5   :  { %v259_v15 = vmul.f32 %v246_v8, %v577_v14 }
 0x2b7   :  { %v256_v11 = vpop.permute.xlu1 %255 }
 0x2b8   :  { %v265_v12 = vpop.permute.xlu0 %264  ;;  %v261_v24 = vmul.f32 %v256_v11, %v581_v16 }
 0x2b9   :  { %v282_v13 = vadd.f32 %v265_v12, %v258_v9 }
 0x2bb   :  { %vm286_vm0 = vcmp.ge.f32.partialorder %v282_v13, 0.0  ;;  %v290_v18 = vmul.f32 0.1, %v282_v13  ;;  %v270_v19 = vpop.permute.xlu1 %269 }
 0x2bc   :  { %v283_v20 = vadd.f32 %v270_v19, %v259_v15  ;;  %v275_v21 = vpop.permute.xlu0 %274 }
 0x2bd   :  { %v294_v22 = vsel %vm286_vm0, %v282_v13, %v290_v18  ;;  %v284_v23 = vadd.f32 %v275_v21, %v260_v17 }
 0x2be   :  { %298 = vst [vmem:[%s633_s5] sm:$0xff] %v294_v22  ;;  %vm287_vm1 = vcmp.ge.f32.partialorder %v283_v20, 0.0  ;;  %v291_v5 = vmul.f32 0.1, %v283_v20 }
 0x2bf   :  { %vm288_vm2 = vcmp.ge.f32.partialorder %v284_v23, 0.0  ;;  %v292_v25 = vmul.f32 0.1, %v284_v23  ;;  %v280_v14 = vpop.permute.xlu1 %279 }
 0x2c0   :  { %v295_v26 = vsel %vm287_vm1, %v283_v20, %v291_v5  ;;  %v285_v10 = vadd.f32 %v280_v14, %v261_v24 }
 0x2c1   :  { %299 = vst [vmem:[%s633_s5 + $0x8] sm:$0xff] %v295_v26  ;;  %v296_v27 = vsel %vm288_vm2, %v284_v23, %v292_v25 }
 0x2c2   :  { %300 = vst [vmem:[%s633_s5 + $0x10] sm:$0xff] %v296_v27  ;;  %vm289_vm3 = vcmp.ge.f32.partialorder %v285_v10, 0.0  ;;  %v293_v16 = vmul.f32 0.1, %v285_v10 }
 0x2c4   :  { %v297_v28 = vsel %vm289_vm3, %v285_v10, %v293_v16 }
 0x2c5   :  { %301 = vst [vmem:[%s633_s5 + $0x18] sm:$0xff] %v297_v28 }

// kernel: cnn_autoencoder_forward.12
= control target key start
LH: loop header
LB: loop body
LE: loop exit
PB: predicated region body
PF: predicated region fallthrough
CT: control target
= control target key end

     0   :  { %v855_v3 = vmov 0   ;;  %vm374_vm0 = vcmask 261120   ;;  %s1366_s1 = inlined_call_operand.vmem [shape: f32[1,512,32], index: 1, kind: input, shape index: {}]   ;;  %s1367_s0 = inlined_call_operand.vmem [shape: f32[1,64,512], index: 0, kind: input, shape index: {}]   ;;  %s1368_s2 = inlined_call_operand.vmem [shape: f32[64,1], index: 2, kind: input, shape index: {}]   ;;  %s1369_s3 = inlined_call_operand.vmem [shape: f32[64,1], index: 3, kind: input, shape index: {}]   ;;  %s1370_s4 = inlined_call_operand.vmem [shape: f32[64,1], index: 4, kind: input, shape index: {}]   ;;  %s1371_s5 = inlined_call_operand.vmem [shape: f32[1,64,32], index: 5, kind: output, shape index: {}]  }
   0x1   :  { %v76_v0 = vld [vmem:[%s1366_s1 + $0x80] sm:$0xff]  ;;  %v77_v1 = vld [vmem:[%s1366_s1 + $0x88] sm:$0xff]  ;;  %837 = vset.pattern.permute.xlu0 %v855_v3  ;;  %838 = vset.pattern.permute.xlu1 %v855_v3  ;;  %v78_v12 = vld [vmem:[%s1366_s1 + $0x90] sm:$0xff] }
   0x2   :  { %v60_v2 = vld [vmem:[%s1366_s1] sm:$0xff]  ;;  %v772_v4 = vpack.c.bf16 %v77_v1, %v76_v0  ;;  %v61_v5 = vld [vmem:[%s1366_s1 + $0x8] sm:$0xff]  ;;  %v79_v14 = vld [vmem:[%s1366_s1 + $0x98] sm:$0xff] }
   0x3   :  { %v108_v6 = vld [vmem:[%s1366_s1 + $0x180] sm:$0xff]  ;;  %v109_v7 = vld [vmem:[%s1366_s1 + $0x188] sm:$0xff]  ;;  %v774_v8 = vpack.c.bf16 %v61_v5, %v60_v2  ;;  %v62_v15 = vld [vmem:[%s1366_s1 + $0x10] sm:$0xff]  ;;  %v776_v17 = vpack.c.bf16 %v79_v14, %v78_v12 }
   0x4   :  { %v804_v9 = vpack.c.bf16 %v109_v7, %v108_v6  ;;  %v92_v10 = vld [vmem:[%s1366_s1 + $0x100] sm:$0xff]  ;;  %v93_v11 = vld [vmem:[%s1366_s1 + $0x108] sm:$0xff]  ;;  %773 = vmatprep.subr.bf16.mxu0 %v772_v4  ;;  %v63_v16 = vld [vmem:[%s1366_s1 + $0x18] sm:$0xff] }
   0x5   :  { %v806_v13 = vpack.c.bf16 %v93_v11, %v92_v10  ;;  %775 = vmatpush3.bf16.msra.mxu0 %v774_v8  ;;  %v778_v18 = vpack.c.bf16 %v63_v16, %v62_v15  ;;  %v110_v19 = vld [vmem:[%s1366_s1 + $0x190] sm:$0xff]  ;;  %v111_v20 = vld [vmem:[%s1366_s1 + $0x198] sm:$0xff]  ;;  %v80_v24 = vld [vmem:[%s1366_s1 + $0xa0] sm:$0xff] }
   0x6   :  { %805 = vmatprep.subr.bf16.mxu1 %v804_v9  ;;  %v94_v21 = vld [vmem:[%s1366_s1 + $0x110] sm:$0xff]  ;;  %v808_v22 = vpack.c.bf16 %v111_v20, %v110_v19  ;;  %v95_v23 = vld [vmem:[%s1366_s1 + $0x118] sm:$0xff]  ;;  %v81_v25 = vld [vmem:[%s1366_s1 + $0xa8] sm:$0xff]  ;;  %777 = vmatprep.subr.bf16.mxu0 %v776_v17 }
   0x7   :  { %807 = vmatpush3.bf16.msra.mxu1 %v806_v13  ;;  %v810_v26 = vpack.c.bf16 %v95_v23, %v94_v21  ;;  %v780_v27 = vpack.c.bf16 %v81_v25, %v80_v24  ;;  %v64_v28 = vld [vmem:[%s1366_s1 + $0x20] sm:$0xff]  ;;  %v65_v29 = vld [vmem:[%s1366_s1 + $0x28] sm:$0xff]  ;;  %v82_v36 = vld [vmem:[%s1366_s1 + $0xb0] sm:$0xff] }
   0x8   :  { %v112_v30 = vld [vmem:[%s1366_s1 + $0x1a0] sm:$0xff]  ;;  %809 = vmatprep.subr.bf16.mxu1 %v808_v22  ;;  %v113_v31 = vld [vmem:[%s1366_s1 + $0x1a8] sm:$0xff]  ;;  %v782_v34 = vpack.c.bf16 %v65_v29, %v64_v28  ;;  %v83_v37 = vld [vmem:[%s1366_s1 + $0xb8] sm:$0xff] }
   0x9   :  { %v96_v32 = vld [vmem:[%s1366_s1 + $0x120] sm:$0xff]  ;;  %v97_v33 = vld [vmem:[%s1366_s1 + $0x128] sm:$0xff]  ;;  %779 = vmatpush3.bf16.msra.mxu0 %v778_v18  ;;  %v812_v35 = vpack.c.bf16 %v113_v31, %v112_v30  ;;  %v66_v38 = vld [vmem:[%s1366_s1 + $0x30] sm:$0xff]  ;;  %v784_v40 = vpack.c.bf16 %v83_v37, %v82_v36 }
   0xa   :  { %781 = vmatprep.subr.bf16.mxu0 %v780_v27  ;;  %v814_v39 = vpack.c.bf16 %v97_v33, %v96_v32  ;;  %v67_v41 = vld [vmem:[%s1366_s1 + $0x38] sm:$0xff]  ;;  %v114_v42 = vld [vmem:[%s1366_s1 + $0x1b0] sm:$0xff]  ;;  %v84_v47 = vld [vmem:[%s1366_s1 + $0xc0] sm:$0xff] }
   0xb   :  { %811 = vmatpush3.bf16.msra.mxu1 %v810_v26  ;;  %v115_v43 = vld [vmem:[%s1366_s1 + $0x1b8] sm:$0xff]  ;;  %v98_v45 = vld [vmem:[%s1366_s1 + $0x130] sm:$0xff]  ;;  %v85_v48 = vld [vmem:[%s1366_s1 + $0xc8] sm:$0xff]  ;;  %v786_v49 = vpack.c.bf16 %v67_v41, %v66_v38 }
   0xc   :  { %813 = vmatprep.subr.bf16.mxu1 %v812_v35  ;;  %v816_v44 = vpack.c.bf16 %v115_v43, %v114_v42  ;;  %v99_v46 = vld [vmem:[%s1366_s1 + $0x138] sm:$0xff]  ;;  %v116_v50 = vld [vmem:[%s1366_s1 + $0x1c0] sm:$0xff]  ;;  %v117_v51 = vld [vmem:[%s1366_s1 + $0x1c8] sm:$0xff]  ;;  %v788_v53 = vpack.c.bf16 %v85_v48, %v84_v47 }
   0xd   :  { %783 = vmatpush3.bf16.msra.mxu0 %v782_v34  ;;  %v818_v52 = vpack.c.bf16 %v99_v46, %v98_v45  ;;  %v68_v54 = vld [vmem:[%s1366_s1 + $0x40] sm:$0xff]  ;;  %v69_v55 = vld [vmem:[%s1366_s1 + $0x48] sm:$0xff]  ;;  %v820_v57 = vpack.c.bf16 %v117_v51, %v116_v50  ;;  %v86_v59 = vld [vmem:[%s1366_s1 + $0xd0] sm:$0xff] }
   0xe   :  { %785 = vmatprep.subr.bf16.mxu0 %v784_v40  ;;  %v100_v56 = vld [vmem:[%s1366_s1 + $0x140] sm:$0xff]  ;;  %v101_v58 = vld [vmem:[%s1366_s1 + $0x148] sm:$0xff]  ;;  %v87_v60 = vld [vmem:[%s1366_s1 + $0xd8] sm:$0xff]  ;;  %v790_v63 = vpack.c.bf16 %v69_v55, %v68_v54 }
   0xf   :  { %815 = vmatpush3.bf16.msra.mxu1 %v814_v39  ;;  %v118_v61 = vld [vmem:[%s1366_s1 + $0x1d0] sm:$0xff]  ;;  %v119_v62 = vld [vmem:[%s1366_s1 + $0x1d8] sm:$0xff]  ;;  %v822_v0 = vpack.c.bf16 %v101_v58, %v100_v56  ;;  %v792_v1 = vpack.c.bf16 %v87_v60, %v86_v59  ;;  %v88_v7 = vld [vmem:[%s1366_s1 + $0xe0] sm:$0xff] }
  0x10   :  { %817 = vmatprep.subr.bf16.mxu1 %v816_v44  ;;  %v70_v2 = vld [vmem:[%s1366_s1 + $0x50] sm:$0xff]  ;;  %v71_v3 = vld [vmem:[%s1366_s1 + $0x58] sm:$0xff]  ;;  %v824_v5 = vpack.c.bf16 %v119_v62, %v118_v61  ;;  %v89_v8 = vld [vmem:[%s1366_s1 + $0xe8] sm:$0xff] }
  0x11   :  { %787 = vmatpush3.bf16.msra.mxu0 %v786_v49  ;;  %v102_v4 = vld [vmem:[%s1366_s1 + $0x150] sm:$0xff]  ;;  %v103_v6 = vld [vmem:[%s1366_s1 + $0x158] sm:$0xff]  ;;  %v120_v9 = vld [vmem:[%s1366_s1 + $0x1e0] sm:$0xff]  ;;  %v794_v11 = vpack.c.bf16 %v71_v3, %v70_v2  ;;  %v796_v15 = vpack.c.bf16 %v89_v8, %v88_v7 }
  0x12   :  { %789 = vmatprep.subr.bf16.mxu0 %v788_v53  ;;  %v121_v10 = vld [vmem:[%s1366_s1 + $0x1e8] sm:$0xff]  ;;  %v72_v12 = vld [vmem:[%s1366_s1 + $0x60] sm:$0xff]  ;;  %v826_v14 = vpack.c.bf16 %v103_v6, %v102_v4  ;;  %v90_v20 = vld [vmem:[%s1366_s1 + $0xf0] sm:$0xff] }
  0x13   :  { %819 = vmatpush3.bf16.msra.mxu1 %v818_v52  ;;  %v73_v13 = vld [vmem:[%s1366_s1 + $0x68] sm:$0xff]  ;;  %v104_v16 = vld [vmem:[%s1366_s1 + $0x160] sm:$0xff]  ;;  %v828_v19 = vpack.c.bf16 %v121_v10, %v120_v9  ;;  %v91_v21 = vld [vmem:[%s1366_s1 + $0xf8] sm:$0xff] }
  0x14   :  { %821 = vmatprep.subr.bf16.mxu1 %v820_v57  ;;  %v105_v17 = vld [vmem:[%s1366_s1 + $0x168] sm:$0xff]  ;;  %v31_v22 = vld [vmem:[%s1367_s0 + $0x18] sm:$0xff]  ;;  %v122_v23 = vld [vmem:[%s1366_s1 + $0x1f0] sm:$0xff]  ;;  %v798_v25 = vpack.c.bf16 %v73_v13, %v72_v12  ;;  %v800_v27 = vpack.c.bf16 %v91_v21, %v90_v20 }
  0x15   :  { %791 = vmatpush3.bf16.msra.mxu0 %v790_v63  ;;  %v29_v18 = vld [vmem:[%s1367_s0 + $0x8] sm:$0xff]  ;;  %v123_v24 = vld [vmem:[%s1366_s1 + $0x1f8] sm:$0xff]  ;;  %333 = vmatprep.mubr.f32.mxu1 %v31_v22  ;;  %v830_v26 = vpack.c.bf16 %v105_v17, %v104_v16  ;;  %v74_v28 = vld [vmem:[%s1366_s1 + $0x70] sm:$0xff] }
  0x16   :  { %793 = vmatprep.subr.bf16.mxu0 %v792_v1  ;;  %228 = vmatprep.mubr.f32.mxu0 %v29_v18  ;;  %v75_v29 = vld [vmem:[%s1366_s1 + $0x78] sm:$0xff]  ;;  %v832_v30 = vpack.c.bf16 %v123_v24, %v122_v23  ;;  %v106_v31 = vld [vmem:[%s1366_s1 + $0x170] sm:$0xff]  ;;  %v28_v35 = vld [vmem:[%s1367_s0] sm:$0xff] }
  0x17   :  { %823 = vmatpush3.bf16.msra.mxu1 %v822_v0  ;;  %v107_v32 = vld [vmem:[%s1366_s1 + $0x178] sm:$0xff]  ;;  %v802_v33 = vpack.c.bf16 %v75_v29, %v74_v28  ;;  %v20_v36 = vld [vmem:[%s1368_s2] sm:$0xff]  ;;  %v22_v37 = vld [vmem:[%s1368_s2 + $0x10] sm:$0xff] }
  0x18   :  { %825 = vmatprep.subr.bf16.mxu1 %v824_v5  ;;  %v834_v34 = vpack.c.bf16 %v107_v32, %v106_v31  ;;  %v30_v38 = vld [vmem:[%s1367_s0 + $0x10] sm:$0xff]  ;;  %v33_v39 = vld [vmem:[%s1367_s0 + $0x28] sm:$0xff]  ;;  %126 = vperm.xlu0 %837, %v20_v36   ;;  %v35_v40 = vld [vmem:[%s1367_s0 + $0x38] sm:$0xff] }
  0x19   :  { %795 = vmatpush3.bf16.msra.mxu0 %v794_v11  ;;  %136 = vperm.xlu1 %838, %v22_v37   ;;  %v21_v41 = vld [vmem:[%s1368_s2 + $0x8] sm:$0xff]  ;;  %v23_v42 = vld [vmem:[%s1368_s2 + $0x18] sm:$0xff]  ;;  %v32_v43 = vld [vmem:[%s1367_s0 + $0x20] sm:$0xff] }
  0x1a   :  { %797 = vmatprep.subr.bf16.mxu0 %v796_v15  ;;  %v34_v44 = vld [vmem:[%s1367_s0 + $0x30] sm:$0xff]  ;;  %v37_v45 = vld [vmem:[%s1367_s0 + $0x48] sm:$0xff]  ;;  %v39_v46 = vld [vmem:[%s1367_s0 + $0x58] sm:$0xff] }
  0x1b   :  { %827 = vmatpush3.bf16.msra.mxu1 %v826_v14  ;;  %v24_v47 = vld [vmem:[%s1368_s2 + $0x20] sm:$0xff]  ;;  %v25_v48 = vld [vmem:[%s1368_s2 + $0x28] sm:$0xff]  ;;  %v38_v50 = vld [vmem:[%s1367_s0 + $0x50] sm:$0xff] }
  0x1c   :  { %829 = vmatprep.subr.bf16.mxu1 %v828_v19  ;;  %131 = vperm.xlu0 %837, %v21_v41   ;;  %v36_v49 = vld [vmem:[%s1367_s0 + $0x40] sm:$0xff]  ;;  %v41_v51 = vld [vmem:[%s1367_s0 + $0x68] sm:$0xff]  ;;  %v43_v52 = vld [vmem:[%s1367_s0 + $0x78] sm:$0xff] }
  0x1d   :  { %799 = vmatpush3.bf16.msra.mxu0 %v798_v25  ;;  %141 = vperm.xlu1 %838, %v23_v42   ;;  %v26_v53 = vld [vmem:[%s1368_s2 + $0x30] sm:$0xff]  ;;  %v27_v54 = vld [vmem:[%s1368_s2 + $0x38] sm:$0xff]  ;;  %v40_v55 = vld [vmem:[%s1367_s0 + $0x60] sm:$0xff] }
  0x1e   :  { %801 = vmatprep.subr.bf16.mxu0 %v800_v27  ;;  %v42_v56 = vld [vmem:[%s1367_s0 + $0x70] sm:$0xff]  ;;  %v45_v57 = vld [vmem:[%s1367_s0 + $0x88] sm:$0xff]  ;;  %v47_v58 = vld [vmem:[%s1367_s0 + $0x98] sm:$0xff] }
  0x1f   :  { %831 = vmatpush3.bf16.msra.mxu1 %v830_v26  ;;  %v44_v59 = vld [vmem:[%s1367_s0 + $0x80] sm:$0xff]  ;;  %v46_v60 = vld [vmem:[%s1367_s0 + $0x90] sm:$0xff]  ;;  %v49_v61 = vld [vmem:[%s1367_s0 + $0xa8] sm:$0xff] }
  0x20   :  { %833 = vmatprep.subr.bf16.mxu1 %v832_v30  ;;  %146 = vperm.xlu0 %837, %v24_v47   ;;  %v51_v62 = vld [vmem:[%s1367_s0 + $0xb8] sm:$0xff]  ;;  %v48_v63 = vld [vmem:[%s1367_s0 + $0xa0] sm:$0xff]  ;;  %v50_v0 = vld [vmem:[%s1367_s0 + $0xb0] sm:$0xff] }
  0x21   :  { %803 = vmatpush3.bf16.msra.mxu0 %v802_v33  ;;  %151 = vperm.xlu1 %838, %v25_v48   ;;  %v53_v1 = vld [vmem:[%s1367_s0 + $0xc8] sm:$0xff]  ;;  %v55_v2 = vld [vmem:[%s1367_s0 + $0xd8] sm:$0xff]  ;;  %v52_v3 = vld [vmem:[%s1367_s0 + $0xc0] sm:$0xff] }
  0x22   :  { %v54_v4 = vld [vmem:[%s1367_s0 + $0xd0] sm:$0xff]  ;;  %v57_v5 = vld [vmem:[%s1367_s0 + $0xe8] sm:$0xff]  ;;  %v59_v6 = vld [vmem:[%s1367_s0 + $0xf8] sm:$0xff] }
  0x23   :  { %835 = vmatpush3.bf16.msra.mxu1 %v834_v34  ;;  %v56_v7 = vld [vmem:[%s1367_s0 + $0xe0] sm:$0xff]  ;;  %v58_v8 = vld [vmem:[%s1367_s0 + $0xf0] sm:$0xff] }
  0x24   :  { %229 = vmatmul.mubr.f32.vlgmr.msra.gmra.mrb[0].mxu0 %v28_v35  ;;  %156 = vperm.xlu0 %837, %v26_v53  }
  0x25   :  { %233 = vmatprep.mubr.f32.mxu0 %v33_v39  ;;  %161 = vperm.xlu1 %838, %v27_v54  }
  0x26   :  { %334 = vmatmul.mubr.f32.vlgmr.msra.gmra.mrb[0].mxu1 %v30_v38 }
  0x27   :  { %338 = vmatprep.mubr.f32.mxu1 %v35_v40 }
  0x28   :  { %234 = vmatmul.mubr.f32.gmra.mrb[2].mxu0 %v32_v43 }
  0x29   :  { %238 = vmatprep.mubr.f32.mxu0 %v37_v45 }
  0x2a   :  { %339 = vmatmul.mubr.f32.gmra.mrb[2].mxu1 %v34_v44 }
  0x2b   :  { %343 = vmatprep.mubr.f32.mxu1 %v39_v46 }
  0x2c   :  { %239 = vmatmul.mubr.f32.gmra.mrb[4].mxu0 %v36_v49 }
  0x2d   :  { %243 = vmatprep.mubr.f32.mxu0 %v41_v51 }
  0x2e   :  { %344 = vmatmul.mubr.f32.gmra.mrb[4].mxu1 %v38_v50 }
  0x2f   :  { %348 = vmatprep.mubr.f32.mxu1 %v43_v52 }
  0x30   :  { %244 = vmatmul.mubr.f32.gmra.mrb[6].mxu0 %v40_v55 }
  0x31   :  { %248 = vmatprep.mubr.f32.mxu0 %v45_v57 }
  0x32   :  { %349 = vmatmul.mubr.f32.gmra.mrb[6].mxu1 %v42_v56 }
  0x33   :  { %353 = vmatprep.mubr.f32.mxu1 %v47_v58 }
  0x34   :  { %249 = vmatmul.mubr.f32.gmra.mrb[8].mxu0 %v44_v59 }
  0x35   :  { %253 = vmatprep.mubr.f32.mxu0 %v49_v61 }
  0x36   :  { %354 = vmatmul.mubr.f32.gmra.mrb[8].mxu1 %v46_v60 }
  0x37   :  { %358 = vmatprep.mubr.f32.mxu1 %v51_v62 }
  0x38   :  { %254 = vmatmul.mubr.f32.gmra.mrb[10].mxu0 %v48_v63 }
  0x39   :  { %258 = vmatprep.mubr.f32.mxu0 %v53_v1 }
  0x3a   :  { %359 = vmatmul.mubr.f32.gmra.mrb[10].mxu1 %v50_v0 }
  0x3b   :  { %363 = vmatprep.mubr.f32.mxu1 %v55_v2 }
  0x3c   :  { %259 = vmatmul.mubr.f32.gmra.mrb[12].mxu0 %v52_v3 }
  0x3d   :  { %263 = vmatprep.mubr.f32.mxu0 %v57_v5 }
  0x3e   :  { %364 = vmatmul.mubr.f32.gmra.mrb[12].mxu1 %v54_v4 }
  0x3f   :  { %368 = vmatprep.mubr.f32.mxu1 %v59_v6 }
  0x40   :  { %264 = vmatmul.mubr.f32.gmra.mrb[14].mxu0 %v56_v7 }
  0x42   :  { %369 = vmatmul.mubr.f32.gmra.mrb[14].mxu1 %v58_v8 }
  0x97   :  { %v127_v9 = vpop.permute.xlu0 %126 }
  0x98   :  { %v137_v25 = vpop.permute.xlu1 %136 }
  0x9b   :  { %v132_v23 = vpop.permute.xlu0 %131 }
  0x9c   :  { %v142_v43 = vpop.permute.xlu1 %141 }
  0x9f   :  { %v147_v53 = vpop.permute.xlu0 %146 }
  0xa0   :  { %v152_v63 = vpop.permute.xlu1 %151 }
  0xf7   :  { %v692_v10 = vpop.f32.mrb[0].mxu0 }
  0xf8   :  { %v693_v11 = vpop.f32.mrb[1].mxu0 }
  0xf9   :  { %v748_v12 = vpop.f32.mrb[0].mxu1  ;;  %v694_v13 = vadd.f32 %v693_v11, %v692_v10 }
  0xfa   :  { %v749_v14 = vpop.f32.mrb[1].mxu1 }
  0xfb   :  { %v750_v15 = vadd.f32 %v749_v14, %v748_v12  ;;  %v231_v16 = vadd.f32 %v694_v13, %v127_v9  ;;  %v695_v17 = vpop.f32.mrb[2].mxu0  ;;  %v157_v9 = vpop.permute.xlu0 %156 }
  0xfc   :  { %v696_v18 = vpop.f32.mrb[3].mxu0 }
  0xfd   :  { %v751_v19 = vpop.f32.mrb[2].mxu1  ;;  %v1198_v20 = vadd.f32 %v750_v15, %v231_v16  ;;  %v697_v21 = vadd.f32 %v696_v18, %v695_v17 }
  0xfe   :  { %v752_v22 = vpop.f32.mrb[3].mxu1 }
  0xff   :  { %v753_v24 = vadd.f32 %v752_v22, %v751_v19  ;;  %v236_v26 = vadd.f32 %v697_v21, %v132_v23  ;;  %v698_v27 = vpop.f32.mrb[4].mxu0  ;;  %v375_v28 = vsel %vm374_vm0, %v1198_v20, 0.0  ;;  %v162_v19 = vpop.permute.xlu1 %161 }
 0x100   :  { %v699_v29 = vpop.f32.mrb[5].mxu0  ;;  %376 = vadd.xlane.f32.xlu0 %v375_v28 }
 0x101   :  { %v754_v30 = vpop.f32.mrb[4].mxu1  ;;  %v1202_v31 = vadd.f32 %v753_v24, %v236_v26  ;;  %v700_v32 = vadd.f32 %v699_v29, %v698_v27 }
 0x102   :  { %v755_v33 = vpop.f32.mrb[5].mxu1 }
 0x103   :  { %v756_v34 = vadd.f32 %v755_v33, %v754_v30  ;;  %v241_v35 = vadd.f32 %v700_v32, %v137_v25  ;;  %v701_v36 = vpop.f32.mrb[6].mxu0  ;;  %v378_v37 = vsel %vm374_vm0, %v1202_v31, 0.0 }
 0x104   :  { %v702_v38 = vpop.f32.mrb[7].mxu0  ;;  %379 = vadd.xlane.f32.xlu1 %v378_v37 }
 0x105   :  { %v757_v39 = vpop.f32.mrb[6].mxu1  ;;  %v1206_v40 = vadd.f32 %v756_v34, %v241_v35  ;;  %v703_v41 = vadd.f32 %v702_v38, %v701_v36 }
 0x106   :  { %v758_v42 = vpop.f32.mrb[7].mxu1 }
 0x107   :  { %v759_v44 = vadd.f32 %v758_v42, %v757_v39  ;;  %v246_v45 = vadd.f32 %v703_v41, %v142_v43  ;;  %v704_v46 = vpop.f32.mrb[8].mxu0  ;;  %v381_v47 = vsel %vm374_vm0, %v1206_v40, 0.0 }
 0x108   :  { %v705_v48 = vpop.f32.mrb[9].mxu0  ;;  %382 = vadd.xlane.f32.xlu0 %v381_v47 }
 0x109   :  { %v760_v49 = vpop.f32.mrb[8].mxu1  ;;  %v1210_v50 = vadd.f32 %v759_v44, %v246_v45  ;;  %v706_v51 = vadd.f32 %v705_v48, %v704_v46 }
 0x10a   :  { %v761_v52 = vpop.f32.mrb[9].mxu1 }
 0x10b   :  { %v762_v54 = vadd.f32 %v761_v52, %v760_v49  ;;  %v251_v55 = vadd.f32 %v706_v51, %v147_v53  ;;  %v707_v56 = vpop.f32.mrb[10].mxu0  ;;  %v384_v57 = vsel %vm374_vm0, %v1210_v50, 0.0 }
 0x10c   :  { %v708_v58 = vpop.f32.mrb[11].mxu0  ;;  %385 = vadd.xlane.f32.xlu0 %v384_v57 }
 0x10d   :  { %v763_v59 = vpop.f32.mrb[10].mxu1  ;;  %v1214_v60 = vadd.f32 %v762_v54, %v251_v55  ;;  %v709_v61 = vadd.f32 %v708_v58, %v707_v56 }
 0x10e   :  { %v764_v62 = vpop.f32.mrb[11].mxu1 }
 0x10f   :  { %v765_v0 = vadd.f32 %v764_v62, %v763_v59  ;;  %v256_v1 = vadd.f32 %v709_v61, %v152_v63  ;;  %v710_v2 = vpop.f32.mrb[12].mxu0  ;;  %v387_v3 = vsel %vm374_vm0, %v1214_v60, 0.0 }
 0x110   :  { %v711_v4 = vpop.f32.mrb[13].mxu0  ;;  %388 = vadd.xlane.f32.xlu1 %v387_v3 }
 0x111   :  { %v766_v5 = vpop.f32.mrb[12].mxu1  ;;  %v1218_v6 = vadd.f32 %v765_v0, %v256_v1  ;;  %v712_v7 = vadd.f32 %v711_v4, %v710_v2 }
 0x112   :  { %v767_v8 = vpop.f32.mrb[13].mxu1 }
 0x113   :  { %v768_v10 = vadd.f32 %v767_v8, %v766_v5  ;;  %v261_v11 = vadd.f32 %v712_v7, %v157_v9  ;;  %v713_v12 = vpop.f32.mrb[14].mxu0  ;;  %v390_v13 = vsel %vm374_vm0, %v1218_v6, 0.0 }
 0x114   :  { %v714_v14 = vpop.f32.mrb[15].mxu0  ;;  %391 = vadd.xlane.f32.xlu0 %v390_v13 }
 0x115   :  { %v769_v15 = vpop.f32.mrb[14].mxu1  ;;  %v1222_v16 = vadd.f32 %v768_v10, %v261_v11  ;;  %v715_v17 = vadd.f32 %v714_v14, %v713_v12 }
 0x116   :  { %v770_v18 = vpop.f32.mrb[15].mxu1 }
 0x117   :  { %v771_v21 = vadd.f32 %v770_v18, %v769_v15  ;;  %v266_v22 = vadd.f32 %v715_v17, %v162_v19  ;;  %v393_v23 = vsel %vm374_vm0, %v1222_v16, 0.0  ;;  %v472_v19 = vld [vmem:[%s1369_s3] sm:$0xff] }
 0x118   :  { %394 = vadd.xlane.f32.xlu1 %v393_v23 }
 0x119   :  { %v1226_v24 = vadd.f32 %v771_v21, %v266_v22 }
 0x11b   :  { %v396_v25 = vsel %vm374_vm0, %v1226_v24, 0.0 }
 0x11c   :  { %397 = vadd.xlane.f32.xlu0 %v396_v25 }
 0x18d   :  { %v377_v26 = vpop.xlane.xlu0 %376 }
 0x18e   :  { %v1230_v27 = vmul.f32 0.03125, %v377_v26 }
 0x190   :  { %v416_v28 = vsub.f32 %v1198_v20, %v1230_v27 }
 0x191   :  { %v380_v29 = vpop.xlane.xlu1 %379 }
 0x192   :  { %v1234_v30 = vmul.f32 0.03125, %v380_v29  ;;  %v424_v32 = vmul.f32 %v416_v28, %v416_v28  ;;  %v473_v28 = vld [vmem:[%s1369_s3 + $0x8] sm:$0xff] }
 0x194   :  { %v417_v33 = vsub.f32 %v1202_v31, %v1234_v30  ;;  %v432_v34 = vsel %vm374_vm0, %v424_v32, 0.0 }
 0x195   :  { %433 = vadd.xlane.f32.xlu1 %v432_v34  ;;  %v383_v35 = vpop.xlane.xlu0 %382 }
 0x196   :  { %v1239_v36 = vmul.f32 0.03125, %v383_v35  ;;  %v425_v37 = vmul.f32 %v417_v33, %v417_v33 }
 0x198   :  { %v418_v38 = vsub.f32 %v1206_v40, %v1239_v36  ;;  %v435_v39 = vsel %vm374_vm0, %v425_v37, 0.0 }
 0x199   :  { %436 = vadd.xlane.f32.xlu0 %v435_v39  ;;  %v386_v41 = vpop.xlane.xlu0 %385  ;;  %v504_v39 = vld [vmem:[%s1370_s4] sm:$0xff] }
 0x19a   :  { %v1244_v42 = vmul.f32 0.03125, %v386_v41  ;;  %v426_v43 = vmul.f32 %v418_v38, %v418_v38  ;;  %v474_v38 = vld [vmem:[%s1369_s3 + $0x10] sm:$0xff] }
 0x19c   :  { %v419_v44 = vsub.f32 %v1210_v50, %v1244_v42  ;;  %v438_v45 = vsel %vm374_vm0, %v426_v43, 0.0 }
 0x19d   :  { %v389_v46 = vpop.xlane.xlu1 %388  ;;  %439 = vadd.xlane.f32.xlu1 %v438_v45 }
 0x19e   :  { %v1249_v47 = vmul.f32 0.03125, %v389_v46  ;;  %v427_v48 = vmul.f32 %v419_v44, %v419_v44 }
 0x1a0   :  { %v420_v49 = vsub.f32 %v1214_v60, %v1249_v47  ;;  %v441_v51 = vsel %vm374_vm0, %v427_v48, 0.0 }
 0x1a1   :  { %442 = vadd.xlane.f32.xlu0 %v441_v51  ;;  %v392_v52 = vpop.xlane.xlu0 %391  ;;  %v505_v51 = vld [vmem:[%s1370_s4 + $0x8] sm:$0xff] }
 0x1a2   :  { %v1254_v53 = vmul.f32 0.03125, %v392_v52  ;;  %v428_v54 = vmul.f32 %v420_v49, %v420_v49  ;;  %v506_v49 = vld [vmem:[%s1370_s4 + $0x10] sm:$0xff]  ;;  %v475_v52 = vld [vmem:[%s1369_s3 + $0x18] sm:$0xff] }
 0x1a4   :  { %v421_v55 = vsub.f32 %v1218_v6, %v1254_v53  ;;  %v444_v56 = vsel %vm374_vm0, %v428_v54, 0.0 }
 0x1a5   :  { %v395_v57 = vpop.xlane.xlu1 %394  ;;  %445 = vadd.xlane.f32.xlu1 %v444_v56 }
 0x1a6   :  { %v1259_v58 = vmul.f32 0.03125, %v395_v57  ;;  %v429_v59 = vmul.f32 %v421_v55, %v421_v55 }
 0x1a8   :  { %v422_v61 = vsub.f32 %v1222_v16, %v1259_v58  ;;  %v447_v62 = vsel %vm374_vm0, %v429_v59, 0.0 }
 0x1a9   :  { %448 = vadd.xlane.f32.xlu0 %v447_v62  ;;  %v398_v63 = vpop.xlane.xlu0 %397 }
 0x1aa   :  { %v1264_v0 = vmul.f32 0.03125, %v398_v63  ;;  %v430_v1 = vmul.f32 %v422_v61, %v422_v61  ;;  %v476_v63 = vld [vmem:[%s1369_s3 + $0x20] sm:$0xff] }
 0x1ac   :  { %v423_v2 = vsub.f32 %v1226_v24, %v1264_v0  ;;  %v450_v3 = vsel %vm374_vm0, %v430_v1, 0.0 }
 0x1ad   :  { %451 = vadd.xlane.f32.xlu1 %v450_v3 }
 0x1ae   :  { %v431_v4 = vmul.f32 %v423_v2, %v423_v2 }
 0x1b0   :  { %v453_v5 = vsel %vm374_vm0, %v431_v4, 0.0 }
 0x1b1   :  { %454 = vadd.xlane.f32.xlu0 %v453_v5  ;;  %v507_v5 = vld [vmem:[%s1370_s4 + $0x18] sm:$0xff] }
 0x222   :  { %v434_v7 = vpop.xlane.xlu1 %433 }
 0x223   :  { %v464_v8 = vmul.f32 0.03125, %v434_v7  ;;  %v477_v7 = vld [vmem:[%s1369_s3 + $0x28] sm:$0xff] }
 0x225   :  { %v480_v9 = vadd.f32 1e-05, %v464_v8 }
 0x226   :  { %v437_v10 = vpop.xlane.xlu0 %436 }
 0x227   :  { %839 = vrsqrt.f32 %v480_v9  ;;  %v465_v11 = vmul.f32 0.03125, %v437_v10 }
 0x229   :  { %v481_v12 = vadd.f32 1e-05, %v465_v11 }
 0x22a   :  { %v440_v13 = vpop.xlane.xlu1 %439 }
 0x22b   :  { %841 = vrsqrt.f32 %v481_v12  ;;  %v466_v14 = vmul.f32 0.03125, %v440_v13  ;;  %v478_v12 = vld [vmem:[%s1369_s3 + $0x30] sm:$0xff] }
 0x22d   :  { %v482_v15 = vadd.f32 1e-05, %v466_v14 }
 0x22e   :  { %v443_v17 = vpop.xlane.xlu0 %442 }
 0x22f   :  { %843 = vrsqrt.f32 %v482_v15  ;;  %v467_v18 = vmul.f32 0.03125, %v443_v17  ;;  %v510_v17 = vld [vmem:[%s1370_s4 + $0x30] sm:$0xff] }
 0x231   :  { %v840_v21 = vpop.eup %839  ;;  %v483_v22 = vadd.f32 1e-05, %v467_v18  ;;  %v479_v18 = vld [vmem:[%s1369_s3 + $0x38] sm:$0xff] }
 0x232   :  { %v446_v23 = vpop.xlane.xlu1 %445  ;;  %v496_v25 = vmul.f32 %v840_v21, %v472_v19 }
 0x233   :  { %845 = vrsqrt.f32 %v483_v22  ;;  %v468_v26 = vmul.f32 0.03125, %v446_v23 }
 0x234   :  { %530 = vperm.xlu1 %838, %v496_v25   ;;  %v512_v35 = vmul.f32 %v496_v25, %v1230_v27 }
 0x235   :  { %v842_v29 = vpop.eup %841  ;;  %v484_v32 = vadd.f32 1e-05, %v468_v26  ;;  %v511_v26 = vld [vmem:[%s1370_s4 + $0x38] sm:$0xff] }
 0x236   :  { %v449_v33 = vpop.xlane.xlu0 %448  ;;  %v497_v34 = vmul.f32 %v842_v29, %v473_v28  ;;  %v520_v46 = vsub.f32 %v504_v39, %v512_v35 }
 0x237   :  { %847 = vrsqrt.f32 %v484_v32  ;;  %v469_v37 = vmul.f32 0.03125, %v449_v33 }
 0x238   :  { %535 = vperm.xlu0 %837, %v497_v34   ;;  %v513_v48 = vmul.f32 %v497_v34, %v1234_v30 }
 0x239   :  { %v844_v41 = vpop.eup %843  ;;  %v485_v43 = vadd.f32 1e-05, %v469_v37 }
 0x23a   :  { %v452_v44 = vpop.xlane.xlu1 %451  ;;  %v498_v45 = vmul.f32 %v844_v41, %v474_v38  ;;  %v521_v59 = vsub.f32 %v505_v51, %v513_v48 }
 0x23b   :  { %849 = vrsqrt.f32 %v485_v43  ;;  %v470_v27 = vmul.f32 0.03125, %v452_v44 }
 0x23c   :  { %540 = vperm.xlu1 %838, %v498_v45   ;;  %578 = vperm.xlu0 %837, %v520_v46   ;;  %v514_v54 = vmul.f32 %v498_v45, %v1239_v36  ;;  %v508_v36 = vld [vmem:[%s1370_s4 + $0x20] sm:$0xff] }
 0x23d   :  { %v846_v55 = vpop.eup %845  ;;  %v486_v30 = vadd.f32 1e-05, %v470_v27 }
 0x23e   :  { %v455_v56 = vpop.xlane.xlu0 %454  ;;  %v522_v57 = vsub.f32 %v506_v49, %v514_v54  ;;  %v499_v61 = vmul.f32 %v846_v55, %v475_v52 }
 0x23f   :  { %851 = vrsqrt.f32 %v486_v30  ;;  %v471_v62 = vmul.f32 0.03125, %v455_v56 }
 0x240   :  { %588 = vperm.xlu0 %837, %v522_v57   ;;  %583 = vperm.xlu1 %838, %v521_v59   ;;  %v515_v4 = vmul.f32 %v499_v61, %v1244_v42 }
 0x241   :  { %v848_v1 = vpop.eup %847  ;;  %v487_v2 = vadd.f32 1e-05, %v471_v62 }
 0x242   :  { %v500_v3 = vmul.f32 %v848_v1, %v476_v63  ;;  %v523_v42 = vsub.f32 %v507_v5, %v515_v4 }
 0x243   :  { %853 = vrsqrt.f32 %v487_v2 }
 0x244   :  { %550 = vperm.xlu0 %837, %v500_v3   ;;  %545 = vperm.xlu1 %838, %v499_v61   ;;  %v516_v8 = vmul.f32 %v500_v3, %v1249_v47  ;;  %v509_v47 = vld [vmem:[%s1370_s4 + $0x28] sm:$0xff] }
 0x245   :  { %v850_v9 = vpop.eup %849 }
 0x246   :  { %v524_v10 = vsub.f32 %v508_v36, %v516_v8  ;;  %v501_v11 = vmul.f32 %v850_v9, %v477_v7 }
 0x248   :  { %598 = vperm.xlu0 %837, %v524_v10   ;;  %593 = vperm.xlu1 %838, %v523_v42   ;;  %v517_v15 = vmul.f32 %v501_v11, %v1254_v53 }
 0x249   :  { %v852_v13 = vpop.eup %851 }
 0x24a   :  { %v502_v14 = vmul.f32 %v852_v13, %v478_v12  ;;  %v525_v23 = vsub.f32 %v509_v47, %v517_v15 }
 0x24c   :  { %560 = vperm.xlu0 %837, %v502_v14   ;;  %555 = vperm.xlu1 %838, %v501_v11   ;;  %v518_v19 = vmul.f32 %v502_v14, %v1259_v58 }
 0x24d   :  { %v854_v21 = vpop.eup %853 }
 0x24e   :  { %v526_v22 = vsub.f32 %v510_v17, %v518_v19  ;;  %v503_v53 = vmul.f32 %v854_v21, %v479_v18 }
 0x250   :  { %608 = vperm.xlu0 %837, %v526_v22   ;;  %603 = vperm.xlu1 %838, %v525_v23   ;;  %v519_v25 = vmul.f32 %v503_v53, %v1264_v0 }
 0x252   :  { %v527_v28 = vsub.f32 %v511_v26, %v519_v25 }
 0x254   :  { %565 = vperm.xlu1 %838, %v503_v53  }
 0x258   :  { %613 = vperm.xlu1 %838, %v527_v28  }
 0x2b3   :  { %v531_v29 = vpop.permute.xlu1 %530 }
 0x2b4   :  { %v568_v33 = vmul.f32 %v531_v29, %v1198_v20 }
 0x2b7   :  { %v536_v32 = vpop.permute.xlu0 %535 }
 0x2b8   :  { %v569_v37 = vmul.f32 %v536_v32, %v1202_v31 }
 0x2bb   :  { %v541_v58 = vpop.permute.xlu1 %540  ;;  %v579_v34 = vpop.permute.xlu0 %578 }
 0x2bc   :  { %v616_v35 = vadd.f32 %v579_v34, %v568_v33  ;;  %v570_v38 = vmul.f32 %v541_v58, %v1206_v40 }
 0x2be   :  { %vm624_vm1 = vcmp.ge.f32.partialorder %v616_v35, 0.0  ;;  %v632_v0 = vmul.f32 0.1, %v616_v35 }
 0x2bf   :  { %v584_v39 = vpop.permute.xlu1 %583  ;;  %v589_v41 = vpop.permute.xlu0 %588 }
 0x2c0   :  { %v640_v43 = vsel %vm624_vm1, %v616_v35, %v632_v0  ;;  %v617_v44 = vadd.f32 %v584_v39, %v569_v37  ;;  %v618_v45 = vadd.f32 %v589_v41, %v570_v38 }
 0x2c1   :  { %648 = vst.msk [vmem:[%s1371_s5] sm:$0xff] %vm374_vm0, %v640_v43 }
 0x2c2   :  { %vm625_vm2 = vcmp.ge.f32.partialorder %v617_v44, 0.0  ;;  %v633_v20 = vmul.f32 0.1, %v617_v44  ;;  %vm626_vm3 = vcmp.ge.f32.partialorder %v618_v45, 0.0  ;;  %v634_v46 = vmul.f32 0.1, %v618_v45 }
 0x2c3   :  { %v546_v48 = vpop.permute.xlu1 %545  ;;  %v551_v31 = vpop.permute.xlu0 %550 }
 0x2c4   :  { %v641_v27 = vsel %vm625_vm2, %v617_v44, %v633_v20  ;;  %v642_v40 = vsel %vm626_vm3, %v618_v45, %v634_v46  ;;  %v571_v49 = vmul.f32 %v546_v48, %v1210_v50  ;;  %v572_v51 = vmul.f32 %v551_v31, %v1214_v60 }
 0x2c5   :  { %649 = vst.msk [vmem:[%s1371_s5 + $0x8] sm:$0xff] %vm374_vm0, %v641_v27  ;;  %650 = vst.msk [vmem:[%s1371_s5 + $0x10] sm:$0xff] %vm374_vm0, %v642_v40 }
 0x2c7   :  { %v594_v52 = vpop.permute.xlu1 %593  ;;  %v599_v54 = vpop.permute.xlu0 %598 }
 0x2c8   :  { %v619_v55 = vadd.f32 %v594_v52, %v571_v49  ;;  %v620_v30 = vadd.f32 %v599_v54, %v572_v51 }
 0x2ca   :  { %vm627_vm4 = vcmp.ge.f32.partialorder %v619_v55, 0.0  ;;  %v635_v56 = vmul.f32 0.1, %v619_v55  ;;  %vm628_vm5 = vcmp.ge.f32.partialorder %v620_v30, 0.0  ;;  %v636_v57 = vmul.f32 0.1, %v620_v30 }
 0x2cb   :  { %v556_v59 = vpop.permute.xlu1 %555  ;;  %v561_v61 = vpop.permute.xlu0 %560 }
 0x2cc   :  { %v643_v62 = vsel %vm627_vm4, %v619_v55, %v635_v56  ;;  %v644_v63 = vsel %vm628_vm5, %v620_v30, %v636_v57  ;;  %v573_v50 = vmul.f32 %v556_v59, %v1218_v6  ;;  %v574_v60 = vmul.f32 %v561_v61, %v1222_v16 }
 0x2cd   :  { %651 = vst.msk [vmem:[%s1371_s5 + $0x18] sm:$0xff] %vm374_vm0, %v643_v62  ;;  %652 = vst.msk [vmem:[%s1371_s5 + $0x20] sm:$0xff] %vm374_vm0, %v644_v63 }
 0x2cf   :  { %v604_v1 = vpop.permute.xlu1 %603  ;;  %v609_v2 = vpop.permute.xlu0 %608 }
 0x2d0   :  { %v621_v3 = vadd.f32 %v604_v1, %v573_v50  ;;  %v622_v4 = vadd.f32 %v609_v2, %v574_v60 }
 0x2d2   :  { %vm629_vm6 = vcmp.ge.f32.partialorder %v621_v3, 0.0  ;;  %v637_v36 = vmul.f32 0.1, %v621_v3  ;;  %vm630_vm7 = vcmp.ge.f32.partialorder %v622_v4, 0.0  ;;  %v638_v5 = vmul.f32 0.1, %v622_v4 }
 0x2d3   :  { %v566_v7 = vpop.permute.xlu1 %565 }
 0x2d4   :  { %v645_v8 = vsel %vm629_vm6, %v621_v3, %v637_v36  ;;  %v646_v9 = vsel %vm630_vm7, %v622_v4, %v638_v5  ;;  %v575_v6 = vmul.f32 %v566_v7, %v1226_v24 }
 0x2d5   :  { %653 = vst.msk [vmem:[%s1371_s5 + $0x28] sm:$0xff] %vm374_vm0, %v645_v8  ;;  %654 = vst.msk [vmem:[%s1371_s5 + $0x30] sm:$0xff] %vm374_vm0, %v646_v9 }
 0x2d7   :  { %v614_v16 = vpop.permute.xlu1 %613 }
 0x2d8   :  { %v623_v10 = vadd.f32 %v614_v16, %v575_v6 }
 0x2da   :  { %vm631_vm8 = vcmp.ge.f32.partialorder %v623_v10, 0.0  ;;  %v639_v42 = vmul.f32 0.1, %v623_v10 }
 0x2dc   :  { %v647_v11 = vsel %vm631_vm8, %v623_v10, %v639_v42 }
 0x2dd   :  { %655 = vst.msk [vmem:[%s1371_s5 + $0x38] sm:$0xff] %vm374_vm0, %v647_v11 }

// kernel: cnn_autoencoder_forward.13
= control target key start
LH: loop header
LB: loop body
LE: loop exit
PB: predicated region body
PF: predicated region fallthrough
CT: control target
= control target key end

     0   :  { %v3346_v0 = vmov 0   ;;  %vm1377_vm0 = vcmask 130048   ;;  %vm478_vm1 = vcmask 15360   ;;  %s5581_s4 = inlined_call_operand.vmem [shape: f32[1024,1], index: 4, kind: input, shape index: {}]   ;;  %s5582_s2 = inlined_call_operand.vmem [shape: f32[16,1], index: 2, kind: input, shape index: {}]   ;;  %s5583_s0 = inlined_call_operand.vmem [shape: f32[1024,2], index: 0, kind: input, shape index: {}]   ;;  %s5584_s1 = inlined_call_operand.vmem [shape: f32[16,1024], index: 1, kind: input, shape index: {}]   ;;  %s5585_s3 = inlined_call_operand.vmem [shape: f32[1024,16], index: 3, kind: input, shape index: {}]   ;;  %s5586_s5 = inlined_call_operand.vmem [shape: f32[16,2], index: 5, kind: output, shape index: {0}]   ;;  %s5587_s6 = inlined_call_operand.vmem [shape: f32[1024,2], index: 6, kind: output, shape index: {1}]  }
   0x1   :  { %3345 = vset.pattern.permute.xlu1 %v3346_v0  ;;  %3344 = vset.pattern.permute.xlu0 %v3346_v0  ;;  %v609_v1 = vld [vmem:[%s5581_s4] sm:$0xff]  ;;  %v55_v4 = vld [vmem:[%s5583_s0 + $0x88] sm:$0xff]  ;;  %v56_v17 = vld [vmem:[%s5583_s0 + $0x90] sm:$0xff] }
   0x2   :  { %v166_v2 = vld [vmem:[%s5582_s2] sm:$0xff]  ;;  %739 = vperm.xlu1 %3345, %v609_v1   ;;  %v39_v6 = vld [vmem:[%s5583_s0 + $0x8] sm:$0xff]  ;;  %v57_v18 = vld [vmem:[%s5583_s0 + $0x98] sm:$0xff] }
   0x3   :  { %v54_v3 = vld [vmem:[%s5583_s0 + $0x80] sm:$0xff]  ;;  %170 = vperm.xlu0 %3344, %v166_v2   ;;  %v87_v10 = vld [vmem:[%s5583_s0 + $0x188] sm:$0xff]  ;;  %v40_v19 = vld [vmem:[%s5583_s0 + $0x10] sm:$0xff]  ;;  %v3213_v20 = vpack.c.bf16 %v57_v18, %v56_v17 }
   0x4   :  { %v38_v5 = vld [vmem:[%s5583_s0] sm:$0xff]  ;;  %v3209_v7 = vpack.c.bf16 %v55_v4, %v54_v3  ;;  %v610_v11 = vld [vmem:[%s5581_s4 + $0x8] sm:$0xff]  ;;  %v41_v21 = vld [vmem:[%s5583_s0 + $0x18] sm:$0xff] }
   0x5   :  { %v3211_v8 = vpack.c.bf16 %v39_v6, %v38_v5  ;;  %v86_v9 = vld [vmem:[%s5583_s0 + $0x180] sm:$0xff]  ;;  %v167_v13 = vld [vmem:[%s5582_s2 + $0x8] sm:$0xff]  ;;  %v88_v22 = vld [vmem:[%s5583_s0 + $0x190] sm:$0xff]  ;;  %v3215_v24 = vpack.c.bf16 %v41_v21, %v40_v19 }
   0x6   :  { %v3241_v12 = vpack.c.bf16 %v87_v10, %v86_v9  ;;  %v70_v14 = vld [vmem:[%s5583_s0 + $0x100] sm:$0xff]  ;;  %v71_v15 = vld [vmem:[%s5583_s0 + $0x108] sm:$0xff]  ;;  %3210 = vmatprep.subr.bf16.mxu0 %v3209_v7  ;;  %v89_v23 = vld [vmem:[%s5583_s0 + $0x198] sm:$0xff]  ;;  %744 = vperm.xlu1 %3345, %v610_v11  }
   0x7   :  { %v3243_v16 = vpack.c.bf16 %v71_v15, %v70_v14  ;;  %3212 = vmatpush3.bf16.msra.mxu0 %v3211_v8  ;;  %175 = vperm.xlu0 %3344, %v167_v13   ;;  %v3245_v25 = vpack.c.bf16 %v89_v23, %v88_v22  ;;  %v612_v26 = vld [vmem:[%s5581_s4 + $0x18] sm:$0xff]  ;;  %v611_v27 = vld [vmem:[%s5581_s4 + $0x10] sm:$0xff]  ;;  %v58_v30 = vld [vmem:[%s5583_s0 + $0xa0] sm:$0xff] }
   0x8   :  { %3242 = vmatprep.subr.bf16.mxu1 %v3241_v12  ;;  %v72_v28 = vld [vmem:[%s5583_s0 + $0x110] sm:$0xff]  ;;  %3214 = vmatprep.subr.bf16.mxu0 %v3213_v20  ;;  %v73_v29 = vld [vmem:[%s5583_s0 + $0x118] sm:$0xff]  ;;  %v59_v31 = vld [vmem:[%s5583_s0 + $0xa8] sm:$0xff] }
   0x9   :  { %3244 = vmatpush3.bf16.msra.mxu1 %v3243_v16  ;;  %v3247_v32 = vpack.c.bf16 %v73_v29, %v72_v28  ;;  %v3217_v33 = vpack.c.bf16 %v59_v31, %v58_v30  ;;  %v42_v34 = vld [vmem:[%s5583_s0 + $0x20] sm:$0xff]  ;;  %v43_v35 = vld [vmem:[%s5583_s0 + $0x28] sm:$0xff]  ;;  %v60_v44 = vld [vmem:[%s5583_s0 + $0xb0] sm:$0xff] }
   0xa   :  { %3246 = vmatprep.subr.bf16.mxu1 %v3245_v25  ;;  %v90_v36 = vld [vmem:[%s5583_s0 + $0x1a0] sm:$0xff]  ;;  %v3219_v37 = vpack.c.bf16 %v43_v35, %v42_v34  ;;  %v91_v38 = vld [vmem:[%s5583_s0 + $0x1a8] sm:$0xff]  ;;  %754 = vperm.xlu1 %3345, %v612_v26   ;;  %v61_v46 = vld [vmem:[%s5583_s0 + $0xb8] sm:$0xff] }
   0xb   :  { %3216 = vmatpush3.bf16.msra.mxu0 %v3215_v24  ;;  %v614_v39 = vld [vmem:[%s5581_s4 + $0x28] sm:$0xff]  ;;  %v613_v40 = vld [vmem:[%s5581_s4 + $0x20] sm:$0xff]  ;;  %749 = vperm.xlu0 %3344, %v611_v27   ;;  %v3249_v41 = vpack.c.bf16 %v91_v38, %v90_v36  ;;  %v44_v47 = vld [vmem:[%s5583_s0 + $0x30] sm:$0xff]  ;;  %v3221_v49 = vpack.c.bf16 %v61_v46, %v60_v44 }
   0xc   :  { %v74_v42 = vld [vmem:[%s5583_s0 + $0x120] sm:$0xff]  ;;  %v75_v43 = vld [vmem:[%s5583_s0 + $0x128] sm:$0xff]  ;;  %3218 = vmatprep.subr.bf16.mxu0 %v3217_v33  ;;  %v45_v48 = vld [vmem:[%s5583_s0 + $0x38] sm:$0xff] }
   0xd   :  { %3248 = vmatpush3.bf16.msra.mxu1 %v3247_v32  ;;  %v3251_v45 = vpack.c.bf16 %v75_v43, %v74_v42  ;;  %v92_v50 = vld [vmem:[%s5583_s0 + $0x1b0] sm:$0xff]  ;;  %v93_v51 = vld [vmem:[%s5583_s0 + $0x1b8] sm:$0xff]  ;;  %v3223_v52 = vpack.c.bf16 %v45_v48, %v44_v47  ;;  %v62_v58 = vld [vmem:[%s5583_s0 + $0xc0] sm:$0xff] }
   0xe   :  { %3250 = vmatprep.subr.bf16.mxu1 %v3249_v41  ;;  %v3253_v53 = vpack.c.bf16 %v93_v51, %v92_v50  ;;  %v616_v54 = vld [vmem:[%s5581_s4 + $0x38] sm:$0xff]  ;;  %v615_v55 = vld [vmem:[%s5581_s4 + $0x30] sm:$0xff]  ;;  %764 = vperm.xlu1 %3345, %v614_v39   ;;  %v63_v59 = vld [vmem:[%s5583_s0 + $0xc8] sm:$0xff] }
   0xf   :  { %3220 = vmatpush3.bf16.msra.mxu0 %v3219_v37  ;;  %v76_v56 = vld [vmem:[%s5583_s0 + $0x130] sm:$0xff]  ;;  %v77_v57 = vld [vmem:[%s5583_s0 + $0x138] sm:$0xff]  ;;  %759 = vperm.xlu0 %3344, %v613_v40   ;;  %v46_v60 = vld [vmem:[%s5583_s0 + $0x40] sm:$0xff]  ;;  %v3225_v62 = vpack.c.bf16 %v63_v59, %v62_v58 }
  0x10   :  { %3222 = vmatprep.subr.bf16.mxu0 %v3221_v49  ;;  %v3255_v61 = vpack.c.bf16 %v77_v57, %v76_v56  ;;  %v47_v63 = vld [vmem:[%s5583_s0 + $0x48] sm:$0xff]  ;;  %v94_v0 = vld [vmem:[%s5583_s0 + $0x1c0] sm:$0xff]  ;;  %v64_v6 = vld [vmem:[%s5583_s0 + $0xd0] sm:$0xff] }
  0x11   :  { %3252 = vmatpush3.bf16.msra.mxu1 %v3251_v45  ;;  %v95_v1 = vld [vmem:[%s5583_s0 + $0x1c8] sm:$0xff]  ;;  %v78_v3 = vld [vmem:[%s5583_s0 + $0x140] sm:$0xff]  ;;  %v3227_v4 = vpack.c.bf16 %v47_v63, %v46_v60  ;;  %v65_v7 = vld [vmem:[%s5583_s0 + $0xd8] sm:$0xff] }
  0x12   :  { %3254 = vmatprep.subr.bf16.mxu1 %v3253_v53  ;;  %v3257_v2 = vpack.c.bf16 %v95_v1, %v94_v0  ;;  %v79_v5 = vld [vmem:[%s5583_s0 + $0x148] sm:$0xff]  ;;  %774 = vperm.xlu1 %3345, %v616_v54   ;;  %v48_v8 = vld [vmem:[%s5583_s0 + $0x50] sm:$0xff]  ;;  %v49_v9 = vld [vmem:[%s5583_s0 + $0x58] sm:$0xff]  ;;  %v3229_v14 = vpack.c.bf16 %v65_v7, %v64_v6 }
  0x13   :  { %3224 = vmatpush3.bf16.msra.mxu0 %v3223_v52  ;;  %769 = vperm.xlu0 %3344, %v615_v55   ;;  %v96_v10 = vld [vmem:[%s5583_s0 + $0x1d0] sm:$0xff]  ;;  %v618_v11 = vld [vmem:[%s5581_s4 + $0x48] sm:$0xff]  ;;  %v617_v12 = vld [vmem:[%s5581_s4 + $0x40] sm:$0xff]  ;;  %v3259_v13 = vpack.c.bf16 %v79_v5, %v78_v3  ;;  %v3231_v20 = vpack.c.bf16 %v49_v9, %v48_v8 }
  0x14   :  { %3226 = vmatprep.subr.bf16.mxu0 %v3225_v62  ;;  %v97_v15 = vld [vmem:[%s5583_s0 + $0x1d8] sm:$0xff]  ;;  %v80_v17 = vld [vmem:[%s5583_s0 + $0x150] sm:$0xff]  ;;  %v66_v19 = vld [vmem:[%s5583_s0 + $0xe0] sm:$0xff] }
  0x15   :  { %3256 = vmatpush3.bf16.msra.mxu1 %v3255_v61  ;;  %v3261_v16 = vpack.c.bf16 %v97_v15, %v96_v10  ;;  %v81_v18 = vld [vmem:[%s5583_s0 + $0x158] sm:$0xff]  ;;  %v67_v21 = vld [vmem:[%s5583_s0 + $0xe8] sm:$0xff]  ;;  %v50_v22 = vld [vmem:[%s5583_s0 + $0x60] sm:$0xff] }
  0x16   :  { %3258 = vmatprep.subr.bf16.mxu1 %v3257_v2  ;;  %784 = vperm.xlu1 %3345, %v618_v11   ;;  %v51_v23 = vld [vmem:[%s5583_s0 + $0x68] sm:$0xff]  ;;  %v98_v24 = vld [vmem:[%s5583_s0 + $0x1e0] sm:$0xff]  ;;  %v620_v26 = vld [vmem:[%s5581_s4 + $0x58] sm:$0xff]  ;;  %v3263_v28 = vpack.c.bf16 %v81_v18, %v80_v17  ;;  %v3233_v29 = vpack.c.bf16 %v67_v21, %v66_v19 }
  0x17   :  { %3228 = vmatpush3.bf16.msra.mxu0 %v3227_v4  ;;  %779 = vperm.xlu0 %3344, %v617_v12   ;;  %v99_v25 = vld [vmem:[%s5583_s0 + $0x1e8] sm:$0xff]  ;;  %v619_v27 = vld [vmem:[%s5581_s4 + $0x50] sm:$0xff]  ;;  %v82_v30 = vld [vmem:[%s5583_s0 + $0x160] sm:$0xff]  ;;  %v3235_v35 = vpack.c.bf16 %v51_v23, %v50_v22 }
  0x18   :  { %3230 = vmatprep.subr.bf16.mxu0 %v3229_v14  ;;  %v3265_v31 = vpack.c.bf16 %v99_v25, %v98_v24  ;;  %v83_v32 = vld [vmem:[%s5583_s0 + $0x168] sm:$0xff]  ;;  %v68_v33 = vld [vmem:[%s5583_s0 + $0xf0] sm:$0xff]  ;;  %v69_v34 = vld [vmem:[%s5583_s0 + $0xf8] sm:$0xff] }
  0x19   :  { %3260 = vmatpush3.bf16.msra.mxu1 %v3259_v13  ;;  %v622_v36 = vld [vmem:[%s5581_s4 + $0x68] sm:$0xff]  ;;  %v100_v37 = vld [vmem:[%s5583_s0 + $0x1f0] sm:$0xff]  ;;  %v101_v38 = vld [vmem:[%s5583_s0 + $0x1f8] sm:$0xff]  ;;  %v3267_v42 = vpack.c.bf16 %v83_v32, %v82_v30  ;;  %v3237_v43 = vpack.c.bf16 %v69_v34, %v68_v33 }
  0x1a   :  { %3262 = vmatprep.subr.bf16.mxu1 %v3261_v16  ;;  %794 = vperm.xlu1 %3345, %v620_v26   ;;  %v621_v39 = vld [vmem:[%s5581_s4 + $0x60] sm:$0xff]  ;;  %v52_v40 = vld [vmem:[%s5583_s0 + $0x70] sm:$0xff]  ;;  %v53_v41 = vld [vmem:[%s5583_s0 + $0x78] sm:$0xff]  ;;  %v3269_v47 = vpack.c.bf16 %v101_v38, %v100_v37 }
  0x1b   :  { %3232 = vmatpush3.bf16.msra.mxu0 %v3231_v20  ;;  %789 = vperm.xlu0 %3344, %v619_v27   ;;  %v84_v44 = vld [vmem:[%s5583_s0 + $0x170] sm:$0xff]  ;;  %v85_v45 = vld [vmem:[%s5583_s0 + $0x178] sm:$0xff]  ;;  %v23_v46 = vld [vmem:[%s5584_s1 + $0x8] sm:$0xff]  ;;  %v3239_v51 = vpack.c.bf16 %v53_v41, %v52_v40 }
  0x1c   :  { %3234 = vmatprep.subr.bf16.mxu0 %v3233_v29  ;;  %242 = vmatprep.mubr.f32.mxu0 %v23_v46  ;;  %v118_v48 = vld [vmem:[%s5583_s0 + $0x280] sm:$0xff]  ;;  %v119_v49 = vld [vmem:[%s5583_s0 + $0x288] sm:$0xff]  ;;  %v25_v50 = vld [vmem:[%s5584_s1 + $0x18] sm:$0xff]  ;;  %v3271_v58 = vpack.c.bf16 %v85_v45, %v84_v44 }
  0x1d   :  { %3264 = vmatpush3.bf16.msra.mxu1 %v3263_v28  ;;  %317 = vmatprep.mubr.f32.mxu1 %v25_v50  ;;  %v150_v52 = vld [vmem:[%s5583_s0 + $0x380] sm:$0xff]  ;;  %v103_v54 = vld [vmem:[%s5583_s0 + $0x208] sm:$0xff]  ;;  %v624_v56 = vld [vmem:[%s5581_s4 + $0x78] sm:$0xff]  ;;  %v3273_v59 = vpack.c.bf16 %v119_v49, %v118_v48 }
  0x1e   :  { %3266 = vmatprep.subr.bf16.mxu1 %v3265_v31  ;;  %804 = vperm.xlu1 %3345, %v622_v36   ;;  %v102_v53 = vld [vmem:[%s5583_s0 + $0x200] sm:$0xff]  ;;  %v151_v55 = vld [vmem:[%s5583_s0 + $0x388] sm:$0xff]  ;;  %v623_v57 = vld [vmem:[%s5581_s4 + $0x70] sm:$0xff] }
  0x1f   :  { %3236 = vmatpush3.bf16.msra.mxu0 %v3235_v35  ;;  %799 = vperm.xlu0 %3344, %v621_v39   ;;  %v22_v60 = vld [vmem:[%s5584_s1] sm:$0xff]  ;;  %v3305_v61 = vpack.c.bf16 %v151_v55, %v150_v52  ;;  %v120_v62 = vld [vmem:[%s5583_s0 + $0x290] sm:$0xff]  ;;  %v121_v63 = vld [vmem:[%s5583_s0 + $0x298] sm:$0xff]  ;;  %v3275_v0 = vpack.c.bf16 %v103_v54, %v102_v53 }
  0x20   :  { %3238 = vmatprep.subr.bf16.mxu0 %v3237_v43  ;;  %v134_v1 = vld [vmem:[%s5583_s0 + $0x300] sm:$0xff]  ;;  %v135_v2 = vld [vmem:[%s5583_s0 + $0x308] sm:$0xff]  ;;  %v104_v3 = vld [vmem:[%s5583_s0 + $0x210] sm:$0xff]  ;;  %v3277_v9 = vpack.c.bf16 %v121_v63, %v120_v62 }
  0x21   :  { %3268 = vmatpush3.bf16.msra.mxu1 %v3267_v42  ;;  %v105_v4 = vld [vmem:[%s5583_s0 + $0x218] sm:$0xff]  ;;  %v152_v5 = vld [vmem:[%s5583_s0 + $0x390] sm:$0xff]  ;;  %v626_v7 = vld [vmem:[%s5581_s4 + $0x88] sm:$0xff]  ;;  %v3307_v11 = vpack.c.bf16 %v135_v2, %v134_v1 }
  0x22   :  { %3270 = vmatprep.subr.bf16.mxu1 %v3269_v47  ;;  %814 = vperm.xlu1 %3345, %v624_v56   ;;  %v153_v6 = vld [vmem:[%s5583_s0 + $0x398] sm:$0xff]  ;;  %v625_v8 = vld [vmem:[%s5581_s4 + $0x80] sm:$0xff]  ;;  %v24_v10 = vld [vmem:[%s5584_s1 + $0x10] sm:$0xff]  ;;  %v3279_v14 = vpack.c.bf16 %v105_v4, %v104_v3 }
  0x23   :  { %3240 = vmatpush3.bf16.msra.mxu0 %v3239_v51  ;;  %809 = vperm.xlu0 %3344, %v623_v57   ;;  %v122_v12 = vld [vmem:[%s5583_s0 + $0x2a0] sm:$0xff]  ;;  %v123_v13 = vld [vmem:[%s5583_s0 + $0x2a8] sm:$0xff]  ;;  %v3309_v15 = vpack.c.bf16 %v153_v6, %v152_v5  ;;  %v136_v16 = vld [vmem:[%s5583_s0 + $0x310] sm:$0xff] }
  0x24   :  { %3274 = vmatprep.subr.bf16.mxu0 %v3273_v59  ;;  %v137_v17 = vld [vmem:[%s5583_s0 + $0x318] sm:$0xff]  ;;  %v106_v18 = vld [vmem:[%s5583_s0 + $0x220] sm:$0xff]  ;;  %v107_v19 = vld [vmem:[%s5583_s0 + $0x228] sm:$0xff]  ;;  %v3281_v24 = vpack.c.bf16 %v123_v13, %v122_v12 }
  0x25   :  { %3272 = vmatpush3.bf16.msra.mxu1 %v3271_v58  ;;  %v154_v20 = vld [vmem:[%s5583_s0 + $0x3a0] sm:$0xff]  ;;  %v155_v21 = vld [vmem:[%s5583_s0 + $0x3a8] sm:$0xff]  ;;  %v628_v22 = vld [vmem:[%s5581_s4 + $0x98] sm:$0xff]  ;;  %v3311_v25 = vpack.c.bf16 %v137_v17, %v136_v16  ;;  %v3283_v28 = vpack.c.bf16 %v107_v19, %v106_v18 }
  0x26   :  { %243 = vmatmul.mubr.f32.vlgmr.msra.gmra.mrb[0].mxu0 %v22_v60  ;;  %3306 = vmatprep.subr.bf16.mxu1 %v3305_v61  ;;  %v627_v23 = vld [vmem:[%s5581_s4 + $0x90] sm:$0xff]  ;;  %v125_v27 = vld [vmem:[%s5583_s0 + $0x2b8] sm:$0xff]  ;;  %v3313_v29 = vpack.c.bf16 %v155_v21, %v154_v20  ;;  %v138_v30 = vld [vmem:[%s5583_s0 + $0x320] sm:$0xff] }
  0x27   :  { %3276 = vmatpush3.bf16.msra.mxu0 %v3275_v0  ;;  %824 = vperm.xlu1 %3345, %v626_v7   ;;  %v124_v26 = vld [vmem:[%s5583_s0 + $0x2b0] sm:$0xff]  ;;  %v139_v31 = vld [vmem:[%s5583_s0 + $0x328] sm:$0xff]  ;;  %v109_v33 = vld [vmem:[%s5583_s0 + $0x238] sm:$0xff] }
  0x28   :  { %819 = vperm.xlu0 %3344, %v625_v8   ;;  %318 = vmatmul.mubr.f32.vlgmr.msra.gmra.mrb[0].mxu1 %v24_v10  ;;  %v108_v32 = vld [vmem:[%s5583_s0 + $0x230] sm:$0xff]  ;;  %v157_v35 = vld [vmem:[%s5583_s0 + $0x3b8] sm:$0xff]  ;;  %v630_v36 = vld [vmem:[%s5581_s4 + $0xa8] sm:$0xff]  ;;  %v3285_v38 = vpack.c.bf16 %v125_v27, %v124_v26  ;;  %v3315_v39 = vpack.c.bf16 %v139_v31, %v138_v30 }
  0x29   :  { %3278 = vmatprep.subr.bf16.mxu0 %v3277_v9  ;;  %3308 = vmatpush3.bf16.msra.mxu1 %v3307_v11  ;;  %v156_v34 = vld [vmem:[%s5583_s0 + $0x3b0] sm:$0xff]  ;;  %v629_v37 = vld [vmem:[%s5581_s4 + $0xa0] sm:$0xff]  ;;  %v127_v41 = vld [vmem:[%s5583_s0 + $0x2c8] sm:$0xff]  ;;  %v3287_v42 = vpack.c.bf16 %v109_v33, %v108_v32 }
  0x2a   :  { %3310 = vmatprep.subr.bf16.mxu1 %v3309_v15  ;;  %v126_v40 = vld [vmem:[%s5583_s0 + $0x2c0] sm:$0xff]  ;;  %v3317_v43 = vpack.c.bf16 %v157_v35, %v156_v34  ;;  %v140_v44 = vld [vmem:[%s5583_s0 + $0x330] sm:$0xff]  ;;  %v141_v45 = vld [vmem:[%s5583_s0 + $0x338] sm:$0xff] }
  0x2b   :  { %3280 = vmatpush3.bf16.msra.mxu0 %v3279_v14  ;;  %834 = vperm.xlu1 %3345, %v628_v22   ;;  %v110_v46 = vld [vmem:[%s5583_s0 + $0x240] sm:$0xff]  ;;  %v111_v47 = vld [vmem:[%s5583_s0 + $0x248] sm:$0xff]  ;;  %v632_v50 = vld [vmem:[%s5581_s4 + $0xb8] sm:$0xff]  ;;  %v3289_v52 = vpack.c.bf16 %v127_v41, %v126_v40  ;;  %v3319_v53 = vpack.c.bf16 %v141_v45, %v140_v44 }
  0x2c   :  { %829 = vperm.xlu0 %3344, %v627_v23   ;;  %3282 = vmatprep.subr.bf16.mxu0 %v3281_v24  ;;  %v158_v48 = vld [vmem:[%s5583_s0 + $0x3c0] sm:$0xff]  ;;  %v159_v49 = vld [vmem:[%s5583_s0 + $0x3c8] sm:$0xff]  ;;  %v631_v51 = vld [vmem:[%s5581_s4 + $0xb0] sm:$0xff]  ;;  %v3291_v56 = vpack.c.bf16 %v111_v47, %v110_v46 }
  0x2d   :  { %3312 = vmatpush3.bf16.msra.mxu1 %v3311_v25  ;;  %v128_v54 = vld [vmem:[%s5583_s0 + $0x2d0] sm:$0xff]  ;;  %v129_v55 = vld [vmem:[%s5583_s0 + $0x2d8] sm:$0xff]  ;;  %v3321_v57 = vpack.c.bf16 %v159_v49, %v158_v48  ;;  %v634_v58 = vld [vmem:[%s5581_s4 + $0xc8] sm:$0xff] }
  0x2e   :  { %3314 = vmatprep.subr.bf16.mxu1 %v3313_v29  ;;  %v142_v59 = vld [vmem:[%s5583_s0 + $0x340] sm:$0xff]  ;;  %v143_v60 = vld [vmem:[%s5583_s0 + $0x348] sm:$0xff]  ;;  %v112_v61 = vld [vmem:[%s5583_s0 + $0x250] sm:$0xff]  ;;  %v3293_v2 = vpack.c.bf16 %v129_v55, %v128_v54 }
  0x2f   :  { %3284 = vmatpush3.bf16.msra.mxu0 %v3283_v28  ;;  %844 = vperm.xlu1 %3345, %v630_v36   ;;  %v113_v62 = vld [vmem:[%s5583_s0 + $0x258] sm:$0xff]  ;;  %v160_v63 = vld [vmem:[%s5583_s0 + $0x3d0] sm:$0xff]  ;;  %v633_v1 = vld [vmem:[%s5581_s4 + $0xc0] sm:$0xff]  ;;  %v3323_v5 = vpack.c.bf16 %v143_v60, %v142_v59 }
  0x30   :  { %839 = vperm.xlu0 %3344, %v629_v37   ;;  %3286 = vmatprep.subr.bf16.mxu0 %v3285_v38  ;;  %v161_v0 = vld [vmem:[%s5583_s0 + $0x3d8] sm:$0xff]  ;;  %v144_v3 = vld [vmem:[%s5583_s0 + $0x350] sm:$0xff]  ;;  %v31_v4 = vld [vmem:[%s5584_s1 + $0x48] sm:$0xff]  ;;  %v3295_v9 = vpack.c.bf16 %v113_v62, %v112_v61 }
  0x31   :  { %3316 = vmatpush3.bf16.msra.mxu1 %v3315_v39  ;;  %v130_v6 = vld [vmem:[%s5583_s0 + $0x2e0] sm:$0xff]  ;;  %v131_v7 = vld [vmem:[%s5583_s0 + $0x2e8] sm:$0xff]  ;;  %247 = vmatprep.mubr.f32.mxu0 %v31_v4  ;;  %v3325_v10 = vpack.c.bf16 %v161_v0, %v160_v63  ;;  %v145_v11 = vld [vmem:[%s5583_s0 + $0x358] sm:$0xff] }
  0x32   :  { %3318 = vmatprep.subr.bf16.mxu1 %v3317_v43  ;;  %v30_v8 = vld [vmem:[%s5584_s1 + $0x40] sm:$0xff]  ;;  %v33_v13 = vld [vmem:[%s5584_s1 + $0x58] sm:$0xff]  ;;  %v115_v14 = vld [vmem:[%s5583_s0 + $0x268] sm:$0xff]  ;;  %v3297_v19 = vpack.c.bf16 %v131_v7, %v130_v6  ;;  %v3327_v21 = vpack.c.bf16 %v145_v11, %v144_v3 }
  0x33   :  { %3288 = vmatpush3.bf16.msra.mxu0 %v3287_v42  ;;  %854 = vperm.xlu1 %3345, %v632_v50   ;;  %v114_v12 = vld [vmem:[%s5583_s0 + $0x260] sm:$0xff]  ;;  %v163_v16 = vld [vmem:[%s5583_s0 + $0x3e8] sm:$0xff]  ;;  %v636_v17 = vld [vmem:[%s5581_s4 + $0xd8] sm:$0xff] }
  0x34   :  { %849 = vperm.xlu0 %3344, %v631_v51   ;;  %3290 = vmatprep.subr.bf16.mxu0 %v3289_v52  ;;  %v162_v15 = vld [vmem:[%s5583_s0 + $0x3e0] sm:$0xff]  ;;  %v635_v18 = vld [vmem:[%s5581_s4 + $0xd0] sm:$0xff]  ;;  %v133_v23 = vld [vmem:[%s5583_s0 + $0x2f8] sm:$0xff]  ;;  %v3299_v25 = vpack.c.bf16 %v115_v14, %v114_v12 }
  0x35   :  { %3320 = vmatpush3.bf16.msra.mxu1 %v3319_v53  ;;  %v146_v20 = vld [vmem:[%s5583_s0 + $0x360] sm:$0xff]  ;;  %248 = vmatmul.mubr.f32.gmra.mrb[2].mxu0 %v30_v8  ;;  %v132_v22 = vld [vmem:[%s5583_s0 + $0x2f0] sm:$0xff]  ;;  %v3329_v26 = vpack.c.bf16 %v163_v16, %v162_v15  ;;  %v147_v27 = vld [vmem:[%s5583_s0 + $0x368] sm:$0xff] }
  0x36   :  { %3322 = vmatprep.subr.bf16.mxu1 %v3321_v57  ;;  %322 = vmatprep.mubr.f32.mxu1 %v33_v13  ;;  %v32_v24 = vld [vmem:[%s5584_s1 + $0x50] sm:$0xff]  ;;  %v27_v29 = vld [vmem:[%s5584_s1 + $0x28] sm:$0xff]  ;;  %v117_v30 = vld [vmem:[%s5583_s0 + $0x278] sm:$0xff]  ;;  %v3301_v35 = vpack.c.bf16 %v133_v23, %v132_v22  ;;  %v3331_v36 = vpack.c.bf16 %v147_v27, %v146_v20 }
  0x37   :  { %3292 = vmatpush3.bf16.msra.mxu0 %v3291_v56  ;;  %864 = vperm.xlu1 %3345, %v634_v58   ;;  %v116_v28 = vld [vmem:[%s5583_s0 + $0x270] sm:$0xff]  ;;  %v165_v32 = vld [vmem:[%s5583_s0 + $0x3f8] sm:$0xff]  ;;  %v638_v33 = vld [vmem:[%s5581_s4 + $0xe8] sm:$0xff] }
  0x38   :  { %859 = vperm.xlu0 %3344, %v633_v1   ;;  %3294 = vmatprep.subr.bf16.mxu0 %v3293_v2  ;;  %v164_v31 = vld [vmem:[%s5583_s0 + $0x3f0] sm:$0xff]  ;;  %v637_v34 = vld [vmem:[%s5581_s4 + $0xe0] sm:$0xff]  ;;  %v29_v37 = vld [vmem:[%s5584_s1 + $0x38] sm:$0xff]  ;;  %v3303_v38 = vpack.c.bf16 %v117_v30, %v116_v28 }
  0x39   :  { %3324 = vmatpush3.bf16.msra.mxu1 %v3323_v5  ;;  %392 = vmatprep.mubr.f32.mxu0 %v27_v29  ;;  %v3333_v39 = vpack.c.bf16 %v165_v32, %v164_v31  ;;  %v148_v40 = vld [vmem:[%s5583_s0 + $0x370] sm:$0xff]  ;;  %v149_v41 = vld [vmem:[%s5583_s0 + $0x378] sm:$0xff]  ;;  %v26_v45 = vld [vmem:[%s5584_s1 + $0x20] sm:$0xff] }
  0x3a   :  { %3326 = vmatprep.subr.bf16.mxu1 %v3325_v10  ;;  %323 = vmatmul.mubr.f32.gmra.mrb[2].mxu1 %v32_v24  ;;  %v640_v42 = vld [vmem:[%s5581_s4 + $0xf8] sm:$0xff]  ;;  %v639_v43 = vld [vmem:[%s5581_s4 + $0xf0] sm:$0xff]  ;;  %v3335_v44 = vpack.c.bf16 %v149_v41, %v148_v40  ;;  %v35_v46 = vld [vmem:[%s5584_s1 + $0x68] sm:$0xff] }
  0x3b   :  { %3296 = vmatpush3.bf16.msra.mxu0 %v3295_v9  ;;  %874 = vperm.xlu1 %3345, %v636_v17   ;;  %v642_v47 = vld [vmem:[%s5581_s4 + $0x108] sm:$0xff]  ;;  %v641_v48 = vld [vmem:[%s5581_s4 + $0x100] sm:$0xff]  ;;  %v28_v49 = vld [vmem:[%s5584_s1 + $0x30] sm:$0xff] }
  0x3c   :  { %869 = vperm.xlu0 %3344, %v635_v18   ;;  %3298 = vmatprep.subr.bf16.mxu0 %v3297_v19  ;;  %v34_v50 = vld [vmem:[%s5584_s1 + $0x60] sm:$0xff]  ;;  %v37_v51 = vld [vmem:[%s5584_s1 + $0x78] sm:$0xff]  ;;  %v643_v53 = vld [vmem:[%s5581_s4 + $0x110] sm:$0xff] }
  0x3d   :  { %3328 = vmatpush3.bf16.msra.mxu1 %v3327_v21  ;;  %467 = vmatprep.mubr.f32.mxu1 %v29_v37  ;;  %v644_v52 = vld [vmem:[%s5581_s4 + $0x118] sm:$0xff]  ;;  %v36_v54 = vld [vmem:[%s5584_s1 + $0x70] sm:$0xff]  ;;  %v646_v55 = vld [vmem:[%s5581_s4 + $0x128] sm:$0xff] }
  0x3e   :  { %3330 = vmatprep.subr.bf16.mxu1 %v3329_v26  ;;  %v645_v56 = vld [vmem:[%s5581_s4 + $0x120] sm:$0xff]  ;;  %v648_v57 = vld [vmem:[%s5581_s4 + $0x138] sm:$0xff]  ;;  %v647_v58 = vld [vmem:[%s5581_s4 + $0x130] sm:$0xff] }
  0x3f   :  { %3300 = vmatpush3.bf16.msra.mxu0 %v3299_v25  ;;  %884 = vperm.xlu1 %3345, %v638_v33   ;;  %v650_v59 = vld [vmem:[%s5581_s4 + $0x148] sm:$0xff]  ;;  %v649_v60 = vld [vmem:[%s5581_s4 + $0x140] sm:$0xff]  ;;  %v652_v61 = vld [vmem:[%s5581_s4 + $0x158] sm:$0xff] }
  0x40   :  { %879 = vperm.xlu0 %3344, %v637_v34   ;;  %3302 = vmatprep.subr.bf16.mxu0 %v3301_v35  ;;  %v651_v62 = vld [vmem:[%s5581_s4 + $0x150] sm:$0xff]  ;;  %v654_v63 = vld [vmem:[%s5581_s4 + $0x168] sm:$0xff]  ;;  %v653_v0 = vld [vmem:[%s5581_s4 + $0x160] sm:$0xff] }
  0x41   :  { %3332 = vmatpush3.bf16.msra.mxu1 %v3331_v36  ;;  %v656_v1 = vld [vmem:[%s5581_s4 + $0x178] sm:$0xff]  ;;  %v655_v2 = vld [vmem:[%s5581_s4 + $0x170] sm:$0xff]  ;;  %v658_v3 = vld [vmem:[%s5581_s4 + $0x188] sm:$0xff] }
  0x42   :  { %3334 = vmatprep.subr.bf16.mxu1 %v3333_v39  ;;  %v657_v4 = vld [vmem:[%s5581_s4 + $0x180] sm:$0xff]  ;;  %v660_v5 = vld [vmem:[%s5581_s4 + $0x198] sm:$0xff]  ;;  %v659_v6 = vld [vmem:[%s5581_s4 + $0x190] sm:$0xff] }
  0x43   :  { %3304 = vmatpush3.bf16.msra.mxu0 %v3303_v38  ;;  %894 = vperm.xlu1 %3345, %v640_v42   ;;  %v662_v7 = vld [vmem:[%s5581_s4 + $0x1a8] sm:$0xff]  ;;  %v661_v8 = vld [vmem:[%s5581_s4 + $0x1a0] sm:$0xff]  ;;  %v664_v9 = vld [vmem:[%s5581_s4 + $0x1b8] sm:$0xff] }
  0x44   :  { %889 = vperm.xlu0 %3344, %v639_v43   ;;  %v663_v10 = vld [vmem:[%s5581_s4 + $0x1b0] sm:$0xff]  ;;  %v666_v11 = vld [vmem:[%s5581_s4 + $0x1c8] sm:$0xff]  ;;  %v665_v12 = vld [vmem:[%s5581_s4 + $0x1c0] sm:$0xff] }
  0x45   :  { %3336 = vmatpush3.bf16.msra.mxu1 %v3335_v44  ;;  %v668_v13 = vld [vmem:[%s5581_s4 + $0x1d8] sm:$0xff]  ;;  %v667_v14 = vld [vmem:[%s5581_s4 + $0x1d0] sm:$0xff]  ;;  %v670_v15 = vld [vmem:[%s5581_s4 + $0x1e8] sm:$0xff] }
  0x46   :  { %393 = vmatmul.mubr.f32.vlgmr.msra.gmra.mrb[4].mxu0 %v26_v45  ;;  %v669_v16 = vld [vmem:[%s5581_s4 + $0x1e0] sm:$0xff]  ;;  %v672_v17 = vld [vmem:[%s5581_s4 + $0x1f8] sm:$0xff]  ;;  %v671_v18 = vld [vmem:[%s5581_s4 + $0x1f0] sm:$0xff] }
  0x47   :  { %397 = vmatprep.mubr.f32.mxu0 %v35_v46  ;;  %904 = vperm.xlu1 %3345, %v642_v47   ;;  %v674_v19 = vld [vmem:[%s5581_s4 + $0x208] sm:$0xff]  ;;  %v673_v20 = vld [vmem:[%s5581_s4 + $0x200] sm:$0xff]  ;;  %v676_v21 = vld [vmem:[%s5581_s4 + $0x218] sm:$0xff] }
  0x48   :  { %899 = vperm.xlu0 %3344, %v641_v48   ;;  %468 = vmatmul.mubr.f32.vlgmr.msra.gmra.mrb[4].mxu1 %v28_v49  ;;  %v675_v22 = vld [vmem:[%s5581_s4 + $0x210] sm:$0xff]  ;;  %v678_v23 = vld [vmem:[%s5581_s4 + $0x228] sm:$0xff]  ;;  %v677_v24 = vld [vmem:[%s5581_s4 + $0x220] sm:$0xff] }
  0x49   :  { %472 = vmatprep.mubr.f32.mxu1 %v37_v51  ;;  %v680_v25 = vld [vmem:[%s5581_s4 + $0x238] sm:$0xff]  ;;  %v679_v26 = vld [vmem:[%s5581_s4 + $0x230] sm:$0xff]  ;;  %v682_v27 = vld [vmem:[%s5581_s4 + $0x248] sm:$0xff] }
  0x4a   :  { %398 = vmatmul.mubr.f32.gmra.mrb[6].mxu0 %v34_v50  ;;  %v681_v28 = vld [vmem:[%s5581_s4 + $0x240] sm:$0xff]  ;;  %v684_v29 = vld [vmem:[%s5581_s4 + $0x258] sm:$0xff]  ;;  %v683_v30 = vld [vmem:[%s5581_s4 + $0x250] sm:$0xff] }
  0x4b   :  { %914 = vperm.xlu1 %3345, %v644_v52   ;;  %v686_v31 = vld [vmem:[%s5581_s4 + $0x268] sm:$0xff]  ;;  %v685_v32 = vld [vmem:[%s5581_s4 + $0x260] sm:$0xff]  ;;  %v688_v33 = vld [vmem:[%s5581_s4 + $0x278] sm:$0xff] }
  0x4c   :  { %909 = vperm.xlu0 %3344, %v643_v53   ;;  %473 = vmatmul.mubr.f32.gmra.mrb[6].mxu1 %v36_v54  ;;  %v687_v34 = vld [vmem:[%s5581_s4 + $0x270] sm:$0xff]  ;;  %v690_v35 = vld [vmem:[%s5581_s4 + $0x288] sm:$0xff]  ;;  %v689_v36 = vld [vmem:[%s5581_s4 + $0x280] sm:$0xff] }
  0x4d   :  { %v692_v37 = vld [vmem:[%s5581_s4 + $0x298] sm:$0xff]  ;;  %v691_v38 = vld [vmem:[%s5581_s4 + $0x290] sm:$0xff]  ;;  %v481_v41 = vld [vmem:[%s5585_s3] sm:$0xff] }
  0x4e   :  { %v545_v42 = vld [vmem:[%s5585_s3 + $0x200] sm:$0xff]  ;;  %3017 = vmatprep.mubr.msk.f32.mxu0 %vm1377_vm0, %v481_v41  ;;  %v694_v43 = vld [vmem:[%s5581_s4 + $0x2a8] sm:$0xff]  ;;  %v696_v47 = vld [vmem:[%s5581_s4 + $0x2b8] sm:$0xff] }
  0x4f   :  { %924 = vperm.xlu1 %3345, %v646_v55   ;;  %3113 = vmatprep.mubr.msk.f32.mxu1 %vm1377_vm0, %v545_v42  ;;  %v693_v44 = vld [vmem:[%s5581_s4 + $0x2a0] sm:$0xff]  ;;  %v695_v48 = vld [vmem:[%s5581_s4 + $0x2b0] sm:$0xff]  ;;  %v698_v49 = vld [vmem:[%s5581_s4 + $0x2c8] sm:$0xff] }
  0x50   :  { %919 = vperm.xlu0 %3344, %v645_v56   ;;  %v697_v50 = vld [vmem:[%s5581_s4 + $0x2c0] sm:$0xff]  ;;  %v700_v53 = vld [vmem:[%s5581_s4 + $0x2d8] sm:$0xff]  ;;  %v699_v54 = vld [vmem:[%s5581_s4 + $0x2d0] sm:$0xff] }
  0x51   :  { %v730_v41 = vld [vmem:[%s5581_s4 + $0x3c8] sm:$0xff]  ;;  %v729_v42 = vld [vmem:[%s5581_s4 + $0x3c0] sm:$0xff] }
  0x53   :  { %934 = vperm.xlu1 %3345, %v648_v57   ;;  %v702_v57 = vld [vmem:[%s5581_s4 + $0x2e8] sm:$0xff] }
  0x54   :  { %929 = vperm.xlu0 %3344, %v647_v58   ;;  %v701_v58 = vld [vmem:[%s5581_s4 + $0x2e0] sm:$0xff] }
  0x57   :  { %944 = vperm.xlu1 %3345, %v650_v59   ;;  %v704_v59 = vld [vmem:[%s5581_s4 + $0x2f8] sm:$0xff] }
  0x58   :  { %939 = vperm.xlu0 %3344, %v649_v60   ;;  %v703_v60 = vld [vmem:[%s5581_s4 + $0x2f0] sm:$0xff] }
  0x5b   :  { %954 = vperm.xlu1 %3345, %v652_v61  }
  0x5c   :  { %949 = vperm.xlu0 %3344, %v651_v62  }
  0x5f   :  { %964 = vperm.xlu1 %3345, %v654_v63   ;;  %v706_v63 = vld [vmem:[%s5581_s4 + $0x308] sm:$0xff] }
  0x60   :  { %959 = vperm.xlu0 %3344, %v653_v0   ;;  %v705_v0 = vld [vmem:[%s5581_s4 + $0x300] sm:$0xff] }
  0x63   :  { %974 = vperm.xlu1 %3345, %v656_v1  }
  0x64   :  { %969 = vperm.xlu0 %3344, %v655_v2  }
  0x67   :  { %984 = vperm.xlu1 %3345, %v658_v3   ;;  %v708_v3 = vld [vmem:[%s5581_s4 + $0x318] sm:$0xff] }
  0x68   :  { %979 = vperm.xlu0 %3344, %v657_v4   ;;  %v707_v4 = vld [vmem:[%s5581_s4 + $0x310] sm:$0xff] }
  0x6b   :  { %994 = vperm.xlu1 %3345, %v660_v5   ;;  %v710_v5 = vld [vmem:[%s5581_s4 + $0x328] sm:$0xff] }
  0x6c   :  { %989 = vperm.xlu0 %3344, %v659_v6   ;;  %v709_v6 = vld [vmem:[%s5581_s4 + $0x320] sm:$0xff] }
  0x6f   :  { %1004 = vperm.xlu1 %3345, %v662_v7  }
  0x70   :  { %999 = vperm.xlu0 %3344, %v661_v8  }
  0x73   :  { %1014 = vperm.xlu1 %3345, %v664_v9   ;;  %v712_v9 = vld [vmem:[%s5581_s4 + $0x338] sm:$0xff] }
  0x74   :  { %1009 = vperm.xlu0 %3344, %v663_v10   ;;  %v711_v10 = vld [vmem:[%s5581_s4 + $0x330] sm:$0xff] }
  0x77   :  { %1024 = vperm.xlu1 %3345, %v666_v11  }
  0x78   :  { %1019 = vperm.xlu0 %3344, %v665_v12  }
  0x7b   :  { %1034 = vperm.xlu1 %3345, %v668_v13   ;;  %v714_v13 = vld [vmem:[%s5581_s4 + $0x348] sm:$0xff] }
  0x7c   :  { %1029 = vperm.xlu0 %3344, %v667_v14   ;;  %v713_v14 = vld [vmem:[%s5581_s4 + $0x340] sm:$0xff] }
  0x7f   :  { %1044 = vperm.xlu1 %3345, %v670_v15   ;;  %v716_v15 = vld [vmem:[%s5581_s4 + $0x358] sm:$0xff] }
  0x80   :  { %1039 = vperm.xlu0 %3344, %v669_v16   ;;  %v715_v16 = vld [vmem:[%s5581_s4 + $0x350] sm:$0xff] }
  0x81   :  { %v4072_v39 = vpop.permute.xlu1 %739 }
  0x82   :  { %v4074_v40 = vpop.permute.xlu0 %170 }
  0x83   :  { %1054 = vperm.xlu1 %3345, %v672_v17  }
  0x84   :  { %1049 = vperm.xlu0 %3344, %v671_v18  }
  0x85   :  { %v4090_v45 = vpop.permute.xlu1 %744 }
  0x86   :  { %v4092_v46 = vpop.permute.xlu0 %175 }
  0x87   :  { %1064 = vperm.xlu1 %3345, %v674_v19   ;;  %v718_v19 = vld [vmem:[%s5581_s4 + $0x368] sm:$0xff] }
  0x88   :  { %1059 = vperm.xlu0 %3344, %v673_v20   ;;  %v717_v20 = vld [vmem:[%s5581_s4 + $0x360] sm:$0xff] }
  0x89   :  { %v4106_v51 = vpop.permute.xlu1 %754 }
  0x8a   :  { %v4108_v52 = vpop.permute.xlu0 %749 }
  0x8b   :  { %1074 = vperm.xlu1 %3345, %v676_v21  }
  0x8c   :  { %1069 = vperm.xlu0 %3344, %v675_v22  }
  0x8d   :  { %v4116_v55 = vpop.permute.xlu1 %764 }
  0x8e   :  { %v4118_v56 = vpop.permute.xlu0 %759 }
  0x8f   :  { %1084 = vperm.xlu1 %3345, %v678_v23   ;;  %v720_v23 = vld [vmem:[%s5581_s4 + $0x378] sm:$0xff] }
  0x90   :  { %1079 = vperm.xlu0 %3344, %v677_v24   ;;  %v719_v24 = vld [vmem:[%s5581_s4 + $0x370] sm:$0xff] }
  0x91   :  { %v4132_v61 = vpop.permute.xlu1 %774 }
  0x92   :  { %v4134_v62 = vpop.permute.xlu0 %769 }
  0x93   :  { %1094 = vperm.xlu1 %3345, %v680_v25   ;;  %v722_v25 = vld [vmem:[%s5581_s4 + $0x388] sm:$0xff] }
  0x94   :  { %1089 = vperm.xlu0 %3344, %v679_v26   ;;  %v721_v26 = vld [vmem:[%s5581_s4 + $0x380] sm:$0xff] }
  0x95   :  { %v4142_v1 = vpop.permute.xlu1 %784 }
  0x96   :  { %v4144_v2 = vpop.permute.xlu0 %779 }
  0x97   :  { %1104 = vperm.xlu1 %3345, %v682_v27  }
  0x98   :  { %1099 = vperm.xlu0 %3344, %v681_v28  }
  0x99   :  { %v4158_v7 = vpop.permute.xlu1 %794 }
  0x9a   :  { %v4160_v8 = vpop.permute.xlu0 %789 }
  0x9b   :  { %1114 = vperm.xlu1 %3345, %v684_v29   ;;  %v724_v29 = vld [vmem:[%s5581_s4 + $0x398] sm:$0xff] }
  0x9c   :  { %1109 = vperm.xlu0 %3344, %v683_v30   ;;  %v723_v30 = vld [vmem:[%s5581_s4 + $0x390] sm:$0xff] }
  0x9d   :  { %v4168_v11 = vpop.permute.xlu1 %804 }
  0x9e   :  { %v4170_v12 = vpop.permute.xlu0 %799 }
  0x9f   :  { %1124 = vperm.xlu1 %3345, %v686_v31  }
  0xa0   :  { %1119 = vperm.xlu0 %3344, %v685_v32  }
  0xa1   :  { %v4184_v17 = vpop.permute.xlu1 %814 }
  0xa2   :  { %v4186_v18 = vpop.permute.xlu0 %809 }
  0xa3   :  { %1134 = vperm.xlu1 %3345, %v688_v33   ;;  %v726_v33 = vld [vmem:[%s5581_s4 + $0x3a8] sm:$0xff] }
  0xa4   :  { %1129 = vperm.xlu0 %3344, %v687_v34   ;;  %v725_v34 = vld [vmem:[%s5581_s4 + $0x3a0] sm:$0xff] }
  0xa6   :  { %v4194_v21 = vpop.permute.xlu1 %824 }
  0xa7   :  { %1144 = vperm.xlu1 %3345, %v690_v35   ;;  %v4196_v22 = vpop.permute.xlu0 %819  ;;  %v728_v35 = vld [vmem:[%s5581_s4 + $0x3b8] sm:$0xff] }
  0xa8   :  { %1139 = vperm.xlu0 %3344, %v689_v36   ;;  %v727_v36 = vld [vmem:[%s5581_s4 + $0x3b0] sm:$0xff] }
  0xaa   :  { %v4210_v27 = vpop.permute.xlu1 %834 }
  0xab   :  { %1154 = vperm.xlu1 %3345, %v692_v37   ;;  %v4212_v28 = vpop.permute.xlu0 %829 }
  0xac   :  { %1149 = vperm.xlu0 %3344, %v691_v38  }
  0xae   :  { %v4220_v31 = vpop.permute.xlu1 %844 }
  0xaf   :  { %1164 = vperm.xlu1 %3345, %v694_v43   ;;  %v4222_v32 = vpop.permute.xlu0 %839 }
  0xb0   :  { %1159 = vperm.xlu0 %3344, %v693_v44  }
  0xb2   :  { %v4236_v37 = vpop.permute.xlu1 %854 }
  0xb3   :  { %1174 = vperm.xlu1 %3345, %v696_v47   ;;  %v4238_v38 = vpop.permute.xlu0 %849 }
  0xb4   :  { %1169 = vperm.xlu0 %3344, %v695_v48   ;;  %v732_v48 = vld [vmem:[%s5581_s4 + $0x3d8] sm:$0xff] }
  0xb6   :  { %v4246_v43 = vpop.permute.xlu1 %864 }
  0xb7   :  { %1184 = vperm.xlu1 %3345, %v698_v49   ;;  %v4248_v44 = vpop.permute.xlu0 %859  ;;  %v731_v49 = vld [vmem:[%s5581_s4 + $0x3d0] sm:$0xff] }
  0xb8   :  { %1179 = vperm.xlu0 %3344, %v697_v50   ;;  %5588 = vst [vmem:[#allocation2_spill] sm:$0xff] %v4248_v44 }
  0xbb   :  { %1194 = vperm.xlu1 %3345, %v700_v53  }
  0xbc   :  { %1189 = vperm.xlu0 %3344, %v699_v54  }
  0xbf   :  { %1204 = vperm.xlu1 %3345, %v702_v57  }
  0xc0   :  { %1199 = vperm.xlu0 %3344, %v701_v58  }
  0xc3   :  { %1214 = vperm.xlu1 %3345, %v704_v59   ;;  %v734_v59 = vld [vmem:[%s5581_s4 + $0x3e8] sm:$0xff] }
  0xc4   :  { %1209 = vperm.xlu0 %3344, %v703_v60   ;;  %v733_v60 = vld [vmem:[%s5581_s4 + $0x3e0] sm:$0xff] }
  0xc7   :  { %1224 = vperm.xlu1 %3345, %v706_v63   ;;  %v4263_v63 = vpop.permute.xlu1 %874 }
  0xc8   :  { %1219 = vperm.xlu0 %3344, %v705_v0   ;;  %5589 = vst [vmem:[#allocation3_spill] sm:$0xff] %v4263_v63  ;;  %v4265_v0 = vpop.permute.xlu0 %869 }
  0xc9   :  { %5590 = vst [vmem:[#allocation4_spill] sm:$0xff] %v4265_v0 }
  0xcb   :  { %1234 = vperm.xlu1 %3345, %v708_v3  }
  0xcc   :  { %1229 = vperm.xlu0 %3344, %v707_v4  }
  0xcf   :  { %1244 = vperm.xlu1 %3345, %v710_v5   ;;  %v735_v5 = vld [vmem:[%s5581_s4 + $0x3f0] sm:$0xff] }
  0xd0   :  { %1239 = vperm.xlu0 %3344, %v709_v6   ;;  %v4273_v6 = vpop.permute.xlu1 %884 }
  0xd1   :  { %5591 = vst [vmem:[#allocation5_spill] sm:$0xff] %v4273_v6 }
  0xd3   :  { %1254 = vperm.xlu1 %3345, %v712_v9   ;;  %v4275_v9 = vpop.permute.xlu0 %879 }
  0xd4   :  { %1249 = vperm.xlu0 %3344, %v711_v10   ;;  %5592 = vst [vmem:[#allocation6_spill] sm:$0xff] %v4275_v9 }
  0xd7   :  { %1264 = vperm.xlu1 %3345, %v714_v13  }
  0xd8   :  { %1259 = vperm.xlu0 %3344, %v713_v14  }
  0xdb   :  { %1274 = vperm.xlu1 %3345, %v716_v15  }
  0xdc   :  { %1269 = vperm.xlu0 %3344, %v715_v16  }
  0xdf   :  { %1284 = vperm.xlu1 %3345, %v718_v19  }
  0xe0   :  { %1279 = vperm.xlu0 %3344, %v717_v20  }
  0xe3   :  { %1294 = vperm.xlu1 %3345, %v720_v23  }
  0xe4   :  { %1289 = vperm.xlu0 %3344, %v719_v24  }
  0xe7   :  { %1304 = vperm.xlu1 %3345, %v722_v25  }
  0xe8   :  { %1299 = vperm.xlu0 %3344, %v721_v26  }
  0xeb   :  { %1314 = vperm.xlu1 %3345, %v724_v29  }
  0xec   :  { %1309 = vperm.xlu0 %3344, %v723_v30  }
  0xef   :  { %1324 = vperm.xlu1 %3345, %v726_v33  }
  0xf0   :  { %1319 = vperm.xlu0 %3344, %v725_v34  }
  0xf3   :  { %1334 = vperm.xlu1 %3345, %v728_v35  }
  0xf4   :  { %1329 = vperm.xlu0 %3344, %v727_v36  }
  0xf7   :  { %1344 = vperm.xlu1 %3345, %v730_v41  }
  0xf8   :  { %1339 = vperm.xlu0 %3344, %v729_v42  }
  0xf9   :  { %v2763_v47 = vpop.f32.mrb[0].mxu0 }
  0xfa   :  { %v2764_v50 = vpop.f32.mrb[1].mxu0 }
  0xfb   :  { %v2765_v53 = vadd.f32 %v2764_v50, %v2763_v47  ;;  %v2801_v54 = vpop.f32.mrb[0].mxu1  ;;  %1354 = vperm.xlu1 %3345, %v732_v48  }
  0xfc   :  { %1349 = vperm.xlu0 %3344, %v731_v49   ;;  %v2802_v58 = vpop.f32.mrb[1].mxu1 }
  0xfd   :  { %v245_v57 = vadd.f32 %v2765_v53, %v4074_v40  ;;  %v2803_v3 = vadd.f32 %v2802_v58, %v2801_v54  ;;  %v736_v40 = vld [vmem:[%s5581_s4 + $0x3f8] sm:$0xff]  ;;  %v482_v54 = vld [vmem:[%s5585_s3 + $0x8] sm:$0xff]  ;;  %v483_v58 = vld [vmem:[%s5585_s3 + $0x10] sm:$0xff] }
  0xff   :  { %v320_v4 = vadd.f32 %v2803_v3, %v245_v57  ;;  %1364 = vperm.xlu1 %3345, %v734_v59   ;;  %v546_v57 = vld [vmem:[%s5585_s3 + $0x208] sm:$0xff]  ;;  %v547_v59 = vld [vmem:[%s5585_s3 + $0x210] sm:$0xff]  ;;  %v548_v3 = vld [vmem:[%s5585_s3 + $0x218] sm:$0xff] }
 0x100   :  { %1359 = vperm.xlu0 %3344, %v733_v60   ;;  %v484_v60 = vld [vmem:[%s5585_s3 + $0x18] sm:$0xff] }
 0x103   :  { %1374 = vperm.xlu1 %3345, %v736_v40   ;;  %v549_v40 = vld [vmem:[%s5585_s3 + $0x220] sm:$0xff] }
 0x104   :  { %1369 = vperm.xlu0 %3344, %v735_v5   ;;  %v486_v5 = vld [vmem:[%s5585_s3 + $0x28] sm:$0xff] }
 0x108   :  { %v2766_v10 = vpop.f32.mrb[2].mxu0 }
 0x109   :  { %v2767_v13 = vpop.f32.mrb[3].mxu0 }
 0x10a   :  { %v2768_v14 = vadd.f32 %v2767_v13, %v2766_v10  ;;  %v550_v10 = vld [vmem:[%s5585_s3 + $0x228] sm:$0xff]  ;;  %v487_v13 = vld [vmem:[%s5585_s3 + $0x30] sm:$0xff] }
 0x10c   :  { %v250_v15 = vadd.f32 %v2768_v14, %v4092_v46  ;;  %v551_v14 = vld [vmem:[%s5585_s3 + $0x230] sm:$0xff] }
 0x10d   :  { %v2804_v16 = vpop.f32.mrb[2].mxu1 }
 0x10e   :  { %v2805_v19 = vpop.f32.mrb[3].mxu1 }
 0x10f   :  { %v2806_v20 = vadd.f32 %v2805_v19, %v2804_v16  ;;  %v552_v16 = vld [vmem:[%s5585_s3 + $0x238] sm:$0xff]  ;;  %v489_v19 = vld [vmem:[%s5585_s3 + $0x40] sm:$0xff] }
 0x111   :  { %v325_v23 = vadd.f32 %v2806_v20, %v250_v15  ;;  %v488_v15 = vld [vmem:[%s5585_s3 + $0x38] sm:$0xff]  ;;  %v553_v20 = vld [vmem:[%s5585_s3 + $0x240] sm:$0xff] }
 0x119   :  { %v2839_v24 = vpop.f32.mrb[4].mxu0 }
 0x11a   :  { %v2840_v25 = vpop.f32.mrb[5].mxu0 }
 0x11b   :  { %v2841_v26 = vadd.f32 %v2840_v25, %v2839_v24  ;;  %v2877_v29 = vpop.f32.mrb[4].mxu1  ;;  %v554_v24 = vld [vmem:[%s5585_s3 + $0x248] sm:$0xff]  ;;  %v491_v25 = vld [vmem:[%s5585_s3 + $0x50] sm:$0xff] }
 0x11c   :  { %v2878_v33 = vpop.f32.mrb[5].mxu1 }
 0x11d   :  { %v395_v30 = vadd.f32 %v2841_v26, %v320_v4  ;;  %v2842_v34 = vpop.f32.mrb[6].mxu0  ;;  %v2879_v35 = vadd.f32 %v2878_v33, %v2877_v29  ;;  %v485_v4 = vld [vmem:[%s5585_s3 + $0x20] sm:$0xff]  ;;  %v555_v26 = vld [vmem:[%s5585_s3 + $0x250] sm:$0xff]  ;;  %v4362_v29 = vpop.permute.xlu1 %894  ;;  %v492_v33 = vld [vmem:[%s5585_s3 + $0x58] sm:$0xff] }
 0x11e   :  { %v2843_v36 = vpop.f32.mrb[7].mxu0  ;;  %5593 = vst [vmem:[#allocation7_spill] sm:$0xff] %v4362_v29 }
 0x11f   :  { %v2844_v41 = vadd.f32 %v2843_v36, %v2842_v34  ;;  %v470_v42 = vadd.f32 %v2879_v35, %v395_v30  ;;  %v2880_v47 = vpop.f32.mrb[6].mxu1  ;;  %v4364_v30 = vpop.permute.xlu0 %889  ;;  %v556_v34 = vld [vmem:[%s5585_s3 + $0x258] sm:$0xff]  ;;  %v493_v35 = vld [vmem:[%s5585_s3 + $0x60] sm:$0xff] }
 0x120   :  { %v2881_v49 = vpop.f32.mrb[7].mxu1  ;;  %5594 = vst [vmem:[#allocation8_spill] sm:$0xff] %v4364_v30  ;;  %v557_v36 = vld [vmem:[%s5585_s3 + $0x260] sm:$0xff] }
 0x121   :  { %v400_v48 = vadd.f32 %v2844_v41, %v325_v23  ;;  %479 = vst.msk [vmem:[%s5586_s5] sm:$0xff] %vm478_vm1, %v470_v42  ;;  %v2882_v46 = vadd.f32 %v2881_v49, %v2880_v47  ;;  %v490_v23 = vld [vmem:[%s5585_s3 + $0x48] sm:$0xff]  ;;  %v4392_v47 = vpop.permute.xlu1 %904  ;;  %v495_v49 = vld [vmem:[%s5585_s3 + $0x70] sm:$0xff] }
 0x122   :  { %v494_v41 = vld [vmem:[%s5585_s3 + $0x68] sm:$0xff]  ;;  %5595 = vst [vmem:[#allocation9_spill] sm:$0xff] %v4392_v47 }
 0x123   :  { %v475_v50 = vadd.f32 %v2882_v46, %v400_v48  ;;  %v4394_v48 = vpop.permute.xlu0 %899  ;;  %v559_v46 = vld [vmem:[%s5585_s3 + $0x270] sm:$0xff] }
 0x124   :  { %5596 = vst [vmem:[#allocation10_spill] sm:$0xff] %v4394_v48 }
 0x125   :  { %480 = vst.msk [vmem:[%s5586_s5 + $0x8] sm:$0xff] %vm478_vm1, %v475_v50  ;;  %v3337_v53 = vpack.c.bf16 %v475_v50, %v470_v42  ;;  %v558_v42 = vld [vmem:[%s5585_s3 + $0x268] sm:$0xff]  ;;  %v496_v50 = vld [vmem:[%s5585_s3 + $0x78] sm:$0xff] }
 0x127   :  { %3338 = vmatprep.subr.bf16.mxu0 %v3337_v53  ;;  %3341 = vmatprep.subr.bf16.mxu1 %v3337_v53 }
 0x128   :  { %3340 = vmatpush3.bf16.msra.mxu0 %v3337_v53  ;;  %3342 = vmatpush3.bf16.msra.mxu1 %v3337_v53  ;;  %v560_v53 = vld [vmem:[%s5585_s3 + $0x278] sm:$0xff] }
 0x12b   :  { %3018 = vmatmul.mubr.msk.f32.vlgmr.msra.gmra.mrb[8].mxu0 %vm1377_vm0, %v482_v54  ;;  %3114 = vmatmul.mubr.msk.f32.vlgmr.msra.gmra.mrb[8].mxu1 %vm1377_vm0, %v546_v57  ;;  %v497_v54 = vld [vmem:[%s5585_s3 + $0x80] sm:$0xff] }
 0x12c   :  { %3020 = vmatprep.mubr.msk.f32.mxu0 %vm1377_vm0, %v483_v58  ;;  %3116 = vmatprep.mubr.msk.f32.mxu1 %vm1377_vm0, %v547_v59  ;;  %v561_v57 = vld [vmem:[%s5585_s3 + $0x280] sm:$0xff]  ;;  %v4418_v58 = vpop.permute.xlu1 %914  ;;  %v4420_v59 = vpop.permute.xlu0 %909 }
 0x12d   :  { %5597 = vst [vmem:[#allocation11_spill] sm:$0xff] %v4418_v58  ;;  %5598 = vst [vmem:[#allocation12_spill] sm:$0xff] %v4420_v59 }
 0x12f   :  { %3021 = vmatmul.mubr.msk.f32.gmra.mrb[10].mxu0 %vm1377_vm0, %v484_v60  ;;  %3117 = vmatmul.mubr.msk.f32.gmra.mrb[10].mxu1 %vm1377_vm0, %v548_v3  ;;  %v498_v60 = vld [vmem:[%s5585_s3 + $0x88] sm:$0xff] }
 0x130   :  { %3023 = vmatprep.mubr.msk.f32.mxu0 %vm1377_vm0, %v485_v4  ;;  %3119 = vmatprep.mubr.msk.f32.mxu1 %vm1377_vm0, %v549_v40  ;;  %v562_v3 = vld [vmem:[%s5585_s3 + $0x288] sm:$0xff]  ;;  %v499_v4 = vld [vmem:[%s5585_s3 + $0x90] sm:$0xff] }
 0x131   :  { %v563_v40 = vld [vmem:[%s5585_s3 + $0x290] sm:$0xff] }
 0x133   :  { %3024 = vmatmul.mubr.msk.f32.gmra.mrb[12].mxu0 %vm1377_vm0, %v486_v5  ;;  %3120 = vmatmul.mubr.msk.f32.gmra.mrb[12].mxu1 %vm1377_vm0, %v550_v10  ;;  %v500_v5 = vld [vmem:[%s5585_s3 + $0x98] sm:$0xff] }
 0x134   :  { %3026 = vmatprep.mubr.msk.f32.mxu0 %vm1377_vm0, %v487_v13  ;;  %3122 = vmatprep.mubr.msk.f32.mxu1 %vm1377_vm0, %v551_v14  ;;  %v564_v10 = vld [vmem:[%s5585_s3 + $0x298] sm:$0xff]  ;;  %v4448_v13 = vpop.permute.xlu1 %924  ;;  %v4450_v14 = vpop.permute.xlu0 %919 }
 0x135   :  { %5599 = vst [vmem:[#allocation13_spill] sm:$0xff] %v4448_v13  ;;  %5600 = vst [vmem:[#allocation14_spill] sm:$0xff] %v4450_v14 }
 0x137   :  { %3027 = vmatmul.mubr.msk.f32.gmra.mrb[14].mxu0 %vm1377_vm0, %v488_v15  ;;  %3123 = vmatmul.mubr.msk.f32.gmra.mrb[14].mxu1 %vm1377_vm0, %v552_v16  ;;  %v501_v15 = vld [vmem:[%s5585_s3 + $0xa0] sm:$0xff] }
 0x138   :  { %3029 = vmatprep.mubr.msk.f32.mxu0 %vm1377_vm0, %v489_v19  ;;  %3125 = vmatprep.mubr.msk.f32.mxu1 %vm1377_vm0, %v553_v20  ;;  %v565_v16 = vld [vmem:[%s5585_s3 + $0x2a0] sm:$0xff]  ;;  %v502_v19 = vld [vmem:[%s5585_s3 + $0xa8] sm:$0xff] }
 0x139   :  { %v566_v20 = vld [vmem:[%s5585_s3 + $0x2a8] sm:$0xff] }
 0x13b   :  { %3030 = vmatmul.mubr.msk.f32.gmra.mrb[16].mxu0 %vm1377_vm0, %v490_v23  ;;  %3126 = vmatmul.mubr.msk.f32.gmra.mrb[16].mxu1 %vm1377_vm0, %v554_v24  ;;  %v503_v23 = vld [vmem:[%s5585_s3 + $0xb0] sm:$0xff] }
 0x13c   :  { %3032 = vmatprep.mubr.msk.f32.mxu0 %vm1377_vm0, %v491_v25  ;;  %3128 = vmatprep.mubr.msk.f32.mxu1 %vm1377_vm0, %v555_v26  ;;  %v567_v24 = vld [vmem:[%s5585_s3 + $0x2b0] sm:$0xff]  ;;  %v4474_v25 = vpop.permute.xlu1 %934  ;;  %v4476_v26 = vpop.permute.xlu0 %929 }
 0x13d   :  { %5601 = vst [vmem:[#allocation15_spill] sm:$0xff] %v4474_v25  ;;  %5602 = vst [vmem:[#allocation16_spill] sm:$0xff] %v4476_v26 }
 0x13f   :  { %3033 = vmatmul.mubr.msk.f32.gmra.mrb[18].mxu0 %vm1377_vm0, %v492_v33  ;;  %3129 = vmatmul.mubr.msk.f32.gmra.mrb[18].mxu1 %vm1377_vm0, %v556_v34  ;;  %v504_v33 = vld [vmem:[%s5585_s3 + $0xb8] sm:$0xff] }
 0x140   :  { %3035 = vmatprep.mubr.msk.f32.mxu0 %vm1377_vm0, %v493_v35  ;;  %3131 = vmatprep.mubr.msk.f32.mxu1 %vm1377_vm0, %v557_v36  ;;  %v568_v34 = vld [vmem:[%s5585_s3 + $0x2b8] sm:$0xff]  ;;  %v505_v35 = vld [vmem:[%s5585_s3 + $0xc0] sm:$0xff] }
 0x141   :  { %v569_v36 = vld [vmem:[%s5585_s3 + $0x2c0] sm:$0xff] }
 0x143   :  { %3036 = vmatmul.mubr.msk.f32.gmra.mrb[20].mxu0 %vm1377_vm0, %v494_v41  ;;  %3132 = vmatmul.mubr.msk.f32.gmra.mrb[20].mxu1 %vm1377_vm0, %v558_v42  ;;  %v506_v41 = vld [vmem:[%s5585_s3 + $0xc8] sm:$0xff] }
 0x144   :  { %3038 = vmatprep.mubr.msk.f32.mxu0 %vm1377_vm0, %v495_v49  ;;  %3134 = vmatprep.mubr.msk.f32.mxu1 %vm1377_vm0, %v559_v46  ;;  %v570_v42 = vld [vmem:[%s5585_s3 + $0x2c8] sm:$0xff]  ;;  %v4504_v49 = vpop.permute.xlu1 %944  ;;  %v4506_v46 = vpop.permute.xlu0 %939 }
 0x145   :  { %5603 = vst [vmem:[#allocation17_spill] sm:$0xff] %v4504_v49  ;;  %5604 = vst [vmem:[#allocation18_spill] sm:$0xff] %v4506_v46 }
 0x147   :  { %3039 = vmatmul.mubr.msk.f32.gmra.mrb[22].mxu0 %vm1377_vm0, %v496_v50  ;;  %3135 = vmatmul.mubr.msk.f32.gmra.mrb[22].mxu1 %vm1377_vm0, %v560_v53  ;;  %v507_v50 = vld [vmem:[%s5585_s3 + $0xd0] sm:$0xff] }
 0x148   :  { %3041 = vmatprep.mubr.msk.f32.mxu0 %vm1377_vm0, %v497_v54  ;;  %3137 = vmatprep.mubr.msk.f32.mxu1 %vm1377_vm0, %v561_v57  ;;  %v571_v53 = vld [vmem:[%s5585_s3 + $0x2d0] sm:$0xff]  ;;  %v508_v54 = vld [vmem:[%s5585_s3 + $0xd8] sm:$0xff] }
 0x149   :  { %v572_v57 = vld [vmem:[%s5585_s3 + $0x2d8] sm:$0xff] }
 0x14b   :  { %3042 = vmatmul.mubr.msk.f32.gmra.mrb[24].mxu0 %vm1377_vm0, %v498_v60  ;;  %3138 = vmatmul.mubr.msk.f32.gmra.mrb[24].mxu1 %vm1377_vm0, %v562_v3  ;;  %v509_v60 = vld [vmem:[%s5585_s3 + $0xe0] sm:$0xff] }
 0x14c   :  { %3044 = vmatprep.mubr.msk.f32.mxu0 %vm1377_vm0, %v499_v4  ;;  %3140 = vmatprep.mubr.msk.f32.mxu1 %vm1377_vm0, %v563_v40  ;;  %v573_v3 = vld [vmem:[%s5585_s3 + $0x2e0] sm:$0xff]  ;;  %v4530_v4 = vpop.permute.xlu1 %954  ;;  %v4532_v40 = vpop.permute.xlu0 %949 }
 0x14d   :  { %5605 = vst [vmem:[#allocation19_spill] sm:$0xff] %v4530_v4  ;;  %5606 = vst [vmem:[#allocation20_spill] sm:$0xff] %v4532_v40 }
 0x14f   :  { %3045 = vmatmul.mubr.msk.f32.gmra.mrb[26].mxu0 %vm1377_vm0, %v500_v5  ;;  %3141 = vmatmul.mubr.msk.f32.gmra.mrb[26].mxu1 %vm1377_vm0, %v564_v10  ;;  %v510_v5 = vld [vmem:[%s5585_s3 + $0xe8] sm:$0xff] }
 0x150   :  { %3047 = vmatprep.mubr.msk.f32.mxu0 %vm1377_vm0, %v501_v15  ;;  %3143 = vmatprep.mubr.msk.f32.mxu1 %vm1377_vm0, %v565_v16  ;;  %v574_v10 = vld [vmem:[%s5585_s3 + $0x2e8] sm:$0xff]  ;;  %v511_v15 = vld [vmem:[%s5585_s3 + $0xf0] sm:$0xff] }
 0x151   :  { %v575_v16 = vld [vmem:[%s5585_s3 + $0x2f0] sm:$0xff] }
 0x153   :  { %3048 = vmatmul.mubr.msk.f32.gmra.mrb[28].mxu0 %vm1377_vm0, %v502_v19  ;;  %3144 = vmatmul.mubr.msk.f32.gmra.mrb[28].mxu1 %vm1377_vm0, %v566_v20  ;;  %v512_v19 = vld [vmem:[%s5585_s3 + $0xf8] sm:$0xff] }
 0x154   :  { %3050 = vmatprep.mubr.msk.f32.mxu0 %vm1377_vm0, %v503_v23  ;;  %3146 = vmatprep.mubr.msk.f32.mxu1 %vm1377_vm0, %v567_v24  ;;  %v576_v20 = vld [vmem:[%s5585_s3 + $0x2f8] sm:$0xff]  ;;  %v4560_v23 = vpop.permute.xlu1 %964  ;;  %v4562_v24 = vpop.permute.xlu0 %959 }
 0x155   :  { %5607 = vst [vmem:[#allocation21_spill] sm:$0xff] %v4560_v23  ;;  %5608 = vst [vmem:[#allocation22_spill] sm:$0xff] %v4562_v24 }
 0x157   :  { %3051 = vmatmul.mubr.msk.f32.gmra.mrb[30].mxu0 %vm1377_vm0, %v504_v33  ;;  %3147 = vmatmul.mubr.msk.f32.gmra.mrb[30].mxu1 %vm1377_vm0, %v568_v34  ;;  %v513_v33 = vld [vmem:[%s5585_s3 + $0x100] sm:$0xff] }
 0x158   :  { %3053 = vmatprep.mubr.msk.f32.mxu0 %vm1377_vm0, %v505_v35  ;;  %3149 = vmatprep.mubr.msk.f32.mxu1 %vm1377_vm0, %v569_v36  ;;  %v577_v34 = vld [vmem:[%s5585_s3 + $0x300] sm:$0xff]  ;;  %v514_v35 = vld [vmem:[%s5585_s3 + $0x108] sm:$0xff] }
 0x159   :  { %v578_v36 = vld [vmem:[%s5585_s3 + $0x308] sm:$0xff] }
 0x15b   :  { %3054 = vmatmul.mubr.msk.f32.gmra.mrb[32].mxu0 %vm1377_vm0, %v506_v41  ;;  %3150 = vmatmul.mubr.msk.f32.gmra.mrb[32].mxu1 %vm1377_vm0, %v570_v42  ;;  %v515_v41 = vld [vmem:[%s5585_s3 + $0x110] sm:$0xff] }
 0x15c   :  { %3056 = vmatprep.mubr.msk.f32.mxu0 %vm1377_vm0, %v507_v50  ;;  %3152 = vmatprep.mubr.msk.f32.mxu1 %vm1377_vm0, %v571_v53  ;;  %v579_v42 = vld [vmem:[%s5585_s3 + $0x310] sm:$0xff]  ;;  %v4586_v50 = vpop.permute.xlu1 %974  ;;  %v4588_v53 = vpop.permute.xlu0 %969 }
 0x15d   :  { %5609 = vst [vmem:[#allocation23_spill] sm:$0xff] %v4586_v50  ;;  %5610 = vst [vmem:[#allocation24_spill] sm:$0xff] %v4588_v53 }
 0x15f   :  { %3057 = vmatmul.mubr.msk.f32.gmra.mrb[34].mxu0 %vm1377_vm0, %v508_v54  ;;  %3153 = vmatmul.mubr.msk.f32.gmra.mrb[34].mxu1 %vm1377_vm0, %v572_v57  ;;  %v516_v54 = vld [vmem:[%s5585_s3 + $0x118] sm:$0xff] }
 0x160   :  { %3059 = vmatprep.mubr.msk.f32.mxu0 %vm1377_vm0, %v509_v60  ;;  %3155 = vmatprep.mubr.msk.f32.mxu1 %vm1377_vm0, %v573_v3  ;;  %v580_v57 = vld [vmem:[%s5585_s3 + $0x318] sm:$0xff]  ;;  %v517_v60 = vld [vmem:[%s5585_s3 + $0x120] sm:$0xff] }
 0x161   :  { %v581_v3 = vld [vmem:[%s5585_s3 + $0x320] sm:$0xff] }
 0x163   :  { %3060 = vmatmul.mubr.msk.f32.gmra.mrb[36].mxu0 %vm1377_vm0, %v510_v5  ;;  %3156 = vmatmul.mubr.msk.f32.gmra.mrb[36].mxu1 %vm1377_vm0, %v574_v10  ;;  %v518_v5 = vld [vmem:[%s5585_s3 + $0x128] sm:$0xff] }
 0x164   :  { %3062 = vmatprep.mubr.msk.f32.mxu0 %vm1377_vm0, %v511_v15  ;;  %3158 = vmatprep.mubr.msk.f32.mxu1 %vm1377_vm0, %v575_v16  ;;  %v582_v10 = vld [vmem:[%s5585_s3 + $0x328] sm:$0xff]  ;;  %v4616_v15 = vpop.permute.xlu1 %984  ;;  %v4618_v16 = vpop.permute.xlu0 %979 }
 0x165   :  { %5611 = vst [vmem:[#allocation25_spill] sm:$0xff] %v4616_v15  ;;  %5612 = vst [vmem:[#allocation26_spill] sm:$0xff] %v4618_v16 }
 0x167   :  { %3063 = vmatmul.mubr.msk.f32.gmra.mrb[38].mxu0 %vm1377_vm0, %v512_v19  ;;  %3159 = vmatmul.mubr.msk.f32.gmra.mrb[38].mxu1 %vm1377_vm0, %v576_v20  ;;  %v519_v19 = vld [vmem:[%s5585_s3 + $0x130] sm:$0xff] }
 0x168   :  { %3065 = vmatprep.mubr.msk.f32.mxu0 %vm1377_vm0, %v513_v33  ;;  %3161 = vmatprep.mubr.msk.f32.mxu1 %vm1377_vm0, %v577_v34  ;;  %v583_v20 = vld [vmem:[%s5585_s3 + $0x330] sm:$0xff]  ;;  %v520_v33 = vld [vmem:[%s5585_s3 + $0x138] sm:$0xff] }
 0x169   :  { %v584_v34 = vld [vmem:[%s5585_s3 + $0x338] sm:$0xff] }
 0x16b   :  { %3066 = vmatmul.mubr.msk.f32.gmra.mrb[40].mxu0 %vm1377_vm0, %v514_v35  ;;  %3162 = vmatmul.mubr.msk.f32.gmra.mrb[40].mxu1 %vm1377_vm0, %v578_v36  ;;  %v521_v35 = vld [vmem:[%s5585_s3 + $0x140] sm:$0xff] }
 0x16c   :  { %3068 = vmatprep.mubr.msk.f32.mxu0 %vm1377_vm0, %v515_v41  ;;  %3164 = vmatprep.mubr.msk.f32.mxu1 %vm1377_vm0, %v579_v42  ;;  %v585_v36 = vld [vmem:[%s5585_s3 + $0x340] sm:$0xff]  ;;  %v4642_v41 = vpop.permute.xlu1 %994  ;;  %v4644_v42 = vpop.permute.xlu0 %989 }
 0x16d   :  { %5613 = vst [vmem:[#allocation27_spill] sm:$0xff] %v4642_v41  ;;  %5614 = vst [vmem:[#allocation28_spill] sm:$0xff] %v4644_v42 }
 0x16f   :  { %3069 = vmatmul.mubr.msk.f32.gmra.mrb[42].mxu0 %vm1377_vm0, %v516_v54  ;;  %3165 = vmatmul.mubr.msk.f32.gmra.mrb[42].mxu1 %vm1377_vm0, %v580_v57  ;;  %v522_v54 = vld [vmem:[%s5585_s3 + $0x148] sm:$0xff] }
 0x170   :  { %3071 = vmatprep.mubr.msk.f32.mxu0 %vm1377_vm0, %v517_v60  ;;  %3167 = vmatprep.mubr.msk.f32.mxu1 %vm1377_vm0, %v581_v3  ;;  %v586_v57 = vld [vmem:[%s5585_s3 + $0x348] sm:$0xff]  ;;  %v523_v60 = vld [vmem:[%s5585_s3 + $0x150] sm:$0xff] }
 0x171   :  { %v587_v3 = vld [vmem:[%s5585_s3 + $0x350] sm:$0xff] }
 0x173   :  { %3072 = vmatmul.mubr.msk.f32.gmra.mrb[44].mxu0 %vm1377_vm0, %v518_v5  ;;  %3168 = vmatmul.mubr.msk.f32.gmra.mrb[44].mxu1 %vm1377_vm0, %v582_v10  ;;  %v524_v5 = vld [vmem:[%s5585_s3 + $0x158] sm:$0xff] }
 0x174   :  { %3074 = vmatprep.mubr.msk.f32.mxu0 %vm1377_vm0, %v519_v19  ;;  %3170 = vmatprep.mubr.msk.f32.mxu1 %vm1377_vm0, %v583_v20  ;;  %v588_v10 = vld [vmem:[%s5585_s3 + $0x358] sm:$0xff]  ;;  %v4672_v19 = vpop.permute.xlu1 %1004  ;;  %v4674_v20 = vpop.permute.xlu0 %999 }
 0x175   :  { %5615 = vst [vmem:[#allocation29_spill] sm:$0xff] %v4672_v19  ;;  %5616 = vst [vmem:[#allocation30_spill] sm:$0xff] %v4674_v20 }
 0x177   :  { %3075 = vmatmul.mubr.msk.f32.gmra.mrb[46].mxu0 %vm1377_vm0, %v520_v33  ;;  %3171 = vmatmul.mubr.msk.f32.gmra.mrb[46].mxu1 %vm1377_vm0, %v584_v34  ;;  %v525_v33 = vld [vmem:[%s5585_s3 + $0x160] sm:$0xff] }
 0x178   :  { %3077 = vmatprep.mubr.msk.f32.mxu0 %vm1377_vm0, %v521_v35  ;;  %3173 = vmatprep.mubr.msk.f32.mxu1 %vm1377_vm0, %v585_v36  ;;  %v589_v34 = vld [vmem:[%s5585_s3 + $0x360] sm:$0xff]  ;;  %v526_v35 = vld [vmem:[%s5585_s3 + $0x168] sm:$0xff] }
 0x179   :  { %v590_v36 = vld [vmem:[%s5585_s3 + $0x368] sm:$0xff] }
 0x17b   :  { %3078 = vmatmul.mubr.msk.f32.gmra.mrb[48].mxu0 %vm1377_vm0, %v522_v54  ;;  %3174 = vmatmul.mubr.msk.f32.gmra.mrb[48].mxu1 %vm1377_vm0, %v586_v57  ;;  %v527_v54 = vld [vmem:[%s5585_s3 + $0x170] sm:$0xff] }
 0x17c   :  { %3080 = vmatprep.mubr.msk.f32.mxu0 %vm1377_vm0, %v523_v60  ;;  %3176 = vmatprep.mubr.msk.f32.mxu1 %vm1377_vm0, %v587_v3  ;;  %v591_v57 = vld [vmem:[%s5585_s3 + $0x370] sm:$0xff]  ;;  %v4698_v60 = vpop.permute.xlu1 %1014  ;;  %v4700_v3 = vpop.permute.xlu0 %1009 }
 0x17d   :  { %5617 = vst [vmem:[#allocation31_spill] sm:$0xff] %v4698_v60  ;;  %5618 = vst [vmem:[#allocation32_spill] sm:$0xff] %v4700_v3 }
 0x17f   :  { %3081 = vmatmul.mubr.msk.f32.gmra.mrb[50].mxu0 %vm1377_vm0, %v524_v5  ;;  %3177 = vmatmul.mubr.msk.f32.gmra.mrb[50].mxu1 %vm1377_vm0, %v588_v10  ;;  %v528_v5 = vld [vmem:[%s5585_s3 + $0x178] sm:$0xff] }
 0x180   :  { %3083 = vmatprep.mubr.msk.f32.mxu0 %vm1377_vm0, %v525_v33  ;;  %3179 = vmatprep.mubr.msk.f32.mxu1 %vm1377_vm0, %v589_v34  ;;  %v592_v10 = vld [vmem:[%s5585_s3 + $0x378] sm:$0xff]  ;;  %v529_v33 = vld [vmem:[%s5585_s3 + $0x180] sm:$0xff] }
 0x181   :  { %v593_v34 = vld [vmem:[%s5585_s3 + $0x380] sm:$0xff] }
 0x183   :  { %3084 = vmatmul.mubr.msk.f32.gmra.mrb[52].mxu0 %vm1377_vm0, %v526_v35  ;;  %3180 = vmatmul.mubr.msk.f32.gmra.mrb[52].mxu1 %vm1377_vm0, %v590_v36  ;;  %v530_v35 = vld [vmem:[%s5585_s3 + $0x188] sm:$0xff] }
 0x184   :  { %3086 = vmatprep.mubr.msk.f32.mxu0 %vm1377_vm0, %v527_v54  ;;  %3182 = vmatprep.mubr.msk.f32.mxu1 %vm1377_vm0, %v591_v57  ;;  %v594_v36 = vld [vmem:[%s5585_s3 + $0x388] sm:$0xff]  ;;  %v4728_v54 = vpop.permute.xlu1 %1024  ;;  %v4730_v57 = vpop.permute.xlu0 %1019 }
 0x185   :  { %5619 = vst [vmem:[#allocation33_spill] sm:$0xff] %v4728_v54  ;;  %5620 = vst [vmem:[#allocation34_spill] sm:$0xff] %v4730_v57  ;;  %v533_v57 = vld [vmem:[%s5585_s3 + $0x1a0] sm:$0xff]  ;;  %v598_v54 = vld [vmem:[%s5585_s3 + $0x3a8] sm:$0xff] }
 0x187   :  { %3087 = vmatmul.mubr.msk.f32.gmra.mrb[54].mxu0 %vm1377_vm0, %v528_v5  ;;  %3183 = vmatmul.mubr.msk.f32.gmra.mrb[54].mxu1 %vm1377_vm0, %v592_v10  ;;  %v531_v5 = vld [vmem:[%s5585_s3 + $0x190] sm:$0xff] }
 0x188   :  { %3089 = vmatprep.mubr.msk.f32.mxu0 %vm1377_vm0, %v529_v33  ;;  %3185 = vmatprep.mubr.msk.f32.mxu1 %vm1377_vm0, %v593_v34  ;;  %v595_v10 = vld [vmem:[%s5585_s3 + $0x390] sm:$0xff]  ;;  %v532_v33 = vld [vmem:[%s5585_s3 + $0x198] sm:$0xff] }
 0x189   :  { %v596_v34 = vld [vmem:[%s5585_s3 + $0x398] sm:$0xff] }
 0x18b   :  { %3090 = vmatmul.mubr.msk.f32.gmra.mrb[56].mxu0 %vm1377_vm0, %v530_v35  ;;  %3186 = vmatmul.mubr.msk.f32.gmra.mrb[56].mxu1 %vm1377_vm0, %v594_v36  ;;  %v597_v35 = vld [vmem:[%s5585_s3 + $0x3a0] sm:$0xff]  ;;  %v4754_v36 = vpop.permute.xlu1 %1034 }
 0x18c   :  { %3092 = vmatprep.mubr.msk.f32.mxu0 %vm1377_vm0, %v531_v5  ;;  %3188 = vmatprep.mubr.msk.f32.mxu1 %vm1377_vm0, %v595_v10  ;;  %5621 = vst [vmem:[#allocation35_spill] sm:$0xff] %v4754_v36  ;;  %v4756_v5 = vpop.permute.xlu0 %1029  ;;  %v534_v10 = vld [vmem:[%s5585_s3 + $0x1a8] sm:$0xff] }
 0x18d   :  { %5622 = vst [vmem:[#allocation36_spill] sm:$0xff] %v4756_v5  ;;  %v535_v5 = vld [vmem:[%s5585_s3 + $0x1b0] sm:$0xff] }
 0x18f   :  { %3093 = vmatmul.mubr.msk.f32.gmra.mrb[58].mxu0 %vm1377_vm0, %v532_v33  ;;  %3189 = vmatmul.mubr.msk.f32.gmra.mrb[58].mxu1 %vm1377_vm0, %v596_v34  ;;  %v599_v33 = vld [vmem:[%s5585_s3 + $0x3b0] sm:$0xff]  ;;  %v600_v34 = vld [vmem:[%s5585_s3 + $0x3b8] sm:$0xff] }
 0x190   :  { %3095 = vmatprep.mubr.msk.f32.mxu0 %vm1377_vm0, %v533_v57  ;;  %3191 = vmatprep.mubr.msk.f32.mxu1 %vm1377_vm0, %v597_v35  ;;  %v536_v57 = vld [vmem:[%s5585_s3 + $0x1b8] sm:$0xff]  ;;  %v4784_v35 = vpop.permute.xlu1 %1044  ;;  %v4786_v36 = vpop.permute.xlu0 %1039 }
 0x191   :  { %5623 = vst [vmem:[#allocation37_spill] sm:$0xff] %v4784_v35  ;;  %5624 = vst [vmem:[#allocation38_spill] sm:$0xff] %v4786_v36  ;;  %v539_v36 = vld [vmem:[%s5585_s3 + $0x1d0] sm:$0xff]  ;;  %v604_v35 = vld [vmem:[%s5585_s3 + $0x3d8] sm:$0xff] }
 0x193   :  { %3096 = vmatmul.mubr.msk.f32.gmra.mrb[60].mxu0 %vm1377_vm0, %v534_v10  ;;  %3192 = vmatmul.mubr.msk.f32.gmra.mrb[60].mxu1 %vm1377_vm0, %v598_v54  ;;  %v537_v54 = vld [vmem:[%s5585_s3 + $0x1c0] sm:$0xff]  ;;  %v538_v10 = vld [vmem:[%s5585_s3 + $0x1c8] sm:$0xff] }
 0x194   :  { %3098 = vmatprep.mubr.msk.f32.mxu0 %vm1377_vm0, %v535_v5  ;;  %3194 = vmatprep.mubr.msk.f32.mxu1 %vm1377_vm0, %v599_v33  ;;  %v601_v5 = vld [vmem:[%s5585_s3 + $0x3c0] sm:$0xff]  ;;  %v602_v33 = vld [vmem:[%s5585_s3 + $0x3c8] sm:$0xff] }
 0x197   :  { %3099 = vmatmul.mubr.msk.f32.gmra.mrb[62].mxu0 %vm1377_vm0, %v536_v57  ;;  %3195 = vmatmul.mubr.msk.f32.gmra.mrb[62].mxu1 %vm1377_vm0, %v600_v34  ;;  %v603_v57 = vld [vmem:[%s5585_s3 + $0x3d0] sm:$0xff]  ;;  %v4810_v34 = vpop.permute.xlu1 %1054 }
 0x198   :  { %3101 = vmatprep.mubr.msk.f32.mxu0 %vm1377_vm0, %v537_v54  ;;  %3197 = vmatprep.mubr.msk.f32.mxu1 %vm1377_vm0, %v601_v5  ;;  %5625 = vst [vmem:[#allocation39_spill] sm:$0xff] %v4810_v34  ;;  %v4812_v54 = vpop.permute.xlu0 %1049  ;;  %v540_v5 = vld [vmem:[%s5585_s3 + $0x1d8] sm:$0xff] }
 0x199   :  { %5626 = vst [vmem:[#allocation40_spill] sm:$0xff] %v4812_v54  ;;  %v541_v54 = vld [vmem:[%s5585_s3 + $0x1e0] sm:$0xff] }
 0x19b   :  { %3102 = vmatmul.mubr.msk.f32.gmra.mrb[64].mxu0 %vm1377_vm0, %v538_v10  ;;  %3198 = vmatmul.mubr.msk.f32.gmra.mrb[64].mxu1 %vm1377_vm0, %v602_v33  ;;  %v605_v10 = vld [vmem:[%s5585_s3 + $0x3e0] sm:$0xff]  ;;  %v606_v33 = vld [vmem:[%s5585_s3 + $0x3e8] sm:$0xff] }
 0x19c   :  { %3104 = vmatprep.mubr.msk.f32.mxu0 %vm1377_vm0, %v539_v36  ;;  %3200 = vmatprep.mubr.msk.f32.mxu1 %vm1377_vm0, %v603_v57  ;;  %v542_v36 = vld [vmem:[%s5585_s3 + $0x1e8] sm:$0xff]  ;;  %v1065_v57 = vpop.permute.xlu1 %1064  ;;  %v1060_v34 = vpop.permute.xlu0 %1059 }
 0x19f   :  { %3105 = vmatmul.mubr.msk.f32.gmra.mrb[66].mxu0 %vm1377_vm0, %v540_v5  ;;  %3201 = vmatmul.mubr.msk.f32.gmra.mrb[66].mxu1 %vm1377_vm0, %v604_v35  ;;  %v543_v5 = vld [vmem:[%s5585_s3 + $0x1f0] sm:$0xff] }
 0x1a0   :  { %3107 = vmatprep.mubr.msk.f32.mxu0 %vm1377_vm0, %v541_v54  ;;  %3203 = vmatprep.mubr.msk.f32.mxu1 %vm1377_vm0, %v605_v10  ;;  %v607_v35 = vld [vmem:[%s5585_s3 + $0x3f0] sm:$0xff]  ;;  %v544_v54 = vld [vmem:[%s5585_s3 + $0x1f8] sm:$0xff]  ;;  %v1075_v3 = vpop.permute.xlu1 %1074  ;;  %v1070_v60 = vpop.permute.xlu0 %1069 }
 0x1a1   :  { %v608_v10 = vld [vmem:[%s5585_s3 + $0x3f8] sm:$0xff] }
 0x1a3   :  { %3108 = vmatmul.mubr.msk.f32.gmra.mrb[68].mxu0 %vm1377_vm0, %v542_v36  ;;  %3204 = vmatmul.mubr.msk.f32.gmra.mrb[68].mxu1 %vm1377_vm0, %v606_v33 }
 0x1a4   :  { %3110 = vmatprep.mubr.msk.f32.mxu0 %vm1377_vm0, %v543_v5  ;;  %3206 = vmatprep.mubr.msk.f32.mxu1 %vm1377_vm0, %v607_v35  ;;  %v1085_v36 = vpop.permute.xlu1 %1084  ;;  %v1080_v33 = vpop.permute.xlu0 %1079 }
 0x1a7   :  { %3111 = vmatmul.mubr.msk.f32.gmra.mrb[70].mxu0 %vm1377_vm0, %v544_v54  ;;  %3207 = vmatmul.mubr.msk.f32.gmra.mrb[70].mxu1 %vm1377_vm0, %v608_v10 }
 0x1a8   :  { %v4858_v20 = vpop.permute.xlu1 %1094  ;;  %v4860_v5 = vpop.permute.xlu0 %1089 }
 0x1ac   :  { %v4862_v35 = vpop.permute.xlu1 %1104  ;;  %v4864_v19 = vpop.permute.xlu0 %1099 }
 0x1b0   :  { %v4866_v42 = vpop.permute.xlu1 %1114  ;;  %v4868_v41 = vpop.permute.xlu0 %1109 }
 0x1b4   :  { %v4870_v16 = vpop.permute.xlu1 %1124  ;;  %v4872_v15 = vpop.permute.xlu0 %1119 }
 0x1b8   :  { %v4874_v54 = vpop.permute.xlu1 %1134  ;;  %v4876_v10 = vpop.permute.xlu0 %1129 }
 0x1bc   :  { %v4878_v53 = vpop.permute.xlu1 %1144  ;;  %v4880_v50 = vpop.permute.xlu0 %1139 }
 0x1c0   :  { %v4882_v24 = vpop.permute.xlu1 %1154  ;;  %v4884_v23 = vpop.permute.xlu0 %1149 }
 0x1c4   :  { %v4886_v40 = vpop.permute.xlu1 %1164  ;;  %v4888_v4 = vpop.permute.xlu0 %1159 }
 0x1c8   :  { %v4890_v46 = vpop.permute.xlu1 %1174  ;;  %v4892_v49 = vpop.permute.xlu0 %1169 }
 0x1cc   :  { %v4894_v26 = vpop.permute.xlu1 %1184  ;;  %v4896_v25 = vpop.permute.xlu0 %1179 }
 0x1cd   :  { %5627 = vst [vmem:[#allocation41_spill] sm:$0xff] %v4896_v25 }
 0x1d0   :  { %v4898_v14 = vpop.permute.xlu1 %1194  ;;  %v4900_v13 = vpop.permute.xlu0 %1189 }
 0x1d1   :  { %5628 = vst [vmem:[#allocation42_spill] sm:$0xff] %v4898_v14  ;;  %5629 = vst [vmem:[#allocation43_spill] sm:$0xff] %v4900_v13 }
 0x1d4   :  { %v4902_v59 = vpop.permute.xlu1 %1204  ;;  %v4904_v58 = vpop.permute.xlu0 %1199 }
 0x1d8   :  { %v4906_v48 = vpop.permute.xlu1 %1214  ;;  %v4908_v47 = vpop.permute.xlu0 %1209 }
 0x1dc   :  { %v4912_v44 = vpop.permute.xlu1 %1224  ;;  %v4914_v13 = vpop.permute.xlu0 %1219 }
 0x1fe   :  { %v3019_v30 = vpop.f32.mrb[8].mxu0  ;;  %v3115_v29 = vpop.f32.mrb[8].mxu1 }
 0x1ff   :  { %v1834_v9 = vadd.f32 %v3019_v30, %v4090_v45  ;;  %v2154_v6 = vadd.f32 %v3115_v29, %v1065_v57  ;;  %v1828_v0 = vpop.f32.mrb[9].mxu0  ;;  %v2148_v63 = vpop.f32.mrb[9].mxu1 }
 0x200   :  { %v1829_v25 = vadd.f32 %v1828_v0, %v4072_v39  ;;  %v2149_v14 = vadd.f32 %v2148_v63, %v1060_v34 }
 0x201   :  { %2468 = vst.msk [vmem:[%s5587_s6 + $0x8] sm:$0xff] %vm478_vm1, %v1834_v9  ;;  %2532 = vst.msk [vmem:[%s5587_s6 + $0x208] sm:$0xff] %vm478_vm1, %v2154_v6 }
 0x202   :  { %2467 = vst.msk [vmem:[%s5587_s6] sm:$0xff] %vm478_vm1, %v1829_v25  ;;  %2531 = vst.msk [vmem:[%s5587_s6 + $0x200] sm:$0xff] %vm478_vm1, %v2149_v14  ;;  %v3022_v39 = vpop.f32.mrb[10].mxu0  ;;  %v3118_v45 = vpop.f32.mrb[10].mxu1 }
 0x203   :  { %v1844_v63 = vadd.f32 %v3022_v39, %v4106_v51  ;;  %v2164_v0 = vadd.f32 %v3118_v45, %v1075_v3  ;;  %v1838_v9 = vpop.f32.mrb[11].mxu0  ;;  %v2158_v29 = vpop.f32.mrb[11].mxu1 }
 0x204   :  { %v1839_v30 = vadd.f32 %v1838_v9, %v4108_v52  ;;  %v2159_v6 = vadd.f32 %v2158_v29, %v1070_v60  ;;  %v4952_v39 = vpop.permute.xlu1 %1234  ;;  %v4954_v45 = vpop.permute.xlu0 %1229 }
 0x205   :  { %2470 = vst.msk [vmem:[%s5587_s6 + $0x18] sm:$0xff] %vm478_vm1, %v1844_v63  ;;  %2534 = vst.msk [vmem:[%s5587_s6 + $0x218] sm:$0xff] %vm478_vm1, %v2164_v0 }
 0x206   :  { %2469 = vst.msk [vmem:[%s5587_s6 + $0x10] sm:$0xff] %vm478_vm1, %v1839_v30  ;;  %2533 = vst.msk [vmem:[%s5587_s6 + $0x210] sm:$0xff] %vm478_vm1, %v2159_v6  ;;  %v3025_v51 = vpop.f32.mrb[12].mxu0  ;;  %v3121_v52 = vpop.f32.mrb[12].mxu1 }
 0x207   :  { %v1854_v14 = vadd.f32 %v3025_v51, %v4116_v55  ;;  %v2174_v25 = vadd.f32 %v3121_v52, %v1085_v36  ;;  %v1848_v60 = vpop.f32.mrb[13].mxu0  ;;  %v2168_v3 = vpop.f32.mrb[13].mxu1 }
 0x208   :  { %v1849_v34 = vadd.f32 %v1848_v60, %v4118_v56  ;;  %v2169_v57 = vadd.f32 %v2168_v3, %v1080_v33 }
 0x209   :  { %2472 = vst.msk [vmem:[%s5587_s6 + $0x28] sm:$0xff] %vm478_vm1, %v1854_v14  ;;  %2536 = vst.msk [vmem:[%s5587_s6 + $0x228] sm:$0xff] %vm478_vm1, %v2174_v25  ;;  %v4996_v14 = vpop.permute.xlu1 %1244  ;;  %v4998_v25 = vpop.permute.xlu0 %1239 }
 0x20a   :  { %2471 = vst.msk [vmem:[%s5587_s6 + $0x20] sm:$0xff] %vm478_vm1, %v1849_v34  ;;  %2535 = vst.msk [vmem:[%s5587_s6 + $0x220] sm:$0xff] %vm478_vm1, %v2169_v57  ;;  %v3028_v55 = vpop.f32.mrb[14].mxu0  ;;  %v3124_v56 = vpop.f32.mrb[14].mxu1 }
 0x20b   :  { %v1864_v36 = vadd.f32 %v3028_v55, %v4132_v61  ;;  %v2184_v33 = vadd.f32 %v3124_v56, %v4858_v20  ;;  %v1858_v63 = vpop.f32.mrb[15].mxu0  ;;  %v2178_v0 = vpop.f32.mrb[15].mxu1 }
 0x20c   :  { %v1859_v9 = vadd.f32 %v1858_v63, %v4134_v62  ;;  %v2179_v29 = vadd.f32 %v2178_v0, %v4860_v5 }
 0x20d   :  { %2474 = vst.msk [vmem:[%s5587_s6 + $0x38] sm:$0xff] %vm478_vm1, %v1864_v36  ;;  %2538 = vst.msk [vmem:[%s5587_s6 + $0x238] sm:$0xff] %vm478_vm1, %v2184_v33  ;;  %v5040_v63 = vpop.permute.xlu1 %1254  ;;  %v5042_v0 = vpop.permute.xlu0 %1249 }
 0x20e   :  { %2473 = vst.msk [vmem:[%s5587_s6 + $0x30] sm:$0xff] %vm478_vm1, %v1859_v9  ;;  %2537 = vst.msk [vmem:[%s5587_s6 + $0x230] sm:$0xff] %vm478_vm1, %v2179_v29  ;;  %v3031_v61 = vpop.f32.mrb[16].mxu0  ;;  %v3127_v62 = vpop.f32.mrb[16].mxu1 }
 0x20f   :  { %v1874_v20 = vadd.f32 %v3031_v61, %v4142_v1  ;;  %v2194_v5 = vadd.f32 %v3127_v62, %v4862_v35  ;;  %v1868_v30 = vpop.f32.mrb[17].mxu0  ;;  %v2188_v6 = vpop.f32.mrb[17].mxu1 }
 0x210   :  { %v1869_v51 = vadd.f32 %v1868_v30, %v4144_v2  ;;  %v2189_v52 = vadd.f32 %v2188_v6, %v4864_v19 }
 0x211   :  { %2476 = vst.msk [vmem:[%s5587_s6 + $0x48] sm:$0xff] %vm478_vm1, %v1874_v20  ;;  %2540 = vst.msk [vmem:[%s5587_s6 + $0x248] sm:$0xff] %vm478_vm1, %v2194_v5 }
 0x212   :  { %2475 = vst.msk [vmem:[%s5587_s6 + $0x40] sm:$0xff] %vm478_vm1, %v1869_v51  ;;  %2539 = vst.msk [vmem:[%s5587_s6 + $0x240] sm:$0xff] %vm478_vm1, %v2189_v52  ;;  %v3034_v1 = vpop.f32.mrb[18].mxu0  ;;  %v3130_v2 = vpop.f32.mrb[18].mxu1 }
 0x213   :  { %v1884_v19 = vadd.f32 %v3034_v1, %v4158_v7  ;;  %v2204_v35 = vadd.f32 %v3130_v2, %v4866_v42  ;;  %v1878_v60 = vpop.f32.mrb[19].mxu0  ;;  %v2198_v3 = vpop.f32.mrb[19].mxu1 }
 0x214   :  { %v1879_v34 = vadd.f32 %v1878_v60, %v4160_v8  ;;  %v2199_v57 = vadd.f32 %v2198_v3, %v4868_v41  ;;  %v5084_v51 = vpop.permute.xlu1 %1264  ;;  %v5086_v52 = vpop.permute.xlu0 %1259 }
 0x215   :  { %2478 = vst.msk [vmem:[%s5587_s6 + $0x58] sm:$0xff] %vm478_vm1, %v1884_v19  ;;  %2542 = vst.msk [vmem:[%s5587_s6 + $0x258] sm:$0xff] %vm478_vm1, %v2204_v35 }
 0x216   :  { %2477 = vst.msk [vmem:[%s5587_s6 + $0x50] sm:$0xff] %vm478_vm1, %v1879_v34  ;;  %2541 = vst.msk [vmem:[%s5587_s6 + $0x250] sm:$0xff] %vm478_vm1, %v2199_v57  ;;  %v3037_v7 = vpop.f32.mrb[20].mxu0  ;;  %v3133_v8 = vpop.f32.mrb[20].mxu1 }
 0x217   :  { %v1894_v41 = vadd.f32 %v3037_v7, %v4168_v11  ;;  %v2214_v42 = vadd.f32 %v3133_v8, %v4870_v16  ;;  %v1888_v55 = vpop.f32.mrb[21].mxu0  ;;  %v2208_v56 = vpop.f32.mrb[21].mxu1 }
 0x218   :  { %v1889_v36 = vadd.f32 %v1888_v55, %v4170_v12  ;;  %v2209_v33 = vadd.f32 %v2208_v56, %v4872_v15  ;;  %v5128_v7 = vpop.permute.xlu1 %1274  ;;  %v5130_v8 = vpop.permute.xlu0 %1269 }
 0x219   :  { %2480 = vst.msk [vmem:[%s5587_s6 + $0x68] sm:$0xff] %vm478_vm1, %v1894_v41  ;;  %2544 = vst.msk [vmem:[%s5587_s6 + $0x268] sm:$0xff] %vm478_vm1, %v2214_v42 }
 0x21a   :  { %2479 = vst.msk [vmem:[%s5587_s6 + $0x60] sm:$0xff] %vm478_vm1, %v1889_v36  ;;  %2543 = vst.msk [vmem:[%s5587_s6 + $0x260] sm:$0xff] %vm478_vm1, %v2209_v33  ;;  %v3040_v11 = vpop.f32.mrb[22].mxu0  ;;  %v3136_v12 = vpop.f32.mrb[22].mxu1 }
 0x21b   :  { %v1904_v15 = vadd.f32 %v3040_v11, %v4184_v17  ;;  %v2224_v16 = vadd.f32 %v3136_v12, %v4874_v54  ;;  %v1898_v9 = vpop.f32.mrb[23].mxu0  ;;  %v2218_v29 = vpop.f32.mrb[23].mxu1  ;;  %v5630_v11 = vld [vmem:[#allocation2_spill] sm:$0xff] }
 0x21c   :  { %v1899_v61 = vadd.f32 %v1898_v9, %v4186_v18  ;;  %v2219_v62 = vadd.f32 %v2218_v29, %v4876_v10  ;;  %v5172_v9 = vpop.permute.xlu1 %1284  ;;  %v5174_v29 = vpop.permute.xlu0 %1279 }
 0x21d   :  { %2482 = vst.msk [vmem:[%s5587_s6 + $0x78] sm:$0xff] %vm478_vm1, %v1904_v15  ;;  %2546 = vst.msk [vmem:[%s5587_s6 + $0x278] sm:$0xff] %vm478_vm1, %v2224_v16  ;;  %v5631_v15 = vld [vmem:[#allocation41_spill] sm:$0xff] }
 0x21e   :  { %2481 = vst.msk [vmem:[%s5587_s6 + $0x70] sm:$0xff] %vm478_vm1, %v1899_v61  ;;  %2545 = vst.msk [vmem:[%s5587_s6 + $0x270] sm:$0xff] %vm478_vm1, %v2219_v62  ;;  %v3043_v17 = vpop.f32.mrb[24].mxu0  ;;  %v3139_v18 = vpop.f32.mrb[24].mxu1  ;;  %v5632_v61 = vld [vmem:[#allocation3_spill] sm:$0xff] }
 0x21f   :  { %v1914_v54 = vadd.f32 %v3043_v17, %v4194_v21  ;;  %v2234_v10 = vadd.f32 %v3139_v18, %v4878_v53  ;;  %v1908_v20 = vpop.f32.mrb[25].mxu0  ;;  %v2228_v5 = vpop.f32.mrb[25].mxu1  ;;  %v5633_v17 = vld [vmem:[#allocation42_spill] sm:$0xff] }
 0x220   :  { %v1909_v30 = vadd.f32 %v1908_v20, %v4196_v22  ;;  %v2229_v6 = vadd.f32 %v2228_v5, %v4880_v50  ;;  %v5634_v20 = vld [vmem:[#allocation4_spill] sm:$0xff] }
 0x221   :  { %2484 = vst.msk [vmem:[%s5587_s6 + $0x88] sm:$0xff] %vm478_vm1, %v1914_v54  ;;  %2548 = vst.msk [vmem:[%s5587_s6 + $0x288] sm:$0xff] %vm478_vm1, %v2234_v10 }
 0x222   :  { %2483 = vst.msk [vmem:[%s5587_s6 + $0x80] sm:$0xff] %vm478_vm1, %v1909_v30  ;;  %2547 = vst.msk [vmem:[%s5587_s6 + $0x280] sm:$0xff] %vm478_vm1, %v2229_v6  ;;  %v3046_v21 = vpop.f32.mrb[26].mxu0  ;;  %v3142_v22 = vpop.f32.mrb[26].mxu1  ;;  %v5635_v30 = vld [vmem:[#allocation43_spill] sm:$0xff] }
 0x223   :  { %v1924_v50 = vadd.f32 %v3046_v21, %v4210_v27  ;;  %v2244_v53 = vadd.f32 %v3142_v22, %v4882_v24  ;;  %v1918_v1 = vpop.f32.mrb[27].mxu0  ;;  %v2238_v2 = vpop.f32.mrb[27].mxu1 }
 0x224   :  { %v1919_v19 = vadd.f32 %v1918_v1, %v4212_v28  ;;  %v2239_v35 = vadd.f32 %v2238_v2, %v4884_v23 }
 0x225   :  { %2486 = vst.msk [vmem:[%s5587_s6 + $0x98] sm:$0xff] %vm478_vm1, %v1924_v50  ;;  %2550 = vst.msk [vmem:[%s5587_s6 + $0x298] sm:$0xff] %vm478_vm1, %v2244_v53  ;;  %v5636_v50 = vld [vmem:[#allocation5_spill] sm:$0xff] }
 0x226   :  { %2485 = vst.msk [vmem:[%s5587_s6 + $0x90] sm:$0xff] %vm478_vm1, %v1919_v19  ;;  %2549 = vst.msk [vmem:[%s5587_s6 + $0x290] sm:$0xff] %vm478_vm1, %v2239_v35  ;;  %v3049_v27 = vpop.f32.mrb[28].mxu0  ;;  %v3145_v28 = vpop.f32.mrb[28].mxu1  ;;  %v5637_v35 = vld [vmem:[#allocation6_spill] sm:$0xff] }
 0x227   :  { %v1934_v23 = vadd.f32 %v3049_v27, %v4220_v31  ;;  %v2254_v24 = vadd.f32 %v3145_v28, %v4886_v40  ;;  %v1928_v60 = vpop.f32.mrb[29].mxu0  ;;  %v2248_v3 = vpop.f32.mrb[29].mxu1 }
 0x228   :  { %v1929_v34 = vadd.f32 %v1928_v60, %v4222_v32  ;;  %v2249_v57 = vadd.f32 %v2248_v3, %v4888_v4  ;;  %v5638_v60 = vld [vmem:[#allocation7_spill] sm:$0xff] }
 0x229   :  { %2488 = vst.msk [vmem:[%s5587_s6 + $0xa8] sm:$0xff] %vm478_vm1, %v1934_v23  ;;  %2552 = vst.msk [vmem:[%s5587_s6 + $0x2a8] sm:$0xff] %vm478_vm1, %v2254_v24  ;;  %v5216_v23 = vpop.permute.xlu1 %1294  ;;  %v5218_v24 = vpop.permute.xlu0 %1289 }
 0x22a   :  { %2487 = vst.msk [vmem:[%s5587_s6 + $0xa0] sm:$0xff] %vm478_vm1, %v1929_v34  ;;  %2551 = vst.msk [vmem:[%s5587_s6 + $0x2a0] sm:$0xff] %vm478_vm1, %v2249_v57  ;;  %v3052_v31 = vpop.f32.mrb[30].mxu0  ;;  %v3148_v32 = vpop.f32.mrb[30].mxu1 }
 0x22b   :  { %v1944_v4 = vadd.f32 %v3052_v31, %v4236_v37  ;;  %v2264_v40 = vadd.f32 %v3148_v32, %v4890_v46  ;;  %v1938_v41 = vpop.f32.mrb[31].mxu0  ;;  %v2258_v42 = vpop.f32.mrb[31].mxu1  ;;  %v5639_v32 = vld [vmem:[#allocation8_spill] sm:$0xff] }
 0x22c   :  { %v1939_v55 = vadd.f32 %v1938_v41, %v4238_v38  ;;  %v2259_v56 = vadd.f32 %v2258_v42, %v4892_v49  ;;  %v5640_v41 = vld [vmem:[#allocation9_spill] sm:$0xff] }
 0x22d   :  { %2490 = vst.msk [vmem:[%s5587_s6 + $0xb8] sm:$0xff] %vm478_vm1, %v1944_v4  ;;  %2554 = vst.msk [vmem:[%s5587_s6 + $0x2b8] sm:$0xff] %vm478_vm1, %v2264_v40 }
 0x22e   :  { %2489 = vst.msk [vmem:[%s5587_s6 + $0xb0] sm:$0xff] %vm478_vm1, %v1939_v55  ;;  %2553 = vst.msk [vmem:[%s5587_s6 + $0x2b0] sm:$0xff] %vm478_vm1, %v2259_v56  ;;  %v3055_v37 = vpop.f32.mrb[32].mxu0  ;;  %v3151_v38 = vpop.f32.mrb[32].mxu1 }
 0x22f   :  { %v1954_v49 = vadd.f32 %v3055_v37, %v4246_v43  ;;  %v2274_v46 = vadd.f32 %v3151_v38, %v4894_v26  ;;  %v1948_v36 = vpop.f32.mrb[33].mxu0  ;;  %v2268_v33 = vpop.f32.mrb[33].mxu1  ;;  %v5641_v38 = vld [vmem:[#allocation10_spill] sm:$0xff] }
 0x230   :  { %v1949_v12 = vadd.f32 %v1948_v36, %v5630_v11  ;;  %v2269_v16 = vadd.f32 %v2268_v33, %v5631_v15  ;;  %v5260_v36 = vpop.permute.xlu1 %1304  ;;  %v5262_v33 = vpop.permute.xlu0 %1299  ;;  %v5642_v11 = vld [vmem:[#allocation11_spill] sm:$0xff] }
 0x231   :  { %2492 = vst.msk [vmem:[%s5587_s6 + $0xc8] sm:$0xff] %vm478_vm1, %v1954_v49  ;;  %2556 = vst.msk [vmem:[%s5587_s6 + $0x2c8] sm:$0xff] %vm478_vm1, %v2274_v46 }
 0x232   :  { %2491 = vst.msk [vmem:[%s5587_s6 + $0xc0] sm:$0xff] %vm478_vm1, %v1949_v12  ;;  %2555 = vst.msk [vmem:[%s5587_s6 + $0x2c0] sm:$0xff] %vm478_vm1, %v2269_v16  ;;  %v3058_v43 = vpop.f32.mrb[34].mxu0  ;;  %v3154_v26 = vpop.f32.mrb[34].mxu1 }
 0x233   :  { %v1964_v62 = vadd.f32 %v3058_v43, %v5632_v61  ;;  %v2284_v18 = vadd.f32 %v3154_v26, %v5633_v17  ;;  %v1958_v54 = vpop.f32.mrb[35].mxu0  ;;  %v2278_v10 = vpop.f32.mrb[35].mxu1  ;;  %v5643_v26 = vld [vmem:[#allocation12_spill] sm:$0xff]  ;;  %v5644_v17 = vld [vmem:[#allocation13_spill] sm:$0xff] }
 0x234   :  { %v1959_v5 = vadd.f32 %v1958_v54, %v5634_v20  ;;  %v2279_v6 = vadd.f32 %v2278_v10, %v5635_v30 }
 0x235   :  { %2494 = vst.msk [vmem:[%s5587_s6 + $0xd8] sm:$0xff] %vm478_vm1, %v1964_v62  ;;  %2558 = vst.msk [vmem:[%s5587_s6 + $0x2d8] sm:$0xff] %vm478_vm1, %v2284_v18 }
 0x236   :  { %2493 = vst.msk [vmem:[%s5587_s6 + $0xd0] sm:$0xff] %vm478_vm1, %v1959_v5  ;;  %2557 = vst.msk [vmem:[%s5587_s6 + $0x2d0] sm:$0xff] %vm478_vm1, %v2279_v6  ;;  %v3061_v21 = vpop.f32.mrb[36].mxu0  ;;  %v3157_v22 = vpop.f32.mrb[36].mxu1  ;;  %v5645_v5 = vld [vmem:[#allocation14_spill] sm:$0xff] }
 0x237   :  { %v1974_v53 = vadd.f32 %v3061_v21, %v5636_v50  ;;  %v2294_v1 = vadd.f32 %v3157_v22, %v4902_v59  ;;  %v1968_v2 = vpop.f32.mrb[37].mxu0  ;;  %v2288_v19 = vpop.f32.mrb[37].mxu1  ;;  %v5646_v50 = vld [vmem:[#allocation15_spill] sm:$0xff] }
 0x238   :  { %v1969_v27 = vadd.f32 %v1968_v2, %v5637_v35  ;;  %v2289_v28 = vadd.f32 %v2288_v19, %v4904_v58  ;;  %v5304_v21 = vpop.permute.xlu1 %1314  ;;  %v5306_v22 = vpop.permute.xlu0 %1309  ;;  %v5647_v35 = vld [vmem:[#allocation16_spill] sm:$0xff] }
 0x239   :  { %2496 = vst.msk [vmem:[%s5587_s6 + $0xe8] sm:$0xff] %vm478_vm1, %v1974_v53  ;;  %2560 = vst.msk [vmem:[%s5587_s6 + $0x2e8] sm:$0xff] %vm478_vm1, %v2294_v1 }
 0x23a   :  { %2495 = vst.msk [vmem:[%s5587_s6 + $0xe0] sm:$0xff] %vm478_vm1, %v1969_v27  ;;  %2559 = vst.msk [vmem:[%s5587_s6 + $0x2e0] sm:$0xff] %vm478_vm1, %v2289_v28  ;;  %v3064_v58 = vpop.f32.mrb[38].mxu0  ;;  %v3160_v59 = vpop.f32.mrb[38].mxu1 }
 0x23b   :  { %v1984_v3 = vadd.f32 %v3064_v58, %v5638_v60  ;;  %v2304_v34 = vadd.f32 %v3160_v59, %v4906_v48  ;;  %v1978_v57 = vpop.f32.mrb[39].mxu0  ;;  %v2298_v31 = vpop.f32.mrb[39].mxu1  ;;  %v5648_v58 = vld [vmem:[#allocation17_spill] sm:$0xff] }
 0x23c   :  { %v1979_v4 = vadd.f32 %v1978_v57, %v5639_v32  ;;  %v2299_v40 = vadd.f32 %v2298_v31, %v4908_v47  ;;  %v5649_v57 = vld [vmem:[#allocation18_spill] sm:$0xff] }
 0x23d   :  { %2498 = vst.msk [vmem:[%s5587_s6 + $0xf8] sm:$0xff] %vm478_vm1, %v1984_v3  ;;  %2562 = vst.msk [vmem:[%s5587_s6 + $0x2f8] sm:$0xff] %vm478_vm1, %v2304_v34 }
 0x23e   :  { %2497 = vst.msk [vmem:[%s5587_s6 + $0xf0] sm:$0xff] %vm478_vm1, %v1979_v4  ;;  %2561 = vst.msk [vmem:[%s5587_s6 + $0x2f0] sm:$0xff] %vm478_vm1, %v2299_v40  ;;  %v3067_v47 = vpop.f32.mrb[40].mxu0  ;;  %v3163_v48 = vpop.f32.mrb[40].mxu1 }
 0x23f   :  { %v1994_v42 = vadd.f32 %v3067_v47, %v5640_v41  ;;  %v2314_v55 = vadd.f32 %v3163_v48, %v4912_v44  ;;  %v1988_v56 = vpop.f32.mrb[41].mxu0  ;;  %v2308_v37 = vpop.f32.mrb[41].mxu1  ;;  %v5650_v47 = vld [vmem:[#allocation19_spill] sm:$0xff] }
 0x240   :  { %v1989_v49 = vadd.f32 %v1988_v56, %v5641_v38  ;;  %v2309_v46 = vadd.f32 %v2308_v37, %v4914_v13  ;;  %v5348_v4 = vpop.permute.xlu1 %1324  ;;  %v5350_v40 = vpop.permute.xlu0 %1319  ;;  %v5651_v56 = vld [vmem:[#allocation20_spill] sm:$0xff] }
 0x241   :  { %2500 = vst.msk [vmem:[%s5587_s6 + $0x108] sm:$0xff] %vm478_vm1, %v1994_v42  ;;  %2564 = vst.msk [vmem:[%s5587_s6 + $0x308] sm:$0xff] %vm478_vm1, %v2314_v55 }
 0x242   :  { %2499 = vst.msk [vmem:[%s5587_s6 + $0x100] sm:$0xff] %vm478_vm1, %v1989_v49  ;;  %2563 = vst.msk [vmem:[%s5587_s6 + $0x300] sm:$0xff] %vm478_vm1, %v2309_v46  ;;  %v3070_v44 = vpop.f32.mrb[42].mxu0  ;;  %v3166_v13 = vpop.f32.mrb[42].mxu1  ;;  %v5652_v49 = vld [vmem:[#allocation21_spill] sm:$0xff] }
 0x243   :  { %v2004_v12 = vadd.f32 %v3070_v44, %v5642_v11  ;;  %v2324_v15 = vadd.f32 %v3166_v13, %v4952_v39  ;;  %v1998_v16 = vpop.f32.mrb[43].mxu0  ;;  %v2318_v43 = vpop.f32.mrb[43].mxu1 }
 0x244   :  { %v1999_v61 = vadd.f32 %v1998_v16, %v5643_v26  ;;  %v2319_v62 = vadd.f32 %v2318_v43, %v4954_v45  ;;  %v1335_v43 = vpop.permute.xlu1 %1334  ;;  %v5392_v26 = vpop.permute.xlu0 %1329 }
 0x245   :  { %2502 = vst.msk [vmem:[%s5587_s6 + $0x118] sm:$0xff] %vm478_vm1, %v2004_v12  ;;  %2566 = vst.msk [vmem:[%s5587_s6 + $0x318] sm:$0xff] %vm478_vm1, %v2324_v15  ;;  %v5653_v12 = vld [vmem:[#allocation22_spill] sm:$0xff] }
 0x246   :  { %2501 = vst.msk [vmem:[%s5587_s6 + $0x110] sm:$0xff] %vm478_vm1, %v1999_v61  ;;  %2565 = vst.msk [vmem:[%s5587_s6 + $0x310] sm:$0xff] %vm478_vm1, %v2319_v62  ;;  %v3073_v39 = vpop.f32.mrb[44].mxu0  ;;  %v3169_v45 = vpop.f32.mrb[44].mxu1  ;;  %v5654_v61 = vld [vmem:[#allocation23_spill] sm:$0xff] }
 0x247   :  { %v2014_v18 = vadd.f32 %v3073_v39, %v5644_v17  ;;  %v2334_v54 = vadd.f32 %v3169_v45, %v4996_v14  ;;  %v2008_v10 = vpop.f32.mrb[45].mxu0  ;;  %v2328_v20 = vpop.f32.mrb[45].mxu1 }
 0x248   :  { %v2009_v30 = vadd.f32 %v2008_v10, %v5645_v5  ;;  %v2329_v6 = vadd.f32 %v2328_v20, %v4998_v25  ;;  %v5656_v20 = vld [vmem:[#allocation25_spill] sm:$0xff] }
 0x249   :  { %2504 = vst.msk [vmem:[%s5587_s6 + $0x128] sm:$0xff] %vm478_vm1, %v2014_v18  ;;  %2568 = vst.msk [vmem:[%s5587_s6 + $0x328] sm:$0xff] %vm478_vm1, %v2334_v54  ;;  %v5655_v18 = vld [vmem:[#allocation24_spill] sm:$0xff] }
 0x24a   :  { %2503 = vst.msk [vmem:[%s5587_s6 + $0x120] sm:$0xff] %vm478_vm1, %v2009_v30  ;;  %2567 = vst.msk [vmem:[%s5587_s6 + $0x320] sm:$0xff] %vm478_vm1, %v2329_v6  ;;  %v3076_v14 = vpop.f32.mrb[46].mxu0  ;;  %v3172_v25 = vpop.f32.mrb[46].mxu1 }
 0x24b   :  { %v2024_v53 = vadd.f32 %v3076_v14, %v5646_v50  ;;  %v2344_v1 = vadd.f32 %v3172_v25, %v5040_v63  ;;  %v2018_v2 = vpop.f32.mrb[47].mxu0  ;;  %v2338_v19 = vpop.f32.mrb[47].mxu1  ;;  %v5657_v25 = vld [vmem:[#allocation26_spill] sm:$0xff] }
 0x24c   :  { %v2019_v27 = vadd.f32 %v2018_v2, %v5647_v35  ;;  %v2339_v28 = vadd.f32 %v2338_v19, %v5042_v0  ;;  %v1340_v2 = vpop.permute.xlu0 %1339  ;;  %v5658_v19 = vld [vmem:[#allocation27_spill] sm:$0xff] }
 0x24d   :  { %2506 = vst.msk [vmem:[%s5587_s6 + $0x138] sm:$0xff] %vm478_vm1, %v2024_v53  ;;  %2570 = vst.msk [vmem:[%s5587_s6 + $0x338] sm:$0xff] %vm478_vm1, %v2344_v1  ;;  %v1345_v1 = vpop.permute.xlu1 %1344 }
 0x24e   :  { %2505 = vst.msk [vmem:[%s5587_s6 + $0x130] sm:$0xff] %vm478_vm1, %v2019_v27  ;;  %2569 = vst.msk [vmem:[%s5587_s6 + $0x330] sm:$0xff] %vm478_vm1, %v2339_v28  ;;  %v3079_v63 = vpop.f32.mrb[48].mxu0  ;;  %v3175_v0 = vpop.f32.mrb[48].mxu1 }
 0x24f   :  { %v2034_v59 = vadd.f32 %v3079_v63, %v5648_v58  ;;  %v2354_v60 = vadd.f32 %v3175_v0, %v5084_v51  ;;  %v2028_v3 = vpop.f32.mrb[49].mxu0  ;;  %v2348_v34 = vpop.f32.mrb[49].mxu1  ;;  %v5659_v0 = vld [vmem:[#allocation28_spill] sm:$0xff] }
 0x250   :  { %v2029_v31 = vadd.f32 %v2028_v3, %v5649_v57  ;;  %v2349_v32 = vadd.f32 %v2348_v34, %v5086_v52 }
 0x251   :  { %2508 = vst.msk [vmem:[%s5587_s6 + $0x148] sm:$0xff] %vm478_vm1, %v2034_v59  ;;  %2572 = vst.msk [vmem:[%s5587_s6 + $0x348] sm:$0xff] %vm478_vm1, %v2354_v60  ;;  %v5660_v60 = vld [vmem:[#allocation29_spill] sm:$0xff] }
 0x252   :  { %2507 = vst.msk [vmem:[%s5587_s6 + $0x140] sm:$0xff] %vm478_vm1, %v2029_v31  ;;  %2571 = vst.msk [vmem:[%s5587_s6 + $0x340] sm:$0xff] %vm478_vm1, %v2349_v32  ;;  %v3082_v51 = vpop.f32.mrb[50].mxu0  ;;  %v3178_v52 = vpop.f32.mrb[50].mxu1  ;;  %v5661_v32 = vld [vmem:[#allocation30_spill] sm:$0xff] }
 0x253   :  { %v2044_v48 = vadd.f32 %v3082_v51, %v5650_v47  ;;  %v2364_v41 = vadd.f32 %v3178_v52, %v5128_v7  ;;  %v2038_v42 = vpop.f32.mrb[51].mxu0  ;;  %v2358_v55 = vpop.f32.mrb[51].mxu1 }
 0x254   :  { %v2039_v37 = vadd.f32 %v2038_v42, %v5651_v56  ;;  %v2359_v38 = vadd.f32 %v2358_v55, %v5130_v8  ;;  %v1355_v47 = vpop.permute.xlu1 %1354 }
 0x255   :  { %2510 = vst.msk [vmem:[%s5587_s6 + $0x158] sm:$0xff] %vm478_vm1, %v2044_v48  ;;  %2574 = vst.msk [vmem:[%s5587_s6 + $0x358] sm:$0xff] %vm478_vm1, %v2364_v41  ;;  %v1350_v48 = vpop.permute.xlu0 %1349  ;;  %v5662_v41 = vld [vmem:[#allocation31_spill] sm:$0xff] }
 0x256   :  { %2509 = vst.msk [vmem:[%s5587_s6 + $0x150] sm:$0xff] %vm478_vm1, %v2039_v37  ;;  %2573 = vst.msk [vmem:[%s5587_s6 + $0x350] sm:$0xff] %vm478_vm1, %v2359_v38  ;;  %v3085_v7 = vpop.f32.mrb[52].mxu0  ;;  %v3181_v8 = vpop.f32.mrb[52].mxu1  ;;  %v5663_v38 = vld [vmem:[#allocation32_spill] sm:$0xff] }
 0x257   :  { %v2054_v46 = vadd.f32 %v3085_v7, %v5652_v49  ;;  %v2374_v44 = vadd.f32 %v3181_v8, %v5172_v9  ;;  %v2048_v13 = vpop.f32.mrb[53].mxu0  ;;  %v2368_v11 = vpop.f32.mrb[53].mxu1 }
 0x258   :  { %v2049_v15 = vadd.f32 %v2048_v13, %v5653_v12  ;;  %v2369_v16 = vadd.f32 %v2368_v11, %v5174_v29 }
 0x259   :  { %2512 = vst.msk [vmem:[%s5587_s6 + $0x168] sm:$0xff] %vm478_vm1, %v2054_v46  ;;  %2576 = vst.msk [vmem:[%s5587_s6 + $0x368] sm:$0xff] %vm478_vm1, %v2374_v44  ;;  %v5664_v44 = vld [vmem:[#allocation33_spill] sm:$0xff] }
 0x25a   :  { %2511 = vst.msk [vmem:[%s5587_s6 + $0x160] sm:$0xff] %vm478_vm1, %v2049_v15  ;;  %2575 = vst.msk [vmem:[%s5587_s6 + $0x360] sm:$0xff] %vm478_vm1, %v2369_v16  ;;  %v3088_v9 = vpop.f32.mrb[54].mxu0  ;;  %v3184_v29 = vpop.f32.mrb[54].mxu1  ;;  %v5665_v16 = vld [vmem:[#allocation34_spill] sm:$0xff] }
 0x25b   :  { %v2064_v62 = vadd.f32 %v3088_v9, %v5654_v61  ;;  %v2384_v39 = vadd.f32 %v3184_v29, %v5216_v23  ;;  %v2058_v45 = vpop.f32.mrb[55].mxu0  ;;  %v2378_v17 = vpop.f32.mrb[55].mxu1 }
 0x25c   :  { %v2059_v54 = vadd.f32 %v2058_v45, %v5655_v18  ;;  %v2379_v10 = vadd.f32 %v2378_v17, %v5218_v24  ;;  %v1365_v9 = vpop.permute.xlu1 %1364  ;;  %v1360_v29 = vpop.permute.xlu0 %1359 }
 0x25d   :  { %2514 = vst.msk [vmem:[%s5587_s6 + $0x178] sm:$0xff] %vm478_vm1, %v2064_v62  ;;  %2578 = vst.msk [vmem:[%s5587_s6 + $0x378] sm:$0xff] %vm478_vm1, %v2384_v39  ;;  %v5666_v39 = vld [vmem:[#allocation35_spill] sm:$0xff] }
 0x25e   :  { %2513 = vst.msk [vmem:[%s5587_s6 + $0x170] sm:$0xff] %vm478_vm1, %v2059_v54  ;;  %2577 = vst.msk [vmem:[%s5587_s6 + $0x370] sm:$0xff] %vm478_vm1, %v2379_v10  ;;  %v3091_v23 = vpop.f32.mrb[56].mxu0  ;;  %v3187_v24 = vpop.f32.mrb[56].mxu1  ;;  %v5667_v10 = vld [vmem:[#allocation36_spill] sm:$0xff] }
 0x25f   :  { %v2074_v5 = vadd.f32 %v3091_v23, %v5656_v20  ;;  %v2394_v30 = vadd.f32 %v3187_v24, %v5260_v36  ;;  %v2068_v6 = vpop.f32.mrb[57].mxu0  ;;  %v2388_v14 = vpop.f32.mrb[57].mxu1 }
 0x260   :  { %v2069_v50 = vadd.f32 %v2068_v6, %v5657_v25  ;;  %v2389_v53 = vadd.f32 %v2388_v14, %v5262_v33 }
 0x261   :  { %2516 = vst.msk [vmem:[%s5587_s6 + $0x188] sm:$0xff] %vm478_vm1, %v2074_v5  ;;  %2580 = vst.msk [vmem:[%s5587_s6 + $0x388] sm:$0xff] %vm478_vm1, %v2394_v30  ;;  %v5668_v30 = vld [vmem:[#allocation37_spill] sm:$0xff] }
 0x262   :  { %2515 = vst.msk [vmem:[%s5587_s6 + $0x180] sm:$0xff] %vm478_vm1, %v2069_v50  ;;  %2579 = vst.msk [vmem:[%s5587_s6 + $0x380] sm:$0xff] %vm478_vm1, %v2389_v53  ;;  %v3094_v36 = vpop.f32.mrb[58].mxu0  ;;  %v3190_v33 = vpop.f32.mrb[58].mxu1  ;;  %v5669_v53 = vld [vmem:[#allocation38_spill] sm:$0xff] }
 0x263   :  { %v2084_v35 = vadd.f32 %v3094_v36, %v5658_v19  ;;  %v2404_v27 = vadd.f32 %v3190_v33, %v5304_v21  ;;  %v2078_v28 = vpop.f32.mrb[59].mxu0  ;;  %v2398_v63 = vpop.f32.mrb[59].mxu1 }
 0x264   :  { %v2079_v58 = vadd.f32 %v2078_v28, %v5659_v0  ;;  %v2399_v59 = vadd.f32 %v2398_v63, %v5306_v22  ;;  %v1375_v36 = vpop.permute.xlu1 %1374  ;;  %v1370_v33 = vpop.permute.xlu0 %1369 }
 0x265   :  { %2518 = vst.msk [vmem:[%s5587_s6 + $0x198] sm:$0xff] %vm478_vm1, %v2084_v35  ;;  %2582 = vst.msk [vmem:[%s5587_s6 + $0x398] sm:$0xff] %vm478_vm1, %v2404_v27  ;;  %v5670_v27 = vld [vmem:[#allocation39_spill] sm:$0xff] }
 0x266   :  { %2517 = vst.msk [vmem:[%s5587_s6 + $0x190] sm:$0xff] %vm478_vm1, %v2079_v58  ;;  %2581 = vst.msk [vmem:[%s5587_s6 + $0x390] sm:$0xff] %vm478_vm1, %v2399_v59  ;;  %v3097_v21 = vpop.f32.mrb[60].mxu0  ;;  %v3193_v22 = vpop.f32.mrb[60].mxu1  ;;  %v5671_v59 = vld [vmem:[#allocation40_spill] sm:$0xff] }
 0x267   :  { %v2094_v3 = vadd.f32 %v3097_v21, %v5660_v60  ;;  %v2414_v34 = vadd.f32 %v3193_v22, %v5348_v4  ;;  %v2088_v57 = vpop.f32.mrb[61].mxu0  ;;  %v2408_v31 = vpop.f32.mrb[61].mxu1 }
 0x268   :  { %v2089_v51 = vadd.f32 %v2088_v57, %v5661_v32  ;;  %v2409_v52 = vadd.f32 %v2408_v31, %v5350_v40 }
 0x269   :  { %2520 = vst.msk [vmem:[%s5587_s6 + $0x1a8] sm:$0xff] %vm478_vm1, %v2094_v3  ;;  %2584 = vst.msk [vmem:[%s5587_s6 + $0x3a8] sm:$0xff] %vm478_vm1, %v2414_v34 }
 0x26a   :  { %2519 = vst.msk [vmem:[%s5587_s6 + $0x1a0] sm:$0xff] %vm478_vm1, %v2089_v51  ;;  %2583 = vst.msk [vmem:[%s5587_s6 + $0x3a0] sm:$0xff] %vm478_vm1, %v2409_v52  ;;  %v3100_v4 = vpop.f32.mrb[62].mxu0  ;;  %v3196_v40 = vpop.f32.mrb[62].mxu1 }
 0x26b   :  { %v2104_v42 = vadd.f32 %v3100_v4, %v5662_v41  ;;  %v2424_v55 = vadd.f32 %v3196_v40, %v1335_v43  ;;  %v2098_v56 = vpop.f32.mrb[63].mxu0  ;;  %v2418_v37 = vpop.f32.mrb[63].mxu1 }
 0x26c   :  { %v2099_v7 = vadd.f32 %v2098_v56, %v5663_v38  ;;  %v2419_v8 = vadd.f32 %v2418_v37, %v5392_v26 }
 0x26d   :  { %2522 = vst.msk [vmem:[%s5587_s6 + $0x1b8] sm:$0xff] %vm478_vm1, %v2104_v42  ;;  %2586 = vst.msk [vmem:[%s5587_s6 + $0x3b8] sm:$0xff] %vm478_vm1, %v2424_v55 }
 0x26e   :  { %2521 = vst.msk [vmem:[%s5587_s6 + $0x1b0] sm:$0xff] %vm478_vm1, %v2099_v7  ;;  %2585 = vst.msk [vmem:[%s5587_s6 + $0x3b0] sm:$0xff] %vm478_vm1, %v2419_v8  ;;  %v3103_v49 = vpop.f32.mrb[64].mxu0  ;;  %v3199_v46 = vpop.f32.mrb[64].mxu1 }
 0x26f   :  { %v2114_v13 = vadd.f32 %v3103_v49, %v5664_v44  ;;  %v2434_v11 = vadd.f32 %v3199_v46, %v1345_v1  ;;  %v2108_v12 = vpop.f32.mrb[65].mxu0  ;;  %v2428_v15 = vpop.f32.mrb[65].mxu1 }
 0x270   :  { %v2109_v43 = vadd.f32 %v2108_v12, %v5665_v16  ;;  %v2429_v26 = vadd.f32 %v2428_v15, %v1340_v2 }
 0x271   :  { %2524 = vst.msk [vmem:[%s5587_s6 + $0x1c8] sm:$0xff] %vm478_vm1, %v2114_v13  ;;  %2588 = vst.msk [vmem:[%s5587_s6 + $0x3c8] sm:$0xff] %vm478_vm1, %v2434_v11 }
 0x272   :  { %2523 = vst.msk [vmem:[%s5587_s6 + $0x1c0] sm:$0xff] %vm478_vm1, %v2109_v43  ;;  %2587 = vst.msk [vmem:[%s5587_s6 + $0x3c0] sm:$0xff] %vm478_vm1, %v2429_v26  ;;  %v3106_v61 = vpop.f32.mrb[66].mxu0  ;;  %v3202_v62 = vpop.f32.mrb[66].mxu1 }
 0x273   :  { %v2124_v45 = vadd.f32 %v3106_v61, %v5666_v39  ;;  %v2444_v17 = vadd.f32 %v3202_v62, %v1355_v47  ;;  %v2118_v18 = vpop.f32.mrb[67].mxu0  ;;  %v2438_v54 = vpop.f32.mrb[67].mxu1 }
 0x274   :  { %v2119_v23 = vadd.f32 %v2118_v18, %v5667_v10  ;;  %v2439_v24 = vadd.f32 %v2438_v54, %v1350_v48 }
 0x275   :  { %2526 = vst.msk [vmem:[%s5587_s6 + $0x1d8] sm:$0xff] %vm478_vm1, %v2124_v45  ;;  %2590 = vst.msk [vmem:[%s5587_s6 + $0x3d8] sm:$0xff] %vm478_vm1, %v2444_v17 }
 0x276   :  { %2525 = vst.msk [vmem:[%s5587_s6 + $0x1d0] sm:$0xff] %vm478_vm1, %v2119_v23  ;;  %2589 = vst.msk [vmem:[%s5587_s6 + $0x3d0] sm:$0xff] %vm478_vm1, %v2439_v24  ;;  %v3109_v20 = vpop.f32.mrb[68].mxu0  ;;  %v3205_v5 = vpop.f32.mrb[68].mxu1 }
 0x277   :  { %v2134_v6 = vadd.f32 %v3109_v20, %v5668_v30  ;;  %v2454_v14 = vadd.f32 %v3205_v5, %v1365_v9  ;;  %v2128_v25 = vpop.f32.mrb[69].mxu0  ;;  %v2448_v50 = vpop.f32.mrb[69].mxu1 }
 0x278   :  { %v2129_v1 = vadd.f32 %v2128_v25, %v5669_v53  ;;  %v2449_v2 = vadd.f32 %v2448_v50, %v1360_v29 }
 0x279   :  { %2528 = vst.msk [vmem:[%s5587_s6 + $0x1e8] sm:$0xff] %vm478_vm1, %v2134_v6  ;;  %2592 = vst.msk [vmem:[%s5587_s6 + $0x3e8] sm:$0xff] %vm478_vm1, %v2454_v14 }
 0x27a   :  { %2527 = vst.msk [vmem:[%s5587_s6 + $0x1e0] sm:$0xff] %vm478_vm1, %v2129_v1  ;;  %2591 = vst.msk [vmem:[%s5587_s6 + $0x3e0] sm:$0xff] %vm478_vm1, %v2449_v2  ;;  %v3112_v19 = vpop.f32.mrb[70].mxu0  ;;  %v3208_v35 = vpop.f32.mrb[70].mxu1 }
 0x27b   :  { %v2144_v28 = vadd.f32 %v3112_v19, %v5670_v27  ;;  %v2464_v63 = vadd.f32 %v3208_v35, %v1375_v36  ;;  %v2138_v0 = vpop.f32.mrb[71].mxu0  ;;  %v2458_v58 = vpop.f32.mrb[71].mxu1 }
 0x27c   :  { %v2139_v21 = vadd.f32 %v2138_v0, %v5671_v59  ;;  %v2459_v22 = vadd.f32 %v2458_v58, %v1370_v33 }
 0x27d   :  { %2530 = vst.msk [vmem:[%s5587_s6 + $0x1f8] sm:$0xff] %vm478_vm1, %v2144_v28  ;;  %2594 = vst.msk [vmem:[%s5587_s6 + $0x3f8] sm:$0xff] %vm478_vm1, %v2464_v63 }
 0x27e   :  { %2529 = vst.msk [vmem:[%s5587_s6 + $0x1f0] sm:$0xff] %vm478_vm1, %v2139_v21  ;;  %2593 = vst.msk [vmem:[%s5587_s6 + $0x3f0] sm:$0xff] %vm478_vm1, %v2459_v22 }

// kernel: cnn_autoencoder_forward.14
= control target key start
LH: loop header
LB: loop body
LE: loop exit
PB: predicated region body
PF: predicated region fallthrough
CT: control target
= control target key end

     0   :  { %v1306_v3 = vmov 0   ;;  %vm550_vm0 = vcmask 261120   ;;  %s2063_s1 = inlined_call_operand.vmem [shape: f32[4,256,32], index: 1, kind: input, shape index: {}]   ;;  %s2064_s0 = inlined_call_operand.vmem [shape: f32[4,32,256], index: 0, kind: input, shape index: {}]   ;;  %s2065_s2 = inlined_call_operand.vmem [shape: f32[32,1], index: 2, kind: input, shape index: {}]   ;;  %s2066_s3 = inlined_call_operand.vmem [shape: f32[32,1], index: 3, kind: input, shape index: {}]   ;;  %s2067_s4 = inlined_call_operand.vmem [shape: f32[32,1], index: 4, kind: input, shape index: {}]   ;;  %s2068_s5 = inlined_call_operand.vmem [shape: f32[4,32,32], index: 5, kind: output, shape index: {}]  }
   0x1   :  { %v48_v0 = vld [vmem:[%s2063_s1 + $0x80] sm:$0xff]  ;;  %v49_v1 = vld [vmem:[%s2063_s1 + $0x88] sm:$0xff]  ;;  %1296 = vset.pattern.permute.xlu0 %v1306_v3  ;;  %1297 = vset.pattern.permute.xlu1 %v1306_v3  ;;  %v50_v12 = vld [vmem:[%s2063_s1 + $0x90] sm:$0xff] }
   0x2   :  { %v883_v2 = vld [vmem:[%s2063_s1 + $0x180] sm:$0xff]  ;;  %v1167_v4 = vpack.c.bf16 %v49_v1, %v48_v0  ;;  %v884_v5 = vld [vmem:[%s2063_s1 + $0x188] sm:$0xff]  ;;  %v51_v14 = vld [vmem:[%s2063_s1 + $0x98] sm:$0xff] }
   0x3   :  { %v32_v6 = vld [vmem:[%s2063_s1] sm:$0xff]  ;;  %v33_v7 = vld [vmem:[%s2063_s1 + $0x8] sm:$0xff]  ;;  %v1199_v8 = vpack.c.bf16 %v884_v5, %v883_v2  ;;  %v885_v15 = vld [vmem:[%s2063_s1 + $0x190] sm:$0xff]  ;;  %v1171_v17 = vpack.c.bf16 %v51_v14, %v50_v12 }
   0x4   :  { %v1169_v9 = vpack.c.bf16 %v33_v7, %v32_v6  ;;  %v867_v10 = vld [vmem:[%s2063_s1 + $0x100] sm:$0xff]  ;;  %v868_v11 = vld [vmem:[%s2063_s1 + $0x108] sm:$0xff]  ;;  %1168 = vmatprep.subr.bf16.mxu0 %v1167_v4  ;;  %v886_v16 = vld [vmem:[%s2063_s1 + $0x198] sm:$0xff] }
   0x5   :  { %v1201_v13 = vpack.c.bf16 %v868_v11, %v867_v10  ;;  %1200 = vmatprep.subr.bf16.mxu1 %v1199_v8  ;;  %v1203_v18 = vpack.c.bf16 %v886_v16, %v885_v15  ;;  %v34_v19 = vld [vmem:[%s2063_s1 + $0x10] sm:$0xff]  ;;  %v35_v20 = vld [vmem:[%s2063_s1 + $0x18] sm:$0xff]  ;;  %v52_v24 = vld [vmem:[%s2063_s1 + $0xa0] sm:$0xff] }
   0x6   :  { %1170 = vmatpush3.bf16.msra.mxu0 %v1169_v9  ;;  %v869_v21 = vld [vmem:[%s2063_s1 + $0x110] sm:$0xff]  ;;  %v1173_v22 = vpack.c.bf16 %v35_v20, %v34_v19  ;;  %v870_v23 = vld [vmem:[%s2063_s1 + $0x118] sm:$0xff]  ;;  %v53_v25 = vld [vmem:[%s2063_s1 + $0xa8] sm:$0xff] }
   0x7   :  { %1202 = vmatpush3.bf16.msra.mxu1 %v1201_v13  ;;  %1172 = vmatprep.subr.bf16.mxu0 %v1171_v17  ;;  %v1205_v26 = vpack.c.bf16 %v870_v23, %v869_v21  ;;  %v1175_v27 = vpack.c.bf16 %v53_v25, %v52_v24  ;;  %v887_v28 = vld [vmem:[%s2063_s1 + $0x1a0] sm:$0xff]  ;;  %v888_v29 = vld [vmem:[%s2063_s1 + $0x1a8] sm:$0xff]  ;;  %v54_v36 = vld [vmem:[%s2063_s1 + $0xb0] sm:$0xff] }
   0x8   :  { %1204 = vmatprep.subr.bf16.mxu1 %v1203_v18  ;;  %v36_v30 = vld [vmem:[%s2063_s1 + $0x20] sm:$0xff]  ;;  %v1207_v31 = vpack.c.bf16 %v888_v29, %v887_v28  ;;  %v37_v32 = vld [vmem:[%s2063_s1 + $0x28] sm:$0xff]  ;;  %v55_v37 = vld [vmem:[%s2063_s1 + $0xb8] sm:$0xff] }
   0x9   :  { %v871_v33 = vld [vmem:[%s2063_s1 + $0x120] sm:$0xff]  ;;  %v872_v34 = vld [vmem:[%s2063_s1 + $0x128] sm:$0xff]  ;;  %v1177_v35 = vpack.c.bf16 %v37_v32, %v36_v30  ;;  %v889_v38 = vld [vmem:[%s2063_s1 + $0x1b0] sm:$0xff]  ;;  %v1179_v40 = vpack.c.bf16 %v55_v37, %v54_v36 }
   0xa   :  { %1174 = vmatpush3.bf16.msra.mxu0 %v1173_v22  ;;  %v1209_v39 = vpack.c.bf16 %v872_v34, %v871_v33  ;;  %v890_v41 = vld [vmem:[%s2063_s1 + $0x1b8] sm:$0xff]  ;;  %v38_v42 = vld [vmem:[%s2063_s1 + $0x30] sm:$0xff]  ;;  %v56_v47 = vld [vmem:[%s2063_s1 + $0xc0] sm:$0xff] }
   0xb   :  { %1206 = vmatpush3.bf16.msra.mxu1 %v1205_v26  ;;  %1176 = vmatprep.subr.bf16.mxu0 %v1175_v27  ;;  %v39_v43 = vld [vmem:[%s2063_s1 + $0x38] sm:$0xff]  ;;  %v1211_v44 = vpack.c.bf16 %v890_v41, %v889_v38  ;;  %v873_v45 = vld [vmem:[%s2063_s1 + $0x130] sm:$0xff]  ;;  %v57_v48 = vld [vmem:[%s2063_s1 + $0xc8] sm:$0xff] }
   0xc   :  { %1208 = vmatprep.subr.bf16.mxu1 %v1207_v31  ;;  %v874_v46 = vld [vmem:[%s2063_s1 + $0x138] sm:$0xff]  ;;  %v891_v49 = vld [vmem:[%s2063_s1 + $0x1c0] sm:$0xff]  ;;  %v892_v50 = vld [vmem:[%s2063_s1 + $0x1c8] sm:$0xff]  ;;  %v1181_v51 = vpack.c.bf16 %v39_v43, %v38_v42  ;;  %v1183_v53 = vpack.c.bf16 %v57_v48, %v56_v47 }
   0xd   :  { %v1213_v52 = vpack.c.bf16 %v874_v46, %v873_v45  ;;  %v40_v54 = vld [vmem:[%s2063_s1 + $0x40] sm:$0xff]  ;;  %v41_v55 = vld [vmem:[%s2063_s1 + $0x48] sm:$0xff]  ;;  %v1215_v57 = vpack.c.bf16 %v892_v50, %v891_v49  ;;  %v58_v59 = vld [vmem:[%s2063_s1 + $0xd0] sm:$0xff] }
   0xe   :  { %1178 = vmatpush3.bf16.msra.mxu0 %v1177_v35  ;;  %v875_v56 = vld [vmem:[%s2063_s1 + $0x140] sm:$0xff]  ;;  %v876_v58 = vld [vmem:[%s2063_s1 + $0x148] sm:$0xff]  ;;  %v59_v60 = vld [vmem:[%s2063_s1 + $0xd8] sm:$0xff]  ;;  %v1185_v63 = vpack.c.bf16 %v41_v55, %v40_v54 }
   0xf   :  { %1210 = vmatpush3.bf16.msra.mxu1 %v1209_v39  ;;  %1180 = vmatprep.subr.bf16.mxu0 %v1179_v40  ;;  %v893_v61 = vld [vmem:[%s2063_s1 + $0x1d0] sm:$0xff]  ;;  %v894_v62 = vld [vmem:[%s2063_s1 + $0x1d8] sm:$0xff]  ;;  %v1217_v0 = vpack.c.bf16 %v876_v58, %v875_v56  ;;  %v1187_v1 = vpack.c.bf16 %v59_v60, %v58_v59  ;;  %v60_v7 = vld [vmem:[%s2063_s1 + $0xe0] sm:$0xff] }
  0x10   :  { %1212 = vmatprep.subr.bf16.mxu1 %v1211_v44  ;;  %v42_v2 = vld [vmem:[%s2063_s1 + $0x50] sm:$0xff]  ;;  %v43_v3 = vld [vmem:[%s2063_s1 + $0x58] sm:$0xff]  ;;  %v1219_v5 = vpack.c.bf16 %v894_v62, %v893_v61  ;;  %v61_v8 = vld [vmem:[%s2063_s1 + $0xe8] sm:$0xff] }
  0x11   :  { %v877_v4 = vld [vmem:[%s2063_s1 + $0x150] sm:$0xff]  ;;  %v878_v6 = vld [vmem:[%s2063_s1 + $0x158] sm:$0xff]  ;;  %v895_v9 = vld [vmem:[%s2063_s1 + $0x1e0] sm:$0xff]  ;;  %v1189_v11 = vpack.c.bf16 %v43_v3, %v42_v2  ;;  %v1191_v15 = vpack.c.bf16 %v61_v8, %v60_v7 }
  0x12   :  { %1182 = vmatpush3.bf16.msra.mxu0 %v1181_v51  ;;  %v896_v10 = vld [vmem:[%s2063_s1 + $0x1e8] sm:$0xff]  ;;  %v44_v12 = vld [vmem:[%s2063_s1 + $0x60] sm:$0xff]  ;;  %v1221_v14 = vpack.c.bf16 %v878_v6, %v877_v4  ;;  %v62_v21 = vld [vmem:[%s2063_s1 + $0xf0] sm:$0xff] }
  0x13   :  { %1214 = vmatpush3.bf16.msra.mxu1 %v1213_v52  ;;  %1184 = vmatprep.subr.bf16.mxu0 %v1183_v53  ;;  %v45_v13 = vld [vmem:[%s2063_s1 + $0x68] sm:$0xff]  ;;  %v879_v16 = vld [vmem:[%s2063_s1 + $0x160] sm:$0xff]  ;;  %v1223_v19 = vpack.c.bf16 %v896_v10, %v895_v9  ;;  %v63_v22 = vld [vmem:[%s2063_s1 + $0xf8] sm:$0xff] }
  0x14   :  { %1216 = vmatprep.subr.bf16.mxu1 %v1215_v57  ;;  %v25_v17 = vld [vmem:[%s2064_s0 + $0x8] sm:$0xff]  ;;  %v897_v23 = vld [vmem:[%s2063_s1 + $0x1f0] sm:$0xff]  ;;  %v898_v24 = vld [vmem:[%s2063_s1 + $0x1f8] sm:$0xff]  ;;  %v1193_v25 = vpack.c.bf16 %v45_v13, %v44_v12  ;;  %v1195_v27 = vpack.c.bf16 %v63_v22, %v62_v21 }
  0x15   :  { %v860_v18 = vld [vmem:[%s2064_s0 + $0x48] sm:$0xff]  ;;  %148 = vmatprep.mubr.f32.mxu0 %v25_v17  ;;  %v46_v28 = vld [vmem:[%s2063_s1 + $0x70] sm:$0xff]  ;;  %v47_v29 = vld [vmem:[%s2063_s1 + $0x78] sm:$0xff]  ;;  %v1227_v31 = vpack.c.bf16 %v898_v24, %v897_v23 }
  0x16   :  { %1186 = vmatpush3.bf16.msra.mxu0 %v1185_v63  ;;  %v880_v20 = vld [vmem:[%s2063_s1 + $0x168] sm:$0xff]  ;;  %275 = vmatprep.mubr.f32.mxu1 %v860_v18  ;;  %v881_v30 = vld [vmem:[%s2063_s1 + $0x170] sm:$0xff]  ;;  %v882_v32 = vld [vmem:[%s2063_s1 + $0x178] sm:$0xff]  ;;  %v1197_v37 = vpack.c.bf16 %v47_v29, %v46_v28 }
  0x17   :  { %1218 = vmatpush3.bf16.msra.mxu1 %v1217_v0  ;;  %1188 = vmatprep.subr.bf16.mxu0 %v1187_v1  ;;  %v1225_v26 = vpack.c.bf16 %v880_v20, %v879_v16  ;;  %v923_v33 = vld [vmem:[%s2063_s1 + $0x280] sm:$0xff]  ;;  %v924_v34 = vld [vmem:[%s2063_s1 + $0x288] sm:$0xff]  ;;  %v1229_v38 = vpack.c.bf16 %v882_v32, %v881_v30  ;;  %v925_v45 = vld [vmem:[%s2063_s1 + $0x290] sm:$0xff] }
  0x18   :  { %1220 = vmatprep.subr.bf16.mxu1 %v1219_v5  ;;  %v963_v35 = vld [vmem:[%s2063_s1 + $0x380] sm:$0xff]  ;;  %v964_v36 = vld [vmem:[%s2063_s1 + $0x388] sm:$0xff]  ;;  %v1231_v39 = vpack.c.bf16 %v924_v34, %v923_v33  ;;  %v926_v46 = vld [vmem:[%s2063_s1 + $0x298] sm:$0xff] }
  0x19   :  { %v907_v40 = vld [vmem:[%s2063_s1 + $0x200] sm:$0xff]  ;;  %v908_v41 = vld [vmem:[%s2063_s1 + $0x208] sm:$0xff]  ;;  %v1263_v43 = vpack.c.bf16 %v964_v36, %v963_v35  ;;  %v965_v47 = vld [vmem:[%s2063_s1 + $0x390] sm:$0xff]  ;;  %v1235_v53 = vpack.c.bf16 %v926_v46, %v925_v45 }
  0x1a   :  { %1190 = vmatpush3.bf16.msra.mxu0 %v1189_v11  ;;  %v947_v42 = vld [vmem:[%s2063_s1 + $0x300] sm:$0xff]  ;;  %v948_v44 = vld [vmem:[%s2063_s1 + $0x308] sm:$0xff]  ;;  %v966_v48 = vld [vmem:[%s2063_s1 + $0x398] sm:$0xff]  ;;  %v1233_v51 = vpack.c.bf16 %v908_v41, %v907_v40 }
  0x1b   :  { %1222 = vmatpush3.bf16.msra.mxu1 %v1221_v14  ;;  %1192 = vmatprep.subr.bf16.mxu0 %v1191_v15  ;;  %v24_v49 = vld [vmem:[%s2064_s0] sm:$0xff]  ;;  %v1265_v52 = vpack.c.bf16 %v948_v44, %v947_v42  ;;  %v909_v54 = vld [vmem:[%s2063_s1 + $0x210] sm:$0xff]  ;;  %v910_v55 = vld [vmem:[%s2063_s1 + $0x218] sm:$0xff]  ;;  %v1267_v57 = vpack.c.bf16 %v966_v48, %v965_v47 }
  0x1c   :  { %1224 = vmatprep.subr.bf16.mxu1 %v1223_v19  ;;  %v859_v50 = vld [vmem:[%s2064_s0 + $0x40] sm:$0xff]  ;;  %v949_v56 = vld [vmem:[%s2063_s1 + $0x310] sm:$0xff]  ;;  %v950_v58 = vld [vmem:[%s2063_s1 + $0x318] sm:$0xff]  ;;  %v1237_v0 = vpack.c.bf16 %v910_v55, %v909_v54 }
  0x1d   :  { %v927_v59 = vld [vmem:[%s2063_s1 + $0x2a0] sm:$0xff]  ;;  %v928_v60 = vld [vmem:[%s2063_s1 + $0x2a8] sm:$0xff]  ;;  %v27_v63 = vld [vmem:[%s2064_s0 + $0x18] sm:$0xff]  ;;  %v1269_v4 = vpack.c.bf16 %v950_v58, %v949_v56 }
  0x1e   :  { %1194 = vmatpush3.bf16.msra.mxu0 %v1193_v25  ;;  %v967_v61 = vld [vmem:[%s2063_s1 + $0x3a0] sm:$0xff]  ;;  %v968_v62 = vld [vmem:[%s2063_s1 + $0x3a8] sm:$0xff]  ;;  %v862_v2 = vld [vmem:[%s2064_s0 + $0x58] sm:$0xff]  ;;  %v1239_v5 = vpack.c.bf16 %v928_v60, %v927_v59 }
  0x1f   :  { %1226 = vmatpush3.bf16.msra.mxu1 %v1225_v26  ;;  %1196 = vmatprep.subr.bf16.mxu0 %v1195_v27  ;;  %v911_v1 = vld [vmem:[%s2063_s1 + $0x220] sm:$0xff]  ;;  %v26_v3 = vld [vmem:[%s2064_s0 + $0x10] sm:$0xff]  ;;  %v912_v6 = vld [vmem:[%s2063_s1 + $0x228] sm:$0xff]  ;;  %v1271_v9 = vpack.c.bf16 %v968_v62, %v967_v61 }
  0x20   :  { %1228 = vmatprep.subr.bf16.mxu1 %v1227_v31  ;;  %v951_v7 = vld [vmem:[%s2063_s1 + $0x320] sm:$0xff]  ;;  %v861_v8 = vld [vmem:[%s2064_s0 + $0x50] sm:$0xff]  ;;  %v952_v10 = vld [vmem:[%s2063_s1 + $0x328] sm:$0xff]  ;;  %v1241_v16 = vpack.c.bf16 %v912_v6, %v911_v1 }
  0x21   :  { %v929_v11 = vld [vmem:[%s2063_s1 + $0x2b0] sm:$0xff]  ;;  %v930_v12 = vld [vmem:[%s2063_s1 + $0x2b8] sm:$0xff]  ;;  %v29_v15 = vld [vmem:[%s2064_s0 + $0x28] sm:$0xff]  ;;  %v1273_v20 = vpack.c.bf16 %v952_v10, %v951_v7 }
  0x22   :  { %1198 = vmatpush3.bf16.msra.mxu0 %v1197_v37  ;;  %v969_v13 = vld [vmem:[%s2063_s1 + $0x3b0] sm:$0xff]  ;;  %v970_v14 = vld [vmem:[%s2063_s1 + $0x3b8] sm:$0xff]  ;;  %v28_v19 = vld [vmem:[%s2064_s0 + $0x20] sm:$0xff]  ;;  %v1243_v21 = vpack.c.bf16 %v930_v12, %v929_v11 }
  0x23   :  { %1230 = vmatpush3.bf16.msra.mxu1 %v1229_v38  ;;  %1232 = vmatprep.subr.bf16.mxu0 %v1231_v39  ;;  %v913_v17 = vld [vmem:[%s2063_s1 + $0x230] sm:$0xff]  ;;  %v914_v18 = vld [vmem:[%s2063_s1 + $0x238] sm:$0xff]  ;;  %v864_v24 = vld [vmem:[%s2064_s0 + $0x68] sm:$0xff]  ;;  %v1275_v25 = vpack.c.bf16 %v970_v14, %v969_v13 }
  0x24   :  { %1264 = vmatprep.subr.bf16.mxu1 %v1263_v43  ;;  %v953_v22 = vld [vmem:[%s2063_s1 + $0x330] sm:$0xff]  ;;  %v31_v23 = vld [vmem:[%s2064_s0 + $0x38] sm:$0xff]  ;;  %v931_v27 = vld [vmem:[%s2063_s1 + $0x2c0] sm:$0xff]  ;;  %v1245_v32 = vpack.c.bf16 %v914_v18, %v913_v17 }
  0x25   :  { %149 = vmatmul.mubr.f32.vlgmr.msra.gmra.mrb[0].mxu0 %v24_v49  ;;  %v954_v26 = vld [vmem:[%s2063_s1 + $0x338] sm:$0xff]  ;;  %v932_v28 = vld [vmem:[%s2063_s1 + $0x2c8] sm:$0xff]  ;;  %v971_v29 = vld [vmem:[%s2063_s1 + $0x3c0] sm:$0xff] }
  0x26   :  { %276 = vmatmul.mubr.f32.vlgmr.msra.gmra.mrb[0].mxu1 %v859_v50  ;;  %1234 = vmatpush3.bf16.msra.mxu0 %v1233_v51  ;;  %v972_v30 = vld [vmem:[%s2063_s1 + $0x3c8] sm:$0xff]  ;;  %v863_v31 = vld [vmem:[%s2064_s0 + $0x60] sm:$0xff]  ;;  %v30_v33 = vld [vmem:[%s2064_s0 + $0x30] sm:$0xff]  ;;  %v1277_v35 = vpack.c.bf16 %v954_v26, %v953_v22  ;;  %v1247_v36 = vpack.c.bf16 %v932_v28, %v931_v27 }
  0x27   :  { %1266 = vmatpush3.bf16.msra.mxu1 %v1265_v52  ;;  %1236 = vmatprep.subr.bf16.mxu0 %v1235_v53  ;;  %v866_v34 = vld [vmem:[%s2064_s0 + $0x78] sm:$0xff]  ;;  %v915_v37 = vld [vmem:[%s2063_s1 + $0x240] sm:$0xff]  ;;  %v916_v38 = vld [vmem:[%s2063_s1 + $0x248] sm:$0xff]  ;;  %v1279_v40 = vpack.c.bf16 %v972_v30, %v971_v29 }
  0x28   :  { %1268 = vmatprep.subr.bf16.mxu1 %v1267_v57  ;;  %153 = vmatprep.mubr.f32.mxu0 %v27_v63  ;;  %v955_v39 = vld [vmem:[%s2063_s1 + $0x340] sm:$0xff]  ;;  %v956_v41 = vld [vmem:[%s2063_s1 + $0x348] sm:$0xff]  ;;  %v933_v42 = vld [vmem:[%s2063_s1 + $0x2d0] sm:$0xff]  ;;  %v1249_v47 = vpack.c.bf16 %v916_v38, %v915_v37 }
  0x29   :  { %280 = vmatprep.mubr.f32.mxu1 %v862_v2  ;;  %154 = vmatmul.mubr.f32.gmra.mrb[2].mxu0 %v26_v3  ;;  %v934_v43 = vld [vmem:[%s2063_s1 + $0x2d8] sm:$0xff]  ;;  %v973_v44 = vld [vmem:[%s2063_s1 + $0x3d0] sm:$0xff]  ;;  %v900_v48 = vld [vmem:[%s2064_s0 + $0x88] sm:$0xff]  ;;  %v1281_v50 = vpack.c.bf16 %v956_v41, %v955_v39 }
  0x2a   :  { %1238 = vmatpush3.bf16.msra.mxu0 %v1237_v0  ;;  %281 = vmatmul.mubr.f32.gmra.mrb[2].mxu1 %v861_v8  ;;  %v974_v45 = vld [vmem:[%s2063_s1 + $0x3d8] sm:$0xff]  ;;  %v865_v46 = vld [vmem:[%s2064_s0 + $0x70] sm:$0xff]  ;;  %v940_v49 = vld [vmem:[%s2064_s0 + $0xc8] sm:$0xff]  ;;  %v1251_v51 = vpack.c.bf16 %v934_v43, %v933_v42 }
  0x2b   :  { %1270 = vmatpush3.bf16.msra.mxu1 %v1269_v4  ;;  %1240 = vmatprep.subr.bf16.mxu0 %v1239_v5  ;;  %v917_v52 = vld [vmem:[%s2063_s1 + $0x250] sm:$0xff]  ;;  %v918_v53 = vld [vmem:[%s2063_s1 + $0x258] sm:$0xff]  ;;  %v1283_v55 = vpack.c.bf16 %v974_v45, %v973_v44  ;;  %v935_v57 = vld [vmem:[%s2063_s1 + $0x2e0] sm:$0xff] }
  0x2c   :  { %1272 = vmatprep.subr.bf16.mxu1 %v1271_v9  ;;  %158 = vmatprep.mubr.f32.mxu0 %v29_v15  ;;  %v957_v54 = vld [vmem:[%s2063_s1 + $0x350] sm:$0xff]  ;;  %v958_v56 = vld [vmem:[%s2063_s1 + $0x358] sm:$0xff]  ;;  %v936_v58 = vld [vmem:[%s2063_s1 + $0x2e8] sm:$0xff]  ;;  %v1253_v61 = vpack.c.bf16 %v918_v53, %v917_v52 }
  0x2d   :  { %159 = vmatmul.mubr.f32.gmra.mrb[4].mxu0 %v28_v19  ;;  %285 = vmatprep.mubr.f32.mxu1 %v864_v24  ;;  %v975_v59 = vld [vmem:[%s2063_s1 + $0x3e0] sm:$0xff]  ;;  %v976_v60 = vld [vmem:[%s2063_s1 + $0x3e8] sm:$0xff]  ;;  %v1285_v0 = vpack.c.bf16 %v958_v56, %v957_v54  ;;  %v1255_v1 = vpack.c.bf16 %v936_v58, %v935_v57  ;;  %v937_v6 = vld [vmem:[%s2063_s1 + $0x2f0] sm:$0xff] }
  0x2e   :  { %1242 = vmatpush3.bf16.msra.mxu0 %v1241_v16  ;;  %163 = vmatprep.mubr.f32.mxu0 %v31_v23  ;;  %v919_v62 = vld [vmem:[%s2063_s1 + $0x260] sm:$0xff]  ;;  %v920_v63 = vld [vmem:[%s2063_s1 + $0x268] sm:$0xff]  ;;  %v1287_v5 = vpack.c.bf16 %v976_v60, %v975_v59  ;;  %v938_v7 = vld [vmem:[%s2063_s1 + $0x2f8] sm:$0xff] }
  0x2f   :  { %1274 = vmatpush3.bf16.msra.mxu1 %v1273_v20  ;;  %1244 = vmatprep.subr.bf16.mxu0 %v1243_v21  ;;  %v959_v2 = vld [vmem:[%s2063_s1 + $0x360] sm:$0xff]  ;;  %v960_v3 = vld [vmem:[%s2063_s1 + $0x368] sm:$0xff]  ;;  %v22_v8 = vld [vmem:[%s2065_s2 + $0x10] sm:$0xff]  ;;  %v1257_v12 = vpack.c.bf16 %v920_v63, %v919_v62  ;;  %v1259_v15 = vpack.c.bf16 %v938_v7, %v937_v6 }
  0x30   :  { %1276 = vmatprep.subr.bf16.mxu1 %v1275_v25  ;;  %286 = vmatmul.mubr.f32.gmra.mrb[4].mxu1 %v863_v31  ;;  %v20_v4 = vld [vmem:[%s2065_s2] sm:$0xff]  ;;  %v977_v9 = vld [vmem:[%s2063_s1 + $0x3f0] sm:$0xff]  ;;  %v978_v10 = vld [vmem:[%s2063_s1 + $0x3f8] sm:$0xff]  ;;  %v1289_v14 = vpack.c.bf16 %v960_v3, %v959_v2 }
  0x31   :  { %164 = vmatmul.mubr.f32.gmra.mrb[6].mxu0 %v30_v33  ;;  %290 = vmatprep.mubr.f32.mxu1 %v866_v34  ;;  %v21_v11 = vld [vmem:[%s2065_s2 + $0x8] sm:$0xff]  ;;  %v23_v13 = vld [vmem:[%s2065_s2 + $0x18] sm:$0xff]  ;;  %v921_v16 = vld [vmem:[%s2063_s1 + $0x270] sm:$0xff]  ;;  %v1291_v18 = vpack.c.bf16 %v978_v10, %v977_v9 }
  0x32   :  { %1246 = vmatpush3.bf16.msra.mxu0 %v1245_v32  ;;  %402 = vmatprep.mubr.f32.mxu0 %v900_v48  ;;  %v922_v17 = vld [vmem:[%s2063_s1 + $0x278] sm:$0xff]  ;;  %v961_v19 = vld [vmem:[%s2063_s1 + $0x370] sm:$0xff]  ;;  %v899_v23 = vld [vmem:[%s2064_s0 + $0x80] sm:$0xff] }
  0x33   :  { %1278 = vmatpush3.bf16.msra.mxu1 %v1277_v35  ;;  %1248 = vmatprep.subr.bf16.mxu0 %v1247_v36  ;;  %v962_v20 = vld [vmem:[%s2063_s1 + $0x378] sm:$0xff]  ;;  %v1261_v21 = vpack.c.bf16 %v922_v17, %v921_v16  ;;  %v939_v24 = vld [vmem:[%s2064_s0 + $0xc0] sm:$0xff]  ;;  %v901_v27 = vld [vmem:[%s2064_s0 + $0x90] sm:$0xff] }
  0x34   :  { %1280 = vmatprep.subr.bf16.mxu1 %v1279_v40  ;;  %291 = vmatmul.mubr.f32.gmra.mrb[6].mxu1 %v865_v46  ;;  %v1293_v22 = vpack.c.bf16 %v962_v20, %v961_v19  ;;  %v902_v25 = vld [vmem:[%s2064_s0 + $0x98] sm:$0xff]  ;;  %v941_v28 = vld [vmem:[%s2064_s0 + $0xd0] sm:$0xff]  ;;  %v904_v29 = vld [vmem:[%s2064_s0 + $0xa8] sm:$0xff] }
  0x35   :  { %529 = vmatprep.mubr.f32.mxu1 %v940_v49  ;;  %66 = vperm.xlu0 %1296, %v20_v4   ;;  %v942_v26 = vld [vmem:[%s2064_s0 + $0xd8] sm:$0xff]  ;;  %v944_v30 = vld [vmem:[%s2064_s0 + $0xe8] sm:$0xff]  ;;  %v903_v31 = vld [vmem:[%s2064_s0 + $0xa0] sm:$0xff] }
  0x36   :  { %1250 = vmatpush3.bf16.msra.mxu0 %v1249_v47  ;;  %76 = vperm.xlu1 %1297, %v22_v8   ;;  %v943_v32 = vld [vmem:[%s2064_s0 + $0xe0] sm:$0xff]  ;;  %v906_v33 = vld [vmem:[%s2064_s0 + $0xb8] sm:$0xff]  ;;  %v905_v35 = vld [vmem:[%s2064_s0 + $0xb0] sm:$0xff] }
  0x37   :  { %1282 = vmatpush3.bf16.msra.mxu1 %v1281_v50  ;;  %1252 = vmatprep.subr.bf16.mxu0 %v1251_v51  ;;  %v946_v34 = vld [vmem:[%s2064_s0 + $0xf8] sm:$0xff]  ;;  %v945_v36 = vld [vmem:[%s2064_s0 + $0xf0] sm:$0xff] }
  0x38   :  { %1284 = vmatprep.subr.bf16.mxu1 %v1283_v55 }
  0x39   :  { %71 = vperm.xlu0 %1296, %v21_v11  }
  0x3a   :  { %1254 = vmatpush3.bf16.msra.mxu0 %v1253_v61  ;;  %81 = vperm.xlu1 %1297, %v23_v13  }
  0x3b   :  { %1286 = vmatpush3.bf16.msra.mxu1 %v1285_v0  ;;  %1256 = vmatprep.subr.bf16.mxu0 %v1255_v1 }
  0x3c   :  { %1288 = vmatprep.subr.bf16.mxu1 %v1287_v5 }
  0x3e   :  { %1258 = vmatpush3.bf16.msra.mxu0 %v1257_v12 }
  0x3f   :  { %1290 = vmatpush3.bf16.msra.mxu1 %v1289_v14  ;;  %1260 = vmatprep.subr.bf16.mxu0 %v1259_v15 }
  0x40   :  { %1292 = vmatprep.subr.bf16.mxu1 %v1291_v18 }
  0x42   :  { %1262 = vmatpush3.bf16.msra.mxu0 %v1261_v21 }
  0x43   :  { %1294 = vmatpush3.bf16.msra.mxu1 %v1293_v22 }
  0x45   :  { %403 = vmatmul.mubr.f32.vlgmr.msra.gmra.mrb[8].mxu0 %v899_v23 }
  0x46   :  { %530 = vmatmul.mubr.f32.vlgmr.msra.gmra.mrb[8].mxu1 %v939_v24  ;;  %407 = vmatprep.mubr.f32.mxu0 %v902_v25 }
  0x47   :  { %534 = vmatprep.mubr.f32.mxu1 %v942_v26 }
  0x49   :  { %408 = vmatmul.mubr.f32.gmra.mrb[10].mxu0 %v901_v27 }
  0x4a   :  { %535 = vmatmul.mubr.f32.gmra.mrb[10].mxu1 %v941_v28  ;;  %412 = vmatprep.mubr.f32.mxu0 %v904_v29 }
  0x4b   :  { %539 = vmatprep.mubr.f32.mxu1 %v944_v30 }
  0x4d   :  { %413 = vmatmul.mubr.f32.gmra.mrb[12].mxu0 %v903_v31 }
  0x4e   :  { %540 = vmatmul.mubr.f32.gmra.mrb[12].mxu1 %v943_v32  ;;  %417 = vmatprep.mubr.f32.mxu0 %v906_v33 }
  0x4f   :  { %544 = vmatprep.mubr.f32.mxu1 %v946_v34 }
  0x51   :  { %418 = vmatmul.mubr.f32.gmra.mrb[14].mxu0 %v905_v35 }
  0x52   :  { %545 = vmatmul.mubr.f32.gmra.mrb[14].mxu1 %v945_v36 }
  0xb4   :  { %v67_v38 = vpop.permute.xlu0 %66 }
  0xb5   :  { %v1837_v55 = vpop.permute.xlu1 %76 }
  0xb8   :  { %v72_v51 = vpop.permute.xlu0 %71 }
  0xb9   :  { %v82_v5 = vpop.permute.xlu1 %81 }
  0xf8   :  { %v1023_v37 = vpop.f32.mrb[0].mxu0 }
  0xf9   :  { %v1067_v39 = vpop.f32.mrb[0].mxu1  ;;  %v1024_v40 = vpop.f32.mrb[1].mxu0 }
  0xfa   :  { %v1025_v41 = vadd.f32 %v1024_v40, %v1023_v37  ;;  %v1068_v42 = vpop.f32.mrb[1].mxu1 }
  0xfb   :  { %v1069_v43 = vadd.f32 %v1068_v42, %v1067_v39 }
  0xfc   :  { %v1829_v44 = vadd.f32 %v1025_v41, %v67_v38  ;;  %v1026_v45 = vpop.f32.mrb[2].mxu0 }
  0xfd   :  { %v1831_v46 = vadd.f32 %v1069_v43, %v67_v38  ;;  %v1070_v47 = vpop.f32.mrb[2].mxu1  ;;  %v1027_v48 = vpop.f32.mrb[3].mxu0 }
  0xfe   :  { %v551_v49 = vsel %vm550_vm0, %v1829_v44, 0.0  ;;  %v1071_v50 = vpop.f32.mrb[3].mxu1  ;;  %v1028_v52 = vadd.f32 %v1027_v48, %v1026_v45 }
  0xff   :  { %v567_v53 = vsel %vm550_vm0, %v1831_v46, 0.0  ;;  %552 = vadd.xlane.f32.xlu0 %v551_v49  ;;  %v1072_v54 = vadd.f32 %v1071_v50, %v1070_v47 }
 0x100   :  { %568 = vadd.xlane.f32.xlu1 %v567_v53  ;;  %v1839_v56 = vadd.f32 %v1028_v52, %v72_v51  ;;  %v1029_v57 = vpop.f32.mrb[4].mxu0 }
 0x101   :  { %v1030_v58 = vpop.f32.mrb[5].mxu0  ;;  %v1841_v59 = vadd.f32 %v1072_v54, %v72_v51 }
 0x102   :  { %v1031_v60 = vadd.f32 %v1030_v58, %v1029_v57  ;;  %v554_v61 = vsel %vm550_vm0, %v1839_v56, 0.0 }
 0x103   :  { %v570_v62 = vsel %vm550_vm0, %v1841_v59, 0.0  ;;  %v1073_v63 = vpop.f32.mrb[4].mxu1 }
 0x104   :  { %571 = vadd.xlane.f32.xlu0 %v570_v62  ;;  %v1032_v0 = vpop.f32.mrb[6].mxu0  ;;  %v1074_v1 = vpop.f32.mrb[5].mxu1  ;;  %555 = vadd.xlane.f32.xlu1 %v554_v61  ;;  %v1848_v2 = vadd.f32 %v1031_v60, %v1837_v55 }
 0x105   :  { %v1033_v3 = vpop.f32.mrb[7].mxu0  ;;  %v1075_v4 = vadd.f32 %v1074_v1, %v1073_v63 }
 0x106   :  { %v1034_v6 = vadd.f32 %v1033_v3, %v1032_v0  ;;  %v557_v7 = vsel %vm550_vm0, %v1848_v2, 0.0 }
 0x107   :  { %v1853_v8 = vadd.f32 %v1075_v4, %v1837_v55  ;;  %v1076_v9 = vpop.f32.mrb[6].mxu1 }
 0x108   :  { %558 = vadd.xlane.f32.xlu0 %v557_v7  ;;  %v1077_v10 = vpop.f32.mrb[7].mxu1  ;;  %v1855_v11 = vadd.f32 %v1034_v6, %v82_v5 }
 0x109   :  { %v1078_v12 = vadd.f32 %v1077_v10, %v1076_v9  ;;  %v573_v13 = vsel %vm550_vm0, %v1853_v8, 0.0 }
 0x10a   :  { %574 = vadd.xlane.f32.xlu1 %v573_v13  ;;  %v560_v14 = vsel %vm550_vm0, %v1855_v11, 0.0 }
 0x10b   :  { %v1861_v15 = vadd.f32 %v1078_v12, %v82_v5 }
 0x10c   :  { %561 = vadd.xlane.f32.xlu0 %v560_v14 }
 0x10d   :  { %v576_v16 = vsel %vm550_vm0, %v1861_v15, 0.0 }
 0x110   :  { %577 = vadd.xlane.f32.xlu0 %v576_v16 }
 0x118   :  { %v1111_v17 = vpop.f32.mrb[8].mxu0 }
 0x119   :  { %v1155_v18 = vpop.f32.mrb[8].mxu1  ;;  %v1112_v19 = vpop.f32.mrb[9].mxu0 }
 0x11a   :  { %v1113_v20 = vadd.f32 %v1112_v19, %v1111_v17  ;;  %v1156_v21 = vpop.f32.mrb[9].mxu1 }
 0x11b   :  { %v1157_v22 = vadd.f32 %v1156_v21, %v1155_v18 }
 0x11c   :  { %v1865_v23 = vadd.f32 %v1113_v20, %v67_v38  ;;  %v1114_v24 = vpop.f32.mrb[10].mxu0 }
 0x11d   :  { %v1158_v25 = vpop.f32.mrb[10].mxu1  ;;  %v1115_v26 = vpop.f32.mrb[11].mxu0  ;;  %v1867_v27 = vadd.f32 %v1157_v22, %v67_v38 }
 0x11e   :  { %v1116_v28 = vadd.f32 %v1115_v26, %v1114_v24  ;;  %v1159_v29 = vpop.f32.mrb[11].mxu1  ;;  %v583_v30 = vsel %vm550_vm0, %v1865_v23, 0.0 }
 0x11f   :  { %v1160_v31 = vadd.f32 %v1159_v29, %v1158_v25  ;;  %584 = vadd.xlane.f32.xlu1 %v583_v30  ;;  %v599_v38 = vsel %vm550_vm0, %v1867_v27, 0.0 }
 0x120   :  { %v1871_v32 = vadd.f32 %v1116_v28, %v72_v51  ;;  %v1117_v33 = vpop.f32.mrb[12].mxu0 }
 0x121   :  { %v1161_v34 = vpop.f32.mrb[12].mxu1  ;;  %v1118_v35 = vpop.f32.mrb[13].mxu0  ;;  %v1873_v36 = vadd.f32 %v1160_v31, %v72_v51 }
 0x122   :  { %v1119_v37 = vadd.f32 %v1118_v35, %v1117_v33  ;;  %v1162_v39 = vpop.f32.mrb[13].mxu1  ;;  %v586_v40 = vsel %vm550_vm0, %v1871_v32, 0.0 }
 0x123   :  { %v1163_v41 = vadd.f32 %v1162_v39, %v1161_v34  ;;  %600 = vadd.xlane.f32.xlu1 %v599_v38  ;;  %587 = vadd.xlane.f32.xlu0 %v586_v40  ;;  %v602_v52 = vsel %vm550_vm0, %v1873_v36, 0.0 }
 0x124   :  { %v1880_v42 = vadd.f32 %v1119_v37, %v1837_v55  ;;  %v1120_v43 = vpop.f32.mrb[14].mxu0 }
 0x125   :  { %v1164_v45 = vpop.f32.mrb[14].mxu1  ;;  %v1121_v47 = vpop.f32.mrb[15].mxu0  ;;  %v1883_v48 = vadd.f32 %v1163_v41, %v1837_v55 }
 0x126   :  { %v1122_v49 = vadd.f32 %v1121_v47, %v1120_v43  ;;  %v1165_v50 = vpop.f32.mrb[15].mxu1  ;;  %v589_v51 = vsel %vm550_vm0, %v1880_v42, 0.0 }
 0x127   :  { %v1166_v53 = vadd.f32 %v1165_v50, %v1164_v45  ;;  %590 = vadd.xlane.f32.xlu1 %v589_v51  ;;  %603 = vadd.xlane.f32.xlu0 %v602_v52  ;;  %v605_v58 = vsel %vm550_vm0, %v1883_v48, 0.0 }
 0x128   :  { %v1889_v54 = vadd.f32 %v1122_v49, %v82_v5 }
 0x129   :  { %v1891_v57 = vadd.f32 %v1166_v53, %v82_v5 }
 0x12a   :  { %v592_v55 = vsel %vm550_vm0, %v1889_v54, 0.0 }
 0x12b   :  { %606 = vadd.xlane.f32.xlu1 %v605_v58  ;;  %593 = vadd.xlane.f32.xlu0 %v592_v55  ;;  %v608_v60 = vsel %vm550_vm0, %v1891_v57, 0.0 }
 0x12f   :  { %609 = vadd.xlane.f32.xlu0 %v608_v60 }
 0x18c   :  { %v553_v61 = vpop.xlane.xlu0 %552 }
 0x18d   :  { %v569_v63 = vpop.xlane.xlu1 %568 }
 0x18e   :  { %v579_v7 = vadd.f32 %v569_v63, %v553_v61 }
 0x191   :  { %v572_v62 = vpop.xlane.xlu0 %571  ;;  %v556_v1 = vpop.xlane.xlu1 %555 }
 0x192   :  { %v580_v13 = vadd.f32 %v572_v62, %v556_v1 }
 0x195   :  { %v559_v0 = vpop.xlane.xlu0 %558 }
 0x197   :  { %v575_v4 = vpop.xlane.xlu1 %574 }
 0x198   :  { %v581_v20 = vadd.f32 %v575_v4, %v559_v0 }
 0x199   :  { %v562_v3 = vpop.xlane.xlu0 %561 }
 0x19d   :  { %v578_v5 = vpop.xlane.xlu0 %577 }
 0x19e   :  { %v582_v37 = vadd.f32 %v578_v5, %v562_v3 }
 0x1ac   :  { %v585_v6 = vpop.xlane.xlu1 %584 }
 0x1ad   :  { %v595_v9 = vadd.f32 %v585_v6, %v579_v7 }
 0x1b0   :  { %v601_v10 = vpop.xlane.xlu1 %600  ;;  %v588_v12 = vpop.xlane.xlu0 %587 }
 0x1b1   :  { %v611_v14 = vadd.f32 %v601_v10, %v595_v9  ;;  %v596_v17 = vadd.f32 %v588_v12, %v580_v13 }
 0x1b3   :  { %v1899_v16 = vmul.f32 0.0078125, %v611_v14 }
 0x1b4   :  { %v591_v18 = vpop.xlane.xlu1 %590  ;;  %v604_v19 = vpop.xlane.xlu0 %603 }
 0x1b5   :  { %v612_v21 = vadd.f32 %v604_v19, %v596_v17  ;;  %v620_v22 = vsub.f32 %v1829_v44, %v1899_v16  ;;  %v644_v24 = vsub.f32 %v1831_v46, %v1899_v16  ;;  %v597_v25 = vadd.f32 %v591_v18, %v581_v20 }
 0x1b6   :  { %v668_v35 = vsub.f32 %v1865_v23, %v1899_v16  ;;  %v692_v50 = vsub.f32 %v1867_v27, %v1899_v16 }
 0x1b7   :  { %v1905_v26 = vmul.f32 0.0078125, %v612_v21  ;;  %v624_v28 = vmul.f32 %v620_v22, %v620_v22  ;;  %v648_v34 = vmul.f32 %v644_v24, %v644_v24 }
 0x1b8   :  { %v607_v29 = vpop.xlane.xlu1 %606  ;;  %v594_v30 = vpop.xlane.xlu0 %593  ;;  %v672_v49 = vmul.f32 %v668_v35, %v668_v35  ;;  %v696_v60 = vmul.f32 %v692_v50, %v692_v50 }
 0x1b9   :  { %v613_v31 = vadd.f32 %v607_v29, %v597_v25  ;;  %v628_v33 = vsel %vm550_vm0, %v624_v28, 0.0  ;;  %v621_v39 = vsub.f32 %v1839_v56, %v1905_v26  ;;  %v645_v38 = vsub.f32 %v1841_v59, %v1905_v26 }
 0x1ba   :  { %629 = vadd.xlane.f32.xlu1 %v628_v33  ;;  %v598_v40 = vadd.f32 %v594_v30, %v582_v37  ;;  %v652_v47 = vsel %vm550_vm0, %v648_v34, 0.0  ;;  %v669_v58 = vsub.f32 %v1871_v32, %v1905_v26  ;;  %v676_v55 = vsel %vm550_vm0, %v672_v49, 0.0 }
 0x1bb   :  { %v625_v43 = vmul.f32 %v621_v39, %v621_v39  ;;  %v1914_v45 = vmul.f32 0.0078125, %v613_v31  ;;  %v649_v53 = vmul.f32 %v645_v38, %v645_v38  ;;  %v693_v1 = vsub.f32 %v1873_v36, %v1905_v26 }
 0x1bc   :  { %v610_v41 = vpop.xlane.xlu0 %609  ;;  %v673_v0 = vmul.f32 %v669_v58, %v669_v58  ;;  %v700_v3 = vsel %vm550_vm0, %v696_v60, 0.0 }
 0x1bd   :  { %v614_v51 = vadd.f32 %v610_v41, %v598_v40  ;;  %v631_v52 = vsel %vm550_vm0, %v625_v43, 0.0  ;;  %v622_v61 = vsub.f32 %v1848_v2, %v1914_v45  ;;  %v655_v63 = vsel %vm550_vm0, %v649_v53, 0.0 }
 0x1be   :  { %653 = vadd.xlane.f32.xlu1 %v652_v47  ;;  %632 = vadd.xlane.f32.xlu0 %v631_v52  ;;  %v646_v5 = vsub.f32 %v1853_v8, %v1914_v45  ;;  %v679_v6 = vsel %vm550_vm0, %v673_v0, 0.0  ;;  %v697_v7 = vmul.f32 %v693_v1, %v693_v1  ;;  %v670_v13 = vsub.f32 %v1880_v42, %v1914_v45 }
 0x1bf   :  { %v1925_v62 = vmul.f32 0.0078125, %v614_v51  ;;  %v626_v4 = vmul.f32 %v622_v61, %v622_v61  ;;  %v694_v21 = vsub.f32 %v1883_v48, %v1914_v45 }
 0x1c0   :  { %v650_v12 = vmul.f32 %v646_v5, %v646_v5  ;;  %v703_v14 = vsel %vm550_vm0, %v697_v7, 0.0  ;;  %v674_v20 = vmul.f32 %v670_v13, %v670_v13  ;;  %v720_v13 = vld [vmem:[%s2066_s3] sm:$0xff] }
 0x1c1   :  { %v623_v9 = vsub.f32 %v1855_v11, %v1925_v62  ;;  %v634_v10 = vsel %vm550_vm0, %v626_v4, 0.0  ;;  %v647_v18 = vsub.f32 %v1861_v15, %v1925_v62  ;;  %v671_v25 = vsub.f32 %v1889_v54, %v1925_v62 }
 0x1c2   :  { %677 = vadd.xlane.f32.xlu1 %v676_v55  ;;  %656 = vadd.xlane.f32.xlu0 %v655_v63  ;;  %v658_v19 = vsel %vm550_vm0, %v650_v12, 0.0  ;;  %v682_v28 = vsel %vm550_vm0, %v674_v20, 0.0  ;;  %v698_v29 = vmul.f32 %v694_v21, %v694_v21  ;;  %v695_v33 = vsub.f32 %v1891_v57, %v1925_v62 }
 0x1c3   :  { %v627_v17 = vmul.f32 %v623_v9, %v623_v9  ;;  %v651_v24 = vmul.f32 %v647_v18, %v647_v18  ;;  %v675_v31 = vmul.f32 %v671_v25, %v671_v25  ;;  %v721_v25 = vld [vmem:[%s2066_s3 + $0x8] sm:$0xff] }
 0x1c4   :  { %v706_v34 = vsel %vm550_vm0, %v698_v29, 0.0  ;;  %v699_v37 = vmul.f32 %v695_v33, %v695_v33 }
 0x1c5   :  { %v637_v22 = vsel %vm550_vm0, %v627_v17, 0.0  ;;  %v661_v30 = vsel %vm550_vm0, %v651_v24, 0.0  ;;  %v685_v35 = vsel %vm550_vm0, %v675_v31, 0.0 }
 0x1c6   :  { %701 = vadd.xlane.f32.xlu1 %v700_v3  ;;  %680 = vadd.xlane.f32.xlu0 %v679_v6  ;;  %v709_v39 = vsel %vm550_vm0, %v699_v37, 0.0  ;;  %v736_v37 = vld [vmem:[%s2067_s4] sm:$0xff] }
 0x1ca   :  { %635 = vadd.xlane.f32.xlu1 %v634_v10  ;;  %704 = vadd.xlane.f32.xlu0 %v703_v14 }
 0x1ce   :  { %659 = vadd.xlane.f32.xlu1 %v658_v19  ;;  %638 = vadd.xlane.f32.xlu0 %v637_v22 }
 0x1d2   :  { %683 = vadd.xlane.f32.xlu1 %v682_v28  ;;  %662 = vadd.xlane.f32.xlu0 %v661_v30 }
 0x1d6   :  { %707 = vadd.xlane.f32.xlu1 %v706_v34  ;;  %686 = vadd.xlane.f32.xlu0 %v685_v35 }
 0x1da   :  { %710 = vadd.xlane.f32.xlu0 %v709_v39 }
 0x247   :  { %v630_v38 = vpop.xlane.xlu1 %629 }
 0x24b   :  { %v654_v40 = vpop.xlane.xlu1 %653  ;;  %v633_v41 = vpop.xlane.xlu0 %632 }
 0x24c   :  { %v664_v47 = vadd.f32 %v654_v40, %v630_v38  ;;  %v722_v40 = vld [vmem:[%s2066_s3 + $0x10] sm:$0xff] }
 0x24f   :  { %v678_v43 = vpop.xlane.xlu1 %677  ;;  %v657_v49 = vpop.xlane.xlu0 %656 }
 0x250   :  { %v688_v50 = vadd.f32 %v678_v43, %v664_v47  ;;  %v665_v58 = vadd.f32 %v657_v49, %v633_v41  ;;  %v737_v49 = vld [vmem:[%s2067_s4 + $0x8] sm:$0xff] }
 0x253   :  { %v702_v51 = vpop.xlane.xlu1 %701  ;;  %v681_v53 = vpop.xlane.xlu0 %680 }
 0x254   :  { %v712_v52 = vadd.f32 %v702_v51, %v688_v50  ;;  %v689_v60 = vadd.f32 %v681_v53, %v665_v58  ;;  %v723_v51 = vld [vmem:[%s2066_s3 + $0x18] sm:$0xff] }
 0x256   :  { %v716_v55 = vmul.f32 0.0078125, %v712_v52 }
 0x257   :  { %v636_v61 = vpop.xlane.xlu1 %635  ;;  %v705_v0 = vpop.xlane.xlu0 %704 }
 0x258   :  { %v724_v63 = vadd.f32 1e-05, %v716_v55  ;;  %v713_v1 = vadd.f32 %v705_v0, %v689_v60  ;;  %v739_v60 = vld [vmem:[%s2067_s4 + $0x18] sm:$0xff] }
 0x25a   :  { %1298 = vrsqrt.f32 %v724_v63  ;;  %v717_v3 = vmul.f32 0.0078125, %v713_v1 }
 0x25b   :  { %v660_v4 = vpop.xlane.xlu1 %659  ;;  %v639_v5 = vpop.xlane.xlu0 %638 }
 0x25c   :  { %v725_v6 = vadd.f32 1e-05, %v717_v3  ;;  %v666_v9 = vadd.f32 %v660_v4, %v636_v61 }
 0x25e   :  { %1300 = vrsqrt.f32 %v725_v6 }
 0x25f   :  { %v684_v7 = vpop.xlane.xlu1 %683  ;;  %v663_v10 = vpop.xlane.xlu0 %662 }
 0x260   :  { %v690_v12 = vadd.f32 %v684_v7, %v666_v9  ;;  %v667_v20 = vadd.f32 %v663_v10, %v639_v5 }
 0x263   :  { %v708_v14 = vpop.xlane.xlu1 %707  ;;  %v687_v19 = vpop.xlane.xlu0 %686 }
 0x264   :  { %v1299_v17 = vpop.eup %1298  ;;  %v714_v18 = vadd.f32 %v708_v14, %v690_v12  ;;  %v691_v24 = vadd.f32 %v687_v19, %v667_v20 }
 0x265   :  { %v732_v21 = vmul.f32 %v1299_v17, %v720_v13 }
 0x266   :  { %v718_v22 = vmul.f32 0.0078125, %v714_v18 }
 0x267   :  { %750 = vperm.xlu1 %1297, %v732_v21   ;;  %v711_v29 = vpop.xlane.xlu0 %710  ;;  %v740_v34 = vmul.f32 %v732_v21, %v1899_v16  ;;  %v738_v16 = vld [vmem:[%s2067_s4 + $0x10] sm:$0xff] }
 0x268   :  { %v726_v28 = vadd.f32 1e-05, %v718_v22  ;;  %v1301_v30 = vpop.eup %1300  ;;  %v715_v31 = vadd.f32 %v711_v29, %v691_v24 }
 0x269   :  { %v733_v33 = vmul.f32 %v1301_v30, %v721_v25  ;;  %v744_v38 = vsub.f32 %v736_v37, %v740_v34 }
 0x26a   :  { %1302 = vrsqrt.f32 %v726_v28  ;;  %v719_v35 = vmul.f32 0.0078125, %v715_v31 }
 0x26b   :  { %755 = vperm.xlu0 %1296, %v733_v33   ;;  %v741_v47 = vmul.f32 %v733_v33, %v1905_v26 }
 0x26c   :  { %v727_v39 = vadd.f32 1e-05, %v719_v35 }
 0x26d   :  { %v745_v58 = vsub.f32 %v737_v49, %v741_v47 }
 0x26e   :  { %1304 = vrsqrt.f32 %v727_v39 }
 0x26f   :  { %774 = vperm.xlu0 %1296, %v744_v38  }
 0x274   :  { %v1303_v41 = vpop.eup %1302 }
 0x275   :  { %v734_v43 = vmul.f32 %v1303_v41, %v722_v40 }
 0x277   :  { %760 = vperm.xlu1 %1297, %v734_v43   ;;  %v742_v50 = vmul.f32 %v734_v43, %v1914_v45 }
 0x278   :  { %v1305_v52 = vpop.eup %1304 }
 0x279   :  { %v746_v53 = vsub.f32 %v738_v16, %v742_v50  ;;  %v735_v55 = vmul.f32 %v1305_v52, %v723_v51 }
 0x27b   :  { %784 = vperm.xlu0 %1296, %v746_v53   ;;  %779 = vperm.xlu1 %1297, %v745_v58   ;;  %v743_v26 = vmul.f32 %v735_v55, %v1925_v62 }
 0x27d   :  { %v747_v61 = vsub.f32 %v739_v60, %v743_v26 }
 0x27f   :  { %765 = vperm.xlu1 %1297, %v735_v55  }
 0x283   :  { %789 = vperm.xlu1 %1297, %v747_v61  }
 0x2e6   :  { %v751_v45 = vpop.permute.xlu1 %750 }
 0x2e7   :  { %v768_v0 = vmul.f32 %v751_v45, %v1829_v44  ;;  %v804_v1 = vmul.f32 %v751_v45, %v1831_v46  ;;  %v821_v3 = vmul.f32 %v751_v45, %v1865_v23  ;;  %v838_v4 = vmul.f32 %v751_v45, %v1867_v27 }
 0x2ea   :  { %v756_v63 = vpop.permute.xlu0 %755 }
 0x2eb   :  { %v769_v46 = vmul.f32 %v756_v63, %v1839_v56  ;;  %v805_v23 = vmul.f32 %v756_v63, %v1841_v59  ;;  %v822_v27 = vmul.f32 %v756_v63, %v1871_v32  ;;  %v839_v17 = vmul.f32 %v756_v63, %v1873_v36 }
 0x2ee   :  { %v775_v5 = vpop.permute.xlu0 %774 }
 0x2ef   :  { %v792_v6 = vadd.f32 %v775_v5, %v768_v0  ;;  %v808_v62 = vadd.f32 %v804_v1, %v775_v5  ;;  %v825_v7 = vadd.f32 %v821_v3, %v775_v5  ;;  %v842_v9 = vadd.f32 %v838_v4, %v775_v5 }
 0x2f1   :  { %v796_v10 = vmax.f32 %v792_v6, 0.0  ;;  %v812_v12 = vmax.f32 %v808_v62, 0.0  ;;  %v829_v13 = vmax.f32 %v825_v7, 0.0  ;;  %v846_v14 = vmax.f32 %v842_v9, 0.0 }
 0x2f3   :  { %800 = vst.msk [vmem:[%s2068_s5] sm:$0xff] %vm550_vm0, %v796_v10  ;;  %979 = vst.msk [vmem:[%s2068_s5 + $0x20] sm:$0xff] %vm550_vm0, %v812_v12 }
 0x2f4   :  { %983 = vst.msk [vmem:[%s2068_s5 + $0x40] sm:$0xff] %vm550_vm0, %v829_v13  ;;  %987 = vst.msk [vmem:[%s2068_s5 + $0x60] sm:$0xff] %vm550_vm0, %v846_v14 }
 0x2f6   :  { %v761_v44 = vpop.permute.xlu1 %760 }
 0x2f7   :  { %v770_v19 = vmul.f32 %v761_v44, %v1848_v2  ;;  %v806_v20 = vmul.f32 %v761_v44, %v1853_v8  ;;  %v823_v21 = vmul.f32 %v761_v44, %v1880_v42  ;;  %v840_v22 = vmul.f32 %v761_v44, %v1883_v48 }
 0x2fa   :  { %v780_v18 = vpop.permute.xlu1 %779  ;;  %v785_v24 = vpop.permute.xlu0 %784 }
 0x2fb   :  { %v793_v25 = vadd.f32 %v780_v18, %v769_v46  ;;  %v809_v28 = vadd.f32 %v805_v23, %v780_v18  ;;  %v826_v29 = vadd.f32 %v822_v27, %v780_v18  ;;  %v843_v56 = vadd.f32 %v839_v17, %v780_v18 }
 0x2fc   :  { %v794_v30 = vadd.f32 %v785_v24, %v770_v19  ;;  %v810_v59 = vadd.f32 %v806_v20, %v785_v24  ;;  %v827_v31 = vadd.f32 %v823_v21, %v785_v24  ;;  %v844_v32 = vadd.f32 %v840_v22, %v785_v24 }
 0x2fd   :  { %v797_v33 = vmax.f32 %v793_v25, 0.0  ;;  %v813_v36 = vmax.f32 %v809_v28, 0.0  ;;  %v830_v34 = vmax.f32 %v826_v29, 0.0  ;;  %v847_v35 = vmax.f32 %v843_v56, 0.0 }
 0x2fe   :  { %v798_v2 = vmax.f32 %v794_v30, 0.0  ;;  %v814_v37 = vmax.f32 %v810_v59, 0.0  ;;  %v831_v8 = vmax.f32 %v827_v31, 0.0  ;;  %v848_v39 = vmax.f32 %v844_v32, 0.0  ;;  %v766_v42 = vpop.permute.xlu1 %765 }
 0x2ff   :  { %801 = vst.msk [vmem:[%s2068_s5 + $0x8] sm:$0xff] %vm550_vm0, %v797_v33  ;;  %980 = vst.msk [vmem:[%s2068_s5 + $0x28] sm:$0xff] %vm550_vm0, %v813_v36  ;;  %v771_v48 = vmul.f32 %v766_v42, %v1855_v11  ;;  %v807_v38 = vmul.f32 %v766_v42, %v1861_v15  ;;  %v824_v40 = vmul.f32 %v766_v42, %v1889_v54 }
 0x300   :  { %984 = vst.msk [vmem:[%s2068_s5 + $0x48] sm:$0xff] %vm550_vm0, %v830_v34  ;;  %988 = vst.msk [vmem:[%s2068_s5 + $0x68] sm:$0xff] %vm550_vm0, %v847_v35  ;;  %v841_v41 = vmul.f32 %v766_v42, %v1891_v57 }
 0x301   :  { %802 = vst.msk [vmem:[%s2068_s5 + $0x10] sm:$0xff] %vm550_vm0, %v798_v2  ;;  %981 = vst.msk [vmem:[%s2068_s5 + $0x30] sm:$0xff] %vm550_vm0, %v814_v37 }
 0x302   :  { %985 = vst.msk [vmem:[%s2068_s5 + $0x50] sm:$0xff] %vm550_vm0, %v831_v8  ;;  %989 = vst.msk [vmem:[%s2068_s5 + $0x70] sm:$0xff] %vm550_vm0, %v848_v39  ;;  %v790_v43 = vpop.permute.xlu1 %789 }
 0x303   :  { %v795_v47 = vadd.f32 %v790_v43, %v771_v48  ;;  %v811_v16 = vadd.f32 %v807_v38, %v790_v43  ;;  %v828_v49 = vadd.f32 %v824_v40, %v790_v43  ;;  %v845_v50 = vadd.f32 %v841_v41, %v790_v43 }
 0x305   :  { %v799_v51 = vmax.f32 %v795_v47, 0.0  ;;  %v815_v52 = vmax.f32 %v811_v16, 0.0  ;;  %v832_v53 = vmax.f32 %v828_v49, 0.0  ;;  %v849_v58 = vmax.f32 %v845_v50, 0.0 }
 0x307   :  { %803 = vst.msk [vmem:[%s2068_s5 + $0x18] sm:$0xff] %vm550_vm0, %v799_v51  ;;  %982 = vst.msk [vmem:[%s2068_s5 + $0x38] sm:$0xff] %vm550_vm0, %v815_v52 }
 0x308   :  { %986 = vst.msk [vmem:[%s2068_s5 + $0x58] sm:$0xff] %vm550_vm0, %v832_v53  ;;  %990 = vst.msk [vmem:[%s2068_s5 + $0x78] sm:$0xff] %vm550_vm0, %v849_v58 }

// kernel: cnn_autoencoder_forward.15
= control target key start
LH: loop header
LB: loop body
LE: loop exit
PB: predicated region body
PF: predicated region fallthrough
CT: control target
= control target key end

     0   :  { %v959_v3 = vmov 0   ;;  %s1288_s1 = inlined_call_operand.vmem [shape: f32[4,128,128], index: 1, kind: input, shape index: {}]   ;;  %s1289_s0 = inlined_call_operand.vmem [shape: f32[4,16,128], index: 0, kind: input, shape index: {}]   ;;  %s1290_s2 = inlined_call_operand.vmem [shape: f32[16,1], index: 2, kind: input, shape index: {}]   ;;  %s1291_s3 = inlined_call_operand.vmem [shape: f32[16,1], index: 3, kind: input, shape index: {}]   ;;  %s1292_s4 = inlined_call_operand.vmem [shape: f32[16,1], index: 4, kind: input, shape index: {}]   ;;  %s1293_s5 = inlined_call_operand.vmem [shape: f32[4,16,128], index: 5, kind: output, shape index: {}]  }
   0x1   :  { %v24_v0 = vld [vmem:[%s1288_s1] sm:$0xff]  ;;  %v25_v1 = vld [vmem:[%s1288_s1 + $0x8] sm:$0xff]  ;;  %953 = vset.pattern.permute.xlu0 %v959_v3  ;;  %954 = vset.pattern.permute.xlu1 %v959_v3  ;;  %v26_v6 = vld [vmem:[%s1288_s1 + $0x10] sm:$0xff] }
   0x2   :  { %v554_v2 = vld [vmem:[%s1288_s1 + $0x80] sm:$0xff]  ;;  %v824_v4 = vpack.c.bf16 %v25_v1, %v24_v0  ;;  %v555_v5 = vld [vmem:[%s1288_s1 + $0x88] sm:$0xff]  ;;  %v27_v7 = vld [vmem:[%s1288_s1 + $0x18] sm:$0xff] }
   0x3   :  { %v856_v8 = vpack.c.bf16 %v555_v5, %v554_v2  ;;  %v828_v9 = vpack.c.bf16 %v27_v7, %v26_v6  ;;  %v556_v10 = vld [vmem:[%s1288_s1 + $0x90] sm:$0xff]  ;;  %v557_v11 = vld [vmem:[%s1288_s1 + $0x98] sm:$0xff]  ;;  %v28_v12 = vld [vmem:[%s1288_s1 + $0x20] sm:$0xff] }
   0x4   :  { %825 = vmatprep.subr.bf16.mxu0 %v824_v4  ;;  %v860_v13 = vpack.c.bf16 %v557_v11, %v556_v10  ;;  %v29_v14 = vld [vmem:[%s1288_s1 + $0x28] sm:$0xff]  ;;  %v558_v15 = vld [vmem:[%s1288_s1 + $0xa0] sm:$0xff]  ;;  %v30_v19 = vld [vmem:[%s1288_s1 + $0x30] sm:$0xff] }
   0x5   :  { %v559_v16 = vld [vmem:[%s1288_s1 + $0xa8] sm:$0xff]  ;;  %857 = vmatprep.subr.bf16.mxu1 %v856_v8  ;;  %827 = vmatpush3.bf16.msra.mxu0 %v824_v4  ;;  %v832_v17 = vpack.c.bf16 %v29_v14, %v28_v12  ;;  %v31_v20 = vld [vmem:[%s1288_s1 + $0x38] sm:$0xff]  ;;  %v560_v21 = vld [vmem:[%s1288_s1 + $0xb0] sm:$0xff] }
   0x6   :  { %859 = vmatpush3.bf16.msra.mxu1 %v856_v8  ;;  %829 = vmatprep.subr.bf16.mxu0 %v828_v9  ;;  %v864_v18 = vpack.c.bf16 %v559_v16, %v558_v15  ;;  %v561_v22 = vld [vmem:[%s1288_s1 + $0xb8] sm:$0xff]  ;;  %v836_v23 = vpack.c.bf16 %v31_v20, %v30_v19  ;;  %v32_v25 = vld [vmem:[%s1288_s1 + $0x40] sm:$0xff]  ;;  %v33_v26 = vld [vmem:[%s1288_s1 + $0x48] sm:$0xff] }
   0x7   :  { %861 = vmatprep.subr.bf16.mxu1 %v860_v13  ;;  %v868_v24 = vpack.c.bf16 %v561_v22, %v560_v21  ;;  %v22_v27 = vld [vmem:[%s1289_s0] sm:$0xff]  ;;  %v563_v29 = vld [vmem:[%s1288_s1 + $0xc8] sm:$0xff]  ;;  %v552_v30 = vld [vmem:[%s1289_s0 + $0x10] sm:$0xff]  ;;  %v840_v31 = vpack.c.bf16 %v33_v26, %v32_v25 }
   0x8   :  { %v562_v28 = vld [vmem:[%s1288_s1 + $0xc0] sm:$0xff]  ;;  %716 = vmatprep.mubr.f32.mxu0 %v22_v27  ;;  %751 = vmatprep.mubr.f32.mxu1 %v552_v30  ;;  %v34_v33 = vld [vmem:[%s1288_s1 + $0x50] sm:$0xff]  ;;  %v35_v34 = vld [vmem:[%s1288_s1 + $0x58] sm:$0xff] }
   0x9   :  { %831 = vmatpush3.bf16.msra.mxu0 %v828_v9  ;;  %v872_v32 = vpack.c.bf16 %v563_v29, %v562_v28  ;;  %v564_v35 = vld [vmem:[%s1288_s1 + $0xd0] sm:$0xff]  ;;  %v565_v36 = vld [vmem:[%s1288_s1 + $0xd8] sm:$0xff]  ;;  %v844_v37 = vpack.c.bf16 %v35_v34, %v34_v33  ;;  %v36_v39 = vld [vmem:[%s1288_s1 + $0x60] sm:$0xff] }
   0xa   :  { %863 = vmatpush3.bf16.msra.mxu1 %v860_v13  ;;  %833 = vmatprep.subr.bf16.mxu0 %v832_v17  ;;  %v876_v38 = vpack.c.bf16 %v565_v36, %v564_v35  ;;  %v37_v40 = vld [vmem:[%s1288_s1 + $0x68] sm:$0xff]  ;;  %v566_v41 = vld [vmem:[%s1288_s1 + $0xe0] sm:$0xff]  ;;  %v38_v45 = vld [vmem:[%s1288_s1 + $0x70] sm:$0xff] }
   0xb   :  { %865 = vmatprep.subr.bf16.mxu1 %v864_v18  ;;  %v567_v42 = vld [vmem:[%s1288_s1 + $0xe8] sm:$0xff]  ;;  %v848_v43 = vpack.c.bf16 %v37_v40, %v36_v39  ;;  %v39_v46 = vld [vmem:[%s1288_s1 + $0x78] sm:$0xff]  ;;  %v568_v47 = vld [vmem:[%s1288_s1 + $0xf0] sm:$0xff] }
   0xc   :  { %v880_v44 = vpack.c.bf16 %v567_v42, %v566_v41  ;;  %v569_v48 = vld [vmem:[%s1288_s1 + $0xf8] sm:$0xff]  ;;  %v20_v49 = vld [vmem:[%s1290_s2] sm:$0xff]  ;;  %v852_v50 = vpack.c.bf16 %v39_v46, %v38_v45  ;;  %v573_v53 = vld [vmem:[%s1288_s1 + $0x108] sm:$0xff] }
   0xd   :  { %835 = vmatpush3.bf16.msra.mxu0 %v832_v17  ;;  %v884_v51 = vpack.c.bf16 %v569_v48, %v568_v47  ;;  %v572_v52 = vld [vmem:[%s1288_s1 + $0x100] sm:$0xff]  ;;  %42 = vperm.xlu0 %953, %v20_v49   ;;  %v591_v55 = vld [vmem:[%s1288_s1 + $0x188] sm:$0xff]  ;;  %v574_v59 = vld [vmem:[%s1288_s1 + $0x110] sm:$0xff] }
   0xe   :  { %867 = vmatpush3.bf16.msra.mxu1 %v864_v18  ;;  %837 = vmatprep.subr.bf16.mxu0 %v836_v23  ;;  %v590_v54 = vld [vmem:[%s1288_s1 + $0x180] sm:$0xff]  ;;  %v21_v56 = vld [vmem:[%s1290_s2 + $0x8] sm:$0xff]  ;;  %v888_v57 = vpack.c.bf16 %v573_v53, %v572_v52  ;;  %v575_v60 = vld [vmem:[%s1288_s1 + $0x118] sm:$0xff] }
   0xf   :  { %869 = vmatprep.subr.bf16.mxu1 %v868_v24  ;;  %v920_v58 = vpack.c.bf16 %v591_v55, %v590_v54  ;;  %v592_v61 = vld [vmem:[%s1288_s1 + $0x190] sm:$0xff]  ;;  %v593_v62 = vld [vmem:[%s1288_s1 + $0x198] sm:$0xff]  ;;  %v23_v63 = vld [vmem:[%s1289_s0 + $0x8] sm:$0xff]  ;;  %v892_v1 = vpack.c.bf16 %v575_v60, %v574_v59 }
  0x10   :  { %v553_v0 = vld [vmem:[%s1289_s0 + $0x18] sm:$0xff]  ;;  %v924_v2 = vpack.c.bf16 %v593_v62, %v592_v61  ;;  %v576_v3 = vld [vmem:[%s1288_s1 + $0x120] sm:$0xff]  ;;  %v577_v4 = vld [vmem:[%s1288_s1 + $0x128] sm:$0xff] }
  0x11   :  { %839 = vmatpush3.bf16.msra.mxu0 %v836_v23  ;;  %47 = vperm.xlu0 %953, %v21_v56   ;;  %v594_v5 = vld [vmem:[%s1288_s1 + $0x1a0] sm:$0xff]  ;;  %v595_v6 = vld [vmem:[%s1288_s1 + $0x1a8] sm:$0xff]  ;;  %v588_v8 = vld [vmem:[%s1289_s0 + $0x30] sm:$0xff]  ;;  %v896_v9 = vpack.c.bf16 %v577_v4, %v576_v3 }
  0x12   :  { %871 = vmatpush3.bf16.msra.mxu1 %v868_v24  ;;  %841 = vmatprep.subr.bf16.mxu0 %v840_v31  ;;  %v570_v7 = vld [vmem:[%s1289_s0 + $0x20] sm:$0xff]  ;;  %v928_v10 = vpack.c.bf16 %v595_v6, %v594_v5  ;;  %v578_v11 = vld [vmem:[%s1288_s1 + $0x130] sm:$0xff]  ;;  %v579_v12 = vld [vmem:[%s1288_s1 + $0x138] sm:$0xff] }
  0x13   :  { %873 = vmatprep.subr.bf16.mxu1 %v872_v32  ;;  %v596_v13 = vld [vmem:[%s1288_s1 + $0x1b0] sm:$0xff]  ;;  %v597_v14 = vld [vmem:[%s1288_s1 + $0x1b8] sm:$0xff]  ;;  %v900_v15 = vpack.c.bf16 %v579_v12, %v578_v11  ;;  %v580_v17 = vld [vmem:[%s1288_s1 + $0x140] sm:$0xff] }
  0x14   :  { %v932_v16 = vpack.c.bf16 %v597_v14, %v596_v13  ;;  %v581_v18 = vld [vmem:[%s1288_s1 + $0x148] sm:$0xff]  ;;  %v598_v19 = vld [vmem:[%s1288_s1 + $0x1c0] sm:$0xff]  ;;  %v582_v23 = vld [vmem:[%s1288_s1 + $0x150] sm:$0xff] }
  0x15   :  { %843 = vmatpush3.bf16.msra.mxu0 %v840_v31  ;;  %v599_v20 = vld [vmem:[%s1288_s1 + $0x1c8] sm:$0xff]  ;;  %v904_v21 = vpack.c.bf16 %v581_v18, %v580_v17  ;;  %v583_v24 = vld [vmem:[%s1288_s1 + $0x158] sm:$0xff]  ;;  %v600_v25 = vld [vmem:[%s1288_s1 + $0x1d0] sm:$0xff] }
  0x16   :  { %875 = vmatpush3.bf16.msra.mxu1 %v872_v32  ;;  %845 = vmatprep.subr.bf16.mxu0 %v844_v37  ;;  %v936_v22 = vpack.c.bf16 %v599_v20, %v598_v19  ;;  %v601_v26 = vld [vmem:[%s1288_s1 + $0x1d8] sm:$0xff]  ;;  %v908_v27 = vpack.c.bf16 %v583_v24, %v582_v23  ;;  %v584_v29 = vld [vmem:[%s1288_s1 + $0x160] sm:$0xff]  ;;  %v585_v30 = vld [vmem:[%s1288_s1 + $0x168] sm:$0xff] }
  0x17   :  { %877 = vmatprep.subr.bf16.mxu1 %v876_v38  ;;  %v940_v28 = vpack.c.bf16 %v601_v26, %v600_v25  ;;  %v602_v31 = vld [vmem:[%s1288_s1 + $0x1e0] sm:$0xff]  ;;  %v603_v32 = vld [vmem:[%s1288_s1 + $0x1e8] sm:$0xff]  ;;  %v912_v33 = vpack.c.bf16 %v585_v30, %v584_v29  ;;  %v586_v35 = vld [vmem:[%s1288_s1 + $0x170] sm:$0xff] }
  0x18   :  { %v944_v34 = vpack.c.bf16 %v603_v32, %v602_v31  ;;  %v587_v36 = vld [vmem:[%s1288_s1 + $0x178] sm:$0xff]  ;;  %v571_v41 = vld [vmem:[%s1289_s0 + $0x28] sm:$0xff] }
  0x19   :  { %847 = vmatpush3.bf16.msra.mxu0 %v844_v37  ;;  %v604_v37 = vld [vmem:[%s1288_s1 + $0x1f0] sm:$0xff]  ;;  %v916_v39 = vpack.c.bf16 %v587_v36, %v586_v35  ;;  %v589_v42 = vld [vmem:[%s1289_s0 + $0x38] sm:$0xff] }
  0x1a   :  { %879 = vmatpush3.bf16.msra.mxu1 %v876_v38  ;;  %849 = vmatprep.subr.bf16.mxu0 %v848_v43  ;;  %v605_v38 = vld [vmem:[%s1288_s1 + $0x1f8] sm:$0xff] }
  0x1b   :  { %881 = vmatprep.subr.bf16.mxu1 %v880_v44  ;;  %v948_v40 = vpack.c.bf16 %v605_v38, %v604_v37 }
  0x1d   :  { %851 = vmatpush3.bf16.msra.mxu0 %v848_v43 }
  0x1e   :  { %883 = vmatpush3.bf16.msra.mxu1 %v880_v44  ;;  %853 = vmatprep.subr.bf16.mxu0 %v852_v50 }
  0x1f   :  { %885 = vmatprep.subr.bf16.mxu1 %v884_v51 }
  0x21   :  { %855 = vmatpush3.bf16.msra.mxu0 %v852_v50 }
  0x22   :  { %887 = vmatpush3.bf16.msra.mxu1 %v884_v51  ;;  %889 = vmatprep.subr.bf16.mxu0 %v888_v57 }
  0x23   :  { %921 = vmatprep.subr.bf16.mxu1 %v920_v58 }
  0x24   :  { %717 = vmatmul.mubr.f32.vlgmr.msra.gmra.mrb[0].mxu0 %v23_v63 }
  0x25   :  { %752 = vmatmul.mubr.f32.vlgmr.msra.gmra.mrb[0].mxu1 %v553_v0  ;;  %891 = vmatpush3.bf16.msra.mxu0 %v888_v57 }
  0x26   :  { %923 = vmatpush3.bf16.msra.mxu1 %v920_v58  ;;  %893 = vmatprep.subr.bf16.mxu0 %v892_v1 }
  0x27   :  { %925 = vmatprep.subr.bf16.mxu1 %v924_v2  ;;  %786 = vmatprep.mubr.f32.mxu0 %v570_v7 }
  0x28   :  { %821 = vmatprep.mubr.f32.mxu1 %v588_v8 }
  0x29   :  { %895 = vmatpush3.bf16.msra.mxu0 %v892_v1 }
  0x2a   :  { %927 = vmatpush3.bf16.msra.mxu1 %v924_v2  ;;  %897 = vmatprep.subr.bf16.mxu0 %v896_v9 }
  0x2b   :  { %929 = vmatprep.subr.bf16.mxu1 %v928_v10 }
  0x2d   :  { %899 = vmatpush3.bf16.msra.mxu0 %v896_v9 }
  0x2e   :  { %931 = vmatpush3.bf16.msra.mxu1 %v928_v10  ;;  %901 = vmatprep.subr.bf16.mxu0 %v900_v15 }
  0x2f   :  { %933 = vmatprep.subr.bf16.mxu1 %v932_v16 }
  0x31   :  { %903 = vmatpush3.bf16.msra.mxu0 %v900_v15 }
  0x32   :  { %935 = vmatpush3.bf16.msra.mxu1 %v932_v16  ;;  %905 = vmatprep.subr.bf16.mxu0 %v904_v21 }
  0x33   :  { %937 = vmatprep.subr.bf16.mxu1 %v936_v22 }
  0x35   :  { %907 = vmatpush3.bf16.msra.mxu0 %v904_v21 }
  0x36   :  { %939 = vmatpush3.bf16.msra.mxu1 %v936_v22  ;;  %909 = vmatprep.subr.bf16.mxu0 %v908_v27 }
  0x37   :  { %941 = vmatprep.subr.bf16.mxu1 %v940_v28 }
  0x39   :  { %911 = vmatpush3.bf16.msra.mxu0 %v908_v27 }
  0x3a   :  { %943 = vmatpush3.bf16.msra.mxu1 %v940_v28  ;;  %913 = vmatprep.subr.bf16.mxu0 %v912_v33 }
  0x3b   :  { %945 = vmatprep.subr.bf16.mxu1 %v944_v34 }
  0x3d   :  { %915 = vmatpush3.bf16.msra.mxu0 %v912_v33 }
  0x3e   :  { %947 = vmatpush3.bf16.msra.mxu1 %v944_v34  ;;  %917 = vmatprep.subr.bf16.mxu0 %v916_v39 }
  0x3f   :  { %949 = vmatprep.subr.bf16.mxu1 %v948_v40 }
  0x41   :  { %919 = vmatpush3.bf16.msra.mxu0 %v916_v39 }
  0x42   :  { %951 = vmatpush3.bf16.msra.mxu1 %v948_v40 }
  0x44   :  { %787 = vmatmul.mubr.f32.vlgmr.msra.gmra.mrb[2].mxu0 %v571_v41 }
  0x45   :  { %822 = vmatmul.mubr.f32.vlgmr.msra.gmra.mrb[2].mxu1 %v589_v42 }
  0x8c   :  { %v43_v43 = vpop.permute.xlu0 %42 }
  0x90   :  { %v48_v44 = vpop.permute.xlu0 %47 }
  0xf7   :  { %v718_v45 = vpop.f32.mrb[0].mxu0 }
  0xf8   :  { %v1212_v46 = vadd.f32 %v718_v45, %v48_v44  ;;  %v116_v47 = vpop.f32.mrb[1].mxu0  ;;  %v753_v48 = vpop.f32.mrb[0].mxu1 }
  0xf9   :  { %v211_v49 = vpop.f32.mrb[1].mxu1  ;;  %v1217_v51 = vadd.f32 %v116_v47, %v43_v43  ;;  %v1220_v52 = vadd.f32 %v753_v48, %v48_v44  ;;  %v480_v48 = vld [vmem:[%s1291_s3 + $0x8] sm:$0xff] }
  0xfa   :  { %412 = vadd.xlane.f32.xlu1 %v1212_v46  ;;  %v1215_v50 = vadd.f32 %v211_v49, %v43_v43 }
  0xfc   :  { %416 = vadd.xlane.f32.xlu0 %v1215_v50 }
  0xfe   :  { %410 = vadd.xlane.f32.xlu1 %v1217_v51 }
 0x102   :  { %418 = vadd.xlane.f32.xlu1 %v1220_v52 }
 0x117   :  { %v788_v53 = vpop.f32.mrb[2].mxu0 }
 0x118   :  { %v1224_v54 = vadd.f32 %v788_v53, %v48_v44  ;;  %v823_v55 = vpop.f32.mrb[2].mxu1  ;;  %v306_v56 = vpop.f32.mrb[3].mxu0 }
 0x119   :  { %v401_v57 = vpop.f32.mrb[3].mxu1  ;;  %v1227_v58 = vadd.f32 %v306_v56, %v43_v43  ;;  %v1233_v60 = vadd.f32 %v823_v55, %v48_v44  ;;  %v479_v55 = vld [vmem:[%s1291_s3] sm:$0xff] }
 0x11a   :  { %424 = vadd.xlane.f32.xlu1 %v1224_v54  ;;  %v1230_v59 = vadd.f32 %v401_v57, %v43_v43 }
 0x11e   :  { %422 = vadd.xlane.f32.xlu1 %v1227_v58 }
 0x122   :  { %428 = vadd.xlane.f32.xlu1 %v1230_v59 }
 0x126   :  { %430 = vadd.xlane.f32.xlu1 %v1233_v60 }
 0x187   :  { %v413_v61 = vpop.xlane.xlu1 %412 }
 0x189   :  { %v417_v1 = vpop.xlane.xlu0 %416 }
 0x18b   :  { %v411_v62 = vpop.xlane.xlu1 %410 }
 0x18c   :  { %v420_v3 = vadd.f32 %v417_v1, %v411_v62  ;;  %v488_v1 = vld [vmem:[%s1292_s4 + $0x8] sm:$0xff] }
 0x18f   :  { %v419_v63 = vpop.xlane.xlu1 %418 }
 0x190   :  { %v421_v5 = vadd.f32 %v419_v63, %v413_v61  ;;  %v487_v61 = vld [vmem:[%s1292_s4] sm:$0xff] }
 0x1a7   :  { %v425_v0 = vpop.xlane.xlu1 %424 }
 0x1a8   :  { %v427_v7 = vadd.f32 %v425_v0, %v421_v5 }
 0x1ab   :  { %v423_v2 = vpop.xlane.xlu1 %422 }
 0x1ac   :  { %v426_v6 = vadd.f32 %v423_v2, %v420_v3 }
 0x1af   :  { %v429_v4 = vpop.xlane.xlu1 %428 }
 0x1b0   :  { %v432_v8 = vadd.f32 %v429_v4, %v426_v6 }
 0x1b2   :  { %v435_v11 = vmul.f32 0.001953125, %v432_v8 }
 0x1b3   :  { %v431_v9 = vpop.xlane.xlu1 %430 }
 0x1b4   :  { %v433_v10 = vadd.f32 %v431_v9, %v427_v7  ;;  %v437_v18 = vsub.f32 %v1217_v51, %v435_v11  ;;  %v447_v22 = vsub.f32 %v1215_v50, %v435_v11  ;;  %v457_v25 = vsub.f32 %v1227_v58, %v435_v11 }
 0x1b5   :  { %v467_v27 = vsub.f32 %v1230_v59, %v435_v11 }
 0x1b6   :  { %v436_v12 = vmul.f32 0.001953125, %v433_v10  ;;  %v439_v20 = vmul.f32 %v437_v18, %v437_v18  ;;  %v449_v24 = vmul.f32 %v447_v22, %v447_v22  ;;  %v459_v26 = vmul.f32 %v457_v25, %v457_v25 }
 0x1b7   :  { %v469_v28 = vmul.f32 %v467_v27, %v467_v27 }
 0x1b8   :  { %v448_v13 = vsub.f32 %v1220_v52, %v436_v12  ;;  %v438_v14 = vsub.f32 %v1212_v46, %v436_v12  ;;  %v458_v17 = vsub.f32 %v1224_v54, %v436_v12  ;;  %v468_v21 = vsub.f32 %v1233_v60, %v436_v12 }
 0x1ba   :  { %v450_v15 = vmul.f32 %v448_v13, %v448_v13  ;;  %v440_v16 = vmul.f32 %v438_v14, %v438_v14  ;;  %v460_v19 = vmul.f32 %v458_v17, %v458_v17  ;;  %v470_v23 = vmul.f32 %v468_v21, %v468_v21 }
 0x1bc   :  { %453 = vadd.xlane.f32.xlu0 %v450_v15  ;;  %443 = vadd.xlane.f32.xlu1 %v440_v16 }
 0x1c0   :  { %463 = vadd.xlane.f32.xlu0 %v460_v19  ;;  %441 = vadd.xlane.f32.xlu1 %v439_v20 }
 0x1c4   :  { %473 = vadd.xlane.f32.xlu0 %v470_v23  ;;  %451 = vadd.xlane.f32.xlu1 %v449_v24 }
 0x1c8   :  { %461 = vadd.xlane.f32.xlu1 %v459_v26 }
 0x1cc   :  { %471 = vadd.xlane.f32.xlu1 %v469_v28 }
 0x249   :  { %v454_v29 = vpop.xlane.xlu0 %453  ;;  %v444_v30 = vpop.xlane.xlu1 %443 }
 0x24a   :  { %v456_v33 = vadd.f32 %v454_v29, %v444_v30 }
 0x24d   :  { %v464_v31 = vpop.xlane.xlu0 %463  ;;  %v442_v32 = vpop.xlane.xlu1 %441 }
 0x24e   :  { %v466_v34 = vadd.f32 %v464_v31, %v456_v33 }
 0x251   :  { %v474_v35 = vpop.xlane.xlu0 %473  ;;  %v452_v36 = vpop.xlane.xlu1 %451 }
 0x252   :  { %v476_v37 = vadd.f32 %v474_v35, %v466_v34  ;;  %v455_v41 = vadd.f32 %v452_v36, %v442_v32 }
 0x254   :  { %v478_v38 = vmul.f32 0.001953125, %v476_v37 }
 0x255   :  { %v462_v39 = vpop.xlane.xlu1 %461 }
 0x256   :  { %v482_v40 = vadd.f32 1e-05, %v478_v38  ;;  %v465_v42 = vadd.f32 %v462_v39, %v455_v41 }
 0x258   :  { %955 = vrsqrt.f32 %v482_v40 }
 0x259   :  { %v472_v43 = vpop.xlane.xlu1 %471 }
 0x25a   :  { %v475_v44 = vadd.f32 %v472_v43, %v465_v42 }
 0x25c   :  { %v477_v45 = vmul.f32 0.001953125, %v475_v44 }
 0x25e   :  { %v481_v47 = vadd.f32 1e-05, %v477_v45 }
 0x260   :  { %957 = vrsqrt.f32 %v481_v47 }
 0x262   :  { %v956_v49 = vpop.eup %955 }
 0x263   :  { %v486_v53 = vmul.f32 %v956_v49, %v480_v48 }
 0x265   :  { %500 = vperm.xlu0 %953, %v486_v53   ;;  %v490_v0 = vmul.f32 %v486_v53, %v436_v12 }
 0x267   :  { %v492_v2 = vsub.f32 %v488_v1, %v490_v0 }
 0x26a   :  { %v958_v56 = vpop.eup %957 }
 0x26b   :  { %v485_v57 = vmul.f32 %v958_v56, %v479_v55 }
 0x26d   :  { %495 = vperm.xlu1 %954, %v485_v57   ;;  %v489_v62 = vmul.f32 %v485_v57, %v435_v11 }
 0x26f   :  { %v491_v63 = vsub.f32 %v487_v61, %v489_v62 }
 0x271   :  { %507 = vperm.xlu1 %954, %v491_v63  }
 0x275   :  { %512 = vperm.xlu1 %954, %v492_v2  }
 0x2e4   :  { %v501_v4 = vpop.permute.xlu0 %500 }
 0x2e5   :  { %v504_v14 = vmul.f32 %v501_v4, %v1212_v46  ;;  %v522_v15 = vmul.f32 %v501_v4, %v1220_v52  ;;  %v531_v16 = vmul.f32 %v501_v4, %v1224_v54  ;;  %v540_v17 = vmul.f32 %v501_v4, %v1233_v60 }
 0x2ec   :  { %v496_v3 = vpop.permute.xlu1 %495 }
 0x2ed   :  { %v503_v5 = vmul.f32 %v496_v3, %v1217_v51  ;;  %v521_v6 = vmul.f32 %v496_v3, %v1215_v50  ;;  %v530_v7 = vmul.f32 %v496_v3, %v1227_v58  ;;  %v539_v8 = vmul.f32 %v496_v3, %v1230_v59 }
 0x2f0   :  { %v508_v9 = vpop.permute.xlu1 %507 }
 0x2f1   :  { %v515_v10 = vadd.f32 %v508_v9, %v503_v5  ;;  %v523_v11 = vadd.f32 %v521_v6, %v508_v9  ;;  %v532_v12 = vadd.f32 %v530_v7, %v508_v9  ;;  %v541_v13 = vadd.f32 %v539_v8, %v508_v9 }
 0x2f3   :  { %v517_v51 = vmax.f32 %v515_v10, 0.0  ;;  %v525_v18 = vmax.f32 %v523_v11, 0.0  ;;  %v534_v50 = vmax.f32 %v532_v12, 0.0  ;;  %v543_v19 = vmax.f32 %v541_v13, 0.0 }
 0x2f4   :  { %v513_v58 = vpop.permute.xlu1 %512 }
 0x2f5   :  { %519 = vst [vmem:[%s1293_s5] sm:$0xff] %v517_v51  ;;  %606 = vst [vmem:[%s1293_s5 + $0x10] sm:$0xff] %v525_v18  ;;  %v516_v46 = vadd.f32 %v513_v58, %v504_v14  ;;  %v524_v52 = vadd.f32 %v522_v15, %v513_v58  ;;  %v533_v54 = vadd.f32 %v531_v16, %v513_v58 }
 0x2f6   :  { %608 = vst [vmem:[%s1293_s5 + $0x20] sm:$0xff] %v534_v50  ;;  %610 = vst [vmem:[%s1293_s5 + $0x30] sm:$0xff] %v543_v19  ;;  %v542_v59 = vadd.f32 %v540_v17, %v513_v58 }
 0x2f7   :  { %v518_v60 = vmax.f32 %v516_v46, 0.0  ;;  %v526_v20 = vmax.f32 %v524_v52, 0.0  ;;  %v535_v21 = vmax.f32 %v533_v54, 0.0 }
 0x2f8   :  { %v544_v22 = vmax.f32 %v542_v59, 0.0 }
 0x2f9   :  { %520 = vst [vmem:[%s1293_s5 + $0x8] sm:$0xff] %v518_v60  ;;  %607 = vst [vmem:[%s1293_s5 + $0x18] sm:$0xff] %v526_v20 }
 0x2fa   :  { %609 = vst [vmem:[%s1293_s5 + $0x28] sm:$0xff] %v535_v21  ;;  %611 = vst [vmem:[%s1293_s5 + $0x38] sm:$0xff] %v544_v22 }

// kernel: cnn_autoencoder_forward.16
= control target key start
LH: loop header
LB: loop body
LE: loop exit
PB: predicated region body
PF: predicated region fallthrough
CT: control target
= control target key end

     0   :  { %v1169_v3 = vmov 0.0   ;;  %v1170_v8 = vmov 0   ;;  %vm59_vm0 = vcmask 523264   ;;  %s1769_s1 = inlined_call_operand.vmem [shape: f32[4,64,512], index: 1, kind: input, shape index: {}]   ;;  %s1770_s0 = inlined_call_operand.vmem [shape: f32[4,8,64], index: 0, kind: input, shape index: {}]   ;;  %s1771_s2 = inlined_call_operand.vmem [shape: f32[8,1], index: 2, kind: input, shape index: {}]   ;;  %s1772_s3 = inlined_call_operand.vmem [shape: f32[8,1], index: 3, kind: input, shape index: {}]   ;;  %s1773_s4 = inlined_call_operand.vmem [shape: f32[8,1], index: 4, kind: input, shape index: {}]   ;;  %s1774_s5 = inlined_call_operand.vmem [shape: f32[4,8,512], index: 5, kind: output, shape index: {}]  }
   0x1   :  { %v23_v0 = vld [vmem:[%s1769_s1 + $0x8] sm:$0xff]  ;;  %v25_v2 = vld [vmem:[%s1769_s1 + $0x18] sm:$0xff]  ;;  %127 = vmatprep.mubr.f32.mxu0 %v1169_v3  ;;  %198 = vmatprep.mubr.f32.mxu1 %v1169_v3  ;;  %v22_v6 = vld [vmem:[%s1769_s1] sm:$0xff] }
   0x2   :  { %v27_v1 = vld [vmem:[%s1769_s1 + $0x28] sm:$0xff]  ;;  %v29_v5 = vld [vmem:[%s1769_s1 + $0x38] sm:$0xff]  ;;  %v26_v7 = vld [vmem:[%s1769_s1 + $0x20] sm:$0xff]  ;;  %1165 = vset.pattern.permute.xlu0 %v1170_v8  ;;  %1166 = vset.pattern.permute.xlu1 %v1170_v8 }
   0x3   :  { %v1035_v4 = vpack.c.bf16 %v27_v1, %v23_v0  ;;  %v1051_v9 = vpack.c.bf16 %v29_v5, %v25_v2  ;;  %v1037_v10 = vpack.c.bf16 %v26_v7, %v22_v6  ;;  %v24_v11 = vld [vmem:[%s1769_s1 + $0x10] sm:$0xff]  ;;  %v31_v13 = vld [vmem:[%s1769_s1 + $0x48] sm:$0xff]  ;;  %v33_v16 = vld [vmem:[%s1769_s1 + $0x58] sm:$0xff] }
   0x4   :  { %v28_v12 = vld [vmem:[%s1769_s1 + $0x30] sm:$0xff]  ;;  %v35_v15 = vld [vmem:[%s1769_s1 + $0x68] sm:$0xff]  ;;  %v37_v17 = vld [vmem:[%s1769_s1 + $0x78] sm:$0xff] }
   0x5   :  { %1036 = vmatprep.subr.bf16.mxu0 %v1035_v4  ;;  %v1053_v14 = vpack.c.bf16 %v28_v12, %v24_v11  ;;  %1052 = vmatprep.subr.bf16.mxu1 %v1051_v9  ;;  %v1039_v18 = vpack.c.bf16 %v35_v15, %v31_v13  ;;  %v1055_v19 = vpack.c.bf16 %v37_v17, %v33_v16  ;;  %v30_v20 = vld [vmem:[%s1769_s1 + $0x40] sm:$0xff]  ;;  %v32_v22 = vld [vmem:[%s1769_s1 + $0x50] sm:$0xff]  ;;  %v39_v25 = vld [vmem:[%s1769_s1 + $0x88] sm:$0xff] }
   0x6   :  { %1038 = vmatpush1.bf16.msra.mxu0 %v1037_v10  ;;  %v34_v21 = vld [vmem:[%s1769_s1 + $0x60] sm:$0xff]  ;;  %v36_v24 = vld [vmem:[%s1769_s1 + $0x70] sm:$0xff]  ;;  %v43_v26 = vld [vmem:[%s1769_s1 + $0xa8] sm:$0xff] }
   0x7   :  { %1054 = vmatpush1.bf16.msra.mxu1 %v1053_v14  ;;  %v1041_v23 = vpack.c.bf16 %v34_v21, %v30_v20  ;;  %1040 = vmatprep.subr.bf16.mxu0 %v1039_v18  ;;  %v1057_v27 = vpack.c.bf16 %v36_v24, %v32_v22  ;;  %v1043_v28 = vpack.c.bf16 %v43_v26, %v39_v25  ;;  %v41_v29 = vld [vmem:[%s1769_s1 + $0x98] sm:$0xff]  ;;  %v38_v31 = vld [vmem:[%s1769_s1 + $0x80] sm:$0xff]  ;;  %v40_v34 = vld [vmem:[%s1769_s1 + $0x90] sm:$0xff] }
   0x8   :  { %1056 = vmatprep.subr.bf16.mxu1 %v1055_v19  ;;  %v45_v30 = vld [vmem:[%s1769_s1 + $0xb8] sm:$0xff]  ;;  %v42_v33 = vld [vmem:[%s1769_s1 + $0xa0] sm:$0xff]  ;;  %v44_v35 = vld [vmem:[%s1769_s1 + $0xb0] sm:$0xff] }
   0x9   :  { %v1059_v32 = vpack.c.bf16 %v45_v30, %v41_v29  ;;  %v1045_v36 = vpack.c.bf16 %v42_v33, %v38_v31  ;;  %v47_v37 = vld [vmem:[%s1769_s1 + $0xc8] sm:$0xff]  ;;  %v49_v39 = vld [vmem:[%s1769_s1 + $0xd8] sm:$0xff]  ;;  %v1061_v40 = vpack.c.bf16 %v44_v35, %v40_v34  ;;  %v46_v43 = vld [vmem:[%s1769_s1 + $0xc0] sm:$0xff] }
   0xa   :  { %1042 = vmatpush1.bf16.msra.mxu0 %v1041_v23  ;;  %v51_v38 = vld [vmem:[%s1769_s1 + $0xe8] sm:$0xff]  ;;  %v53_v42 = vld [vmem:[%s1769_s1 + $0xf8] sm:$0xff]  ;;  %v50_v44 = vld [vmem:[%s1769_s1 + $0xe0] sm:$0xff] }
   0xb   :  { %1058 = vmatpush1.bf16.msra.mxu1 %v1057_v27  ;;  %1044 = vmatprep.subr.bf16.mxu0 %v1043_v28  ;;  %v1047_v41 = vpack.c.bf16 %v51_v38, %v47_v37  ;;  %v1063_v45 = vpack.c.bf16 %v53_v42, %v49_v39  ;;  %v48_v46 = vld [vmem:[%s1769_s1 + $0xd0] sm:$0xff]  ;;  %v920_v48 = vld [vmem:[%s1769_s1 + $0x108] sm:$0xff]  ;;  %v922_v50 = vld [vmem:[%s1769_s1 + $0x118] sm:$0xff]  ;;  %v1049_v51 = vpack.c.bf16 %v50_v44, %v46_v43 }
   0xc   :  { %1060 = vmatprep.subr.bf16.mxu1 %v1059_v32  ;;  %v52_v47 = vld [vmem:[%s1769_s1 + $0xf0] sm:$0xff]  ;;  %v924_v49 = vld [vmem:[%s1769_s1 + $0x128] sm:$0xff]  ;;  %v926_v52 = vld [vmem:[%s1769_s1 + $0x138] sm:$0xff] }
   0xd   :  { %v1065_v53 = vpack.c.bf16 %v52_v47, %v48_v46  ;;  %v1067_v54 = vpack.c.bf16 %v924_v49, %v920_v48  ;;  %v919_v55 = vld [vmem:[%s1769_s1 + $0x100] sm:$0xff]  ;;  %v921_v57 = vld [vmem:[%s1769_s1 + $0x110] sm:$0xff]  ;;  %v1083_v58 = vpack.c.bf16 %v926_v52, %v922_v50  ;;  %v928_v60 = vld [vmem:[%s1769_s1 + $0x148] sm:$0xff] }
   0xe   :  { %1046 = vmatpush1.bf16.msra.mxu0 %v1045_v36  ;;  %v923_v56 = vld [vmem:[%s1769_s1 + $0x120] sm:$0xff]  ;;  %v925_v59 = vld [vmem:[%s1769_s1 + $0x130] sm:$0xff]  ;;  %v932_v61 = vld [vmem:[%s1769_s1 + $0x168] sm:$0xff] }
   0xf   :  { %1062 = vmatpush1.bf16.msra.mxu1 %v1061_v40  ;;  %1048 = vmatprep.subr.bf16.mxu0 %v1047_v41  ;;  %v930_v62 = vld [vmem:[%s1769_s1 + $0x158] sm:$0xff]  ;;  %v21_v0 = vld [vmem:[%s1770_s0] sm:$0xff]  ;;  %v1069_v1 = vpack.c.bf16 %v923_v56, %v919_v55  ;;  %v1085_v2 = vpack.c.bf16 %v925_v59, %v921_v57  ;;  %v1071_v4 = vpack.c.bf16 %v932_v61, %v928_v60  ;;  %v929_v7 = vld [vmem:[%s1769_s1 + $0x150] sm:$0xff] }
  0x10   :  { %1064 = vmatprep.subr.bf16.mxu1 %v1063_v45  ;;  %v934_v63 = vld [vmem:[%s1769_s1 + $0x178] sm:$0xff]  ;;  %v927_v5 = vld [vmem:[%s1769_s1 + $0x140] sm:$0xff]  ;;  %v933_v9 = vld [vmem:[%s1769_s1 + $0x170] sm:$0xff] }
  0x11   :  { %v931_v6 = vld [vmem:[%s1769_s1 + $0x160] sm:$0xff]  ;;  %v1087_v8 = vpack.c.bf16 %v934_v63, %v930_v62  ;;  %v936_v10 = vld [vmem:[%s1769_s1 + $0x188] sm:$0xff]  ;;  %v938_v12 = vld [vmem:[%s1769_s1 + $0x198] sm:$0xff]  ;;  %v1089_v15 = vpack.c.bf16 %v933_v9, %v929_v7 }
  0x12   :  { %1050 = vmatpush1.bf16.msra.mxu0 %v1049_v51  ;;  %v940_v11 = vld [vmem:[%s1769_s1 + $0x1a8] sm:$0xff]  ;;  %v942_v13 = vld [vmem:[%s1769_s1 + $0x1b8] sm:$0xff]  ;;  %v1073_v14 = vpack.c.bf16 %v931_v6, %v927_v5  ;;  %v935_v17 = vld [vmem:[%s1769_s1 + $0x180] sm:$0xff] }
  0x13   :  { %1066 = vmatpush1.bf16.msra.mxu1 %v1065_v53  ;;  %1068 = vmatprep.subr.bf16.mxu0 %v1067_v54  ;;  %v1075_v16 = vpack.c.bf16 %v940_v11, %v936_v10  ;;  %v939_v18 = vld [vmem:[%s1769_s1 + $0x1a0] sm:$0xff]  ;;  %v937_v19 = vld [vmem:[%s1769_s1 + $0x190] sm:$0xff]  ;;  %v1091_v20 = vpack.c.bf16 %v942_v13, %v938_v12  ;;  %v944_v22 = vld [vmem:[%s1769_s1 + $0x1c8] sm:$0xff] }
  0x14   :  { %1084 = vmatprep.subr.bf16.mxu1 %v1083_v58  ;;  %v941_v21 = vld [vmem:[%s1769_s1 + $0x1b0] sm:$0xff]  ;;  %v948_v23 = vld [vmem:[%s1769_s1 + $0x1e8] sm:$0xff]  ;;  %v946_v24 = vld [vmem:[%s1769_s1 + $0x1d8] sm:$0xff]  ;;  %v1077_v26 = vpack.c.bf16 %v939_v18, %v935_v17 }
  0x15   :  { %916 = vmatmul.mubr.msk.f32.vlgmr.msra.gmra.mrb[0].mxu0 %vm59_vm0, %v21_v0  ;;  %v950_v25 = vld [vmem:[%s1769_s1 + $0x1f8] sm:$0xff]  ;;  %v1093_v27 = vpack.c.bf16 %v941_v21, %v937_v19  ;;  %v1079_v28 = vpack.c.bf16 %v948_v23, %v944_v22  ;;  %v943_v29 = vld [vmem:[%s1769_s1 + $0x1c0] sm:$0xff]  ;;  %v945_v31 = vld [vmem:[%s1769_s1 + $0x1d0] sm:$0xff] }
  0x16   :  { %917 = vmatmul.mubr.msk.f32.vlgmr.msra.gmra.mrb[0].mxu1 %vm59_vm0, %v21_v0  ;;  %1070 = vmatpush1.bf16.msra.mxu0 %v1069_v1  ;;  %v947_v30 = vld [vmem:[%s1769_s1 + $0x1e0] sm:$0xff]  ;;  %v1095_v32 = vpack.c.bf16 %v950_v25, %v946_v24  ;;  %v949_v33 = vld [vmem:[%s1769_s1 + $0x1f0] sm:$0xff]  ;;  %v955_v34 = vld [vmem:[%s1769_s1 + $0x208] sm:$0xff] }
  0x17   :  { %1086 = vmatpush1.bf16.msra.mxu1 %v1085_v2  ;;  %1072 = vmatprep.subr.bf16.mxu0 %v1071_v4  ;;  %v959_v35 = vld [vmem:[%s1769_s1 + $0x228] sm:$0xff]  ;;  %v957_v36 = vld [vmem:[%s1769_s1 + $0x218] sm:$0xff]  ;;  %v1081_v38 = vpack.c.bf16 %v947_v30, %v943_v29  ;;  %v1097_v39 = vpack.c.bf16 %v949_v33, %v945_v31  ;;  %v954_v41 = vld [vmem:[%s1769_s1 + $0x200] sm:$0xff] }
  0x18   :  { %1088 = vmatprep.subr.bf16.mxu1 %v1087_v8  ;;  %307 = vmatprep.mubr.f32.mxu0 %v1169_v3  ;;  %v961_v37 = vld [vmem:[%s1769_s1 + $0x238] sm:$0xff]  ;;  %v1099_v40 = vpack.c.bf16 %v959_v35, %v955_v34  ;;  %v958_v42 = vld [vmem:[%s1769_s1 + $0x220] sm:$0xff]  ;;  %v956_v43 = vld [vmem:[%s1769_s1 + $0x210] sm:$0xff] }
  0x19   :  { %378 = vmatprep.mubr.f32.mxu1 %v1169_v3  ;;  %v1115_v44 = vpack.c.bf16 %v961_v37, %v957_v36  ;;  %v960_v45 = vld [vmem:[%s1769_s1 + $0x230] sm:$0xff]  ;;  %v963_v46 = vld [vmem:[%s1769_s1 + $0x248] sm:$0xff]  ;;  %v965_v48 = vld [vmem:[%s1769_s1 + $0x258] sm:$0xff]  ;;  %v1101_v51 = vpack.c.bf16 %v958_v42, %v954_v41 }
  0x1a   :  { %1074 = vmatpush1.bf16.msra.mxu0 %v1073_v14  ;;  %v967_v47 = vld [vmem:[%s1769_s1 + $0x268] sm:$0xff]  ;;  %v969_v49 = vld [vmem:[%s1769_s1 + $0x278] sm:$0xff]  ;;  %v1117_v52 = vpack.c.bf16 %v960_v45, %v956_v43  ;;  %v962_v54 = vld [vmem:[%s1769_s1 + $0x240] sm:$0xff] }
  0x1b   :  { %1090 = vmatpush1.bf16.msra.mxu1 %v1089_v15  ;;  %1076 = vmatprep.subr.bf16.mxu0 %v1075_v16  ;;  %v918_v50 = vld [vmem:[%s1770_s0 + $0x8] sm:$0xff]  ;;  %v1103_v53 = vpack.c.bf16 %v967_v47, %v963_v46  ;;  %v966_v55 = vld [vmem:[%s1769_s1 + $0x260] sm:$0xff]  ;;  %v964_v56 = vld [vmem:[%s1769_s1 + $0x250] sm:$0xff]  ;;  %v1119_v57 = vpack.c.bf16 %v969_v49, %v965_v48 }
  0x1c   :  { %1092 = vmatprep.subr.bf16.mxu1 %v1091_v20  ;;  %v968_v58 = vld [vmem:[%s1769_s1 + $0x270] sm:$0xff]  ;;  %v971_v59 = vld [vmem:[%s1769_s1 + $0x288] sm:$0xff]  ;;  %v973_v61 = vld [vmem:[%s1769_s1 + $0x298] sm:$0xff]  ;;  %v1105_v63 = vpack.c.bf16 %v966_v55, %v962_v54 }
  0x1d   :  { %v975_v60 = vld [vmem:[%s1769_s1 + $0x2a8] sm:$0xff]  ;;  %v977_v62 = vld [vmem:[%s1769_s1 + $0x2b8] sm:$0xff]  ;;  %v1121_v0 = vpack.c.bf16 %v968_v58, %v964_v56  ;;  %v970_v2 = vld [vmem:[%s1769_s1 + $0x280] sm:$0xff] }
  0x1e   :  { %1078 = vmatpush1.bf16.msra.mxu0 %v1077_v26  ;;  %v1107_v1 = vpack.c.bf16 %v975_v60, %v971_v59  ;;  %v974_v4 = vld [vmem:[%s1769_s1 + $0x2a0] sm:$0xff]  ;;  %v972_v5 = vld [vmem:[%s1769_s1 + $0x290] sm:$0xff]  ;;  %v1123_v6 = vpack.c.bf16 %v977_v62, %v973_v61  ;;  %v979_v8 = vld [vmem:[%s1769_s1 + $0x2c8] sm:$0xff] }
  0x1f   :  { %1094 = vmatpush1.bf16.msra.mxu1 %v1093_v27  ;;  %1080 = vmatprep.subr.bf16.mxu0 %v1079_v28  ;;  %v976_v7 = vld [vmem:[%s1769_s1 + $0x2b0] sm:$0xff]  ;;  %v983_v9 = vld [vmem:[%s1769_s1 + $0x2e8] sm:$0xff]  ;;  %v981_v10 = vld [vmem:[%s1769_s1 + $0x2d8] sm:$0xff]  ;;  %v1109_v12 = vpack.c.bf16 %v974_v4, %v970_v2 }
  0x20   :  { %1096 = vmatprep.subr.bf16.mxu1 %v1095_v32  ;;  %v985_v11 = vld [vmem:[%s1769_s1 + $0x2f8] sm:$0xff]  ;;  %v1125_v13 = vpack.c.bf16 %v976_v7, %v972_v5  ;;  %v1111_v14 = vpack.c.bf16 %v983_v9, %v979_v8  ;;  %v978_v15 = vld [vmem:[%s1769_s1 + $0x2c0] sm:$0xff]  ;;  %v980_v17 = vld [vmem:[%s1769_s1 + $0x2d0] sm:$0xff] }
  0x21   :  { %v982_v16 = vld [vmem:[%s1769_s1 + $0x2e0] sm:$0xff]  ;;  %v1127_v18 = vpack.c.bf16 %v985_v11, %v981_v10  ;;  %v984_v19 = vld [vmem:[%s1769_s1 + $0x2f0] sm:$0xff]  ;;  %v990_v20 = vld [vmem:[%s1769_s1 + $0x308] sm:$0xff] }
  0x22   :  { %1082 = vmatpush1.bf16.msra.mxu0 %v1081_v38  ;;  %v994_v21 = vld [vmem:[%s1769_s1 + $0x328] sm:$0xff]  ;;  %v992_v22 = vld [vmem:[%s1769_s1 + $0x318] sm:$0xff]  ;;  %v1113_v24 = vpack.c.bf16 %v982_v16, %v978_v15  ;;  %v20_v25 = vld [vmem:[%s1771_s2] sm:$0xff]  ;;  %v1129_v26 = vpack.c.bf16 %v984_v19, %v980_v17 }
  0x23   :  { %1098 = vmatpush1.bf16.msra.mxu1 %v1097_v39  ;;  %1100 = vmatprep.subr.bf16.mxu0 %v1099_v40  ;;  %v996_v23 = vld [vmem:[%s1769_s1 + $0x338] sm:$0xff]  ;;  %v1131_v27 = vpack.c.bf16 %v994_v21, %v990_v20  ;;  %v989_v28 = vld [vmem:[%s1769_s1 + $0x300] sm:$0xff]  ;;  %v991_v30 = vld [vmem:[%s1769_s1 + $0x310] sm:$0xff] }
  0x24   :  { %1116 = vmatprep.subr.bf16.mxu1 %v1115_v44  ;;  %v993_v29 = vld [vmem:[%s1769_s1 + $0x320] sm:$0xff]  ;;  %v1147_v31 = vpack.c.bf16 %v996_v23, %v992_v22  ;;  %v995_v32 = vld [vmem:[%s1769_s1 + $0x330] sm:$0xff]  ;;  %v998_v33 = vld [vmem:[%s1769_s1 + $0x348] sm:$0xff]  ;;  %56 = vperm.xlu0 %1165, %v20_v25  }
  0x25   :  { %951 = vmatmul.mubr.msk.f32.vlgmr.msra.gmra.mrb[2].mxu0 %vm59_vm0, %v918_v50  ;;  %v1002_v34 = vld [vmem:[%s1769_s1 + $0x368] sm:$0xff]  ;;  %v1000_v35 = vld [vmem:[%s1769_s1 + $0x358] sm:$0xff]  ;;  %v953_v37 = vld [vmem:[%s1770_s0 + $0x10] sm:$0xff]  ;;  %v1133_v38 = vpack.c.bf16 %v993_v29, %v989_v28  ;;  %v1149_v39 = vpack.c.bf16 %v995_v32, %v991_v30 }
  0x26   :  { %952 = vmatmul.mubr.msk.f32.vlgmr.msra.gmra.mrb[2].mxu1 %vm59_vm0, %v918_v50  ;;  %1102 = vmatpush1.bf16.msra.mxu0 %v1101_v51  ;;  %v1004_v36 = vld [vmem:[%s1769_s1 + $0x378] sm:$0xff]  ;;  %v1135_v40 = vpack.c.bf16 %v1002_v34, %v998_v33  ;;  %v997_v41 = vld [vmem:[%s1769_s1 + $0x340] sm:$0xff]  ;;  %v999_v43 = vld [vmem:[%s1769_s1 + $0x350] sm:$0xff] }
  0x27   :  { %1118 = vmatpush1.bf16.msra.mxu1 %v1117_v52  ;;  %1104 = vmatprep.subr.bf16.mxu0 %v1103_v53  ;;  %v1001_v42 = vld [vmem:[%s1769_s1 + $0x360] sm:$0xff]  ;;  %v1151_v44 = vpack.c.bf16 %v1004_v36, %v1000_v35  ;;  %v1003_v45 = vld [vmem:[%s1769_s1 + $0x370] sm:$0xff]  ;;  %v1006_v46 = vld [vmem:[%s1769_s1 + $0x388] sm:$0xff] }
  0x28   :  { %1120 = vmatprep.subr.bf16.mxu1 %v1119_v57  ;;  %487 = vmatprep.mubr.f32.mxu0 %v1169_v3  ;;  %v1010_v47 = vld [vmem:[%s1769_s1 + $0x3a8] sm:$0xff]  ;;  %v1008_v48 = vld [vmem:[%s1769_s1 + $0x398] sm:$0xff]  ;;  %v1137_v50 = vpack.c.bf16 %v1001_v42, %v997_v41  ;;  %v1153_v51 = vpack.c.bf16 %v1003_v45, %v999_v43  ;;  %v1005_v53 = vld [vmem:[%s1769_s1 + $0x380] sm:$0xff] }
  0x29   :  { %558 = vmatprep.mubr.f32.mxu1 %v1169_v3  ;;  %v1012_v49 = vld [vmem:[%s1769_s1 + $0x3b8] sm:$0xff]  ;;  %v1139_v52 = vpack.c.bf16 %v1010_v47, %v1006_v46  ;;  %v1009_v54 = vld [vmem:[%s1769_s1 + $0x3a0] sm:$0xff]  ;;  %v1007_v55 = vld [vmem:[%s1769_s1 + $0x390] sm:$0xff] }
  0x2a   :  { %1106 = vmatpush1.bf16.msra.mxu0 %v1105_v63  ;;  %v1155_v56 = vpack.c.bf16 %v1012_v49, %v1008_v48  ;;  %v1011_v57 = vld [vmem:[%s1769_s1 + $0x3b0] sm:$0xff]  ;;  %v1014_v58 = vld [vmem:[%s1769_s1 + $0x3c8] sm:$0xff]  ;;  %v1016_v60 = vld [vmem:[%s1769_s1 + $0x3d8] sm:$0xff]  ;;  %v1141_v62 = vpack.c.bf16 %v1009_v54, %v1005_v53 }
  0x2b   :  { %1122 = vmatpush1.bf16.msra.mxu1 %v1121_v0  ;;  %1108 = vmatprep.subr.bf16.mxu0 %v1107_v1  ;;  %v1018_v59 = vld [vmem:[%s1769_s1 + $0x3e8] sm:$0xff]  ;;  %v1020_v61 = vld [vmem:[%s1769_s1 + $0x3f8] sm:$0xff]  ;;  %v1157_v63 = vpack.c.bf16 %v1011_v57, %v1007_v55  ;;  %v1013_v1 = vld [vmem:[%s1769_s1 + $0x3c0] sm:$0xff] }
  0x2c   :  { %1124 = vmatprep.subr.bf16.mxu1 %v1123_v6  ;;  %v1143_v0 = vpack.c.bf16 %v1018_v59, %v1014_v58  ;;  %v1017_v2 = vld [vmem:[%s1769_s1 + $0x3e0] sm:$0xff]  ;;  %v1159_v4 = vpack.c.bf16 %v1020_v61, %v1016_v60  ;;  %v1019_v5 = vld [vmem:[%s1769_s1 + $0x3f0] sm:$0xff]  ;;  %v988_v8 = vld [vmem:[%s1770_s0 + $0x18] sm:$0xff] }
  0x2d   :  { %v1145_v6 = vpack.c.bf16 %v1017_v2, %v1013_v1 }
  0x2e   :  { %1110 = vmatpush1.bf16.msra.mxu0 %v1109_v12 }
  0x2f   :  { %1126 = vmatpush1.bf16.msra.mxu1 %v1125_v13  ;;  %1112 = vmatprep.subr.bf16.mxu0 %v1111_v14 }
  0x30   :  { %1128 = vmatprep.subr.bf16.mxu1 %v1127_v18 }
  0x32   :  { %1114 = vmatpush1.bf16.msra.mxu0 %v1113_v24 }
  0x33   :  { %1130 = vmatpush1.bf16.msra.mxu1 %v1129_v26  ;;  %1132 = vmatprep.subr.bf16.mxu0 %v1131_v27 }
  0x34   :  { %1148 = vmatprep.subr.bf16.mxu1 %v1147_v31 }
  0x35   :  { %986 = vmatmul.mubr.msk.f32.vlgmr.msra.gmra.mrb[4].mxu0 %vm59_vm0, %v953_v37 }
  0x36   :  { %987 = vmatmul.mubr.msk.f32.vlgmr.msra.gmra.mrb[4].mxu1 %vm59_vm0, %v953_v37  ;;  %1134 = vmatpush1.bf16.msra.mxu0 %v1133_v38 }
  0x37   :  { %1150 = vmatpush1.bf16.msra.mxu1 %v1149_v39  ;;  %1136 = vmatprep.subr.bf16.mxu0 %v1135_v40 }
  0x38   :  { %1152 = vmatprep.subr.bf16.mxu1 %v1151_v44  ;;  %667 = vmatprep.mubr.f32.mxu0 %v1169_v3 }
  0x39   :  { %738 = vmatprep.mubr.f32.mxu1 %v1169_v3  ;;  %v1015_v3 = vld [vmem:[%s1769_s1 + $0x3d0] sm:$0xff] }
  0x3a   :  { %1138 = vmatpush1.bf16.msra.mxu0 %v1137_v50  ;;  %v1161_v7 = vpack.c.bf16 %v1019_v5, %v1015_v3 }
  0x3b   :  { %1154 = vmatpush1.bf16.msra.mxu1 %v1153_v51  ;;  %1140 = vmatprep.subr.bf16.mxu0 %v1139_v52 }
  0x3c   :  { %1156 = vmatprep.subr.bf16.mxu1 %v1155_v56 }
  0x3e   :  { %1142 = vmatpush1.bf16.msra.mxu0 %v1141_v62 }
  0x3f   :  { %1158 = vmatpush1.bf16.msra.mxu1 %v1157_v63  ;;  %1144 = vmatprep.subr.bf16.mxu0 %v1143_v0 }
  0x40   :  { %1160 = vmatprep.subr.bf16.mxu1 %v1159_v4 }
  0x42   :  { %1146 = vmatpush1.bf16.msra.mxu0 %v1145_v6 }
  0x43   :  { %1162 = vmatpush1.bf16.msra.mxu1 %v1161_v7 }
  0x45   :  { %1021 = vmatmul.mubr.msk.f32.vlgmr.msra.gmra.mrb[6].mxu0 %vm59_vm0, %v988_v8 }
  0x46   :  { %1022 = vmatmul.mubr.msk.f32.vlgmr.msra.gmra.mrb[6].mxu1 %vm59_vm0, %v988_v8 }
  0xa3   :  { %v57_v9 = vpop.permute.xlu0 %56 }
  0xe8   :  { %v129_v10 = vpop.f32.mrb[0].mxu0 }
  0xe9   :  { %v1616_v11 = vadd.f32 %v129_v10, %v57_v9  ;;  %v131_v12 = vpop.f32.mrb[1].mxu0  ;;  %v200_v13 = vpop.f32.mrb[0].mxu1 }
  0xea   :  { %v1618_v14 = vadd.f32 %v131_v12, %v57_v9  ;;  %v1620_v15 = vadd.f32 %v200_v13, %v57_v9  ;;  %v202_v16 = vpop.f32.mrb[1].mxu1 }
  0xeb   :  { %v1624_v18 = vadd.f32 %v202_v16, %v57_v9 }
  0xec   :  { %v745_v17 = vadd.f32 %v1618_v14, %v1616_v11 }
  0xee   :  { %v746_v19 = vadd.f32 %v745_v17, %v1620_v15 }
  0xf0   :  { %v747_v20 = vadd.f32 %v746_v19, %v1624_v18 }
  0xf2   :  { %748 = vadd.xlane.f32.xlu0 %v747_v20 }
  0xf8   :  { %v309_v21 = vpop.f32.mrb[2].mxu0 }
  0xf9   :  { %v1628_v22 = vadd.f32 %v309_v21, %v57_v9  ;;  %v311_v23 = vpop.f32.mrb[3].mxu0  ;;  %v380_v24 = vpop.f32.mrb[2].mxu1 }
  0xfa   :  { %v1630_v25 = vadd.f32 %v311_v23, %v57_v9  ;;  %v1632_v26 = vadd.f32 %v380_v24, %v57_v9  ;;  %v382_v27 = vpop.f32.mrb[3].mxu1 }
  0xfb   :  { %v1634_v28 = vadd.f32 %v382_v27, %v57_v9 }
  0xfc   :  { %v751_v29 = vadd.f32 %v1630_v25, %v1628_v22 }
  0xfe   :  { %v752_v30 = vadd.f32 %v751_v29, %v1632_v26 }
 0x100   :  { %v753_v31 = vadd.f32 %v752_v30, %v1634_v28 }
 0x102   :  { %754 = vadd.xlane.f32.xlu1 %v753_v31 }
 0x108   :  { %v489_v32 = vpop.f32.mrb[4].mxu0 }
 0x109   :  { %v1640_v33 = vadd.f32 %v489_v32, %v57_v9  ;;  %v491_v34 = vpop.f32.mrb[5].mxu0  ;;  %v560_v35 = vpop.f32.mrb[4].mxu1 }
 0x10a   :  { %v1642_v36 = vadd.f32 %v491_v34, %v57_v9  ;;  %v1644_v37 = vadd.f32 %v560_v35, %v57_v9  ;;  %v562_v38 = vpop.f32.mrb[5].mxu1 }
 0x10b   :  { %v1648_v40 = vadd.f32 %v562_v38, %v57_v9 }
 0x10c   :  { %v757_v39 = vadd.f32 %v1642_v36, %v1640_v33 }
 0x10e   :  { %v758_v41 = vadd.f32 %v757_v39, %v1644_v37 }
 0x110   :  { %v759_v42 = vadd.f32 %v758_v41, %v1648_v40 }
 0x112   :  { %760 = vadd.xlane.f32.xlu1 %v759_v42 }
 0x118   :  { %v669_v43 = vpop.f32.mrb[6].mxu0 }
 0x119   :  { %v1652_v44 = vadd.f32 %v669_v43, %v57_v9  ;;  %v740_v45 = vpop.f32.mrb[6].mxu1  ;;  %v671_v46 = vpop.f32.mrb[7].mxu0 }
 0x11a   :  { %v1654_v47 = vadd.f32 %v671_v46, %v57_v9  ;;  %v742_v48 = vpop.f32.mrb[7].mxu1  ;;  %v1656_v49 = vadd.f32 %v740_v45, %v57_v9 }
 0x11b   :  { %v1660_v51 = vadd.f32 %v742_v48, %v57_v9 }
 0x11c   :  { %v763_v50 = vadd.f32 %v1654_v47, %v1652_v44 }
 0x11e   :  { %v764_v52 = vadd.f32 %v763_v50, %v1656_v49 }
 0x120   :  { %v765_v53 = vadd.f32 %v764_v52, %v1660_v51 }
 0x122   :  { %766 = vadd.xlane.f32.xlu1 %v765_v53 }
 0x17f   :  { %v749_v55 = vpop.xlane.xlu0 %748 }
 0x18f   :  { %v755_v54 = vpop.xlane.xlu1 %754 }
 0x190   :  { %v756_v57 = vadd.f32 %v755_v54, %v749_v55 }
 0x19f   :  { %v761_v56 = vpop.xlane.xlu1 %760 }
 0x1a0   :  { %v762_v58 = vadd.f32 %v761_v56, %v756_v57 }
 0x1af   :  { %v767_v59 = vpop.xlane.xlu1 %766 }
 0x1b0   :  { %v768_v60 = vadd.f32 %v767_v59, %v762_v58 }
 0x1b2   :  { %v1664_v61 = vmul.f32 0.00048828125, %v768_v60 }
 0x1b4   :  { %v771_v62 = vsub.f32 %v1616_v11, %v1664_v61  ;;  %v772_v63 = vsub.f32 %v1618_v14, %v1664_v61  ;;  %v773_v0 = vsub.f32 %v1620_v15, %v1664_v61  ;;  %v774_v1 = vsub.f32 %v1624_v18, %v1664_v61 }
 0x1b5   :  { %v785_v2 = vsub.f32 %v1628_v22, %v1664_v61  ;;  %v786_v4 = vsub.f32 %v1630_v25, %v1664_v61  ;;  %v787_v3 = vsub.f32 %v1632_v26, %v1664_v61  ;;  %v788_v8 = vsub.f32 %v1634_v28, %v1664_v61 }
 0x1b6   :  { %v775_v5 = vmul.f32 %v771_v62, %v771_v62  ;;  %v776_v6 = vmul.f32 %v772_v63, %v772_v63  ;;  %v777_v7 = vmul.f32 %v773_v0, %v773_v0  ;;  %v778_v12 = vmul.f32 %v774_v1, %v774_v1 }
 0x1b7   :  { %v789_v9 = vmul.f32 %v785_v2, %v785_v2  ;;  %v790_v10 = vmul.f32 %v786_v4, %v786_v4  ;;  %v799_v16 = vsub.f32 %v1640_v33, %v1664_v61  ;;  %v800_v17 = vsub.f32 %v1642_v36, %v1664_v61 }
 0x1b8   :  { %v779_v13 = vadd.f32 %v776_v6, %v775_v5  ;;  %v791_v19 = vmul.f32 %v787_v3, %v787_v3  ;;  %v813_v21 = vsub.f32 %v1652_v44, %v1664_v61  ;;  %v814_v23 = vsub.f32 %v1654_v47, %v1664_v61  ;;  %v828_v3 = vld [vmem:[%s1772_s3] sm:$0xff] }
 0x1b9   :  { %v793_v20 = vadd.f32 %v790_v10, %v789_v9  ;;  %v801_v27 = vsub.f32 %v1644_v37, %v1664_v61  ;;  %v803_v29 = vmul.f32 %v799_v16, %v799_v16  ;;  %v804_v30 = vmul.f32 %v800_v17, %v800_v17 }
 0x1ba   :  { %v780_v24 = vadd.f32 %v779_v13, %v777_v7  ;;  %v817_v35 = vmul.f32 %v813_v21, %v813_v21  ;;  %v818_v38 = vmul.f32 %v814_v23, %v814_v23  ;;  %v792_v39 = vmul.f32 %v788_v8, %v788_v8  ;;  %v832_v7 = vld [vmem:[%s1773_s4] sm:$0xff] }
 0x1bb   :  { %v794_v31 = vadd.f32 %v793_v20, %v791_v19  ;;  %v807_v34 = vadd.f32 %v804_v30, %v803_v29  ;;  %v802_v41 = vsub.f32 %v1648_v40, %v1664_v61  ;;  %v805_v42 = vmul.f32 %v801_v27, %v801_v27 }
 0x1bc   :  { %v781_v32 = vadd.f32 %v780_v24, %v778_v12  ;;  %v815_v43 = vsub.f32 %v1656_v49, %v1664_v61  ;;  %v821_v48 = vadd.f32 %v818_v38, %v817_v35  ;;  %v816_v52 = vsub.f32 %v1660_v51, %v1664_v61 }
 0x1bd   :  { %v795_v45 = vadd.f32 %v794_v31, %v792_v39  ;;  %v808_v46 = vadd.f32 %v807_v34, %v805_v42  ;;  %v806_v50 = vmul.f32 %v802_v41, %v802_v41 }
 0x1be   :  { %782 = vadd.xlane.f32.xlu1 %v781_v32  ;;  %v819_v53 = vmul.f32 %v815_v43, %v815_v43  ;;  %v820_v56 = vmul.f32 %v816_v52, %v816_v52 }
 0x1bf   :  { %v809_v54 = vadd.f32 %v808_v46, %v806_v50 }
 0x1c0   :  { %v822_v55 = vadd.f32 %v821_v48, %v819_v53 }
 0x1c2   :  { %796 = vadd.xlane.f32.xlu1 %v795_v45  ;;  %v823_v57 = vadd.f32 %v822_v55, %v820_v56 }
 0x1c6   :  { %810 = vadd.xlane.f32.xlu1 %v809_v54 }
 0x1ca   :  { %824 = vadd.xlane.f32.xlu1 %v823_v57 }
 0x24b   :  { %v783_v58 = vpop.xlane.xlu1 %782 }
 0x24f   :  { %v797_v59 = vpop.xlane.xlu1 %796 }
 0x250   :  { %v798_v62 = vadd.f32 %v797_v59, %v783_v58 }
 0x253   :  { %v811_v60 = vpop.xlane.xlu1 %810 }
 0x254   :  { %v812_v63 = vadd.f32 %v811_v60, %v798_v62 }
 0x257   :  { %v825_v0 = vpop.xlane.xlu1 %824 }
 0x258   :  { %v826_v1 = vadd.f32 %v825_v0, %v812_v63 }
 0x25a   :  { %v827_v2 = vmul.f32 0.00048828125, %v826_v1 }
 0x25c   :  { %v829_v4 = vadd.f32 1e-05, %v827_v2 }
 0x25e   :  { %1167 = vrsqrt.f32 %v829_v4 }
 0x268   :  { %v1168_v5 = vpop.eup %1167 }
 0x269   :  { %v831_v6 = vmul.f32 %v1168_v5, %v828_v3 }
 0x26b   :  { %837 = vperm.xlu1 %1166, %v831_v6   ;;  %v833_v8 = vmul.f32 %v831_v6, %v1664_v61 }
 0x26d   :  { %v834_v9 = vsub.f32 %v832_v7, %v833_v8 }
 0x26f   :  { %846 = vperm.xlu0 %1165, %v834_v9  }
 0x2ea   :  { %v838_v10 = vpop.permute.xlu1 %837 }
 0x2eb   :  { %v840_v12 = vmul.f32 %v838_v10, %v1616_v11  ;;  %v841_v13 = vmul.f32 %v838_v10, %v1618_v14  ;;  %v842_v16 = vmul.f32 %v838_v10, %v1620_v15  ;;  %v843_v17 = vmul.f32 %v838_v10, %v1624_v18 }
 0x2ec   :  { %v861_v19 = vmul.f32 %v838_v10, %v1628_v22  ;;  %v862_v20 = vmul.f32 %v838_v10, %v1630_v25  ;;  %v863_v21 = vmul.f32 %v838_v10, %v1632_v26  ;;  %v864_v23 = vmul.f32 %v838_v10, %v1634_v28 }
 0x2ed   :  { %v878_v61 = vmul.f32 %v838_v10, %v1640_v33  ;;  %v879_v24 = vmul.f32 %v838_v10, %v1642_v36  ;;  %v880_v11 = vmul.f32 %v838_v10, %v1644_v37  ;;  %v881_v14 = vmul.f32 %v838_v10, %v1648_v40 }
 0x2ee   :  { %v895_v15 = vmul.f32 %v838_v10, %v1652_v44  ;;  %v896_v18 = vmul.f32 %v838_v10, %v1654_v47  ;;  %v897_v22 = vmul.f32 %v838_v10, %v1656_v49  ;;  %v898_v25 = vmul.f32 %v838_v10, %v1660_v51  ;;  %v847_v27 = vpop.permute.xlu0 %846 }
 0x2ef   :  { %v849_v26 = vadd.f32 %v847_v27, %v840_v12  ;;  %v850_v29 = vadd.f32 %v847_v27, %v841_v13  ;;  %v851_v28 = vadd.f32 %v847_v27, %v842_v16  ;;  %v852_v30 = vadd.f32 %v847_v27, %v843_v17 }
 0x2f0   :  { %v865_v33 = vadd.f32 %v861_v19, %v847_v27  ;;  %v866_v31 = vadd.f32 %v862_v20, %v847_v27  ;;  %v867_v36 = vadd.f32 %v863_v21, %v847_v27  ;;  %v868_v32 = vadd.f32 %v864_v23, %v847_v27 }
 0x2f1   :  { %v853_v37 = vmax.f32 %v849_v26, 0.0  ;;  %v854_v34 = vmax.f32 %v850_v29, 0.0  ;;  %v855_v40 = vmax.f32 %v851_v28, 0.0  ;;  %v856_v35 = vmax.f32 %v852_v30, 0.0 }
 0x2f2   :  { %v869_v44 = vmax.f32 %v865_v33, 0.0  ;;  %v870_v38 = vmax.f32 %v866_v31, 0.0  ;;  %v871_v47 = vmax.f32 %v867_v36, 0.0  ;;  %v872_v39 = vmax.f32 %v868_v32, 0.0 }
 0x2f3   :  { %857 = vst [vmem:[%s1774_s5] sm:$0xff] %v853_v37  ;;  %858 = vst [vmem:[%s1774_s5 + $0x8] sm:$0xff] %v854_v34  ;;  %v882_v49 = vadd.f32 %v878_v61, %v847_v27  ;;  %v883_v51 = vadd.f32 %v879_v24, %v847_v27  ;;  %v884_v41 = vadd.f32 %v880_v11, %v847_v27 }
 0x2f4   :  { %859 = vst [vmem:[%s1774_s5 + $0x10] sm:$0xff] %v855_v40  ;;  %860 = vst [vmem:[%s1774_s5 + $0x18] sm:$0xff] %v856_v35  ;;  %v885_v42 = vadd.f32 %v881_v14, %v847_v27  ;;  %v899_v43 = vadd.f32 %v895_v15, %v847_v27  ;;  %v900_v45 = vadd.f32 %v896_v18, %v847_v27 }
 0x2f5   :  { %1023 = vst [vmem:[%s1774_s5 + $0x20] sm:$0xff] %v869_v44  ;;  %1024 = vst [vmem:[%s1774_s5 + $0x28] sm:$0xff] %v870_v38  ;;  %v901_v46 = vadd.f32 %v897_v22, %v847_v27  ;;  %v902_v48 = vadd.f32 %v898_v25, %v847_v27  ;;  %v886_v50 = vmax.f32 %v882_v49, 0.0  ;;  %v887_v52 = vmax.f32 %v883_v51, 0.0 }
 0x2f6   :  { %1025 = vst [vmem:[%s1774_s5 + $0x30] sm:$0xff] %v871_v47  ;;  %1026 = vst [vmem:[%s1774_s5 + $0x38] sm:$0xff] %v872_v39  ;;  %v888_v53 = vmax.f32 %v884_v41, 0.0  ;;  %v889_v54 = vmax.f32 %v885_v42, 0.0  ;;  %v903_v55 = vmax.f32 %v899_v43, 0.0  ;;  %v904_v56 = vmax.f32 %v900_v45, 0.0 }
 0x2f7   :  { %v905_v57 = vmax.f32 %v901_v46, 0.0  ;;  %v906_v58 = vmax.f32 %v902_v48, 0.0  ;;  %1027 = vst [vmem:[%s1774_s5 + $0x40] sm:$0xff] %v886_v50  ;;  %1028 = vst [vmem:[%s1774_s5 + $0x48] sm:$0xff] %v887_v52 }
 0x2f8   :  { %1029 = vst [vmem:[%s1774_s5 + $0x50] sm:$0xff] %v888_v53  ;;  %1030 = vst [vmem:[%s1774_s5 + $0x58] sm:$0xff] %v889_v54 }
 0x2f9   :  { %1031 = vst [vmem:[%s1774_s5 + $0x60] sm:$0xff] %v903_v55  ;;  %1032 = vst [vmem:[%s1774_s5 + $0x68] sm:$0xff] %v904_v56 }
 0x2fa   :  { %1033 = vst [vmem:[%s1774_s5 + $0x70] sm:$0xff] %v905_v57  ;;  %1034 = vst [vmem:[%s1774_s5 + $0x78] sm:$0xff] %v906_v58 }

// kernel: cnn_autoencoder_forward.17
= control target key start
LH: loop header
LB: loop body
LE: loop exit
PB: predicated region body
PF: predicated region fallthrough
CT: control target
= control target key end

     0   :  { %s2435_s18 = smov 0   ;;  %s2437_s19 = smov 0   ;;  %s3010_s0 = inlined_call_operand.vmem [shape: f32[4,3,32], index: 0, kind: input, shape index: {}]   ;;  %s3011_s1 = inlined_call_operand.vmem [shape: f32[4,32,2048], index: 1, kind: input, shape index: {}]   ;;  %s3012_s2 = inlined_call_operand.vmem [shape: f32[3,1], index: 2, kind: input, shape index: {}]   ;;  %s3013_s3 = inlined_call_operand.vmem [shape: f32[3,1], index: 3, kind: input, shape index: {}]   ;;  %s3014_s4 = inlined_call_operand.vmem [shape: f32[3,1], index: 4, kind: input, shape index: {}]   ;;  %s3015_s5 = inlined_call_operand.vmem [shape: f32[4,3,2048], index: 5, kind: output, shape index: {}]  }
   0x1   :  { %s2439_s20 = smov 0  }
   0x2 LB: > { %s2016_s3 = sadd.s32 4294967295, %s2401_s20   ;;  %s2452_s4 = sadd.s32 1, %s2401_s20   ;;  %s2401_s20 = sphi %s2439_s20, %s3019_s20   ;;  %s2397_s19 = sphi %s2437_s19, %s3018_s19   ;;  %s2393_s18 = sphi %s2435_s18, %s3017_s18  }
   0x3   : > { %s40_s21 = ssub.s32 %s2401_s20, %s2452_s4  ;;  %s43_s22 = sadd.s32 1, %s2397_s19 }
   0x4   : > { %p41_p0 = scmp.eq.s32.totalorder %s40_s21, 0  ;;  %p50_p1 = scmp.ne.s32.totalorder %s2397_s19, %s2393_s18 }
   0x5   : > { %p51_p2 = scmp.eq.s32.totalorder %s2401_s20, 0  ;;  %p143_p3 = scmp.eq.s32.totalorder %s2016_s3, 1 }
   0x6   : > { %s2463_s23 = scalar_select %p41_p0, %s2397_s19, %s43_s22  }
   0x7   : > { %p52_p4 = por %p51_p2, %p50_p1  ;;  %p2465_p5 = por %p143_p3, %p50_p1 }
   0x8   : > { %p2019_p6 = scmp.ge.s32.totalorder %s2401_s20, 2 }
   0xa   : > { %177 = sbr.rel (%p2019_p6) target bundleno = 85 (0x55), region = 32 }
  0x11   : > { %180 = sbr.rel (!%p52_p4) target bundleno = 85 (0x55), region = 36  ;;  %s182_s25 = sand.u32 (%p52_p4), 1, %s2397_s19  }
  0x12   : > { %s2158_s26 = sshll.u32 (%p52_p4), %s2401_s20, 6  ;;  %s2020_s27 = sshll.u32 (%p52_p4), %s182_s25, 10 }
  0x13   : > { %s2475_s30 = scalar_lea.vmem (%p52_p4), %s3011_s1, %s2158_s26  ;;  %s2480_s6 = scalar_lea.vmem (%p52_p4), [#allocation2], %s2020_s27 }
  0x14   : > { %v200_v0 = vld [vmem:[%s2475_s30] sm:$0xff] (%p52_p4)  ;;  %v202_v1 = vld [vmem:[%s2475_s30 + $0x8] sm:$0xff] (%p52_p4)  ;;  %v204_v2 = vld [vmem:[%s2475_s30 + $0x10] sm:$0xff] (%p52_p4) }
  0x15   : > { %201 = vst [vmem:[%s2480_s6] sm:$0xff] (%p52_p4), %v200_v0  ;;  %203 = vst [vmem:[%s2480_s6 + $0x8] sm:$0xff] (%p52_p4), %v202_v1  ;;  %v206_v3 = vld [vmem:[%s2475_s30 + $0x18] sm:$0xff] (%p52_p4)  ;;  %v208_v4 = vld [vmem:[%s2475_s30 + $0x20] sm:$0xff] (%p52_p4) }
  0x16   : > { %205 = vst [vmem:[%s2480_s6 + $0x10] sm:$0xff] (%p52_p4), %v204_v2  ;;  %v210_v5 = vld [vmem:[%s2475_s30 + $0x28] sm:$0xff] (%p52_p4)  ;;  %207 = vst [vmem:[%s2480_s6 + $0x18] sm:$0xff] (%p52_p4), %v206_v3  ;;  %v212_v6 = vld [vmem:[%s2475_s30 + $0x30] sm:$0xff] (%p52_p4) }
  0x17   : > { %209 = vst [vmem:[%s2480_s6 + $0x20] sm:$0xff] (%p52_p4), %v208_v4  ;;  %211 = vst [vmem:[%s2480_s6 + $0x28] sm:$0xff] (%p52_p4), %v210_v5  ;;  %v214_v7 = vld [vmem:[%s2475_s30 + $0x38] sm:$0xff] (%p52_p4)  ;;  %v216_v8 = vld [vmem:[%s2475_s30 + $0x80] sm:$0xff] (%p52_p4) }
  0x18   : > { %213 = vst [vmem:[%s2480_s6 + $0x30] sm:$0xff] %v212_v6  ;;  %215 = vst [vmem:[%s2480_s6 + $0x38] sm:$0xff] %v214_v7  ;;  %v218_v9 = vld [vmem:[%s2475_s30 + $0x88] sm:$0xff]  ;;  %v220_v10 = vld [vmem:[%s2475_s30 + $0x90] sm:$0xff] }
  0x19   : > { %217 = vst [vmem:[%s2480_s6 + $0x40] sm:$0xff] %v216_v8  ;;  %v222_v11 = vld [vmem:[%s2475_s30 + $0x98] sm:$0xff]  ;;  %219 = vst [vmem:[%s2480_s6 + $0x48] sm:$0xff] %v218_v9  ;;  %v224_v12 = vld [vmem:[%s2475_s30 + $0xa0] sm:$0xff] }
  0x1a   : > { %221 = vst [vmem:[%s2480_s6 + $0x50] sm:$0xff] %v220_v10  ;;  %223 = vst [vmem:[%s2480_s6 + $0x58] sm:$0xff] %v222_v11  ;;  %v226_v13 = vld [vmem:[%s2475_s30 + $0xa8] sm:$0xff]  ;;  %v228_v14 = vld [vmem:[%s2475_s30 + $0xb0] sm:$0xff] }
  0x1b   : > { %225 = vst [vmem:[%s2480_s6 + $0x60] sm:$0xff] %v224_v12  ;;  %227 = vst [vmem:[%s2480_s6 + $0x68] sm:$0xff] %v226_v13  ;;  %v230_v15 = vld [vmem:[%s2475_s30 + $0xb8] sm:$0xff]  ;;  %v232_v16 = vld [vmem:[%s2475_s30 + $0x100] sm:$0xff] }
  0x1c   : > { %229 = vst [vmem:[%s2480_s6 + $0x70] sm:$0xff] %v228_v14  ;;  %v234_v17 = vld [vmem:[%s2475_s30 + $0x108] sm:$0xff]  ;;  %231 = vst [vmem:[%s2480_s6 + $0x78] sm:$0xff] %v230_v15  ;;  %v236_v18 = vld [vmem:[%s2475_s30 + $0x110] sm:$0xff] }
  0x1d   : > { %233 = vst [vmem:[%s2480_s6 + $0x80] sm:$0xff] %v232_v16  ;;  %235 = vst [vmem:[%s2480_s6 + $0x88] sm:$0xff] %v234_v17  ;;  %v238_v19 = vld [vmem:[%s2475_s30 + $0x118] sm:$0xff]  ;;  %v240_v20 = vld [vmem:[%s2475_s30 + $0x120] sm:$0xff] }
  0x1e   : > { %237 = vst [vmem:[%s2480_s6 + $0x90] sm:$0xff] %v236_v18  ;;  %239 = vst [vmem:[%s2480_s6 + $0x98] sm:$0xff] %v238_v19  ;;  %v242_v21 = vld [vmem:[%s2475_s30 + $0x128] sm:$0xff]  ;;  %v244_v22 = vld [vmem:[%s2475_s30 + $0x130] sm:$0xff] }
  0x1f   : > { %241 = vst [vmem:[%s2480_s6 + $0xa0] sm:$0xff] %v240_v20  ;;  %v246_v23 = vld [vmem:[%s2475_s30 + $0x138] sm:$0xff]  ;;  %243 = vst [vmem:[%s2480_s6 + $0xa8] sm:$0xff] %v242_v21  ;;  %v248_v24 = vld [vmem:[%s2475_s30 + $0x180] sm:$0xff] }
  0x20   : > { %245 = vst [vmem:[%s2480_s6 + $0xb0] sm:$0xff] %v244_v22  ;;  %247 = vst [vmem:[%s2480_s6 + $0xb8] sm:$0xff] %v246_v23  ;;  %v250_v25 = vld [vmem:[%s2475_s30 + $0x188] sm:$0xff]  ;;  %v252_v26 = vld [vmem:[%s2475_s30 + $0x190] sm:$0xff] }
  0x21   : > { %249 = vst [vmem:[%s2480_s6 + $0xc0] sm:$0xff] %v248_v24  ;;  %251 = vst [vmem:[%s2480_s6 + $0xc8] sm:$0xff] %v250_v25  ;;  %v254_v27 = vld [vmem:[%s2475_s30 + $0x198] sm:$0xff]  ;;  %v256_v28 = vld [vmem:[%s2475_s30 + $0x1a0] sm:$0xff] }
  0x22   : > { %253 = vst [vmem:[%s2480_s6 + $0xd0] sm:$0xff] %v252_v26  ;;  %v258_v29 = vld [vmem:[%s2475_s30 + $0x1a8] sm:$0xff]  ;;  %255 = vst [vmem:[%s2480_s6 + $0xd8] sm:$0xff] %v254_v27  ;;  %v260_v30 = vld [vmem:[%s2475_s30 + $0x1b0] sm:$0xff] }
  0x23   : > { %257 = vst [vmem:[%s2480_s6 + $0xe0] sm:$0xff] %v256_v28  ;;  %259 = vst [vmem:[%s2480_s6 + $0xe8] sm:$0xff] %v258_v29  ;;  %v262_v31 = vld [vmem:[%s2475_s30 + $0x1b8] sm:$0xff]  ;;  %v264_v32 = vld [vmem:[%s2475_s30 + $0x200] sm:$0xff] }
  0x24   : > { %261 = vst [vmem:[%s2480_s6 + $0xf0] sm:$0xff] %v260_v30  ;;  %263 = vst [vmem:[%s2480_s6 + $0xf8] sm:$0xff] %v262_v31  ;;  %v266_v33 = vld [vmem:[%s2475_s30 + $0x208] sm:$0xff]  ;;  %v268_v34 = vld [vmem:[%s2475_s30 + $0x210] sm:$0xff] }
  0x25   : > { %265 = vst [vmem:[%s2480_s6 + $0x100] sm:$0xff] %v264_v32  ;;  %v270_v35 = vld [vmem:[%s2475_s30 + $0x218] sm:$0xff]  ;;  %267 = vst [vmem:[%s2480_s6 + $0x108] sm:$0xff] %v266_v33  ;;  %v272_v36 = vld [vmem:[%s2475_s30 + $0x220] sm:$0xff] }
  0x26   : > { %269 = vst [vmem:[%s2480_s6 + $0x110] sm:$0xff] %v268_v34  ;;  %271 = vst [vmem:[%s2480_s6 + $0x118] sm:$0xff] %v270_v35  ;;  %v274_v37 = vld [vmem:[%s2475_s30 + $0x228] sm:$0xff]  ;;  %v276_v38 = vld [vmem:[%s2475_s30 + $0x230] sm:$0xff] }
  0x27   : > { %273 = vst [vmem:[%s2480_s6 + $0x120] sm:$0xff] %v272_v36  ;;  %275 = vst [vmem:[%s2480_s6 + $0x128] sm:$0xff] %v274_v37  ;;  %v278_v39 = vld [vmem:[%s2475_s30 + $0x238] sm:$0xff]  ;;  %v280_v40 = vld [vmem:[%s2475_s30 + $0x280] sm:$0xff] }
  0x28   : > { %277 = vst [vmem:[%s2480_s6 + $0x130] sm:$0xff] %v276_v38  ;;  %v282_v41 = vld [vmem:[%s2475_s30 + $0x288] sm:$0xff]  ;;  %279 = vst [vmem:[%s2480_s6 + $0x138] sm:$0xff] %v278_v39  ;;  %v284_v42 = vld [vmem:[%s2475_s30 + $0x290] sm:$0xff] }
  0x29   : > { %281 = vst [vmem:[%s2480_s6 + $0x140] sm:$0xff] %v280_v40  ;;  %283 = vst [vmem:[%s2480_s6 + $0x148] sm:$0xff] %v282_v41  ;;  %v286_v43 = vld [vmem:[%s2475_s30 + $0x298] sm:$0xff]  ;;  %v288_v44 = vld [vmem:[%s2475_s30 + $0x2a0] sm:$0xff] }
  0x2a   : > { %285 = vst [vmem:[%s2480_s6 + $0x150] sm:$0xff] %v284_v42  ;;  %287 = vst [vmem:[%s2480_s6 + $0x158] sm:$0xff] %v286_v43  ;;  %v290_v45 = vld [vmem:[%s2475_s30 + $0x2a8] sm:$0xff]  ;;  %v292_v46 = vld [vmem:[%s2475_s30 + $0x2b0] sm:$0xff] }
  0x2b   : > { %289 = vst [vmem:[%s2480_s6 + $0x160] sm:$0xff] %v288_v44  ;;  %v294_v47 = vld [vmem:[%s2475_s30 + $0x2b8] sm:$0xff]  ;;  %291 = vst [vmem:[%s2480_s6 + $0x168] sm:$0xff] %v290_v45  ;;  %v296_v48 = vld [vmem:[%s2475_s30 + $0x300] sm:$0xff] }
  0x2c   : > { %293 = vst [vmem:[%s2480_s6 + $0x170] sm:$0xff] %v292_v46  ;;  %295 = vst [vmem:[%s2480_s6 + $0x178] sm:$0xff] %v294_v47  ;;  %v298_v49 = vld [vmem:[%s2475_s30 + $0x308] sm:$0xff]  ;;  %v300_v50 = vld [vmem:[%s2475_s30 + $0x310] sm:$0xff] }
  0x2d   : > { %297 = vst [vmem:[%s2480_s6 + $0x180] sm:$0xff] %v296_v48  ;;  %299 = vst [vmem:[%s2480_s6 + $0x188] sm:$0xff] %v298_v49  ;;  %v302_v51 = vld [vmem:[%s2475_s30 + $0x318] sm:$0xff]  ;;  %v304_v52 = vld [vmem:[%s2475_s30 + $0x320] sm:$0xff] }
  0x2e   : > { %301 = vst [vmem:[%s2480_s6 + $0x190] sm:$0xff] %v300_v50  ;;  %v306_v53 = vld [vmem:[%s2475_s30 + $0x328] sm:$0xff]  ;;  %303 = vst [vmem:[%s2480_s6 + $0x198] sm:$0xff] %v302_v51  ;;  %v308_v54 = vld [vmem:[%s2475_s30 + $0x330] sm:$0xff] }
  0x2f   : > { %305 = vst [vmem:[%s2480_s6 + $0x1a0] sm:$0xff] %v304_v52  ;;  %307 = vst [vmem:[%s2480_s6 + $0x1a8] sm:$0xff] %v306_v53  ;;  %v310_v55 = vld [vmem:[%s2475_s30 + $0x338] sm:$0xff]  ;;  %v312_v56 = vld [vmem:[%s2475_s30 + $0x380] sm:$0xff] }
  0x30   : > { %309 = vst [vmem:[%s2480_s6 + $0x1b0] sm:$0xff] %v308_v54  ;;  %311 = vst [vmem:[%s2480_s6 + $0x1b8] sm:$0xff] %v310_v55  ;;  %v314_v57 = vld [vmem:[%s2475_s30 + $0x388] sm:$0xff]  ;;  %v316_v58 = vld [vmem:[%s2475_s30 + $0x390] sm:$0xff] }
  0x31   : > { %313 = vst [vmem:[%s2480_s6 + $0x1c0] sm:$0xff] %v312_v56  ;;  %v318_v59 = vld [vmem:[%s2475_s30 + $0x398] sm:$0xff]  ;;  %315 = vst [vmem:[%s2480_s6 + $0x1c8] sm:$0xff] %v314_v57  ;;  %v320_v60 = vld [vmem:[%s2475_s30 + $0x3a0] sm:$0xff] }
  0x32   : > { %317 = vst [vmem:[%s2480_s6 + $0x1d0] sm:$0xff] %v316_v58  ;;  %319 = vst [vmem:[%s2480_s6 + $0x1d8] sm:$0xff] %v318_v59  ;;  %v322_v61 = vld [vmem:[%s2475_s30 + $0x3a8] sm:$0xff]  ;;  %v324_v62 = vld [vmem:[%s2475_s30 + $0x3b0] sm:$0xff] }
  0x33   : > { %321 = vst [vmem:[%s2480_s6 + $0x1e0] sm:$0xff] %v320_v60  ;;  %323 = vst [vmem:[%s2480_s6 + $0x1e8] sm:$0xff] %v322_v61  ;;  %v326_v63 = vld [vmem:[%s2475_s30 + $0x3b8] sm:$0xff]  ;;  %v328_v0 = vld [vmem:[%s2475_s30 + $0x400] sm:$0xff] }
  0x34   : > { %325 = vst [vmem:[%s2480_s6 + $0x1f0] sm:$0xff] %v324_v62  ;;  %v330_v1 = vld [vmem:[%s2475_s30 + $0x408] sm:$0xff]  ;;  %327 = vst [vmem:[%s2480_s6 + $0x1f8] sm:$0xff] %v326_v63  ;;  %v332_v2 = vld [vmem:[%s2475_s30 + $0x410] sm:$0xff] }
  0x35   : > { %329 = vst [vmem:[%s2480_s6 + $0x200] sm:$0xff] %v328_v0  ;;  %331 = vst [vmem:[%s2480_s6 + $0x208] sm:$0xff] %v330_v1  ;;  %v334_v3 = vld [vmem:[%s2475_s30 + $0x418] sm:$0xff]  ;;  %v336_v4 = vld [vmem:[%s2475_s30 + $0x420] sm:$0xff] }
  0x36   : > { %333 = vst [vmem:[%s2480_s6 + $0x210] sm:$0xff] %v332_v2  ;;  %335 = vst [vmem:[%s2480_s6 + $0x218] sm:$0xff] %v334_v3  ;;  %v338_v5 = vld [vmem:[%s2475_s30 + $0x428] sm:$0xff]  ;;  %v340_v6 = vld [vmem:[%s2475_s30 + $0x430] sm:$0xff] }
  0x37   : > { %337 = vst [vmem:[%s2480_s6 + $0x220] sm:$0xff] %v336_v4  ;;  %v342_v7 = vld [vmem:[%s2475_s30 + $0x438] sm:$0xff]  ;;  %339 = vst [vmem:[%s2480_s6 + $0x228] sm:$0xff] %v338_v5  ;;  %v344_v8 = vld [vmem:[%s2475_s30 + $0x480] sm:$0xff] }
  0x38   : > { %341 = vst [vmem:[%s2480_s6 + $0x230] sm:$0xff] %v340_v6  ;;  %343 = vst [vmem:[%s2480_s6 + $0x238] sm:$0xff] %v342_v7  ;;  %v346_v9 = vld [vmem:[%s2475_s30 + $0x488] sm:$0xff]  ;;  %v348_v10 = vld [vmem:[%s2475_s30 + $0x490] sm:$0xff] }
  0x39   : > { %345 = vst [vmem:[%s2480_s6 + $0x240] sm:$0xff] %v344_v8  ;;  %347 = vst [vmem:[%s2480_s6 + $0x248] sm:$0xff] %v346_v9  ;;  %v350_v11 = vld [vmem:[%s2475_s30 + $0x498] sm:$0xff]  ;;  %v352_v12 = vld [vmem:[%s2475_s30 + $0x4a0] sm:$0xff] }
  0x3a   : > { %349 = vst [vmem:[%s2480_s6 + $0x250] sm:$0xff] %v348_v10  ;;  %v354_v13 = vld [vmem:[%s2475_s30 + $0x4a8] sm:$0xff]  ;;  %351 = vst [vmem:[%s2480_s6 + $0x258] sm:$0xff] %v350_v11  ;;  %v356_v14 = vld [vmem:[%s2475_s30 + $0x4b0] sm:$0xff] }
  0x3b   : > { %353 = vst [vmem:[%s2480_s6 + $0x260] sm:$0xff] %v352_v12  ;;  %355 = vst [vmem:[%s2480_s6 + $0x268] sm:$0xff] %v354_v13  ;;  %v358_v15 = vld [vmem:[%s2475_s30 + $0x4b8] sm:$0xff]  ;;  %v360_v16 = vld [vmem:[%s2475_s30 + $0x500] sm:$0xff] }
  0x3c   : > { %357 = vst [vmem:[%s2480_s6 + $0x270] sm:$0xff] %v356_v14  ;;  %359 = vst [vmem:[%s2480_s6 + $0x278] sm:$0xff] %v358_v15  ;;  %v362_v17 = vld [vmem:[%s2475_s30 + $0x508] sm:$0xff]  ;;  %v364_v18 = vld [vmem:[%s2475_s30 + $0x510] sm:$0xff] }
  0x3d   : > { %361 = vst [vmem:[%s2480_s6 + $0x280] sm:$0xff] %v360_v16  ;;  %v366_v19 = vld [vmem:[%s2475_s30 + $0x518] sm:$0xff]  ;;  %363 = vst [vmem:[%s2480_s6 + $0x288] sm:$0xff] %v362_v17  ;;  %v368_v20 = vld [vmem:[%s2475_s30 + $0x520] sm:$0xff] }
  0x3e   : > { %365 = vst [vmem:[%s2480_s6 + $0x290] sm:$0xff] %v364_v18  ;;  %367 = vst [vmem:[%s2480_s6 + $0x298] sm:$0xff] %v366_v19  ;;  %v370_v21 = vld [vmem:[%s2475_s30 + $0x528] sm:$0xff]  ;;  %v372_v22 = vld [vmem:[%s2475_s30 + $0x530] sm:$0xff] }
  0x3f   : > { %369 = vst [vmem:[%s2480_s6 + $0x2a0] sm:$0xff] %v368_v20  ;;  %371 = vst [vmem:[%s2480_s6 + $0x2a8] sm:$0xff] %v370_v21  ;;  %v374_v23 = vld [vmem:[%s2475_s30 + $0x538] sm:$0xff]  ;;  %v376_v24 = vld [vmem:[%s2475_s30 + $0x580] sm:$0xff] }
  0x40   : > { %373 = vst [vmem:[%s2480_s6 + $0x2b0] sm:$0xff] %v372_v22  ;;  %v378_v25 = vld [vmem:[%s2475_s30 + $0x588] sm:$0xff]  ;;  %375 = vst [vmem:[%s2480_s6 + $0x2b8] sm:$0xff] %v374_v23  ;;  %v380_v26 = vld [vmem:[%s2475_s30 + $0x590] sm:$0xff] }
  0x41   : > { %377 = vst [vmem:[%s2480_s6 + $0x2c0] sm:$0xff] %v376_v24  ;;  %379 = vst [vmem:[%s2480_s6 + $0x2c8] sm:$0xff] %v378_v25  ;;  %v382_v27 = vld [vmem:[%s2475_s30 + $0x598] sm:$0xff]  ;;  %v384_v28 = vld [vmem:[%s2475_s30 + $0x5a0] sm:$0xff] }
  0x42   : > { %381 = vst [vmem:[%s2480_s6 + $0x2d0] sm:$0xff] %v380_v26  ;;  %383 = vst [vmem:[%s2480_s6 + $0x2d8] sm:$0xff] %v382_v27  ;;  %v386_v29 = vld [vmem:[%s2475_s30 + $0x5a8] sm:$0xff]  ;;  %v388_v30 = vld [vmem:[%s2475_s30 + $0x5b0] sm:$0xff] }
  0x43   : > { %385 = vst [vmem:[%s2480_s6 + $0x2e0] sm:$0xff] %v384_v28  ;;  %v390_v31 = vld [vmem:[%s2475_s30 + $0x5b8] sm:$0xff]  ;;  %387 = vst [vmem:[%s2480_s6 + $0x2e8] sm:$0xff] %v386_v29  ;;  %v392_v32 = vld [vmem:[%s2475_s30 + $0x600] sm:$0xff] }
  0x44   : > { %389 = vst [vmem:[%s2480_s6 + $0x2f0] sm:$0xff] %v388_v30  ;;  %391 = vst [vmem:[%s2480_s6 + $0x2f8] sm:$0xff] %v390_v31  ;;  %v394_v33 = vld [vmem:[%s2475_s30 + $0x608] sm:$0xff]  ;;  %v396_v34 = vld [vmem:[%s2475_s30 + $0x610] sm:$0xff] }
  0x45   : > { %393 = vst [vmem:[%s2480_s6 + $0x300] sm:$0xff] %v392_v32  ;;  %395 = vst [vmem:[%s2480_s6 + $0x308] sm:$0xff] %v394_v33  ;;  %v398_v35 = vld [vmem:[%s2475_s30 + $0x618] sm:$0xff]  ;;  %v400_v36 = vld [vmem:[%s2475_s30 + $0x620] sm:$0xff] }
  0x46   : > { %397 = vst [vmem:[%s2480_s6 + $0x310] sm:$0xff] %v396_v34  ;;  %v402_v37 = vld [vmem:[%s2475_s30 + $0x628] sm:$0xff]  ;;  %399 = vst [vmem:[%s2480_s6 + $0x318] sm:$0xff] %v398_v35  ;;  %v404_v38 = vld [vmem:[%s2475_s30 + $0x630] sm:$0xff] }
  0x47   : > { %401 = vst [vmem:[%s2480_s6 + $0x320] sm:$0xff] %v400_v36  ;;  %403 = vst [vmem:[%s2480_s6 + $0x328] sm:$0xff] %v402_v37  ;;  %v406_v39 = vld [vmem:[%s2475_s30 + $0x638] sm:$0xff]  ;;  %v408_v40 = vld [vmem:[%s2475_s30 + $0x680] sm:$0xff] }
  0x48   : > { %405 = vst [vmem:[%s2480_s6 + $0x330] sm:$0xff] %v404_v38  ;;  %407 = vst [vmem:[%s2480_s6 + $0x338] sm:$0xff] %v406_v39  ;;  %v410_v41 = vld [vmem:[%s2475_s30 + $0x688] sm:$0xff]  ;;  %v412_v42 = vld [vmem:[%s2475_s30 + $0x690] sm:$0xff] }
  0x49   : > { %409 = vst [vmem:[%s2480_s6 + $0x340] sm:$0xff] %v408_v40  ;;  %v414_v43 = vld [vmem:[%s2475_s30 + $0x698] sm:$0xff]  ;;  %411 = vst [vmem:[%s2480_s6 + $0x348] sm:$0xff] %v410_v41  ;;  %v416_v44 = vld [vmem:[%s2475_s30 + $0x6a0] sm:$0xff] }
  0x4a   : > { %413 = vst [vmem:[%s2480_s6 + $0x350] sm:$0xff] %v412_v42  ;;  %415 = vst [vmem:[%s2480_s6 + $0x358] sm:$0xff] %v414_v43  ;;  %v418_v45 = vld [vmem:[%s2475_s30 + $0x6a8] sm:$0xff]  ;;  %v420_v46 = vld [vmem:[%s2475_s30 + $0x6b0] sm:$0xff] }
  0x4b   : > { %417 = vst [vmem:[%s2480_s6 + $0x360] sm:$0xff] %v416_v44  ;;  %419 = vst [vmem:[%s2480_s6 + $0x368] sm:$0xff] %v418_v45  ;;  %v422_v47 = vld [vmem:[%s2475_s30 + $0x6b8] sm:$0xff]  ;;  %v424_v48 = vld [vmem:[%s2475_s30 + $0x700] sm:$0xff] }
  0x4c   : > { %421 = vst [vmem:[%s2480_s6 + $0x370] sm:$0xff] %v420_v46  ;;  %v426_v49 = vld [vmem:[%s2475_s30 + $0x708] sm:$0xff]  ;;  %423 = vst [vmem:[%s2480_s6 + $0x378] sm:$0xff] %v422_v47  ;;  %v428_v50 = vld [vmem:[%s2475_s30 + $0x710] sm:$0xff] }
  0x4d   : > { %425 = vst [vmem:[%s2480_s6 + $0x380] sm:$0xff] %v424_v48  ;;  %427 = vst [vmem:[%s2480_s6 + $0x388] sm:$0xff] %v426_v49  ;;  %v430_v51 = vld [vmem:[%s2475_s30 + $0x718] sm:$0xff]  ;;  %v432_v52 = vld [vmem:[%s2475_s30 + $0x720] sm:$0xff] }
  0x4e   : > { %429 = vst [vmem:[%s2480_s6 + $0x390] sm:$0xff] %v428_v50  ;;  %431 = vst [vmem:[%s2480_s6 + $0x398] sm:$0xff] %v430_v51  ;;  %v434_v53 = vld [vmem:[%s2475_s30 + $0x728] sm:$0xff]  ;;  %v436_v54 = vld [vmem:[%s2475_s30 + $0x730] sm:$0xff] }
  0x4f   : > { %433 = vst [vmem:[%s2480_s6 + $0x3a0] sm:$0xff] %v432_v52  ;;  %v438_v55 = vld [vmem:[%s2475_s30 + $0x738] sm:$0xff]  ;;  %435 = vst [vmem:[%s2480_s6 + $0x3a8] sm:$0xff] %v434_v53  ;;  %v440_v56 = vld [vmem:[%s2475_s30 + $0x780] sm:$0xff] }
  0x50   : > { %437 = vst [vmem:[%s2480_s6 + $0x3b0] sm:$0xff] %v436_v54  ;;  %439 = vst [vmem:[%s2480_s6 + $0x3b8] sm:$0xff] %v438_v55  ;;  %v442_v57 = vld [vmem:[%s2475_s30 + $0x788] sm:$0xff]  ;;  %v444_v58 = vld [vmem:[%s2475_s30 + $0x790] sm:$0xff] }
  0x51   : > { %441 = vst [vmem:[%s2480_s6 + $0x3c0] sm:$0xff] %v440_v56  ;;  %443 = vst [vmem:[%s2480_s6 + $0x3c8] sm:$0xff] %v442_v57  ;;  %v446_v59 = vld [vmem:[%s2475_s30 + $0x798] sm:$0xff]  ;;  %v448_v60 = vld [vmem:[%s2475_s30 + $0x7a0] sm:$0xff] }
  0x52   : > { %445 = vst [vmem:[%s2480_s6 + $0x3d0] sm:$0xff] %v444_v58  ;;  %v450_v61 = vld [vmem:[%s2475_s30 + $0x7a8] sm:$0xff]  ;;  %447 = vst [vmem:[%s2480_s6 + $0x3d8] sm:$0xff] %v446_v59  ;;  %v452_v62 = vld [vmem:[%s2475_s30 + $0x7b0] sm:$0xff] }
  0x53   : > { %449 = vst [vmem:[%s2480_s6 + $0x3e0] sm:$0xff] %v448_v60  ;;  %451 = vst [vmem:[%s2480_s6 + $0x3e8] sm:$0xff] %v450_v61  ;;  %v454_v63 = vld [vmem:[%s2475_s30 + $0x7b8] sm:$0xff] }
  0x54   : > { %453 = vst [vmem:[%s2480_s6 + $0x3f0] sm:$0xff] %v452_v62  ;;  %455 = vst [vmem:[%s2480_s6 + $0x3f8] sm:$0xff] %v454_v63 }
  0x55 PF: > { %p2023_p7 = scmp.ge.s32.totalorder %s2401_s20, 1  ;;  %p460_p8 = scmp.lt.s32.totalorder %s2401_s20, 3 }
  0x57   : > { %p461_p9 = pnand %p2023_p7, %p460_p8 }
  0x58   : > { %s467_s7 = sand.u32 (!%p461_p9), 1, %s2393_s18   ;;  %v2403_v0 = vmov (!%p461_p9), 0.0   ;;  %v2404_v1 = vmov (!%p461_p9), 0   ;;  %v495_v2 = vld [vmem:[%s3012_s2] sm:$0x7] (!%p461_p9)  ;;  %vm534_vm0 = vcmask (!%p461_p9), 261120  }
  0x59   : > { %464 = sbr.rel (%p461_p9) target bundleno = 398 (0x18e), region = 59  ;;  %s2024_s8 = sshll.u32 (!%p461_p9), %s467_s7, 10  ;;  %602 = vmatprep.mubr.f32.mxu0 (!%p461_p9), %v2403_v0  ;;  %673 = vmatprep.mubr.f32.mxu1 (!%p461_p9), %v2403_v0  ;;  %v2768_v29 = vld [vmem:[%s3010_s0] sm:$0x7] (!%p461_p9) }
  0x5a   : > { %2314 = vset.pattern.permute.xlu0 (!%p461_p9), %v2404_v1  ;;  %s2745_s11 = scalar_lea.vmem (!%p461_p9), [#allocation2], %s2024_s8  ;;  %s2025_s25 = sshll.u32 (!%p461_p9), %s467_s7, 7 }
  0x5b   : > { %v498_v3 = vld [vmem:[%s2745_s11 + $0x8] sm:$0xff] (!%p461_p9)  ;;  %v500_v5 = vld [vmem:[%s2745_s11 + $0x18] sm:$0xff] (!%p461_p9)  ;;  %531 = vperm.xlu0 (!%p461_p9), %2314, %v495_v2   ;;  %v497_v8 = vld [vmem:[%s2745_s11] sm:$0xff] (!%p461_p9)  ;;  %s2935_s26 = scalar_lea.vmem (!%p461_p9), [#allocation3], %s2025_s25 }
  0x5c   : > { %v506_v4 = vld [vmem:[%s2745_s11 + $0x48] sm:$0xff] (!%p461_p9)  ;;  %v508_v7 = vld [vmem:[%s2745_s11 + $0x58] sm:$0xff] (!%p461_p9)  ;;  %v505_v9 = vld [vmem:[%s2745_s11 + $0x40] sm:$0xff] (!%p461_p9) }
  0x5d   : > { %v2160_v6 = vpack.c.bf16 (!%p461_p9), %v506_v4, %v498_v3  ;;  %v2168_v10 = vpack.c.bf16 (!%p461_p9), %v508_v7, %v500_v5  ;;  %v2162_v11 = vpack.c.bf16 (!%p461_p9), %v505_v9, %v497_v8  ;;  %v499_v12 = vld [vmem:[%s2745_s11 + $0x10] sm:$0xff] (!%p461_p9)  ;;  %v514_v14 = vld [vmem:[%s2745_s11 + $0x88] sm:$0xff] (!%p461_p9)  ;;  %v516_v17 = vld [vmem:[%s2745_s11 + $0x98] sm:$0xff] (!%p461_p9) }
  0x5e   : > { %v507_v13 = vld [vmem:[%s2745_s11 + $0x50] sm:$0xff] (!%p461_p9)  ;;  %v522_v16 = vld [vmem:[%s2745_s11 + $0xc8] sm:$0xff] (!%p461_p9)  ;;  %v524_v18 = vld [vmem:[%s2745_s11 + $0xd8] sm:$0xff] (!%p461_p9) }
  0x5f   : > { %2161 = vmatprep.subr.bf16.mxu0 (!%p461_p9), %v2160_v6  ;;  %v2170_v15 = vpack.c.bf16 (!%p461_p9), %v507_v13, %v499_v12  ;;  %2169 = vmatprep.subr.bf16.mxu1 (!%p461_p9), %v2168_v10  ;;  %v2164_v19 = vpack.c.bf16 (!%p461_p9), %v522_v16, %v514_v14  ;;  %v2172_v20 = vpack.c.bf16 (!%p461_p9), %v524_v18, %v516_v17  ;;  %v513_v21 = vld [vmem:[%s2745_s11 + $0x80] sm:$0xff] (!%p461_p9)  ;;  %v515_v23 = vld [vmem:[%s2745_s11 + $0x90] sm:$0xff] (!%p461_p9)  ;;  %v502_v26 = vld [vmem:[%s2745_s11 + $0x28] sm:$0xff] (!%p461_p9) }
  0x60   : > { %2163 = vmatpush1.bf16.msra.mxu0 %v2162_v11  ;;  %v521_v22 = vld [vmem:[%s2745_s11 + $0xc0] sm:$0xff]  ;;  %v523_v25 = vld [vmem:[%s2745_s11 + $0xd0] sm:$0xff]  ;;  %v510_v27 = vld [vmem:[%s2745_s11 + $0x68] sm:$0xff]  ;;  %s2159_s18 = sshll.u32 (%p2465_p5), %s2016_s3, 5 }
  0x61   : > { %2171 = vmatpush1.bf16.msra.mxu1 %v2170_v15  ;;  %v2166_v24 = vpack.c.bf16 %v521_v22, %v513_v21  ;;  %2165 = vmatprep.subr.bf16.mxu0 %v2164_v19  ;;  %v2174_v28 = vpack.c.bf16 %v523_v25, %v515_v23  ;;  %v2176_v30 = vpack.c.bf16 %v510_v27, %v502_v26  ;;  %v504_v31 = vld [vmem:[%s2745_s11 + $0x38] sm:$0xff]  ;;  %v501_v33 = vld [vmem:[%s2745_s11 + $0x20] sm:$0xff]  ;;  %v503_v36 = vld [vmem:[%s2745_s11 + $0x30] sm:$0xff]  ;;  %s1912_s24 = scalar_lea.vmem (%p2465_p5), %s3015_s5, %s2159_s18 }
  0x62   : > { %2173 = vmatprep.subr.bf16.mxu1 %v2172_v20  ;;  %v512_v32 = vld [vmem:[%s2745_s11 + $0x78] sm:$0xff]  ;;  %v509_v35 = vld [vmem:[%s2745_s11 + $0x60] sm:$0xff]  ;;  %v511_v37 = vld [vmem:[%s2745_s11 + $0x70] sm:$0xff] }
  0x63   : > { %v2184_v34 = vpack.c.bf16 %v512_v32, %v504_v31  ;;  %v2178_v38 = vpack.c.bf16 %v509_v35, %v501_v33  ;;  %v518_v39 = vld [vmem:[%s2745_s11 + $0xa8] sm:$0xff]  ;;  %v520_v41 = vld [vmem:[%s2745_s11 + $0xb8] sm:$0xff]  ;;  %v2186_v42 = vpack.c.bf16 %v511_v37, %v503_v36  ;;  %v517_v45 = vld [vmem:[%s2745_s11 + $0xa0] sm:$0xff] }
  0x64   : > { %2167 = vmatpush1.bf16.msra.mxu0 %v2166_v24  ;;  %v526_v40 = vld [vmem:[%s2745_s11 + $0xe8] sm:$0xff]  ;;  %v528_v44 = vld [vmem:[%s2745_s11 + $0xf8] sm:$0xff]  ;;  %v525_v46 = vld [vmem:[%s2745_s11 + $0xe0] sm:$0xff] }
  0x65   : > { %2175 = vmatpush1.bf16.msra.mxu1 %v2174_v28  ;;  %2177 = vmatprep.subr.bf16.mxu0 %v2176_v30  ;;  %v2180_v43 = vpack.c.bf16 %v526_v40, %v518_v39  ;;  %v2188_v47 = vpack.c.bf16 %v528_v44, %v520_v41  ;;  %v519_v48 = vld [vmem:[%s2745_s11 + $0xb0] sm:$0xff]  ;;  %v2032_v50 = vld [vmem:[%s2745_s11 + $0x108] sm:$0xff]  ;;  %v2034_v52 = vld [vmem:[%s2745_s11 + $0x118] sm:$0xff]  ;;  %v2182_v54 = vpack.c.bf16 %v525_v46, %v517_v45 }
  0x66   : > { %2185 = vmatprep.subr.bf16.mxu1 %v2184_v34  ;;  %v527_v49 = vld [vmem:[%s2745_s11 + $0xf0] sm:$0xff]  ;;  %v2040_v51 = vld [vmem:[%s2745_s11 + $0x148] sm:$0xff]  ;;  %v2042_v53 = vld [vmem:[%s2745_s11 + $0x158] sm:$0xff] }
  0x67   : > { %2026 = vmatmul.mubr.msk.f32.vlgmr.msra.gmra.mrb[0].mxu0 %vm534_vm0, %v2768_v29  ;;  %v2190_v55 = vpack.c.bf16 %v527_v49, %v519_v48  ;;  %v2192_v56 = vpack.c.bf16 %v2040_v51, %v2032_v50  ;;  %v2031_v57 = vld [vmem:[%s2745_s11 + $0x100] sm:$0xff]  ;;  %v2033_v59 = vld [vmem:[%s2745_s11 + $0x110] sm:$0xff]  ;;  %v2200_v60 = vpack.c.bf16 %v2042_v53, %v2034_v52  ;;  %v2048_v62 = vld [vmem:[%s2745_s11 + $0x188] sm:$0xff] }
  0x68   : > { %2027 = vmatmul.mubr.msk.f32.vlgmr.msra.gmra.mrb[0].mxu1 %vm534_vm0, %v2768_v29  ;;  %2179 = vmatpush1.bf16.msra.mxu0 %v2178_v38  ;;  %v2039_v58 = vld [vmem:[%s2745_s11 + $0x140] sm:$0xff]  ;;  %v2041_v61 = vld [vmem:[%s2745_s11 + $0x150] sm:$0xff]  ;;  %v2056_v63 = vld [vmem:[%s2745_s11 + $0x1c8] sm:$0xff] }
  0x69   : > { %2187 = vmatpush1.bf16.msra.mxu1 %v2186_v42  ;;  %2181 = vmatprep.subr.bf16.mxu0 %v2180_v43  ;;  %v2050_v1 = vld [vmem:[%s2745_s11 + $0x198] sm:$0xff]  ;;  %v2194_v3 = vpack.c.bf16 %v2039_v58, %v2031_v57  ;;  %v2202_v4 = vpack.c.bf16 %v2041_v61, %v2033_v59  ;;  %v2196_v5 = vpack.c.bf16 %v2056_v63, %v2048_v62  ;;  %v2047_v6 = vld [vmem:[%s2745_s11 + $0x180] sm:$0xff]  ;;  %v2049_v8 = vld [vmem:[%s2745_s11 + $0x190] sm:$0xff] }
  0x6a   : > { %2189 = vmatprep.subr.bf16.mxu1 %v2188_v47  ;;  %744 = vmatprep.mubr.f32.mxu0 %v2403_v0  ;;  %v2058_v2 = vld [vmem:[%s2745_s11 + $0x1d8] sm:$0xff]  ;;  %v2055_v7 = vld [vmem:[%s2745_s11 + $0x1c0] sm:$0xff]  ;;  %v2057_v10 = vld [vmem:[%s2745_s11 + $0x1d0] sm:$0xff] }
  0x6b   : > { %815 = vmatprep.mubr.f32.mxu1 %v2403_v0  ;;  %v2204_v9 = vpack.c.bf16 %v2058_v2, %v2050_v1  ;;  %v2036_v11 = vld [vmem:[%s2745_s11 + $0x128] sm:$0xff]  ;;  %v2038_v13 = vld [vmem:[%s2745_s11 + $0x138] sm:$0xff]  ;;  %v2198_v15 = vpack.c.bf16 %v2055_v7, %v2047_v6  ;;  %v2206_v16 = vpack.c.bf16 %v2057_v10, %v2049_v8  ;;  %v2035_v18 = vld [vmem:[%s2745_s11 + $0x120] sm:$0xff] }
  0x6c   : > { %2183 = vmatpush1.bf16.msra.mxu0 %v2182_v54  ;;  %v2044_v12 = vld [vmem:[%s2745_s11 + $0x168] sm:$0xff]  ;;  %v2046_v14 = vld [vmem:[%s2745_s11 + $0x178] sm:$0xff]  ;;  %v2043_v19 = vld [vmem:[%s2745_s11 + $0x160] sm:$0xff] }
  0x6d   : > { %2191 = vmatpush1.bf16.msra.mxu1 %v2190_v55  ;;  %2193 = vmatprep.subr.bf16.mxu0 %v2192_v56  ;;  %v2208_v17 = vpack.c.bf16 %v2044_v12, %v2036_v11  ;;  %v2037_v20 = vld [vmem:[%s2745_s11 + $0x130] sm:$0xff]  ;;  %v2216_v21 = vpack.c.bf16 %v2046_v14, %v2038_v13  ;;  %v2052_v23 = vld [vmem:[%s2745_s11 + $0x1a8] sm:$0xff]  ;;  %v2054_v25 = vld [vmem:[%s2745_s11 + $0x1b8] sm:$0xff]  ;;  %v2210_v28 = vpack.c.bf16 %v2043_v19, %v2035_v18 }
  0x6e   : > { %2201 = vmatprep.subr.bf16.mxu1 %v2200_v60  ;;  %v2045_v22 = vld [vmem:[%s2745_s11 + $0x170] sm:$0xff]  ;;  %v2060_v24 = vld [vmem:[%s2745_s11 + $0x1e8] sm:$0xff]  ;;  %v2062_v26 = vld [vmem:[%s2745_s11 + $0x1f8] sm:$0xff] }
  0x6f   : > { %2028 = vmatmul.mubr.msk.f32.vlgmr.msra.gmra.mrb[2].mxu0 %vm534_vm0, %v2768_v29  ;;  %v2030_v27 = vld [vmem:[%s3010_s0 + $0x4] sm:$0x7]  ;;  %v2212_v30 = vpack.c.bf16 %v2060_v24, %v2052_v23  ;;  %v2053_v33 = vld [vmem:[%s2745_s11 + $0x1b0] sm:$0xff]  ;;  %v2220_v34 = vpack.c.bf16 %v2062_v26, %v2054_v25  ;;  %v2069_v36 = vld [vmem:[%s2745_s11 + $0x208] sm:$0xff] }
  0x70   : > { %2029 = vmatmul.mubr.msk.f32.vlgmr.msra.gmra.mrb[2].mxu1 %vm534_vm0, %v2768_v29  ;;  %2195 = vmatpush1.bf16.msra.mxu0 %v2194_v3  ;;  %v2218_v29 = vpack.c.bf16 %v2045_v22, %v2037_v20  ;;  %v2051_v31 = vld [vmem:[%s2745_s11 + $0x1a0] sm:$0xff]  ;;  %v2061_v35 = vld [vmem:[%s2745_s11 + $0x1f0] sm:$0xff]  ;;  %v2077_v37 = vld [vmem:[%s2745_s11 + $0x248] sm:$0xff] }
  0x71   : > { %2203 = vmatpush1.bf16.msra.mxu1 %v2202_v4  ;;  %2197 = vmatprep.subr.bf16.mxu0 %v2196_v5  ;;  %v2059_v32 = vld [vmem:[%s2745_s11 + $0x1e0] sm:$0xff]  ;;  %v2071_v38 = vld [vmem:[%s2745_s11 + $0x218] sm:$0xff]  ;;  %v2222_v41 = vpack.c.bf16 %v2061_v35, %v2053_v33  ;;  %v2224_v42 = vpack.c.bf16 %v2077_v37, %v2069_v36  ;;  %v2070_v45 = vld [vmem:[%s2745_s11 + $0x210] sm:$0xff] }
  0x72   : > { %2205 = vmatprep.subr.bf16.mxu1 %v2204_v9  ;;  %924 = vmatprep.mubr.f32.mxu0 %v2403_v0  ;;  %v2079_v39 = vld [vmem:[%s2745_s11 + $0x258] sm:$0xff]  ;;  %v2214_v40 = vpack.c.bf16 %v2059_v32, %v2051_v31  ;;  %v2068_v43 = vld [vmem:[%s2745_s11 + $0x200] sm:$0xff]  ;;  %v2078_v47 = vld [vmem:[%s2745_s11 + $0x250] sm:$0xff] }
  0x73   : > { %995 = vmatprep.mubr.f32.mxu1 %v2403_v0  ;;  %v2076_v44 = vld [vmem:[%s2745_s11 + $0x240] sm:$0xff]  ;;  %v2232_v46 = vpack.c.bf16 %v2079_v39, %v2071_v38  ;;  %v2085_v48 = vld [vmem:[%s2745_s11 + $0x288] sm:$0xff]  ;;  %v2087_v50 = vld [vmem:[%s2745_s11 + $0x298] sm:$0xff]  ;;  %v2234_v53 = vpack.c.bf16 %v2078_v47, %v2070_v45 }
  0x74   : > { %2199 = vmatpush1.bf16.msra.mxu0 %v2198_v15  ;;  %v2093_v49 = vld [vmem:[%s2745_s11 + $0x2c8] sm:$0xff]  ;;  %v2095_v51 = vld [vmem:[%s2745_s11 + $0x2d8] sm:$0xff]  ;;  %v2226_v52 = vpack.c.bf16 %v2076_v44, %v2068_v43  ;;  %v2084_v55 = vld [vmem:[%s2745_s11 + $0x280] sm:$0xff] }
  0x75   : > { %2207 = vmatpush1.bf16.msra.mxu1 %v2206_v16  ;;  %2209 = vmatprep.subr.bf16.mxu0 %v2208_v17  ;;  %v2228_v54 = vpack.c.bf16 %v2093_v49, %v2085_v48  ;;  %v2092_v56 = vld [vmem:[%s2745_s11 + $0x2c0] sm:$0xff]  ;;  %v2086_v57 = vld [vmem:[%s2745_s11 + $0x290] sm:$0xff]  ;;  %v2236_v58 = vpack.c.bf16 %v2095_v51, %v2087_v50  ;;  %v2073_v60 = vld [vmem:[%s2745_s11 + $0x228] sm:$0xff] }
  0x76   : > { %2217 = vmatprep.subr.bf16.mxu1 %v2216_v21  ;;  %v2094_v59 = vld [vmem:[%s2745_s11 + $0x2d0] sm:$0xff]  ;;  %v2081_v61 = vld [vmem:[%s2745_s11 + $0x268] sm:$0xff]  ;;  %v2075_v62 = vld [vmem:[%s2745_s11 + $0x238] sm:$0xff]  ;;  %v2230_v1 = vpack.c.bf16 %v2092_v56, %v2084_v55 }
  0x77   : > { %2063 = vmatmul.mubr.msk.f32.vlgmr.msra.gmra.mrb[4].mxu0 %vm534_vm0, %v2030_v27  ;;  %v2083_v63 = vld [vmem:[%s2745_s11 + $0x278] sm:$0xff]  ;;  %v2238_v2 = vpack.c.bf16 %v2094_v59, %v2086_v57  ;;  %v2240_v3 = vpack.c.bf16 %v2081_v61, %v2073_v60  ;;  %v2072_v4 = vld [vmem:[%s2745_s11 + $0x220] sm:$0xff]  ;;  %v2074_v6 = vld [vmem:[%s2745_s11 + $0x230] sm:$0xff] }
  0x78   : > { %2064 = vmatmul.mubr.msk.f32.vlgmr.msra.gmra.mrb[4].mxu1 %vm534_vm0, %v2030_v27  ;;  %2211 = vmatpush1.bf16.msra.mxu0 %v2210_v28  ;;  %v2080_v5 = vld [vmem:[%s2745_s11 + $0x260] sm:$0xff]  ;;  %v2248_v7 = vpack.c.bf16 %v2083_v63, %v2075_v62  ;;  %v2082_v8 = vld [vmem:[%s2745_s11 + $0x270] sm:$0xff]  ;;  %v2089_v9 = vld [vmem:[%s2745_s11 + $0x2a8] sm:$0xff] }
  0x79   : > { %2219 = vmatpush1.bf16.msra.mxu1 %v2218_v29  ;;  %2213 = vmatprep.subr.bf16.mxu0 %v2212_v30  ;;  %v2097_v10 = vld [vmem:[%s2745_s11 + $0x2e8] sm:$0xff]  ;;  %v2091_v11 = vld [vmem:[%s2745_s11 + $0x2b8] sm:$0xff]  ;;  %v2242_v14 = vpack.c.bf16 %v2080_v5, %v2072_v4  ;;  %v2250_v15 = vpack.c.bf16 %v2082_v8, %v2074_v6  ;;  %v2088_v17 = vld [vmem:[%s2745_s11 + $0x2a0] sm:$0xff] }
  0x7a   : > { %2221 = vmatprep.subr.bf16.mxu1 %v2220_v34  ;;  %1066 = vmatprep.mubr.f32.mxu0 %v2403_v0  ;;  %v2099_v12 = vld [vmem:[%s2745_s11 + $0x2f8] sm:$0xff]  ;;  %v2067_v13 = vld [vmem:[%s3010_s0 + $0x8] sm:$0x7]  ;;  %v2244_v16 = vpack.c.bf16 %v2097_v10, %v2089_v9  ;;  %v2096_v18 = vld [vmem:[%s2745_s11 + $0x2e0] sm:$0xff] }
  0x7b   : > { %1137 = vmatprep.mubr.f32.mxu1 %v2403_v0  ;;  %v2090_v19 = vld [vmem:[%s2745_s11 + $0x2b0] sm:$0xff]  ;;  %v2252_v20 = vpack.c.bf16 %v2099_v12, %v2091_v11  ;;  %v2106_v22 = vld [vmem:[%s2745_s11 + $0x308] sm:$0xff]  ;;  %v2108_v24 = vld [vmem:[%s2745_s11 + $0x318] sm:$0xff]  ;;  %v2246_v26 = vpack.c.bf16 %v2096_v18, %v2088_v17 }
  0x7c   : > { %2215 = vmatpush1.bf16.msra.mxu0 %v2214_v40  ;;  %v2098_v21 = vld [vmem:[%s2745_s11 + $0x2f0] sm:$0xff]  ;;  %v2114_v23 = vld [vmem:[%s2745_s11 + $0x348] sm:$0xff]  ;;  %v2116_v25 = vld [vmem:[%s2745_s11 + $0x358] sm:$0xff] }
  0x7d   : > { %2223 = vmatpush1.bf16.msra.mxu1 %v2222_v41  ;;  %2225 = vmatprep.subr.bf16.mxu0 %v2224_v42  ;;  %v2256_v28 = vpack.c.bf16 %v2114_v23, %v2106_v22  ;;  %v2105_v29 = vld [vmem:[%s2745_s11 + $0x300] sm:$0xff]  ;;  %v2107_v31 = vld [vmem:[%s2745_s11 + $0x310] sm:$0xff]  ;;  %v2264_v32 = vpack.c.bf16 %v2116_v25, %v2108_v24  ;;  %v2122_v34 = vld [vmem:[%s2745_s11 + $0x388] sm:$0xff] }
  0x7e   : > { %2233 = vmatprep.subr.bf16.mxu1 %v2232_v46  ;;  %v2113_v30 = vld [vmem:[%s2745_s11 + $0x340] sm:$0xff]  ;;  %v2115_v33 = vld [vmem:[%s2745_s11 + $0x350] sm:$0xff]  ;;  %v2130_v35 = vld [vmem:[%s2745_s11 + $0x3c8] sm:$0xff] }
  0x7f   : > { %2065 = vmatmul.mubr.msk.f32.vlgmr.msra.gmra.mrb[6].mxu0 %vm534_vm0, %v2030_v27  ;;  %v2124_v36 = vld [vmem:[%s2745_s11 + $0x398] sm:$0xff]  ;;  %v2258_v38 = vpack.c.bf16 %v2113_v30, %v2105_v29  ;;  %v2266_v39 = vpack.c.bf16 %v2115_v33, %v2107_v31  ;;  %v2260_v40 = vpack.c.bf16 %v2130_v35, %v2122_v34  ;;  %v2121_v41 = vld [vmem:[%s2745_s11 + $0x380] sm:$0xff]  ;;  %v2123_v43 = vld [vmem:[%s2745_s11 + $0x390] sm:$0xff] }
  0x80   : > { %2066 = vmatmul.mubr.msk.f32.vlgmr.msra.gmra.mrb[6].mxu1 %vm534_vm0, %v2030_v27  ;;  %2227 = vmatpush1.bf16.msra.mxu0 %v2226_v52  ;;  %v2254_v27 = vpack.c.bf16 %v2098_v21, %v2090_v19  ;;  %v2132_v37 = vld [vmem:[%s2745_s11 + $0x3d8] sm:$0xff]  ;;  %v2129_v42 = vld [vmem:[%s2745_s11 + $0x3c0] sm:$0xff]  ;;  %v2131_v45 = vld [vmem:[%s2745_s11 + $0x3d0] sm:$0xff] }
  0x81   : > { %2235 = vmatpush1.bf16.msra.mxu1 %v2234_v53  ;;  %2229 = vmatprep.subr.bf16.mxu0 %v2228_v54  ;;  %v2268_v44 = vpack.c.bf16 %v2132_v37, %v2124_v36  ;;  %v2110_v46 = vld [vmem:[%s2745_s11 + $0x328] sm:$0xff]  ;;  %v2112_v48 = vld [vmem:[%s2745_s11 + $0x338] sm:$0xff]  ;;  %v2262_v50 = vpack.c.bf16 %v2129_v42, %v2121_v41  ;;  %v2270_v51 = vpack.c.bf16 %v2131_v45, %v2123_v43  ;;  %v2109_v53 = vld [vmem:[%s2745_s11 + $0x320] sm:$0xff] }
  0x82   : > { %2237 = vmatprep.subr.bf16.mxu1 %v2236_v58  ;;  %1246 = vmatprep.mubr.f32.mxu0 %v2403_v0  ;;  %v2118_v47 = vld [vmem:[%s2745_s11 + $0x368] sm:$0xff]  ;;  %v2120_v49 = vld [vmem:[%s2745_s11 + $0x378] sm:$0xff]  ;;  %v2117_v54 = vld [vmem:[%s2745_s11 + $0x360] sm:$0xff] }
  0x83   : > { %1317 = vmatprep.mubr.f32.mxu1 %v2403_v0  ;;  %v2272_v52 = vpack.c.bf16 %v2118_v47, %v2110_v46  ;;  %v2111_v55 = vld [vmem:[%s2745_s11 + $0x330] sm:$0xff]  ;;  %v2280_v56 = vpack.c.bf16 %v2120_v49, %v2112_v48  ;;  %v2126_v58 = vld [vmem:[%s2745_s11 + $0x3a8] sm:$0xff]  ;;  %v2128_v60 = vld [vmem:[%s2745_s11 + $0x3b8] sm:$0xff]  ;;  %v2274_v63 = vpack.c.bf16 %v2117_v54, %v2109_v53 }
  0x84   : > { %2231 = vmatpush1.bf16.msra.mxu0 %v2230_v1  ;;  %v2119_v57 = vld [vmem:[%s2745_s11 + $0x370] sm:$0xff]  ;;  %v2134_v59 = vld [vmem:[%s2745_s11 + $0x3e8] sm:$0xff]  ;;  %v2136_v61 = vld [vmem:[%s2745_s11 + $0x3f8] sm:$0xff] }
  0x85   : > { %2239 = vmatpush1.bf16.msra.mxu1 %v2238_v2  ;;  %2241 = vmatprep.subr.bf16.mxu0 %v2240_v3  ;;  %v2104_v62 = vld [vmem:[%s3010_s0 + $0xc] sm:$0x7]  ;;  %v2282_v1 = vpack.c.bf16 %v2119_v57, %v2111_v55  ;;  %v2276_v2 = vpack.c.bf16 %v2134_v59, %v2126_v58  ;;  %v2125_v3 = vld [vmem:[%s2745_s11 + $0x3a0] sm:$0xff]  ;;  %v2284_v5 = vpack.c.bf16 %v2136_v61, %v2128_v60  ;;  %v2127_v6 = vld [vmem:[%s2745_s11 + $0x3b0] sm:$0xff] }
  0x86   : > { %2249 = vmatprep.subr.bf16.mxu1 %v2248_v7  ;;  %v2133_v4 = vld [vmem:[%s2745_s11 + $0x3e0] sm:$0xff]  ;;  %v2135_v7 = vld [vmem:[%s2745_s11 + $0x3f0] sm:$0xff] }
  0x87   : > { %2100 = vmatmul.mubr.msk.f32.vlgmr.msra.gmra.mrb[8].mxu0 %vm534_vm0, %v2067_v13  ;;  %v2278_v8 = vpack.c.bf16 %v2133_v4, %v2125_v3  ;;  %v2286_v9 = vpack.c.bf16 %v2135_v7, %v2127_v6 }
  0x88   : > { %2101 = vmatmul.mubr.msk.f32.vlgmr.msra.gmra.mrb[8].mxu1 %vm534_vm0, %v2067_v13  ;;  %2243 = vmatpush1.bf16.msra.mxu0 %v2242_v14 }
  0x89   : > { %2251 = vmatpush1.bf16.msra.mxu1 %v2250_v15  ;;  %2245 = vmatprep.subr.bf16.mxu0 %v2244_v16 }
  0x8a   : > { %2253 = vmatprep.subr.bf16.mxu1 %v2252_v20  ;;  %1388 = vmatprep.mubr.f32.mxu0 %v2403_v0 }
  0x8b   : > { %1459 = vmatprep.mubr.f32.mxu1 %v2403_v0 }
  0x8c   : > { %2247 = vmatpush1.bf16.msra.mxu0 %v2246_v26 }
  0x8d   : > { %2255 = vmatpush1.bf16.msra.mxu1 %v2254_v27  ;;  %2257 = vmatprep.subr.bf16.mxu0 %v2256_v28 }
  0x8e   : > { %2265 = vmatprep.subr.bf16.mxu1 %v2264_v32 }
  0x8f   : > { %2102 = vmatmul.mubr.msk.f32.vlgmr.msra.gmra.mrb[10].mxu0 %vm534_vm0, %v2067_v13 }
  0x90   : > { %2103 = vmatmul.mubr.msk.f32.vlgmr.msra.gmra.mrb[10].mxu1 %vm534_vm0, %v2067_v13  ;;  %2259 = vmatpush1.bf16.msra.mxu0 %v2258_v38 }
  0x91   : > { %2267 = vmatpush1.bf16.msra.mxu1 %v2266_v39  ;;  %2261 = vmatprep.subr.bf16.mxu0 %v2260_v40 }
  0x92   : > { %2269 = vmatprep.subr.bf16.mxu1 %v2268_v44  ;;  %1568 = vmatprep.mubr.f32.mxu0 %v2403_v0 }
  0x93   : > { %1639 = vmatprep.mubr.f32.mxu1 %v2403_v0 }
  0x94   : > { %2263 = vmatpush1.bf16.msra.mxu0 %v2262_v50 }
  0x95   : > { %2271 = vmatpush1.bf16.msra.mxu1 %v2270_v51  ;;  %2273 = vmatprep.subr.bf16.mxu0 %v2272_v52 }
  0x96   : > { %2281 = vmatprep.subr.bf16.mxu1 %v2280_v56 }
  0x97   : > { %2137 = vmatmul.mubr.msk.f32.vlgmr.msra.gmra.mrb[12].mxu0 %vm534_vm0, %v2104_v62 }
  0x98   : > { %2138 = vmatmul.mubr.msk.f32.vlgmr.msra.gmra.mrb[12].mxu1 %vm534_vm0, %v2104_v62  ;;  %2275 = vmatpush1.bf16.msra.mxu0 %v2274_v63 }
  0x99   : > { %2283 = vmatpush1.bf16.msra.mxu1 %v2282_v1  ;;  %2277 = vmatprep.subr.bf16.mxu0 %v2276_v2 }
  0x9a   : > { %2285 = vmatprep.subr.bf16.mxu1 %v2284_v5  ;;  %1710 = vmatprep.mubr.f32.mxu0 %v2403_v0 }
  0x9b   : > { %1781 = vmatprep.mubr.f32.mxu1 %v2403_v0 }
  0x9c   : > { %2279 = vmatpush1.bf16.msra.mxu0 %v2278_v8 }
  0x9d   : > { %2287 = vmatpush1.bf16.msra.mxu1 %v2286_v9 }
  0x9f   : > { %2139 = vmatmul.mubr.msk.f32.vlgmr.msra.gmra.mrb[14].mxu0 %vm534_vm0, %v2104_v62 }
  0xa0   : > { %2140 = vmatmul.mubr.msk.f32.vlgmr.msra.gmra.mrb[14].mxu1 %vm534_vm0, %v2104_v62 }
  0xda   : > { %v2923_v10 = vpop.permute.xlu0 %531 }
 0x13a   : > { %v604_v11 = vpop.f32.mrb[0].mxu0 }
 0x13b   : > { %v675_v12 = vpop.f32.mrb[0].mxu1  ;;  %v605_v13 = vadd.f32 %v604_v11, %v2923_v10  ;;  %v606_v14 = vpop.f32.mrb[1].mxu0 }
 0x13c   : > { %v607_v15 = vadd.f32 %v606_v14, %v2923_v10  ;;  %v676_v16 = vadd.f32 %v675_v12, %v2923_v10  ;;  %v677_v17 = vpop.f32.mrb[1].mxu1 }
 0x13d   : > { %2315 = vtanh.f32 %v605_v13  ;;  %v678_v0 = vadd.f32 %v677_v17, %v2923_v10 }
 0x13e   : > { %2317 = vtanh.f32 %v607_v15 }
 0x13f   : > { %2319 = vtanh.f32 %v676_v16 }
 0x140   : > { %2321 = vtanh.f32 %v678_v0 }
 0x142   : > { %v746_v18 = vpop.f32.mrb[2].mxu0 }
 0x143   : > { %v747_v19 = vadd.f32 %v746_v18, %v2923_v10  ;;  %v817_v20 = vpop.f32.mrb[2].mxu1  ;;  %v748_v21 = vpop.f32.mrb[3].mxu0 }
 0x144   : > { %v818_v22 = vadd.f32 %v817_v20, %v2923_v10  ;;  %v749_v23 = vadd.f32 %v748_v21, %v2923_v10  ;;  %v819_v24 = vpop.f32.mrb[3].mxu1 }
 0x145   : > { %2323 = vtanh.f32 %v747_v19  ;;  %v820_v25 = vadd.f32 %v819_v24, %v2923_v10 }
 0x146   : > { %2325 = vtanh.f32 %v818_v22 }
 0x147   : > { %v2316_v26 = vpop.eup %2315  ;;  %2327 = vtanh.f32 %v749_v23 }
 0x148   : > { %v2318_v27 = vpop.eup %2317  ;;  %2329 = vtanh.f32 %v820_v25 }
 0x149   : > { %v2320_v28 = vpop.eup %2319  ;;  %v1804_v29 = vcombine.low %v2316_v26, %v2318_v27 }
 0x14a   : > { %v2322_v30 = vpop.eup %2321  ;;  %v926_v31 = vpop.f32.mrb[4].mxu0 }
 0x14b   : > { %1812 = vst [vmem:[%s2935_s26] sm:$0x77] %v1804_v29  ;;  %v1805_v32 = vcombine.low %v2320_v28, %v2322_v30  ;;  %v927_v33 = vadd.f32 %v926_v31, %v2923_v10  ;;  %v997_v34 = vpop.f32.mrb[4].mxu1  ;;  %v928_v35 = vpop.f32.mrb[5].mxu0 }
 0x14c   : > { %v998_v36 = vadd.f32 %v997_v34, %v2923_v10  ;;  %v929_v37 = vadd.f32 %v928_v35, %v2923_v10  ;;  %v999_v38 = vpop.f32.mrb[5].mxu1 }
 0x14d   : > { %1813 = vst [vmem:[%s2935_s26 + $0x8] sm:$0x77] %v1805_v32  ;;  %2331 = vtanh.f32 %v927_v33  ;;  %v1000_v39 = vadd.f32 %v999_v38, %v2923_v10 }
 0x14e   : > { %2333 = vtanh.f32 %v998_v36 }
 0x14f   : > { %v2324_v40 = vpop.eup %2323  ;;  %2335 = vtanh.f32 %v929_v37 }
 0x150   : > { %v2326_v41 = vpop.eup %2325  ;;  %2337 = vtanh.f32 %v1000_v39 }
 0x151   : > { %v2328_v42 = vpop.eup %2327 }
 0x152   : > { %v2330_v43 = vpop.eup %2329  ;;  %v1806_v44 = vcombine.low %v2324_v40, %v2328_v42  ;;  %v1068_v45 = vpop.f32.mrb[6].mxu0 }
 0x153   : > { %v1807_v46 = vcombine.low %v2326_v41, %v2330_v43  ;;  %v1069_v47 = vadd.f32 %v1068_v45, %v2923_v10  ;;  %v1139_v48 = vpop.f32.mrb[6].mxu1  ;;  %v1070_v49 = vpop.f32.mrb[7].mxu0 }
 0x154   : > { %1814 = vst [vmem:[%s2935_s26 + $0x10] sm:$0x77] %v1806_v44  ;;  %v1140_v50 = vadd.f32 %v1139_v48, %v2923_v10  ;;  %v1071_v51 = vadd.f32 %v1070_v49, %v2923_v10  ;;  %v1141_v52 = vpop.f32.mrb[7].mxu1 }
 0x155   : > { %1815 = vst [vmem:[%s2935_s26 + $0x18] sm:$0x77] %v1807_v46  ;;  %2339 = vtanh.f32 %v1069_v47  ;;  %v1142_v53 = vadd.f32 %v1141_v52, %v2923_v10 }
 0x156   : > { %2341 = vtanh.f32 %v1140_v50 }
 0x157   : > { %v2332_v54 = vpop.eup %2331  ;;  %2343 = vtanh.f32 %v1071_v51 }
 0x158   : > { %v2334_v55 = vpop.eup %2333  ;;  %2345 = vtanh.f32 %v1142_v53 }
 0x159   : > { %v2336_v56 = vpop.eup %2335 }
 0x15a   : > { %v2338_v57 = vpop.eup %2337  ;;  %v1832_v58 = vcombine.low %v2332_v54, %v2336_v56  ;;  %v1248_v59 = vpop.f32.mrb[8].mxu0 }
 0x15b   : > { %v1833_v60 = vcombine.low %v2334_v55, %v2338_v57  ;;  %v1249_v61 = vadd.f32 %v1248_v59, %v2923_v10  ;;  %v1319_v62 = vpop.f32.mrb[8].mxu1  ;;  %v1250_v63 = vpop.f32.mrb[9].mxu0  ;;  %v1927_v59 = vld [vmem:[%s2935_s26 + $0x8] sm:$0xff] (%p2465_p5) }
 0x15c   : > { %2141 = vst [vmem:[%s2935_s26 + $0x20] sm:$0x77] %v1832_v58  ;;  %v1320_v1 = vadd.f32 %v1319_v62, %v2923_v10  ;;  %v1251_v2 = vadd.f32 %v1250_v63, %v2923_v10  ;;  %v1321_v3 = vpop.f32.mrb[9].mxu1  ;;  %1928 = vst [vmem:[%s1912_s24 + $0x8] sm:$0xff] (%p2465_p5), %v1927_v59 }
 0x15d   : > { %2142 = vst [vmem:[%s2935_s26 + $0x28] sm:$0x77] %v1833_v60  ;;  %2347 = vtanh.f32 %v1249_v61  ;;  %v1322_v4 = vadd.f32 %v1321_v3, %v2923_v10  ;;  %v1929_v60 = vld [vmem:[%s2935_s26 + $0x10] sm:$0xff] (%p2465_p5)  ;;  %v1931_v61 = vld [vmem:[%s2935_s26 + $0x18] sm:$0xff] (%p2465_p5) }
 0x15e   : > { %2349 = vtanh.f32 %v1320_v1  ;;  %1930 = vst [vmem:[%s1912_s24 + $0x10] sm:$0xff] (%p2465_p5), %v1929_v60  ;;  %1932 = vst [vmem:[%s1912_s24 + $0x18] sm:$0xff] (%p2465_p5), %v1931_v61 }
 0x15f   : > { %v2340_v5 = vpop.eup %2339  ;;  %2351 = vtanh.f32 %v1251_v2 }
 0x160   : > { %v2342_v6 = vpop.eup %2341  ;;  %2353 = vtanh.f32 %v1322_v4 }
 0x161   : > { %v2344_v7 = vpop.eup %2343 }
 0x162   : > { %v2346_v8 = vpop.eup %2345  ;;  %v1834_v9 = vcombine.low %v2340_v5, %v2344_v7  ;;  %v1390_v11 = vpop.f32.mrb[10].mxu0 }
 0x163   : > { %v1835_v12 = vcombine.low %v2342_v6, %v2346_v8  ;;  %v1391_v13 = vadd.f32 %v1390_v11, %v2923_v10  ;;  %v1461_v14 = vpop.f32.mrb[10].mxu1  ;;  %v1392_v15 = vpop.f32.mrb[11].mxu0  ;;  %v1933_v62 = vld [vmem:[%s2935_s26 + $0x20] sm:$0xff] (%p2465_p5) }
 0x164   : > { %2143 = vst [vmem:[%s2935_s26 + $0x30] sm:$0x77] %v1834_v9  ;;  %v1462_v16 = vadd.f32 %v1461_v14, %v2923_v10  ;;  %v1393_v17 = vadd.f32 %v1392_v15, %v2923_v10  ;;  %v1463_v0 = vpop.f32.mrb[11].mxu1  ;;  %v1935_v63 = vld [vmem:[%s2935_s26 + $0x28] sm:$0xff] (%p2465_p5)  ;;  %1934 = vst [vmem:[%s1912_s24 + $0x40] sm:$0xff] (%p2465_p5), %v1933_v62 }
 0x165   : > { %2144 = vst [vmem:[%s2935_s26 + $0x38] sm:$0x77] %v1835_v12  ;;  %2355 = vtanh.f32 %v1391_v13  ;;  %v1464_v18 = vadd.f32 %v1463_v0, %v2923_v10  ;;  %1936 = vst [vmem:[%s1912_s24 + $0x48] sm:$0xff] (%p2465_p5), %v1935_v63 }
 0x166   : > { %2357 = vtanh.f32 %v1462_v16 }
 0x167   : > { %v2348_v19 = vpop.eup %2347  ;;  %2359 = vtanh.f32 %v1393_v17 }
 0x168   : > { %v2350_v20 = vpop.eup %2349  ;;  %2361 = vtanh.f32 %v1464_v18 }
 0x169   : > { %v2352_v21 = vpop.eup %2351 }
 0x16a   : > { %v2354_v22 = vpop.eup %2353  ;;  %v1861_v23 = vcombine.low %v2348_v19, %v2352_v21  ;;  %v1570_v24 = vpop.f32.mrb[12].mxu0 }
 0x16b   : > { %v1862_v25 = vcombine.low %v2350_v20, %v2354_v22  ;;  %v1571_v26 = vadd.f32 %v1570_v24, %v2923_v10  ;;  %v1641_v27 = vpop.f32.mrb[12].mxu1  ;;  %v1572_v28 = vpop.f32.mrb[13].mxu0  ;;  %v1937_v1 = vld [vmem:[%s2935_s26 + $0x30] sm:$0xff] (%p2465_p5) }
 0x16c   : > { %2145 = vst [vmem:[%s2935_s26 + $0x40] sm:$0x77] %v1861_v23  ;;  %v1642_v29 = vadd.f32 %v1641_v27, %v2923_v10  ;;  %v1573_v30 = vadd.f32 %v1572_v28, %v2923_v10  ;;  %v1643_v31 = vpop.f32.mrb[13].mxu1  ;;  %v1939_v2 = vld [vmem:[%s2935_s26 + $0x38] sm:$0xff] (%p2465_p5)  ;;  %1938 = vst [vmem:[%s1912_s24 + $0x50] sm:$0xff] (%p2465_p5), %v1937_v1 }
 0x16d   : > { %2146 = vst [vmem:[%s2935_s26 + $0x48] sm:$0x77] %v1862_v25  ;;  %2363 = vtanh.f32 %v1571_v26  ;;  %v1644_v32 = vadd.f32 %v1643_v31, %v2923_v10  ;;  %1940 = vst [vmem:[%s1912_s24 + $0x58] sm:$0xff] (%p2465_p5), %v1939_v2 }
 0x16e   : > { %2365 = vtanh.f32 %v1642_v29 }
 0x16f   : > { %v2356_v33 = vpop.eup %2355  ;;  %2367 = vtanh.f32 %v1573_v30 }
 0x170   : > { %v2358_v34 = vpop.eup %2357  ;;  %2369 = vtanh.f32 %v1644_v32 }
 0x171   : > { %v2360_v35 = vpop.eup %2359 }
 0x172   : > { %v2362_v36 = vpop.eup %2361  ;;  %v1863_v37 = vcombine.low %v2356_v33, %v2360_v35  ;;  %v1712_v38 = vpop.f32.mrb[14].mxu0 }
 0x173   : > { %v1864_v39 = vcombine.low %v2358_v34, %v2362_v36  ;;  %v1713_v40 = vadd.f32 %v1712_v38, %v2923_v10  ;;  %v1783_v41 = vpop.f32.mrb[14].mxu1  ;;  %v1714_v42 = vpop.f32.mrb[15].mxu0  ;;  %v1941_v3 = vld [vmem:[%s2935_s26 + $0x40] sm:$0xff] (%p2465_p5) }
 0x174   : > { %2147 = vst [vmem:[%s2935_s26 + $0x50] sm:$0x77] %v1863_v37  ;;  %v1784_v43 = vadd.f32 %v1783_v41, %v2923_v10  ;;  %v1715_v44 = vadd.f32 %v1714_v42, %v2923_v10  ;;  %v1785_v45 = vpop.f32.mrb[15].mxu1  ;;  %1942 = vst [vmem:[%s1912_s24 + $0x80] sm:$0xff] (%p2465_p5), %v1941_v3  ;;  %v1943_v4 = vld [vmem:[%s2935_s26 + $0x48] sm:$0xff] (%p2465_p5) }
 0x175   : > { %2148 = vst [vmem:[%s2935_s26 + $0x58] sm:$0x77] %v1864_v39  ;;  %2371 = vtanh.f32 %v1713_v40  ;;  %v1786_v46 = vadd.f32 %v1785_v45, %v2923_v10  ;;  %v1925_v10 = vld [vmem:[%s2935_s26] sm:$0xff] (%p2465_p5)  ;;  %1944 = vst [vmem:[%s1912_s24 + $0x88] sm:$0xff] (%p2465_p5), %v1943_v4 }
 0x176   : > { %2373 = vtanh.f32 %v1784_v43  ;;  %1926 = vst [vmem:[%s1912_s24] sm:$0xff] (%p2465_p5), %v1925_v10 }
 0x177   : > { %v2364_v47 = vpop.eup %2363  ;;  %2375 = vtanh.f32 %v1715_v44 }
 0x178   : > { %v2366_v48 = vpop.eup %2365  ;;  %2377 = vtanh.f32 %v1786_v46 }
 0x179   : > { %v2368_v49 = vpop.eup %2367 }
 0x17a   : > { %v2370_v50 = vpop.eup %2369  ;;  %v1890_v51 = vcombine.low %v2364_v47, %v2368_v49 }
 0x17b   : > { %v1891_v52 = vcombine.low %v2366_v48, %v2370_v50  ;;  %v1945_v5 = vld [vmem:[%s2935_s26 + $0x50] sm:$0xff] (%p2465_p5) }
 0x17c   : > { %2149 = vst [vmem:[%s2935_s26 + $0x60] sm:$0x77] %v1890_v51  ;;  %v1947_v6 = vld [vmem:[%s2935_s26 + $0x58] sm:$0xff] (%p2465_p5)  ;;  %1946 = vst [vmem:[%s1912_s24 + $0x90] sm:$0xff] (%p2465_p5), %v1945_v5 }
 0x17d   : > { %2150 = vst [vmem:[%s2935_s26 + $0x68] sm:$0x77] %v1891_v52  ;;  %1948 = vst [vmem:[%s1912_s24 + $0x98] sm:$0xff] (%p2465_p5), %v1947_v6 }
 0x17f   : > { %v2372_v53 = vpop.eup %2371  ;;  %1909 = sbr.rel (!%p2465_p5) target bundleno = 398 (0x18e), region = 67 }
 0x180   : > { %v2374_v54 = vpop.eup %2373 }
 0x181   : > { %v2376_v55 = vpop.eup %2375 }
 0x182   : > { %v2378_v56 = vpop.eup %2377  ;;  %v1892_v57 = vcombine.low %v2372_v53, %v2376_v55 }
 0x183   : > { %v1893_v58 = vcombine.low %v2374_v54, %v2378_v56  ;;  %v1949_v7 = vld [vmem:[%s2935_s26 + $0x60] sm:$0xff] (%p2465_p5) }
 0x184   : > { %2151 = vst [vmem:[%s2935_s26 + $0x70] sm:$0x77] %v1892_v57  ;;  %v1951_v8 = vld [vmem:[%s2935_s26 + $0x68] sm:$0xff] (%p2465_p5)  ;;  %1950 = vst [vmem:[%s1912_s24 + $0xc0] sm:$0xff] (%p2465_p5), %v1949_v7 }
 0x185   : > { %2152 = vst [vmem:[%s2935_s26 + $0x78] sm:$0x77] %v1893_v58  ;;  %1952 = vst [vmem:[%s1912_s24 + $0xc8] sm:$0xff] (%p2465_p5), %v1951_v8 }
 0x18b   : > { %v1953_v9 = vld [vmem:[%s2935_s26 + $0x70] sm:$0xff] }
 0x18c   : > { %1954 = vst [vmem:[%s1912_s24 + $0xd0] sm:$0xff] %v1953_v9  ;;  %v1955_v11 = vld [vmem:[%s2935_s26 + $0x78] sm:$0xff] }
 0x18d   : > { %1956 = vst [vmem:[%s1912_s24 + $0xd8] sm:$0xff] %v1955_v11 }
 0x18e PF: > { %p12_p10 = scmp.ge.s32.totalorder %s2452_s4, 4   ;;  %s3017_s18 = smov %s2397_s19 }
 0x18f   : > { %s3018_s19 = smov %s2463_s23  ;;  %s3019_s20 = smov %s2452_s4 }
 0x190   :  { %14 = sbr.rel (!%p12_p10) target bundleno = 2 (0x2), region = 130 }

</bundles_post_ra>
